<compile_context>
chip_gen: v7x
topology: tpu7x:2x2x1
jax: 0.10.0
libtpu: 0.0.40
codegen_flags: <defaults>
</compile_context>

<pallas_src>
import functools

import jax
import jax.numpy as jnp
from jax.experimental import pallas as pl
from jax.experimental.pallas import tpu as pltpu


def _round_up(x, m):
    return (x + m - 1) // m * m


# ----------------------------------------------------------------------------
# Pallas kernel: out = relu_opt(A @ W + bias), accumulating directly into o_ref
# ----------------------------------------------------------------------------
def _gemv_kernel(a_ref, w_ref, b_ref, o_ref, *, apply_relu):
    k = pl.program_id(1)

    @pl.when(k == 0)
    def _():
        o_ref[...] = jnp.zeros_like(o_ref)

    # bf16 x bf16 -> f32 accumulate on the MXU.
    o_ref[...] += jnp.dot(a_ref[...], w_ref[...],
                          preferred_element_type=jnp.float32)

    @pl.when(k == pl.num_programs(1) - 1)
    def _():
        r = o_ref[...] + b_ref[...]          # bias broadcast over rows
        if apply_relu:
            r = jnp.maximum(r, 0.0)
        o_ref[...] = r


# Per-buffer weight-panel budget (Pallas double-buffers it).  6 MiB keeps the total
# well under v5e's 16 MiB default scoped VMEM; for this model tk is always the full K.
_MAX_PANEL_BYTES = 6 * 1024 * 1024


def pallas_linear(a, w_p, b_p, out_dim, *, relu):
    """relu_opt(a @ w_p + b_p)[:, :out_dim].

    a:   (M, K) float activations (small; padded & cast to bf16 here).
    w_p: (Kp, Np) bf16 weight, already pre-transposed / padded at prep time.
    b_p: (1, Np) f32 bias, already padded.
    """
    M, K = a.shape
    Kp, Np = w_p.shape
    assert K <= Kp

    # Pad rows to a bf16-friendly sublane multiple (cheap: at most 16 rows).
    Mp = _round_up(max(M, 16), 16)
    a_p = jnp.zeros((Mp, Kp), jnp.bfloat16).at[:M, :K].set(a.astype(jnp.bfloat16))

    # Lane-dense, 256-aligned N tiles where possible (v6e/v7x MXU is 2x256^2);
    # keep Np // tn >= 2 on the big layers so both v7x TensorCores get work.
    if Np % 512 == 0:
        tn = 512
    elif Np % 256 == 0:
        tn = 256
    else:
        tn = 128

    # Full-K weight panel when it fits the portable VMEM budget; otherwise halve
    # (o_ref then acts as the accumulator across the k axis).
    tk = Kp
    while tk * tn * 2 > _MAX_PANEL_BYTES and tk % 256 == 0:
        tk //= 2
    assert Kp % tk == 0

    grid = (Np // tn, Kp // tk)
    kernel = functools.partial(_gemv_kernel, apply_relu=relu)

    out = pl.pallas_call(
        kernel,
        out_shape=jax.ShapeDtypeStruct((Mp, Np), jnp.float32),
        grid_spec=pltpu.PrefetchScalarGridSpec(
            num_scalar_prefetch=0,
            grid=grid,
            in_specs=[
                pl.BlockSpec((Mp, tk), lambda n, k: (0, k)),   # A (tiny; block idx constant -> revisited)
                pl.BlockSpec((tk, tn), lambda n, k: (k, n)),   # W panel (the streamed operand)
                pl.BlockSpec((1, tn), lambda n, k: (0, n)),    # bias
            ],
            out_specs=pl.BlockSpec((Mp, tn), lambda n, k: (0, n)),
        ),
        compiler_params=pltpu.CompilerParams(
            dimension_semantics=("parallel", "arbitrary")),
    )(a_p, w_p, b_p)
    return out[:M, :out_dim]


# ----------------------------------------------------------------------------
# Tiny ops left to plain XLA per the performance review (Pallas launch overhead
# exceeds their compute at these sizes).
# ----------------------------------------------------------------------------
def conv1d_relu(x, w, *, padding):
    # x: (B, C, L), w: (Cout, Cin, k); PyTorch Conv1d (cross-correlation, bias=False).
    y = jax.lax.conv_general_dilated(
        x, w, window_strides=(1,), padding=[(padding, padding)],
        dimension_numbers=("NCH", "OIH", "NCH"))
    return jnp.maximum(y, 0.0)


def avg_pool1d(x, k, s, p):
    # PyTorch AvgPool1d defaults: count_include_pad=True, ceil_mode=False.
    xp = jnp.pad(x, ((0, 0), (0, 0), (p, p)))
    Lp = xp.shape[-1]
    Lout = (Lp - k) // s + 1
    wins = jnp.stack(
        [xp[:, :, d:d + (Lout - 1) * s + 1:s] for d in range(k)], axis=-1)
    return wins.mean(axis=-1)


# ----------------------------------------------------------------------------
# Parameters (deterministic synthetic init matching the module's shapes)
# ----------------------------------------------------------------------------
def init_params(key, input_dim, output_dim, in_channel):
    to_linear = 64 * (2 + 3 + 2)                    # 448, hard-coded in the module
    flat_dim = input_dim * in_channel

    def u(k, shape, fan_in):
        bound = 1.0 / (fan_in ** 0.5)
        return jax.random.uniform(k, shape, jnp.float32, -bound, bound)

    ks = jax.random.split(key, 16)
    raw = {}
    raw["conv1_w"] = u(ks[0], (32, in_channel, 1), in_channel * 1)
    raw["conv2_w"] = u(ks[1], (32, in_channel, 5), in_channel * 5)
    raw["conv3_w"] = u(ks[2], (32, in_channel, 3), in_channel * 3)
    raw["conv11_w"] = u(ks[3], (64, 32, 3), 32 * 3)
    raw["conv22_w"] = u(ks[4], (64, 32, 3), 32 * 3)
    raw["conv33_w"] = u(ks[5], (64, 32, 3), 32 * 3)
    raw["flatten_w"] = u(ks[6], (flat_dim, flat_dim), flat_dim)      # torch layout (out, in)
    raw["flatten_b"] = u(ks[7], (flat_dim,), flat_dim)
    raw["fc1_w"] = u(ks[8], (5120, flat_dim + to_linear), flat_dim + to_linear)
    raw["fc1_b"] = u(ks[9], (5120,), flat_dim + to_linear)
    raw["fc2_w"] = u(ks[10], (2560, 5120), 5120)
    raw["fc2_b"] = u(ks[11], (2560,), 5120)
    raw["fc3_w"] = u(ks[12], (1280, 2560), 2560)
    raw["fc3_b"] = u(ks[13], (1280,), 2560)
    raw["fc4_w"] = u(ks[14], (output_dim, 1280), 1280)
    raw["fc4_b"] = u(ks[15], (output_dim,), 1280)
    return raw


def prepare_params(raw):
    """One-time prep (outside the jitted forward): pre-transpose the FC weights to
    (K, N), pad to 128-multiples, and cast to bf16 so no transpose / pad copy ever
    happens at forward time.  Convs and the tiny flatten Linear stay f32."""
    def fc(w, b):                                   # w: torch layout (N_out, K_in)
        n, k = w.shape
        kp, np_ = _round_up(k, 128), _round_up(n, 128)
        w_p = jnp.zeros((kp, np_), jnp.bfloat16).at[:k, :n].set(w.T.astype(jnp.bfloat16))
        b_p = jnp.zeros((1, np_), jnp.float32).at[0, :n].set(b.astype(jnp.float32))
        return {"w": w_p, "b": b_p}

    p = {k: v for k, v in raw.items() if k.startswith("conv")}
    p["flatten_wT"] = raw["flatten_w"].T            # (K, N) f32, stays in XLA (40x40)
    p["flatten_b"] = raw["flatten_b"]
    p["fc1"] = fc(raw["fc1_w"], raw["fc1_b"])
    p["fc2"] = fc(raw["fc2_w"], raw["fc2_b"])
    p["fc3"] = fc(raw["fc3_w"], raw["fc3_b"])
    p["fc4"] = fc(raw["fc4_w"], raw["fc4_b"])
    return p


# ----------------------------------------------------------------------------
# Forward pass (mirrors OriSigCNN.forward; Dropout is defined but never applied there)
# ----------------------------------------------------------------------------
@functools.partial(jax.jit, static_argnames=("output_dim",))
def ori_sig_cnn_forward(x, params, *, output_dim):
    B = x.shape[0]
    x_ori = x
    _x = x.reshape(B, -1)                                        # (B, C*L)

    x1 = conv1d_relu(x_ori, params["conv1_w"], padding=0)        # k=1
    x2 = conv1d_relu(x_ori, params["conv2_w"], padding=2)        # k=5
    x3 = conv1d_relu(x_ori, params["conv3_w"], padding=1)        # k=3

    x1 = avg_pool1d(x1, 2, 2, 0)
    x2 = avg_pool1d(x2, 3, 2, 1)
    x3 = avg_pool1d(x3, 4, 2, 1)

    x1 = conv1d_relu(x1, params["conv11_w"], padding=1)
    x2 = conv1d_relu(x2, params["conv22_w"], padding=1)
    x3 = conv1d_relu(x3, params["conv33_w"], padding=1)

    x1 = avg_pool1d(x1, 2, 2, 0)
    x2 = avg_pool1d(x2, 3, 2, 1)
    x3 = avg_pool1d(x3, 4, 2, 1)

    x1 = x1.reshape(B, -1)
    x2 = x2.reshape(B, -1)
    x3 = x3.reshape(B, -1)

    # 40x40 Linear: left in XLA (a Pallas call would cost more than it computes).
    _x = _x @ params["flatten_wT"] + params["flatten_b"]

    h = jnp.concatenate([_x, x1, x2, x3], axis=1)                # (B, 488)
    h = pallas_linear(h, params["fc1"]["w"], params["fc1"]["b"], 5120, relu=True)
    h = pallas_linear(h, params["fc2"]["w"], params["fc2"]["b"], 2560, relu=True)
    h = pallas_linear(h, params["fc3"]["w"], params["fc3"]["b"], 1280, relu=True)
    out = pallas_linear(h, params["fc4"]["w"], params["fc4"]["b"], output_dim, relu=False)
    return out


if __name__ == "__main__":
    # _to_linear = 448 hard-coded in the module requires input_dim = 10.
    batch, in_channel, input_dim, output_dim = 2, 4, 10, 5

    key = jax.random.PRNGKey(0)
    kx, kp = jax.random.split(key)
    x = jax.random.normal(kx, (batch, in_channel, input_dim), jnp.float32)
    params = prepare_params(init_params(kp, input_dim, output_dim, in_channel))

    out = ori_sig_cnn_forward(x, params, output_dim=output_dim)
    out = jax.block_until_ready(out)
    assert out.shape == (batch, output_dim), out.shape
    print("KERNEL_OK")
</pallas_src>

<mosaic_0001>
module attributes {stable_mosaic.version = 11 : i64} {
  func.func @_gemv_kernel(%arg0: i32, %arg1: i32, %arg2: memref<16x512xbf16, #tpu.memory_space<vmem>>, %arg3: memref<512x512xbf16, #tpu.memory_space<vmem>>, %arg4: memref<1x512xf32, #tpu.memory_space<vmem>>, %arg5: memref<16x512xf32, #tpu.memory_space<vmem>>) attributes {dimension_semantics = [#tpu.dimension_semantics<parallel>, #tpu.dimension_semantics<arbitrary>], iteration_bounds = array<i64: 10, 1>, scalar_prefetch = 0 : i64, scratch_operands = 0 : i64, tpu.core_type = #tpu.core_type<tc>, window_params = [{transform_indices = @transform_0, window_bounds = array<i64: 16, 512>}, {transform_indices = @transform_1, window_bounds = array<i64: 512, 512>}, {transform_indices = @transform_2, window_bounds = array<i64: 1, 512>}, {transform_indices = @transform_3, window_bounds = array<i64: 16, 512>}]} {
    %c0_i32 = arith.constant 0 : i32
    %0 = arith.cmpi eq, %arg1, %c0_i32 : i32
    %1 = arith.extui %0 : i1 to i32
    %c0_i32_0 = arith.constant 0 : i32
    %2 = arith.cmpi ne, %1, %c0_i32_0 : i32
    scf.if %2 {
      %cst_10 = arith.constant 0.000000e+00 : f32
      %12 = vector.broadcast %cst_10 : f32 to vector<16x512xf32>
      %c0_11 = arith.constant 0 : index
      %c0_12 = arith.constant 0 : index
      %13 = vector.load %arg5[%c0_11, %c0_12] : memref<16x512xf32, #tpu.memory_space<vmem>>, vector<16x512xf32>
      tpu.vector_store %arg5[%c0_11, %c0_12], %12 {strides = array<i32>} : memref<16x512xf32, #tpu.memory_space<vmem>>, vector<16x512xf32>,
    } else {
    }
    %c0 = arith.constant 0 : index
    %c0_1 = arith.constant 0 : index
    %3 = vector.load %arg5[%c0, %c0_1] : memref<16x512xf32, #tpu.memory_space<vmem>>, vector<16x512xf32>
    %c0_2 = arith.constant 0 : index
    %c0_3 = arith.constant 0 : index
    %4 = vector.load %arg2[%c0_2, %c0_3] : memref<16x512xbf16, #tpu.memory_space<vmem>>, vector<16x512xbf16>
    %c0_4 = arith.constant 0 : index
    %c0_5 = arith.constant 0 : index
    %5 = vector.load %arg3[%c0_4, %c0_5] : memref<512x512xbf16, #tpu.memory_space<vmem>>, vector<512x512xbf16>
    %cst = arith.constant dense<0.000000e+00> : vector<16x512xf32>
    %6 = tpu.matmul %4, %5, %cst {dimension_numbers = #tpu.dot_dimension_numbers<[1], [0], [0], [1], [0, 0, 1, 1], [], []>} : vector<16x512xbf16>, vector<512x512xbf16>, vector<16x512xf32> -> vector<16x512xf32>
    %7 = arith.addf %3, %6 : vector<16x512xf32>
    %c0_6 = arith.constant 0 : index
    %c0_7 = arith.constant 0 : index
    %8 = vector.load %arg5[%c0_6, %c0_7] : memref<16x512xf32, #tpu.memory_space<vmem>>, vector<16x512xf32>
    tpu.vector_store %arg5[%c0_6, %c0_7], %7 {strides = array<i32>} : memref<16x512xf32, #tpu.memory_space<vmem>>, vector<16x512xf32>,
    %c0_i32_8 = arith.constant 0 : i32
    %9 = arith.cmpi eq, %arg1, %c0_i32_8 : i32
    %10 = arith.extui %9 : i1 to i32
    %c0_i32_9 = arith.constant 0 : i32
    %11 = arith.cmpi ne, %10, %c0_i32_9 : i32
    scf.if %11 {
      %c0_10 = arith.constant 0 : index
      %c0_11 = arith.constant 0 : index
      %12 = vector.load %arg5[%c0_10, %c0_11] : memref<16x512xf32, #tpu.memory_space<vmem>>, vector<16x512xf32>
      %c0_12 = arith.constant 0 : index
      %c0_13 = arith.constant 0 : index
      %13 = vector.load %arg4[%c0_12, %c0_13] : memref<1x512xf32, #tpu.memory_space<vmem>>, vector<1x512xf32>
      %14 = vector.broadcast %13 : vector<1x512xf32> to vector<16x512xf32>
      %15 = arith.addf %12, %14 : vector<16x512xf32>
      %cst_14 = arith.constant 0.000000e+00 : f32
      %16 = vector.broadcast %cst_14 : f32 to vector<16x512xf32>
      %17 = arith.maximumf %15, %16 : vector<16x512xf32>
      %c0_15 = arith.constant 0 : index
      %c0_16 = arith.constant 0 : index
      %18 = vector.load %arg5[%c0_15, %c0_16] : memref<16x512xf32, #tpu.memory_space<vmem>>, vector<16x512xf32>
      tpu.vector_store %arg5[%c0_15, %c0_16], %17 {strides = array<i32>} : memref<16x512xf32, #tpu.memory_space<vmem>>, vector<16x512xf32>,
    } else {
    }
    return
  }
  func.func @transform_0(%arg0: i32, %arg1: i32) -> (i32, i32) {
    %c0_i32 = arith.constant 0 : i32
    %c0_i32_0 = arith.constant 0 : i32
    return %c0_i32, %arg1 : i32, i32
  }
  func.func @transform_1(%arg0: i32, %arg1: i32) -> (i32, i32) {
    %c0_i32 = arith.constant 0 : i32
    return %arg1, %arg0 : i32, i32
  }
  func.func @transform_2(%arg0: i32, %arg1: i32) -> (i32, i32) {
    %c0_i32 = arith.constant 0 : i32
    %c0_i32_0 = arith.constant 0 : i32
    return %c0_i32, %arg0 : i32, i32
  }
  func.func @transform_3(%arg0: i32, %arg1: i32) -> (i32, i32) {
    %c0_i32 = arith.constant 0 : i32
    %c0_i32_0 = arith.constant 0 : i32
    return %c0_i32, %arg0 : i32, i32
  }
}

module attributes {stable_mosaic.version = 11 : i64} {
  func.func @_gemv_kernel(%arg0: i32, %arg1: i32, %arg2: memref<16x5120xbf16, #tpu.memory_space<vmem>>, %arg3: memref<5120x512xbf16, #tpu.memory_space<vmem>>, %arg4: memref<1x512xf32, #tpu.memory_space<vmem>>, %arg5: memref<16x512xf32, #tpu.memory_space<vmem>>) attributes {dimension_semantics = [#tpu.dimension_semantics<parallel>, #tpu.dimension_semantics<arbitrary>], iteration_bounds = array<i64: 5, 1>, scalar_prefetch = 0 : i64, scratch_operands = 0 : i64, tpu.core_type = #tpu.core_type<tc>, window_params = [{transform_indices = @transform_0, window_bounds = array<i64: 16, 5120>}, {transform_indices = @transform_1, window_bounds = array<i64: 5120, 512>}, {transform_indices = @transform_2, window_bounds = array<i64: 1, 512>}, {transform_indices = @transform_3, window_bounds = array<i64: 16, 512>}]} {
    %c0_i32 = arith.constant 0 : i32
    %0 = arith.cmpi eq, %arg1, %c0_i32 : i32
    %1 = arith.extui %0 : i1 to i32
    %c0_i32_0 = arith.constant 0 : i32
    %2 = arith.cmpi ne, %1, %c0_i32_0 : i32
    scf.if %2 {
      %cst_10 = arith.constant 0.000000e+00 : f32
      %12 = vector.broadcast %cst_10 : f32 to vector<16x512xf32>
      %c0_11 = arith.constant 0 : index
      %c0_12 = arith.constant 0 : index
      %13 = vector.load %arg5[%c0_11, %c0_12] : memref<16x512xf32, #tpu.memory_space<vmem>>, vector<16x512xf32>
      tpu.vector_store %arg5[%c0_11, %c0_12], %12 {strides = array<i32>} : memref<16x512xf32, #tpu.memory_space<vmem>>, vector<16x512xf32>,
    } else {
    }
    %c0 = arith.constant 0 : index
    %c0_1 = arith.constant 0 : index
    %3 = vector.load %arg5[%c0, %c0_1] : memref<16x512xf32, #tpu.memory_space<vmem>>, vector<16x512xf32>
    %c0_2 = arith.constant 0 : index
    %c0_3 = arith.constant 0 : index
    %4 = vector.load %arg2[%c0_2, %c0_3] : memref<16x5120xbf16, #tpu.memory_space<vmem>>, vector<16x5120xbf16>
    %c0_4 = arith.constant 0 : index
    %c0_5 = arith.constant 0 : index
    %5 = vector.load %arg3[%c0_4, %c0_5] : memref<5120x512xbf16, #tpu.memory_space<vmem>>, vector<5120x512xbf16>
    %cst = arith.constant dense<0.000000e+00> : vector<16x512xf32>
    %6 = tpu.matmul %4, %5, %cst {dimension_numbers = #tpu.dot_dimension_numbers<[1], [0], [0], [1], [0, 0, 1, 1], [], []>} : vector<16x5120xbf16>, vector<5120x512xbf16>, vector<16x512xf32> -> vector<16x512xf32>
    %7 = arith.addf %3, %6 : vector<16x512xf32>
    %c0_6 = arith.constant 0 : index
    %c0_7 = arith.constant 0 : index
    %8 = vector.load %arg5[%c0_6, %c0_7] : memref<16x512xf32, #tpu.memory_space<vmem>>, vector<16x512xf32>
    tpu.vector_store %arg5[%c0_6, %c0_7], %7 {strides = array<i32>} : memref<16x512xf32, #tpu.memory_space<vmem>>, vector<16x512xf32>,
    %c0_i32_8 = arith.constant 0 : i32
    %9 = arith.cmpi eq, %arg1, %c0_i32_8 : i32
    %10 = arith.extui %9 : i1 to i32
    %c0_i32_9 = arith.constant 0 : i32
    %11 = arith.cmpi ne, %10, %c0_i32_9 : i32
    scf.if %11 {
      %c0_10 = arith.constant 0 : index
      %c0_11 = arith.constant 0 : index
      %12 = vector.load %arg5[%c0_10, %c0_11] : memref<16x512xf32, #tpu.memory_space<vmem>>, vector<16x512xf32>
      %c0_12 = arith.constant 0 : index
      %c0_13 = arith.constant 0 : index
      %13 = vector.load %arg4[%c0_12, %c0_13] : memref<1x512xf32, #tpu.memory_space<vmem>>, vector<1x512xf32>
      %14 = vector.broadcast %13 : vector<1x512xf32> to vector<16x512xf32>
      %15 = arith.addf %12, %14 : vector<16x512xf32>
      %cst_14 = arith.constant 0.000000e+00 : f32
      %16 = vector.broadcast %cst_14 : f32 to vector<16x512xf32>
      %17 = arith.maximumf %15, %16 : vector<16x512xf32>
      %c0_15 = arith.constant 0 : index
      %c0_16 = arith.constant 0 : index
      %18 = vector.load %arg5[%c0_15, %c0_16] : memref<16x512xf32, #tpu.memory_space<vmem>>, vector<16x512xf32>
      tpu.vector_store %arg5[%c0_15, %c0_16], %17 {strides = array<i32>} : memref<16x512xf32, #tpu.memory_space<vmem>>, vector<16x512xf32>,
    } else {
    }
    return
  }
  func.func @transform_0(%arg0: i32, %arg1: i32) -> (i32, i32) {
    %c0_i32 = arith.constant 0 : i32
    %c0_i32_0 = arith.constant 0 : i32
    return %c0_i32, %arg1 : i32, i32
  }
  func.func @transform_1(%arg0: i32, %arg1: i32) -> (i32, i32) {
    %c0_i32 = arith.constant 0 : i32
    return %arg1, %arg0 : i32, i32
  }
  func.func @transform_2(%arg0: i32, %arg1: i32) -> (i32, i32) {
    %c0_i32 = arith.constant 0 : i32
    %c0_i32_0 = arith.constant 0 : i32
    return %c0_i32, %arg0 : i32, i32
  }
  func.func @transform_3(%arg0: i32, %arg1: i32) -> (i32, i32) {
    %c0_i32 = arith.constant 0 : i32
    %c0_i32_0 = arith.constant 0 : i32
    return %c0_i32, %arg0 : i32, i32
  }
}

module attributes {stable_mosaic.version = 11 : i64} {
  func.func @_gemv_kernel(%arg0: i32, %arg1: i32, %arg2: memref<16x1280xbf16, #tpu.memory_space<vmem>>, %arg3: memref<1280x128xbf16, #tpu.memory_space<vmem>>, %arg4: memref<1x128xf32, #tpu.memory_space<vmem>>, %arg5: memref<16x128xf32, #tpu.memory_space<vmem>>) attributes {dimension_semantics = [#tpu.dimension_semantics<parallel>, #tpu.dimension_semantics<arbitrary>], iteration_bounds = array<i64: 1, 1>, scalar_prefetch = 0 : i64, scratch_operands = 0 : i64, tpu.core_type = #tpu.core_type<tc>, window_params = [{transform_indices = @transform_0, window_bounds = array<i64: 16, 1280>}, {transform_indices = @transform_1, window_bounds = array<i64: 1280, 128>}, {transform_indices = @transform_2, window_bounds = array<i64: 1, 128>}, {transform_indices = @transform_3, window_bounds = array<i64: 16, 128>}]} {
    %c0_i32 = arith.constant 0 : i32
    %0 = arith.cmpi eq, %arg1, %c0_i32 : i32
    %1 = arith.extui %0 : i1 to i32
    %c0_i32_0 = arith.constant 0 : i32
    %2 = arith.cmpi ne, %1, %c0_i32_0 : i32
    scf.if %2 {
      %cst_10 = arith.constant 0.000000e+00 : f32
      %12 = vector.broadcast %cst_10 : f32 to vector<16x128xf32>
      %c0_11 = arith.constant 0 : index
      %c0_12 = arith.constant 0 : index
      %13 = vector.load %arg5[%c0_11, %c0_12] : memref<16x128xf32, #tpu.memory_space<vmem>>, vector<16x128xf32>
      tpu.vector_store %arg5[%c0_11, %c0_12], %12 {strides = array<i32>} : memref<16x128xf32, #tpu.memory_space<vmem>>, vector<16x128xf32>,
    } else {
    }
    %c0 = arith.constant 0 : index
    %c0_1 = arith.constant 0 : index
    %3 = vector.load %arg5[%c0, %c0_1] : memref<16x128xf32, #tpu.memory_space<vmem>>, vector<16x128xf32>
    %c0_2 = arith.constant 0 : index
    %c0_3 = arith.constant 0 : index
    %4 = vector.load %arg2[%c0_2, %c0_3] : memref<16x1280xbf16, #tpu.memory_space<vmem>>, vector<16x1280xbf16>
    %c0_4 = arith.constant 0 : index
    %c0_5 = arith.constant 0 : index
    %5 = vector.load %arg3[%c0_4, %c0_5] : memref<1280x128xbf16, #tpu.memory_space<vmem>>, vector<1280x128xbf16>
    %cst = arith.constant dense<0.000000e+00> : vector<16x128xf32>
    %6 = tpu.matmul %4, %5, %cst {dimension_numbers = #tpu.dot_dimension_numbers<[1], [0], [0], [1], [0, 0, 1, 1], [], []>} : vector<16x1280xbf16>, vector<1280x128xbf16>, vector<16x128xf32> -> vector<16x128xf32>
    %7 = arith.addf %3, %6 : vector<16x128xf32>
    %c0_6 = arith.constant 0 : index
    %c0_7 = arith.constant 0 : index
    %8 = vector.load %arg5[%c0_6, %c0_7] : memref<16x128xf32, #tpu.memory_space<vmem>>, vector<16x128xf32>
    tpu.vector_store %arg5[%c0_6, %c0_7], %7 {strides = array<i32>} : memref<16x128xf32, #tpu.memory_space<vmem>>, vector<16x128xf32>,
    %c0_i32_8 = arith.constant 0 : i32
    %9 = arith.cmpi eq, %arg1, %c0_i32_8 : i32
    %10 = arith.extui %9 : i1 to i32
    %c0_i32_9 = arith.constant 0 : i32
    %11 = arith.cmpi ne, %10, %c0_i32_9 : i32
    scf.if %11 {
      %c0_10 = arith.constant 0 : index
      %c0_11 = arith.constant 0 : index
      %12 = vector.load %arg5[%c0_10, %c0_11] : memref<16x128xf32, #tpu.memory_space<vmem>>, vector<16x128xf32>
      %c0_12 = arith.constant 0 : index
      %c0_13 = arith.constant 0 : index
      %13 = vector.load %arg4[%c0_12, %c0_13] : memref<1x128xf32, #tpu.memory_space<vmem>>, vector<1x128xf32>
      %14 = vector.broadcast %13 : vector<1x128xf32> to vector<16x128xf32>
      %15 = arith.addf %12, %14 : vector<16x128xf32>
      %c0_14 = arith.constant 0 : index
      %c0_15 = arith.constant 0 : index
      %16 = vector.load %arg5[%c0_14, %c0_15] : memref<16x128xf32, #tpu.memory_space<vmem>>, vector<16x128xf32>
      tpu.vector_store %arg5[%c0_14, %c0_15], %15 {strides = array<i32>} : memref<16x128xf32, #tpu.memory_space<vmem>>, vector<16x128xf32>,
    } else {
    }
    return
  }
  func.func @transform_0(%arg0: i32, %arg1: i32) -> (i32, i32) {
    %c0_i32 = arith.constant 0 : i32
    %c0_i32_0 = arith.constant 0 : i32
    return %c0_i32, %arg1 : i32, i32
  }
  func.func @transform_1(%arg0: i32, %arg1: i32) -> (i32, i32) {
    %c0_i32 = arith.constant 0 : i32
    return %arg1, %arg0 : i32, i32
  }
  func.func @transform_2(%arg0: i32, %arg1: i32) -> (i32, i32) {
    %c0_i32 = arith.constant 0 : i32
    %c0_i32_0 = arith.constant 0 : i32
    return %c0_i32, %arg0 : i32, i32
  }
  func.func @transform_3(%arg0: i32, %arg1: i32) -> (i32, i32) {
    %c0_i32 = arith.constant 0 : i32
    %c0_i32_0 = arith.constant 0 : i32
    return %c0_i32, %arg0 : i32, i32
  }
}

module attributes {stable_mosaic.version = 11 : i64} {
  func.func @_gemv_kernel(%arg0: i32, %arg1: i32, %arg2: memref<16x2560xbf16, #tpu.memory_space<vmem>>, %arg3: memref<2560x256xbf16, #tpu.memory_space<vmem>>, %arg4: memref<1x256xf32, #tpu.memory_space<vmem>>, %arg5: memref<16x256xf32, #tpu.memory_space<vmem>>) attributes {dimension_semantics = [#tpu.dimension_semantics<parallel>, #tpu.dimension_semantics<arbitrary>], iteration_bounds = array<i64: 5, 1>, scalar_prefetch = 0 : i64, scratch_operands = 0 : i64, tpu.core_type = #tpu.core_type<tc>, window_params = [{transform_indices = @transform_0, window_bounds = array<i64: 16, 2560>}, {transform_indices = @transform_1, window_bounds = array<i64: 2560, 256>}, {transform_indices = @transform_2, window_bounds = array<i64: 1, 256>}, {transform_indices = @transform_3, window_bounds = array<i64: 16, 256>}]} {
    %c0_i32 = arith.constant 0 : i32
    %0 = arith.cmpi eq, %arg1, %c0_i32 : i32
    %1 = arith.extui %0 : i1 to i32
    %c0_i32_0 = arith.constant 0 : i32
    %2 = arith.cmpi ne, %1, %c0_i32_0 : i32
    scf.if %2 {
      %cst_10 = arith.constant 0.000000e+00 : f32
      %12 = vector.broadcast %cst_10 : f32 to vector<16x256xf32>
      %c0_11 = arith.constant 0 : index
      %c0_12 = arith.constant 0 : index
      %13 = vector.load %arg5[%c0_11, %c0_12] : memref<16x256xf32, #tpu.memory_space<vmem>>, vector<16x256xf32>
      tpu.vector_store %arg5[%c0_11, %c0_12], %12 {strides = array<i32>} : memref<16x256xf32, #tpu.memory_space<vmem>>, vector<16x256xf32>,
    } else {
    }
    %c0 = arith.constant 0 : index
    %c0_1 = arith.constant 0 : index
    %3 = vector.load %arg5[%c0, %c0_1] : memref<16x256xf32, #tpu.memory_space<vmem>>, vector<16x256xf32>
    %c0_2 = arith.constant 0 : index
    %c0_3 = arith.constant 0 : index
    %4 = vector.load %arg2[%c0_2, %c0_3] : memref<16x2560xbf16, #tpu.memory_space<vmem>>, vector<16x2560xbf16>
    %c0_4 = arith.constant 0 : index
    %c0_5 = arith.constant 0 : index
    %5 = vector.load %arg3[%c0_4, %c0_5] : memref<2560x256xbf16, #tpu.memory_space<vmem>>, vector<2560x256xbf16>
    %cst = arith.constant dense<0.000000e+00> : vector<16x256xf32>
    %6 = tpu.matmul %4, %5, %cst {dimension_numbers = #tpu.dot_dimension_numbers<[1], [0], [0], [1], [0, 0, 1, 1], [], []>} : vector<16x2560xbf16>, vector<2560x256xbf16>, vector<16x256xf32> -> vector<16x256xf32>
    %7 = arith.addf %3, %6 : vector<16x256xf32>
    %c0_6 = arith.constant 0 : index
    %c0_7 = arith.constant 0 : index
    %8 = vector.load %arg5[%c0_6, %c0_7] : memref<16x256xf32, #tpu.memory_space<vmem>>, vector<16x256xf32>
    tpu.vector_store %arg5[%c0_6, %c0_7], %7 {strides = array<i32>} : memref<16x256xf32, #tpu.memory_space<vmem>>, vector<16x256xf32>,
    %c0_i32_8 = arith.constant 0 : i32
    %9 = arith.cmpi eq, %arg1, %c0_i32_8 : i32
    %10 = arith.extui %9 : i1 to i32
    %c0_i32_9 = arith.constant 0 : i32
    %11 = arith.cmpi ne, %10, %c0_i32_9 : i32
    scf.if %11 {
      %c0_10 = arith.constant 0 : index
      %c0_11 = arith.constant 0 : index
      %12 = vector.load %arg5[%c0_10, %c0_11] : memref<16x256xf32, #tpu.memory_space<vmem>>, vector<16x256xf32>
      %c0_12 = arith.constant 0 : index
      %c0_13 = arith.constant 0 : index
      %13 = vector.load %arg4[%c0_12, %c0_13] : memref<1x256xf32, #tpu.memory_space<vmem>>, vector<1x256xf32>
      %14 = vector.broadcast %13 : vector<1x256xf32> to vector<16x256xf32>
      %15 = arith.addf %12, %14 : vector<16x256xf32>
      %cst_14 = arith.constant 0.000000e+00 : f32
      %16 = vector.broadcast %cst_14 : f32 to vector<16x256xf32>
      %17 = arith.maximumf %15, %16 : vector<16x256xf32>
      %c0_15 = arith.constant 0 : index
      %c0_16 = arith.constant 0 : index
      %18 = vector.load %arg5[%c0_15, %c0_16] : memref<16x256xf32, #tpu.memory_space<vmem>>, vector<16x256xf32>
      tpu.vector_store %arg5[%c0_15, %c0_16], %17 {strides = array<i32>} : memref<16x256xf32, #tpu.memory_space<vmem>>, vector<16x256xf32>,
    } else {
    }
    return
  }
  func.func @transform_0(%arg0: i32, %arg1: i32) -> (i32, i32) {
    %c0_i32 = arith.constant 0 : i32
    %c0_i32_0 = arith.constant 0 : i32
    return %c0_i32, %arg1 : i32, i32
  }
  func.func @transform_1(%arg0: i32, %arg1: i32) -> (i32, i32) {
    %c0_i32 = arith.constant 0 : i32
    return %arg1, %arg0 : i32, i32
  }
  func.func @transform_2(%arg0: i32, %arg1: i32) -> (i32, i32) {
    %c0_i32 = arith.constant 0 : i32
    %c0_i32_0 = arith.constant 0 : i32
    return %c0_i32, %arg0 : i32, i32
  }
  func.func @transform_3(%arg0: i32, %arg1: i32) -> (i32, i32) {
    %c0_i32 = arith.constant 0 : i32
    %c0_i32_0 = arith.constant 0 : i32
    return %c0_i32, %arg0 : i32, i32
  }
}

</mosaic_0001>

<bundles_post_ra>
// kernel: ori_sig_cnn_forward.7
= control target key start
LH: loop header
LB: loop body
LE: loop exit
PB: predicated region body
PF: predicated region fallthrough
CT: control target
= control target key end

     0   :  { %s1548_s1 = inlined_call_operand.vmem [shape: bf16[1280,128], index: 1, kind: input, shape index: {}]   ;;  %s1549_s0 = inlined_call_operand.vmem [shape: bf16[16,1280], index: 0, kind: input, shape index: {}]   ;;  %s1550_s2 = inlined_call_operand.vmem [shape: f32[1,128], index: 2, kind: input, shape index: {}]   ;;  %s1551_s3 = inlined_call_operand.vmem [shape: f32[16,128], index: 3, kind: output, shape index: {}]  }
   0x1   :  { %v1154_v0 = vld [vmem:[%s1548_s1 + $0x40] sm:$0xff]   ;;  %v1158_v4 = vld [vmem:[%s1548_s1 + $0x48] sm:$0xff]   ;;  %v1162_v8 = vld [vmem:[%s1548_s1 + $0x50] sm:$0xff]  }
   0x2   :  { %v1155_v1 = vld [vmem:[%s1548_s1 + $0xc0] sm:$0xff]   ;;  %1043 = vmatprep.subr.bf16.mxu0 %v1154_v0  ;;  %v1159_v5 = vld [vmem:[%s1548_s1 + $0xc8] sm:$0xff]   ;;  %v1163_v9 = vld [vmem:[%s1548_s1 + $0xd0] sm:$0xff]  }
   0x3   :  { %v1156_v2 = vld [vmem:[%s1548_s1] sm:$0xff]   ;;  %1065 = vmatprep.subr.bf16.mxu1 %v1155_v1  ;;  %v1160_v6 = vld [vmem:[%s1548_s1 + $0x8] sm:$0xff]   ;;  %v1164_v10 = vld [vmem:[%s1548_s1 + $0x10] sm:$0xff]  }
   0x4   :  { %v1157_v3 = vld [vmem:[%s1548_s1 + $0x80] sm:$0xff]   ;;  %1044 = vmatpush3.bf16.msra.mxu0 %v1156_v2  ;;  %v1161_v7 = vld [vmem:[%s1548_s1 + $0x88] sm:$0xff]   ;;  %v1165_v11 = vld [vmem:[%s1548_s1 + $0x90] sm:$0xff]  }
   0x5   :  { %1066 = vmatpush3.bf16.msra.mxu1 %v1157_v3  ;;  %1045 = vmatprep.subr.bf16.mxu0 %v1158_v4  ;;  %v1166_v12 = vld [vmem:[%s1548_s1 + $0x58] sm:$0xff]   ;;  %v1170_v16 = vld [vmem:[%s1548_s1 + $0x60] sm:$0xff]   ;;  %v1174_v20 = vld [vmem:[%s1548_s1 + $0x68] sm:$0xff]  }
   0x6   :  { %1067 = vmatprep.subr.bf16.mxu1 %v1159_v5  ;;  %v1167_v13 = vld [vmem:[%s1548_s1 + $0xd8] sm:$0xff]   ;;  %v1171_v17 = vld [vmem:[%s1548_s1 + $0xe0] sm:$0xff]   ;;  %v1175_v21 = vld [vmem:[%s1548_s1 + $0xe8] sm:$0xff]  }
   0x7   :  { %v1168_v14 = vld [vmem:[%s1548_s1 + $0x18] sm:$0xff]   ;;  %v1172_v18 = vld [vmem:[%s1548_s1 + $0x20] sm:$0xff]   ;;  %v1176_v22 = vld [vmem:[%s1548_s1 + $0x28] sm:$0xff]  }
   0x8   :  { %1046 = vmatpush3.bf16.msra.mxu0 %v1160_v6  ;;  %v1169_v15 = vld [vmem:[%s1548_s1 + $0x98] sm:$0xff]   ;;  %v1173_v19 = vld [vmem:[%s1548_s1 + $0xa0] sm:$0xff]   ;;  %v1177_v23 = vld [vmem:[%s1548_s1 + $0xa8] sm:$0xff]  }
   0x9   :  { %1068 = vmatpush3.bf16.msra.mxu1 %v1161_v7  ;;  %1047 = vmatprep.subr.bf16.mxu0 %v1162_v8  ;;  %v1178_v24 = vld [vmem:[%s1548_s1 + $0x70] sm:$0xff]   ;;  %v1182_v28 = vld [vmem:[%s1548_s1 + $0x78] sm:$0xff]   ;;  %v1186_v32 = vld [vmem:[%s1549_s0] ss:$40 sps:$4 sm:$0xff]  }
   0xa   :  { %1069 = vmatprep.subr.bf16.mxu1 %v1163_v9  ;;  %v1179_v25 = vld [vmem:[%s1548_s1 + $0xf0] sm:$0xff]   ;;  %v1183_v29 = vld [vmem:[%s1548_s1 + $0xf8] sm:$0xff]   ;;  %v1188_v33 = vld [vmem:[%s1549_s0 + $0x4] ss:$40 sps:$4 sm:$0xff]  }
   0xb   :  { %v1180_v26 = vld [vmem:[%s1548_s1 + $0x30] sm:$0xff]   ;;  %v1184_v30 = vld [vmem:[%s1548_s1 + $0x38] sm:$0xff]   ;;  %755 = vmatprep.mubr.bf16.mxu0 %v1188_v33  ;;  %v1192_v36 = vld [vmem:[%s1548_s1 + $0x140] sm:$0xff]  }
   0xc   :  { %1048 = vmatpush3.bf16.msra.mxu0 %v1164_v10  ;;  %v1181_v27 = vld [vmem:[%s1548_s1 + $0xb0] sm:$0xff]   ;;  %v1185_v31 = vld [vmem:[%s1548_s1 + $0xb8] sm:$0xff]   ;;  %v1193_v37 = vld [vmem:[%s1548_s1 + $0x100] sm:$0xff]  }
   0xd   :  { %1070 = vmatpush3.bf16.msra.mxu1 %v1165_v11  ;;  %1049 = vmatprep.subr.bf16.mxu0 %v1166_v12  ;;  %v1189_v34 = vld [vmem:[%s1549_s0 + $0x8] ss:$40 sps:$4 sm:$0xff]   ;;  %v1191_v35 = vld [vmem:[%s1549_s0 + $0xc] ss:$40 sps:$4 sm:$0xff]   ;;  %v1194_v38 = vld [vmem:[%s1548_s1 + $0x1c0] sm:$0xff]  }
   0xe   :  { %1071 = vmatprep.subr.bf16.mxu1 %v1167_v13  ;;  %796 = vmatprep.mubr.bf16.mxu1 %v1191_v35  ;;  %v1195_v39 = vld [vmem:[%s1548_s1 + $0x180] sm:$0xff]   ;;  %v1196_v40 = vld [vmem:[%s1548_s1 + $0x148] sm:$0xff]   ;;  %v1200_v44 = vld [vmem:[%s1548_s1 + $0x150] sm:$0xff]  }
   0xf   :  { %v1197_v41 = vld [vmem:[%s1548_s1 + $0x108] sm:$0xff]   ;;  %v1201_v45 = vld [vmem:[%s1548_s1 + $0x110] sm:$0xff]   ;;  %v1204_v48 = vld [vmem:[%s1548_s1 + $0x158] sm:$0xff]  }
  0x10   :  { %1050 = vmatpush3.bf16.msra.mxu0 %v1168_v14  ;;  %v1198_v42 = vld [vmem:[%s1548_s1 + $0x1c8] sm:$0xff]   ;;  %v1202_v46 = vld [vmem:[%s1548_s1 + $0x1d0] sm:$0xff]   ;;  %v1205_v49 = vld [vmem:[%s1548_s1 + $0x118] sm:$0xff]  }
  0x11   :  { %1072 = vmatpush3.bf16.msra.mxu1 %v1169_v15  ;;  %1051 = vmatprep.subr.bf16.mxu0 %v1170_v16  ;;  %v1199_v43 = vld [vmem:[%s1548_s1 + $0x188] sm:$0xff]   ;;  %v1203_v47 = vld [vmem:[%s1548_s1 + $0x190] sm:$0xff]   ;;  %v1206_v50 = vld [vmem:[%s1548_s1 + $0x1d8] sm:$0xff]  }
  0x12   :  { %1073 = vmatprep.subr.bf16.mxu1 %v1171_v17  ;;  %v1207_v51 = vld [vmem:[%s1548_s1 + $0x198] sm:$0xff]   ;;  %v1208_v52 = vld [vmem:[%s1548_s1 + $0x160] sm:$0xff]   ;;  %v1212_v56 = vld [vmem:[%s1548_s1 + $0x168] sm:$0xff]  }
  0x13   :  { %v1209_v53 = vld [vmem:[%s1548_s1 + $0x120] sm:$0xff]   ;;  %v1213_v57 = vld [vmem:[%s1548_s1 + $0x128] sm:$0xff]   ;;  %v1216_v60 = vld [vmem:[%s1548_s1 + $0x170] sm:$0xff]  }
  0x14   :  { %1052 = vmatpush3.bf16.msra.mxu0 %v1172_v18  ;;  %v1210_v54 = vld [vmem:[%s1548_s1 + $0x1e0] sm:$0xff]   ;;  %v1214_v58 = vld [vmem:[%s1548_s1 + $0x1e8] sm:$0xff]   ;;  %v1217_v61 = vld [vmem:[%s1548_s1 + $0x130] sm:$0xff]  }
  0x15   :  { %1074 = vmatpush3.bf16.msra.mxu1 %v1173_v19  ;;  %1053 = vmatprep.subr.bf16.mxu0 %v1174_v20  ;;  %v1211_v55 = vld [vmem:[%s1548_s1 + $0x1a0] sm:$0xff]   ;;  %v1215_v59 = vld [vmem:[%s1548_s1 + $0x1a8] sm:$0xff]   ;;  %v1218_v62 = vld [vmem:[%s1548_s1 + $0x1f0] sm:$0xff]  }
  0x16   :  { %1075 = vmatprep.subr.bf16.mxu1 %v1175_v21  ;;  %v1219_v63 = vld [vmem:[%s1548_s1 + $0x1b0] sm:$0xff]   ;;  %v1220_v0 = vld [vmem:[%s1548_s1 + $0x178] sm:$0xff]   ;;  %v1227_v6 = vld [vmem:[%s1548_s1 + $0x240] sm:$0xff]  }
  0x17   :  { %v1221_v1 = vld [vmem:[%s1548_s1 + $0x138] sm:$0xff]   ;;  %v1231_v9 = vld [vmem:[%s1548_s1 + $0x200] sm:$0xff]   ;;  %v1232_v10 = vld [vmem:[%s1548_s1 + $0x248] sm:$0xff]  }
  0x18   :  { %1054 = vmatpush3.bf16.msra.mxu0 %v1176_v22  ;;  %v1222_v2 = vld [vmem:[%s1548_s1 + $0x1f8] sm:$0xff]   ;;  %v1233_v11 = vld [vmem:[%s1548_s1 + $0x208] sm:$0xff]   ;;  %v1234_v12 = vld [vmem:[%s1548_s1 + $0x250] sm:$0xff]  }
  0x19   :  { %1076 = vmatpush3.bf16.msra.mxu1 %v1177_v23  ;;  %1055 = vmatprep.subr.bf16.mxu0 %v1178_v24  ;;  %v1223_v3 = vld [vmem:[%s1549_s0 + $0x10] ss:$40 sps:$4 sm:$0xff]   ;;  %v1225_v4 = vld [vmem:[%s1549_s0 + $0x14] ss:$40 sps:$4 sm:$0xff]   ;;  %v1238_v16 = vld [vmem:[%s1548_s1 + $0x260] sm:$0xff]  }
  0x1a   :  { %1077 = vmatprep.subr.bf16.mxu1 %v1179_v25  ;;  %v1226_v5 = vld [vmem:[%s1548_s1 + $0x1b8] sm:$0xff]   ;;  %v1235_v13 = vld [vmem:[%s1548_s1 + $0x210] sm:$0xff]   ;;  %v1239_v17 = vld [vmem:[%s1548_s1 + $0x220] sm:$0xff]  }
  0x1b   :  { %v1228_v7 = vld [vmem:[%s1549_s0 + $0x18] ss:$40 sps:$4 sm:$0xff]   ;;  %v1230_v8 = vld [vmem:[%s1549_s0 + $0x1c] ss:$40 sps:$4 sm:$0xff]   ;;  %v1240_v18 = vld [vmem:[%s1548_s1 + $0x268] sm:$0xff]  }
  0x1c   :  { %1056 = vmatpush3.bf16.msra.mxu0 %v1180_v26  ;;  %v1236_v14 = vld [vmem:[%s1548_s1 + $0x258] sm:$0xff]   ;;  %v1248_v19 = vld [vmem:[%s1549_s0 + $0x24] ss:$40 sps:$4 sm:$0xff]   ;;  %v1242_v21 = vld [vmem:[%s1548_s1 + $0x270] sm:$0xff]  }
  0x1d   :  { %1078 = vmatpush3.bf16.msra.mxu1 %v1181_v27  ;;  %1057 = vmatprep.subr.bf16.mxu0 %v1182_v28  ;;  %v1237_v15 = vld [vmem:[%s1548_s1 + $0x218] sm:$0xff]   ;;  %v1241_v20 = vld [vmem:[%s1548_s1 + $0x228] sm:$0xff]   ;;  %v1243_v22 = vld [vmem:[%s1548_s1 + $0x230] sm:$0xff]  }
  0x1e   :  { %1079 = vmatprep.subr.bf16.mxu1 %v1183_v29  ;;  %v1244_v23 = vld [vmem:[%s1548_s1 + $0x278] sm:$0xff]   ;;  %v1246_v25 = vld [vmem:[%s1549_s0 + $0x20] ss:$40 sps:$4 sm:$0xff]  }
  0x1f   :  { %v1245_v24 = vld [vmem:[%s1548_s1 + $0x238] sm:$0xff]  }
  0x20   :  { %1058 = vmatpush3.bf16.msra.mxu0 %v1184_v30 }
  0x21   :  { %1080 = vmatpush3.bf16.msra.mxu1 %v1185_v31  ;;  %1087 = vmatprep.subr.bf16.mxu0 %v1192_v36 }
  0x22   :  { %1109 = vmatprep.subr.bf16.mxu1 %v1194_v38 }
  0x23   :  { %756 = vmatmul.mubr.bf16.vlgmr.msra.gmra.mrb[0].mxu0 %v1186_v32 }
  0x24   :  { %797 = vmatmul.mubr.bf16.vlgmr.msra.gmra.mrb[0].mxu1 %v1189_v34  ;;  %1088 = vmatpush3.bf16.msra.mxu0 %v1193_v37 }
  0x25   :  { %1110 = vmatpush3.bf16.msra.mxu1 %v1195_v39  ;;  %1089 = vmatprep.subr.bf16.mxu0 %v1196_v40 }
  0x26   :  { %1111 = vmatprep.subr.bf16.mxu1 %v1198_v42  ;;  %837 = vmatprep.mubr.bf16.mxu0 %v1225_v4 }
  0x27   :  { %878 = vmatprep.mubr.bf16.mxu1 %v1230_v8 }
  0x28   :  { %1090 = vmatpush3.bf16.msra.mxu0 %v1197_v41 }
  0x29   :  { %1112 = vmatpush3.bf16.msra.mxu1 %v1199_v43  ;;  %1091 = vmatprep.subr.bf16.mxu0 %v1200_v44 }
  0x2a   :  { %1113 = vmatprep.subr.bf16.mxu1 %v1202_v46 }
  0x2c   :  { %1092 = vmatpush3.bf16.msra.mxu0 %v1201_v45 }
  0x2d   :  { %1114 = vmatpush3.bf16.msra.mxu1 %v1203_v47  ;;  %1093 = vmatprep.subr.bf16.mxu0 %v1204_v48 }
  0x2e   :  { %1115 = vmatprep.subr.bf16.mxu1 %v1206_v50 }
  0x30   :  { %1094 = vmatpush3.bf16.msra.mxu0 %v1205_v49 }
  0x31   :  { %1116 = vmatpush3.bf16.msra.mxu1 %v1207_v51  ;;  %1095 = vmatprep.subr.bf16.mxu0 %v1208_v52 }
  0x32   :  { %1117 = vmatprep.subr.bf16.mxu1 %v1210_v54 }
  0x34   :  { %1096 = vmatpush3.bf16.msra.mxu0 %v1209_v53 }
  0x35   :  { %1118 = vmatpush3.bf16.msra.mxu1 %v1211_v55  ;;  %1097 = vmatprep.subr.bf16.mxu0 %v1212_v56 }
  0x36   :  { %1119 = vmatprep.subr.bf16.mxu1 %v1214_v58 }
  0x38   :  { %1098 = vmatpush3.bf16.msra.mxu0 %v1213_v57 }
  0x39   :  { %1120 = vmatpush3.bf16.msra.mxu1 %v1215_v59  ;;  %1099 = vmatprep.subr.bf16.mxu0 %v1216_v60 }
  0x3a   :  { %1121 = vmatprep.subr.bf16.mxu1 %v1218_v62 }
  0x3c   :  { %1100 = vmatpush3.bf16.msra.mxu0 %v1217_v61 }
  0x3d   :  { %1122 = vmatpush3.bf16.msra.mxu1 %v1219_v63  ;;  %1101 = vmatprep.subr.bf16.mxu0 %v1220_v0  ;;  %v1042_v63 = vld [vmem:[%s1550_s2] ss:$0 sm:$0xff] }
  0x3e   :  { %1123 = vmatprep.subr.bf16.mxu1 %v1222_v2 }
  0x40   :  { %1102 = vmatpush3.bf16.msra.mxu0 %v1221_v1 }
  0x41   :  { %1124 = vmatpush3.bf16.msra.mxu1 %v1226_v5  ;;  %1131 = vmatprep.subr.bf16.mxu0 %v1227_v6 }
  0x43   :  { %838 = vmatmul.mubr.bf16.vlgmr.msra.gmra.mrb[4].mxu0 %v1223_v3 }
  0x44   :  { %1132 = vmatpush3.bf16.msra.mxu0 %v1231_v9  ;;  %879 = vmatmul.mubr.bf16.vlgmr.msra.gmra.mrb[4].mxu1 %v1228_v7 }
  0x45   :  { %1133 = vmatprep.subr.bf16.mxu0 %v1232_v10  ;;  %919 = vmatprep.mubr.bf16.mxu0 %v1248_v19 }
  0x48   :  { %1134 = vmatpush3.bf16.msra.mxu0 %v1233_v11 }
  0x49   :  { %1135 = vmatprep.subr.bf16.mxu0 %v1234_v12 }
  0x4c   :  { %1136 = vmatpush3.bf16.msra.mxu0 %v1235_v13 }
  0x4d   :  { %1137 = vmatprep.subr.bf16.mxu0 %v1236_v14 }
  0x50   :  { %1138 = vmatpush3.bf16.msra.mxu0 %v1237_v15 }
  0x51   :  { %1139 = vmatprep.subr.bf16.mxu0 %v1238_v16 }
  0x54   :  { %1140 = vmatpush3.bf16.msra.mxu0 %v1239_v17 }
  0x55   :  { %1141 = vmatprep.subr.bf16.mxu0 %v1240_v18 }
  0x58   :  { %1142 = vmatpush3.bf16.msra.mxu0 %v1241_v20 }
  0x59   :  { %1143 = vmatprep.subr.bf16.mxu0 %v1242_v21 }
  0x5c   :  { %1144 = vmatpush3.bf16.msra.mxu0 %v1243_v22 }
  0x5d   :  { %1145 = vmatprep.subr.bf16.mxu0 %v1244_v23 }
  0x60   :  { %1146 = vmatpush3.bf16.msra.mxu0 %v1245_v24 }
  0x63   :  { %920 = vmatmul.mubr.bf16.vlgmr.msra.gmra.mrb[8].mxu0 %v1246_v25 }
  0xf6   :  { %v1059_v26 = vpop.f32.mrb[0].mxu0 }
  0xf7   :  { %v1081_v27 = vpop.f32.mrb[0].mxu1  ;;  %v1060_v28 = vpop.f32.mrb[1].mxu0 }
  0xf8   :  { %v1061_v29 = vadd.f32 %v1060_v28, %v1059_v26  ;;  %v1082_v30 = vpop.f32.mrb[1].mxu1  ;;  %v1062_v31 = vpop.f32.mrb[2].mxu0 }
  0xf9   :  { %v1083_v32 = vadd.f32 %v1082_v30, %v1081_v27  ;;  %v1084_v33 = vpop.f32.mrb[2].mxu1  ;;  %v1063_v34 = vpop.f32.mrb[3].mxu0 }
  0xfa   :  { %v1064_v35 = vadd.f32 %v1063_v34, %v1062_v31  ;;  %v1085_v36 = vpop.f32.mrb[3].mxu1 }
  0xfb   :  { %v799_v37 = vadd.f32 %v1083_v32, %v1061_v29  ;;  %v1086_v38 = vadd.f32 %v1085_v36, %v1084_v33 }
  0xfd   :  { %v802_v39 = vadd.f32 %v1086_v38, %v1064_v35 }
 0x116   :  { %v1103_v40 = vpop.f32.mrb[4].mxu0 }
 0x117   :  { %v1104_v41 = vpop.f32.mrb[5].mxu0  ;;  %v1125_v46 = vpop.f32.mrb[4].mxu1 }
 0x118   :  { %v1105_v42 = vadd.f32 %v1104_v41, %v1103_v40  ;;  %v1106_v43 = vpop.f32.mrb[6].mxu0  ;;  %v1126_v48 = vpop.f32.mrb[5].mxu1 }
 0x119   :  { %v1107_v44 = vpop.f32.mrb[7].mxu0  ;;  %v1127_v50 = vadd.f32 %v1126_v48, %v1125_v46  ;;  %v1128_v51 = vpop.f32.mrb[6].mxu1 }
 0x11a   :  { %v840_v45 = vadd.f32 %v1105_v42, %v799_v37  ;;  %v1108_v47 = vadd.f32 %v1107_v44, %v1106_v43  ;;  %v1129_v52 = vpop.f32.mrb[7].mxu1 }
 0x11b   :  { %v1130_v54 = vadd.f32 %v1129_v52, %v1128_v51 }
 0x11c   :  { %v843_v49 = vadd.f32 %v1108_v47, %v802_v39  ;;  %v881_v53 = vadd.f32 %v1127_v50, %v840_v45 }
 0x11e   :  { %v884_v55 = vadd.f32 %v1130_v54, %v843_v49 }
 0x136   :  { %v1147_v56 = vpop.f32.mrb[8].mxu0 }
 0x137   :  { %v1148_v57 = vpop.f32.mrb[9].mxu0 }
 0x138   :  { %v1149_v58 = vadd.f32 %v1148_v57, %v1147_v56  ;;  %v1150_v59 = vpop.f32.mrb[10].mxu0 }
 0x139   :  { %v1151_v60 = vpop.f32.mrb[11].mxu0 }
 0x13a   :  { %v922_v61 = vadd.f32 %v1149_v58, %v881_v53  ;;  %v1152_v62 = vadd.f32 %v1151_v60, %v1150_v59 }
 0x13c   :  { %v925_v0 = vadd.f32 %v1152_v62, %v884_v55  ;;  %v944_v1 = vadd.f32 %v1042_v63, %v922_v61 }
 0x13e   :  { %946 = vst [vmem:[%s1551_s3] sm:$0xff] %v944_v1  ;;  %v945_v2 = vadd.f32 %v1042_v63, %v925_v0 }
 0x140   :  { %947 = vst [vmem:[%s1551_s3 + $0x8] sm:$0xff] %v945_v2 }

// kernel: ori_sig_cnn_forward.4
= control target key start
LH: loop header
LB: loop body
LE: loop exit
PB: predicated region body
PF: predicated region fallthrough
CT: control target
= control target key end

     0   :  { %8 = vsyncpa [#allocation3], 0  ;;  %s2364_s0 = inlined_call_operand.vmem [shape: bf16[16,512], index: 0, kind: input, shape index: {}]   ;;  %s2365_s1 = inlined_call_operand.hbm [shape: bf16[512,5120], index: 1, kind: input, shape index: {}]   ;;  %s2366_s2 = inlined_call_operand.hbm [shape: f32[1,5120], index: 2, kind: input, shape index: {}]   ;;  %s2367_s3 = inlined_call_operand.vmem [shape: f32[16,5120], index: 3, kind: output, shape index: {}]  }
   0x1   :  { %10 = vsyncpa [#allocation3 + $0x1], 0 }
   0x2   :  { %11 = vsyncpa [#allocation5], 0 }
   0x3   :  { %13 = vsyncpa [#allocation5 + $0x1], 0  ;;  %s2041_s12 = smov 0   ;;  %s2043_s13 = smov 0  }
   0x4   :  { %s2045_s14 = smov 0   ;;  %s2047_s15 = smov 0  }
   0x5   :  { %s2049_s16 = smov 0   ;;  %s2051_s17 = smov 0  }
   0x6 LB: > { %s1475_s18 = sadd.s32 4294967295, %s2014_s17   ;;  %s31_s19 = sadd.s32 1, %s2010_s16  ;;  %s2014_s17 = sphi %s2051_s17, %s19_s17   ;;  %s2010_s16 = sphi %s2049_s16, %s2382_s16   ;;  %s2006_s15 = sphi %s2047_s15, %s2381_s15   ;;  %s2002_s14 = sphi %s2045_s14, %s2380_s14   ;;  %s1998_s13 = sphi %s2043_s13, %s2379_s13   ;;  %s1994_s12 = sphi %s2041_s12, %s2378_s12  }
   0x7   : > { %p33_p0 = scmp.ge.s32.totalorder %s31_s19, 10  ;;  %s66_s20 = sadd.s32 1, %s2002_s14 }
   0x8   : > { %p73_p1 = scmp.ne.s32.totalorder %s2002_s14, %s1998_s13  ;;  %p74_p2 = scmp.eq.s32.totalorder %s2014_s17, 0 }
   0x9   : > { %s2384_s19 = smov (%p33_p0, %s31_s19), 0  ;;  %p79_p4 = scmp.ne.s32.totalorder %s1998_s13, %s1994_s12 }
   0xa   : > { %p2077_p3 = por %p74_p2, %p73_p1  ;;  %s62_s22 = ssub.s32 %s2010_s16, %s2384_s19 }
   0xb   : > { %p80_p5 = scmp.eq.s32.totalorder %s1475_s18, 0  ;;  %p64_p6 = scmp.eq.s32.totalorder %s62_s22, 0 }
   0xc   : > { %p129_p7 = scmp.eq.s32.totalorder %s1475_s18, 9  ;;  %p1649_p10 = scmp.lt.s32.totalorder %s2014_s17, 10 }
   0xd   : > { %p2084_p8 = por %p80_p5, %p79_p4  ;;  %s2097_s26 = sand.u32 1, %s2002_s14  }
   0xe   : > { %s2089_s24 = scalar_select %p64_p6, %s2002_s14, %s66_s20  }
   0xf   : > { %s2370_s23 = scalar_select %p2084_p8, 1, 0 }
  0x10   : > { %p2091_p9 = por %p129_p7, %p73_p1  ;;  %s1627_s27 = sshll.u32 %s2010_s16, 8 }
  0x11   : > { %s1480_s28 = sshll.u32 %s2097_s26, 10  ;;  %s2104_s4 = scalar_lea.hbm %s2365_s1, %s1627_s27 }
  0x12   : > { %s2371_s25 = scalar_select %p2091_p9, 1, 0 }
  0x13   : > { %s168_s5 = scalar_lea.vmem [#allocation2], %s1480_s28  ;;  %p2108_p11 = pnand %p1649_p10, %p2077_p3 }
  0x14   : > { %s178_s6 = sshll.u32 %s168_s5, 4  ;;  %s165_s8 = scalar_lea.sflag [#allocation3], %s2097_s26  ;;  %s2112_s6 = int_to_ptr.vmem [resolvable:$true] %s178_s6 }
  0x15   : > { %s1900_s9 = scalar_lea.hbm %s2104_s4, 16384  ;;  %p1902_p0 = pneg %p2108_p11 }
  0x16   : > { %p1901_p13 = scmp.ne.s32.totalorder %s2104_s4, %s1900_s9  ;;  %s1905_s12 = scalar_lea.hbm %s2365_s1, 163840 }
  0x17   : > { %p1906_p3 = scmp.lt.u32.totalorder %s2104_s4, %s2365_s1  ;;  %p1907_p4 = scmp.lt.u32.totalorder %s1905_s12, %s1900_s9 }
  0x18   : > { %p1903_p1 = pnand %p1902_p0, %p1901_p13  ;;  %p1909_p6 = scmp.lt.u32.totalorder %s1900_s9, %s2104_s4 }
  0x19   : > { %p1908_p5 = por %p1907_p4, %p1906_p3 }
  0x1a   : > { %p1904_p2 = pneg %p1903_p1 }
  0x1b   : > { %p1910_p7 = por %p1909_p6, %p1908_p5 }
  0x1d   : > { %p1911_p10 = pnand %p1910_p7, %p1904_p2 }
  0x1f   : > { %1914 = shalt.err (!%p1911_p10)
}
  0x20   : > { %s1915_s21 = scalar_lea.vmem %s2112_s6, 16384  ;;  %s2016_s22 = smov [#allocation2]  }
  0x21   : > { %p1916_p13 = scmp.ne.s32.totalorder %s2112_s6, %s1915_s21  ;;  %s1920_s27 = sshll.u32 %s2016_s22, 4  ;;  %s1921_s27 = int_to_ptr.vmem [resolvable:$false] %s1920_s27 }
  0x22   : > { %s1922_s28 = scalar_lea.vmem %s1921_s27, 32768  ;;  %p1923_p9 = scmp.lt.s32.totalorder %s2112_s6, %s1921_s27 }
  0x23   : > { %p1918_p1 = pnand %p1916_p13, %p1902_p0  ;;  %p1924_p3 = scmp.lt.s32.totalorder %s1922_s28, %s1915_s21 }
  0x25   : > { %p1919_p12 = pneg %p1918_p1  ;;  %p1925_p4 = por %p1924_p3, %p1923_p9 }
  0x27   : > { %p1926_p5 = pnand %p1925_p4, %p1919_p12 }
  0x29   : > { %1929 = shalt.err (!%p1926_p5)
}
  0x2a   : > { %s2017_s29 = smov 2560   ;;  %s2018_s30 = smov 256  }
  0x2b   : > { %s2019_s5 = smov 16   ;;  %p205_p2 = scmp.lt.s32.totalorder %s2014_s17, 11 }
  0x2c   : > { %1645 = dma.hbm_to_vmem [thread:$0]  (!%p2108_p11), %s2104_s4, 16384, %s2112_s6, %s165_s8, %s2017_s29, %s2018_s30, %s2019_s5  }
  0x2d   : > { %s1483_s9 = sshll.u32 %s2097_s26, 2  ;;  %s1628_s10 = sshll.u32 %s2010_s16, 6 }
  0x2e   : > { %p2373_p9 = scmp.ge.s32.totalorder %s2014_s17, 1  ;;  %s2155_s20 = scalar_lea.hbm %s2366_s2, %s1628_s10 }
  0x2f   : > { %s192_s21 = scalar_lea.vmem [#allocation4], %s1483_s9  ;;  %s189_s4 = scalar_lea.sflag [#allocation5], %s2097_s26 }
  0x30   : > { %p2148_p12 = pnand %p2373_p9, %p205_p2  ;;  %s200_s22 = sshll.u32 %s192_s21, 4  ;;  %s201_s22 = int_to_ptr.vmem [resolvable:$true] %s200_s22 }
  0x31   : > { %s1930_s6 = scalar_lea.hbm %s2155_s20, 64  ;;  %s1935_s28 = scalar_lea.hbm %s2366_s2, 640 }
  0x32   : > { %s2374_s11 = scalar_select %p2148_p12, 1, 0 }
  0x33   : > { %p1931_p6 = scmp.ne.s32.totalorder %s2155_s20, %s1930_s6  ;;  %p1936_p13 = scmp.lt.u32.totalorder %s2155_s20, %s2366_s2 }
  0x34   : > { %p1937_p1 = scmp.lt.u32.totalorder %s1935_s28, %s1930_s6  ;;  %p1939_p4 = scmp.lt.u32.totalorder %s1930_s6, %s2155_s20 }
  0x35   : > { %p1933_p7 = pnand %p1931_p6, %p1902_p0 }
  0x36   : > { %p1938_p3 = por %p1937_p1, %p1936_p13 }
  0x37   : > { %p1934_p10 = pneg %p1933_p7 }
  0x38   : > { %p1940_p5 = por %p1939_p4, %p1938_p3 }
  0x3a   : > { %p1941_p2 = pnand %p1940_p5, %p1934_p10 }
  0x3c   : > { %1944 = shalt.err (!%p1941_p2)
}
  0x3d   : > { %s1945_s26 = scalar_lea.vmem %s201_s22, 64  ;;  %s2020_s5 = smov [#allocation4]  }
  0x3e   : > { %p1946_p9 = scmp.ne.s32.totalorder %s201_s22, %s1945_s26  ;;  %s1950_s9 = sshll.u32 %s2020_s5, 4  ;;  %s1951_s9 = int_to_ptr.vmem [resolvable:$false] %s1950_s9 }
  0x3f   : > { %s1952_s10 = scalar_lea.vmem %s1951_s9, 128  ;;  %p1953_p8 = scmp.lt.s32.totalorder %s201_s22, %s1951_s9 }
  0x40   : > { %p1948_p6 = pnand %p1946_p9, %p1902_p0  ;;  %p1954_p12 = scmp.lt.s32.totalorder %s1952_s10, %s1945_s26 }
  0x42   : > { %p1949_p7 = pneg %p1948_p6  ;;  %p1955_p1 = por %p1954_p12, %p1953_p8 }
  0x44   : > { %p1956_p13 = pnand %p1955_p1, %p1949_p7 }
  0x46   : > { %1959 = shalt.err (!%p1956_p13)
}
  0x47   : > { %1648 = dma.hbm_to_vmem [thread:$0]  (!%p2108_p11), %s2155_s20, 64, %s201_s22, %s189_s4  }
  0x48   : > { %p2375_p10 = scmp.ne.s32.totalorder %s2374_s11, 0 }
  0x49   : > { %s2180_s12 = sand.u32 (!%p2375_p10), 1, %s1998_s13   ;;  %p2376_p8 = scmp.ne.s32.totalorder (!%p2375_p10), %s2370_s23, 0 }
  0x4a   : > { %209 = sbr.rel (%p2375_p10) target bundleno = 442 (0x1ba), region = 32  ;;  %s1487_s18 = sshll.u32 (!%p2375_p10), %s2180_s12, 10 }
  0x4b   : > { %s212_s21 = scalar_lea.sflag (!%p2375_p10), [#allocation3], %s2180_s12  ;;  %s2184_s6 = scalar_lea.vmem (!%p2375_p10), [#allocation2], %s1487_s18 }
  0x51   : > { %1985 = dma.done.wait (%p2376_p8), %s212_s21, 16384  }
  0x52   : > { %1987 = vsyncadd (%p2376_p8), %s212_s21, 4294950912  ;;  %s1488_s7 = sshll.u32 %s2180_s12, 2  ;;  %s221_s11 = scalar_lea.sflag [#allocation5], %s2180_s12 }
  0x53   : > { %s2192_s20 = scalar_lea.vmem [#allocation4], %s1488_s7 }
  0x54   : > { %1989 = dma.done.wait (%p2376_p8), %s221_s11, 64  }
  0x55   : > { %1991 = vsyncadd (%p2376_p8), %s221_s11, 4294967232  ;;  %v1702_v0 = vld [vmem:[%s2184_s6 + $0x4] ss:$16 sps:$4 sm:$0xff]   ;;  %v1704_v1 = vld [vmem:[%s2184_s6 + $0xc] ss:$16 sps:$4 sm:$0xff]   ;;  %s1489_s26 = sshll.u32 %s2180_s12, 6 }
  0x56   : > { %1078 = vmatprep.subr.bf16.mxu0 %v1702_v0  ;;  %v1706_v2 = vld [vmem:[%s2184_s6] ss:$16 sps:$4 sm:$0xff]   ;;  %v1707_v3 = vld [vmem:[%s2184_s6 + $0x8] ss:$16 sps:$4 sm:$0xff]   ;;  %1164 = vmatprep.subr.bf16.mxu1 %v1704_v1  ;;  %v1708_v4 = vld [vmem:[%s2184_s6 + $0x24] ss:$16 sps:$4 sm:$0xff]  }
  0x57   : > { %1079 = vmatpush1.bf16.msra.mxu0 %v1706_v2  ;;  %1165 = vmatpush1.bf16.msra.mxu1 %v1707_v3  ;;  %v1710_v5 = vld [vmem:[%s2184_s6 + $0x2c] ss:$16 sps:$4 sm:$0xff]   ;;  %v1712_v6 = vld [vmem:[%s2184_s6 + $0x20] ss:$16 sps:$4 sm:$0xff]   ;;  %v1713_v7 = vld [vmem:[%s2184_s6 + $0x28] ss:$16 sps:$4 sm:$0xff]  }
  0x58   : > { %1080 = vmatprep.subr.bf16.mxu0 %v1708_v4  ;;  %1166 = vmatprep.subr.bf16.mxu1 %v1710_v5  ;;  %v1714_v8 = vld [vmem:[%s2184_s6 + $0x44] ss:$16 sps:$4 sm:$0xff]   ;;  %v1716_v9 = vld [vmem:[%s2184_s6 + $0x4c] ss:$16 sps:$4 sm:$0xff]   ;;  %v1718_v10 = vld [vmem:[%s2184_s6 + $0x40] ss:$16 sps:$4 sm:$0xff]  }
  0x59   : > { %v1719_v11 = vld [vmem:[%s2184_s6 + $0x48] ss:$16 sps:$4 sm:$0xff]   ;;  %v1720_v12 = vld [vmem:[%s2184_s6 + $0x64] ss:$16 sps:$4 sm:$0xff]   ;;  %v1722_v13 = vld [vmem:[%s2184_s6 + $0x6c] ss:$16 sps:$4 sm:$0xff]  }
  0x5a   : > { %v1724_v14 = vld [vmem:[%s2184_s6 + $0x60] ss:$16 sps:$4 sm:$0xff]   ;;  %v1725_v15 = vld [vmem:[%s2184_s6 + $0x68] ss:$16 sps:$4 sm:$0xff]   ;;  %v1726_v16 = vld [vmem:[%s2184_s6 + $0x84] ss:$16 sps:$4 sm:$0xff]  }
  0x5b   : > { %1081 = vmatpush1.bf16.msra.mxu0 %v1712_v6  ;;  %1167 = vmatpush1.bf16.msra.mxu1 %v1713_v7  ;;  %v1728_v17 = vld [vmem:[%s2184_s6 + $0x8c] ss:$16 sps:$4 sm:$0xff]   ;;  %v1730_v18 = vld [vmem:[%s2184_s6 + $0x80] ss:$16 sps:$4 sm:$0xff]   ;;  %v1731_v19 = vld [vmem:[%s2184_s6 + $0x88] ss:$16 sps:$4 sm:$0xff]  }
  0x5c   : > { %1082 = vmatprep.subr.bf16.mxu0 %v1714_v8  ;;  %1168 = vmatprep.subr.bf16.mxu1 %v1716_v9  ;;  %v1732_v20 = vld [vmem:[%s2184_s6 + $0xa4] ss:$16 sps:$4 sm:$0xff]   ;;  %v1734_v21 = vld [vmem:[%s2184_s6 + $0xac] ss:$16 sps:$4 sm:$0xff]   ;;  %v1736_v22 = vld [vmem:[%s2184_s6 + $0xa0] ss:$16 sps:$4 sm:$0xff]  }
  0x5d   : > { %v1737_v23 = vld [vmem:[%s2184_s6 + $0xa8] ss:$16 sps:$4 sm:$0xff]   ;;  %v1738_v24 = vld [vmem:[%s2184_s6 + $0xc4] ss:$16 sps:$4 sm:$0xff]   ;;  %v1740_v25 = vld [vmem:[%s2184_s6 + $0xcc] ss:$16 sps:$4 sm:$0xff]  }
  0x5e   : > { %v1742_v26 = vld [vmem:[%s2184_s6 + $0xc0] ss:$16 sps:$4 sm:$0xff]   ;;  %v1743_v27 = vld [vmem:[%s2184_s6 + $0xc8] ss:$16 sps:$4 sm:$0xff]   ;;  %v1744_v28 = vld [vmem:[%s2184_s6 + $0xe4] ss:$16 sps:$4 sm:$0xff]  }
  0x5f   : > { %1083 = vmatpush1.bf16.msra.mxu0 %v1718_v10  ;;  %1169 = vmatpush1.bf16.msra.mxu1 %v1719_v11  ;;  %v1746_v29 = vld [vmem:[%s2184_s6 + $0xec] ss:$16 sps:$4 sm:$0xff]   ;;  %v1748_v30 = vld [vmem:[%s2184_s6 + $0xe0] ss:$16 sps:$4 sm:$0xff]   ;;  %v1749_v31 = vld [vmem:[%s2184_s6 + $0xe8] ss:$16 sps:$4 sm:$0xff]  }
  0x60   : > { %1084 = vmatprep.subr.bf16.mxu0 %v1720_v12  ;;  %1170 = vmatprep.subr.bf16.mxu1 %v1722_v13  ;;  %v1750_v32 = vld [vmem:[%s2184_s6 + $0x104] ss:$16 sps:$4 sm:$0xff]   ;;  %v1752_v33 = vld [vmem:[%s2184_s6 + $0x10c] ss:$16 sps:$4 sm:$0xff]   ;;  %v1754_v34 = vld [vmem:[%s2184_s6 + $0x100] ss:$16 sps:$4 sm:$0xff]  }
  0x61   : > { %v1755_v35 = vld [vmem:[%s2184_s6 + $0x108] ss:$16 sps:$4 sm:$0xff]   ;;  %v1756_v36 = vld [vmem:[%s2184_s6 + $0x124] ss:$16 sps:$4 sm:$0xff]   ;;  %v1758_v37 = vld [vmem:[%s2184_s6 + $0x12c] ss:$16 sps:$4 sm:$0xff]  }
  0x62   : > { %v1760_v38 = vld [vmem:[%s2184_s6 + $0x120] ss:$16 sps:$4 sm:$0xff]   ;;  %v1761_v39 = vld [vmem:[%s2184_s6 + $0x128] ss:$16 sps:$4 sm:$0xff]   ;;  %v1762_v40 = vld [vmem:[%s2184_s6 + $0x144] ss:$16 sps:$4 sm:$0xff]  }
  0x63   : > { %1085 = vmatpush1.bf16.msra.mxu0 %v1724_v14  ;;  %1171 = vmatpush1.bf16.msra.mxu1 %v1725_v15  ;;  %v1764_v41 = vld [vmem:[%s2184_s6 + $0x14c] ss:$16 sps:$4 sm:$0xff]   ;;  %v1766_v42 = vld [vmem:[%s2184_s6 + $0x140] ss:$16 sps:$4 sm:$0xff]   ;;  %v1767_v43 = vld [vmem:[%s2184_s6 + $0x148] ss:$16 sps:$4 sm:$0xff]  }
  0x64   : > { %1086 = vmatprep.subr.bf16.mxu0 %v1726_v16  ;;  %1172 = vmatprep.subr.bf16.mxu1 %v1728_v17  ;;  %v1768_v44 = vld [vmem:[%s2184_s6 + $0x164] ss:$16 sps:$4 sm:$0xff]   ;;  %v1770_v45 = vld [vmem:[%s2184_s6 + $0x16c] ss:$16 sps:$4 sm:$0xff]   ;;  %v1772_v46 = vld [vmem:[%s2184_s6 + $0x160] ss:$16 sps:$4 sm:$0xff]  }
  0x65   : > { %v1773_v47 = vld [vmem:[%s2184_s6 + $0x168] ss:$16 sps:$4 sm:$0xff]   ;;  %v1800_v48 = vld [vmem:[%s2364_s0 + $0x4] ss:$16 sps:$4 sm:$0xff]   ;;  %v1776_v50 = vld [vmem:[%s2184_s6 + $0x18c] ss:$16 sps:$4 sm:$0xff]  }
  0x66   : > { %v1774_v49 = vld [vmem:[%s2184_s6 + $0x184] ss:$16 sps:$4 sm:$0xff]   ;;  %1110 = vmatprep.mubr.bf16.mxu0 %v1800_v48  ;;  %1196 = vmatprep.mubr.bf16.mxu1 %v1800_v48  ;;  %v1778_v51 = vld [vmem:[%s2184_s6 + $0x180] ss:$16 sps:$4 sm:$0xff]   ;;  %v1779_v52 = vld [vmem:[%s2184_s6 + $0x188] ss:$16 sps:$4 sm:$0xff]  }
  0x67   : > { %1087 = vmatpush1.bf16.msra.mxu0 %v1730_v18  ;;  %1173 = vmatpush1.bf16.msra.mxu1 %v1731_v19  ;;  %v1780_v53 = vld [vmem:[%s2184_s6 + $0x1a4] ss:$16 sps:$4 sm:$0xff]   ;;  %v1782_v54 = vld [vmem:[%s2184_s6 + $0x1ac] ss:$16 sps:$4 sm:$0xff]   ;;  %v1784_v55 = vld [vmem:[%s2184_s6 + $0x1a0] ss:$16 sps:$4 sm:$0xff]  }
  0x68   : > { %1088 = vmatprep.subr.bf16.mxu0 %v1732_v20  ;;  %1174 = vmatprep.subr.bf16.mxu1 %v1734_v21  ;;  %v1785_v56 = vld [vmem:[%s2184_s6 + $0x1a8] ss:$16 sps:$4 sm:$0xff]   ;;  %v1786_v57 = vld [vmem:[%s2184_s6 + $0x1c4] ss:$16 sps:$4 sm:$0xff]   ;;  %v1788_v58 = vld [vmem:[%s2184_s6 + $0x1cc] ss:$16 sps:$4 sm:$0xff]  }
  0x69   : > { %v1790_v59 = vld [vmem:[%s2184_s6 + $0x1c0] ss:$16 sps:$4 sm:$0xff]   ;;  %v1791_v60 = vld [vmem:[%s2184_s6 + $0x1c8] ss:$16 sps:$4 sm:$0xff]   ;;  %v1792_v61 = vld [vmem:[%s2184_s6 + $0x1e4] ss:$16 sps:$4 sm:$0xff]  }
  0x6a   : > { %v1794_v62 = vld [vmem:[%s2184_s6 + $0x1ec] ss:$16 sps:$4 sm:$0xff]   ;;  %v1796_v63 = vld [vmem:[%s2184_s6 + $0x1e0] ss:$16 sps:$4 sm:$0xff]   ;;  %v1797_v0 = vld [vmem:[%s2184_s6 + $0x1e8] ss:$16 sps:$4 sm:$0xff]  }
  0x6b   : > { %1089 = vmatpush1.bf16.msra.mxu0 %v1736_v22  ;;  %1175 = vmatpush1.bf16.msra.mxu1 %v1737_v23  ;;  %v1803_v1 = vld [vmem:[%s2184_s6 + $0x204] ss:$16 sps:$4 sm:$0xff]   ;;  %v1806_v2 = vld [vmem:[%s2184_s6 + $0x20c] ss:$16 sps:$4 sm:$0xff]   ;;  %v1798_v3 = vld [vmem:[%s2364_s0] ss:$16 sps:$4 sm:$0xff]  }
  0x6c   : > { %1090 = vmatprep.subr.bf16.mxu0 %v1738_v24  ;;  %1176 = vmatprep.subr.bf16.mxu1 %v1740_v25  ;;  %v1801_v4 = vld [vmem:[%s2184_s6 + $0x200] ss:$16 sps:$4 sm:$0xff]   ;;  %v1804_v5 = vld [vmem:[%s2184_s6 + $0x208] ss:$16 sps:$4 sm:$0xff]   ;;  %v1809_v6 = vld [vmem:[%s2184_s6 + $0x224] ss:$16 sps:$4 sm:$0xff]  }
  0x6d   : > { %v1812_v7 = vld [vmem:[%s2184_s6 + $0x22c] ss:$16 sps:$4 sm:$0xff]   ;;  %v1807_v8 = vld [vmem:[%s2184_s6 + $0x220] ss:$16 sps:$4 sm:$0xff]   ;;  %v1810_v9 = vld [vmem:[%s2184_s6 + $0x228] ss:$16 sps:$4 sm:$0xff]  }
  0x6e   : > { %v1815_v10 = vld [vmem:[%s2184_s6 + $0x244] ss:$16 sps:$4 sm:$0xff]   ;;  %v1818_v11 = vld [vmem:[%s2184_s6 + $0x24c] ss:$16 sps:$4 sm:$0xff]   ;;  %v1813_v12 = vld [vmem:[%s2184_s6 + $0x240] ss:$16 sps:$4 sm:$0xff]  }
  0x6f   : > { %1091 = vmatpush1.bf16.msra.mxu0 %v1742_v26  ;;  %1177 = vmatpush1.bf16.msra.mxu1 %v1743_v27  ;;  %v1816_v13 = vld [vmem:[%s2184_s6 + $0x248] ss:$16 sps:$4 sm:$0xff]   ;;  %v1821_v14 = vld [vmem:[%s2184_s6 + $0x264] ss:$16 sps:$4 sm:$0xff]   ;;  %v1824_v15 = vld [vmem:[%s2184_s6 + $0x26c] ss:$16 sps:$4 sm:$0xff]  }
  0x70   : > { %1092 = vmatprep.subr.bf16.mxu0 %v1744_v28  ;;  %1178 = vmatprep.subr.bf16.mxu1 %v1746_v29  ;;  %v1819_v16 = vld [vmem:[%s2184_s6 + $0x260] ss:$16 sps:$4 sm:$0xff]   ;;  %v1822_v17 = vld [vmem:[%s2184_s6 + $0x268] ss:$16 sps:$4 sm:$0xff]   ;;  %v1827_v18 = vld [vmem:[%s2184_s6 + $0x284] ss:$16 sps:$4 sm:$0xff]  }
  0x71   : > { %v1830_v19 = vld [vmem:[%s2184_s6 + $0x28c] ss:$16 sps:$4 sm:$0xff]   ;;  %v1825_v20 = vld [vmem:[%s2184_s6 + $0x280] ss:$16 sps:$4 sm:$0xff]   ;;  %v1828_v21 = vld [vmem:[%s2184_s6 + $0x288] ss:$16 sps:$4 sm:$0xff]  }
  0x72   : > { %v1833_v22 = vld [vmem:[%s2184_s6 + $0x2a4] ss:$16 sps:$4 sm:$0xff]   ;;  %v1836_v23 = vld [vmem:[%s2184_s6 + $0x2ac] ss:$16 sps:$4 sm:$0xff]   ;;  %v1831_v24 = vld [vmem:[%s2184_s6 + $0x2a0] ss:$16 sps:$4 sm:$0xff]  }
  0x73   : > { %1093 = vmatpush1.bf16.msra.mxu0 %v1748_v30  ;;  %1179 = vmatpush1.bf16.msra.mxu1 %v1749_v31  ;;  %v1834_v25 = vld [vmem:[%s2184_s6 + $0x2a8] ss:$16 sps:$4 sm:$0xff]   ;;  %v1839_v26 = vld [vmem:[%s2184_s6 + $0x2c4] ss:$16 sps:$4 sm:$0xff]   ;;  %v1842_v27 = vld [vmem:[%s2184_s6 + $0x2cc] ss:$16 sps:$4 sm:$0xff]  }
  0x74   : > { %1094 = vmatprep.subr.bf16.mxu0 %v1750_v32  ;;  %1180 = vmatprep.subr.bf16.mxu1 %v1752_v33  ;;  %v1899_v28 = vld [vmem:[%s2364_s0 + $0xc] ss:$16 sps:$4 sm:$0xff]   ;;  %v1837_v29 = vld [vmem:[%s2184_s6 + $0x2c0] ss:$16 sps:$4 sm:$0xff]   ;;  %v1840_v30 = vld [vmem:[%s2184_s6 + $0x2c8] ss:$16 sps:$4 sm:$0xff]  }
  0x75   : > { %v1845_v31 = vld [vmem:[%s2184_s6 + $0x2e4] ss:$16 sps:$4 sm:$0xff]   ;;  %v1848_v32 = vld [vmem:[%s2184_s6 + $0x2ec] ss:$16 sps:$4 sm:$0xff]   ;;  %v1843_v33 = vld [vmem:[%s2184_s6 + $0x2e0] ss:$16 sps:$4 sm:$0xff]  }
  0x76   : > { %v1872_v48 = vld [vmem:[%s2184_s6 + $0x36c] ss:$16 sps:$4 sm:$0xff]   ;;  %s255_s5 = scalar_lea.vmem [#allocation6], %s1489_s26  ;;  %p2377_p11 = scmp.ne.s32.totalorder %s2371_s25, 0 }
  0x77   : > { %1095 = vmatpush1.bf16.msra.mxu0 %v1754_v34  ;;  %1181 = vmatpush1.bf16.msra.mxu1 %v1755_v35  ;;  %v1846_v34 = vld [vmem:[%s2184_s6 + $0x2e8] ss:$16 sps:$4 sm:$0xff]   ;;  %v1851_v35 = vld [vmem:[%s2184_s6 + $0x304] ss:$16 sps:$4 sm:$0xff]   ;;  %s1629_s9 = sshll.u32 (%p2377_p11), %s2006_s15, 5 }
  0x78   : > { %1096 = vmatprep.subr.bf16.mxu0 %v1756_v36  ;;  %1182 = vmatprep.subr.bf16.mxu1 %v1758_v37  ;;  %v1854_v36 = vld [vmem:[%s2184_s6 + $0x30c] ss:$16 sps:$4 sm:$0xff]   ;;  %v1849_v37 = vld [vmem:[%s2184_s6 + $0x300] ss:$16 sps:$4 sm:$0xff]   ;;  %s1332_s18 = scalar_lea.vmem (%p2377_p11), %s2367_s3, %s1629_s9 }
  0x7b   : > { %1097 = vmatpush1.bf16.msra.mxu0 %v1760_v38  ;;  %1183 = vmatpush1.bf16.msra.mxu1 %v1761_v39  ;;  %v1852_v38 = vld [vmem:[%s2184_s6 + $0x308] ss:$16 sps:$4 sm:$0xff]   ;;  %v1857_v39 = vld [vmem:[%s2184_s6 + $0x324] ss:$16 sps:$4 sm:$0xff]  }
  0x7c   : > { %1098 = vmatprep.subr.bf16.mxu0 %v1762_v40  ;;  %1184 = vmatprep.subr.bf16.mxu1 %v1764_v41  ;;  %v1860_v40 = vld [vmem:[%s2184_s6 + $0x32c] ss:$16 sps:$4 sm:$0xff]   ;;  %v1855_v41 = vld [vmem:[%s2184_s6 + $0x320] ss:$16 sps:$4 sm:$0xff]  }
  0x7f   : > { %1099 = vmatpush1.bf16.msra.mxu0 %v1766_v42  ;;  %1185 = vmatpush1.bf16.msra.mxu1 %v1767_v43  ;;  %v1858_v42 = vld [vmem:[%s2184_s6 + $0x328] ss:$16 sps:$4 sm:$0xff]   ;;  %v1863_v43 = vld [vmem:[%s2184_s6 + $0x344] ss:$16 sps:$4 sm:$0xff]  }
  0x80   : > { %1100 = vmatprep.subr.bf16.mxu0 %v1768_v44  ;;  %1186 = vmatprep.subr.bf16.mxu1 %v1770_v45  ;;  %v1866_v44 = vld [vmem:[%s2184_s6 + $0x34c] ss:$16 sps:$4 sm:$0xff]   ;;  %v1861_v45 = vld [vmem:[%s2184_s6 + $0x340] ss:$16 sps:$4 sm:$0xff]  }
  0x83   : > { %1101 = vmatpush1.bf16.msra.mxu0 %v1772_v46  ;;  %1187 = vmatpush1.bf16.msra.mxu1 %v1773_v47  ;;  %v1864_v46 = vld [vmem:[%s2184_s6 + $0x348] ss:$16 sps:$4 sm:$0xff]   ;;  %v1869_v47 = vld [vmem:[%s2184_s6 + $0x364] ss:$16 sps:$4 sm:$0xff]  }
  0x84   : > { %1102 = vmatprep.subr.bf16.mxu0 %v1774_v49  ;;  %1188 = vmatprep.subr.bf16.mxu1 %v1776_v50  ;;  %v1867_v49 = vld [vmem:[%s2184_s6 + $0x360] ss:$16 sps:$4 sm:$0xff]   ;;  %v1870_v50 = vld [vmem:[%s2184_s6 + $0x368] ss:$16 sps:$4 sm:$0xff]  }
  0x87   : > { %1103 = vmatpush1.bf16.msra.mxu0 %v1778_v51  ;;  %1189 = vmatpush1.bf16.msra.mxu1 %v1779_v52  ;;  %v1875_v51 = vld [vmem:[%s2184_s6 + $0x384] ss:$16 sps:$4 sm:$0xff]   ;;  %v1878_v52 = vld [vmem:[%s2184_s6 + $0x38c] ss:$16 sps:$4 sm:$0xff]  }
  0x88   : > { %1104 = vmatprep.subr.bf16.mxu0 %v1780_v53  ;;  %1190 = vmatprep.subr.bf16.mxu1 %v1782_v54  ;;  %v1873_v53 = vld [vmem:[%s2184_s6 + $0x380] ss:$16 sps:$4 sm:$0xff]   ;;  %v1876_v54 = vld [vmem:[%s2184_s6 + $0x388] ss:$16 sps:$4 sm:$0xff]  }
  0x8b   : > { %1105 = vmatpush1.bf16.msra.mxu0 %v1784_v55  ;;  %1191 = vmatpush1.bf16.msra.mxu1 %v1785_v56  ;;  %v1881_v55 = vld [vmem:[%s2184_s6 + $0x3a4] ss:$16 sps:$4 sm:$0xff]   ;;  %v1884_v56 = vld [vmem:[%s2184_s6 + $0x3ac] ss:$16 sps:$4 sm:$0xff]  }
  0x8c   : > { %1106 = vmatprep.subr.bf16.mxu0 %v1786_v57  ;;  %1192 = vmatprep.subr.bf16.mxu1 %v1788_v58  ;;  %v1879_v57 = vld [vmem:[%s2184_s6 + $0x3a0] ss:$16 sps:$4 sm:$0xff]   ;;  %v1882_v58 = vld [vmem:[%s2184_s6 + $0x3a8] ss:$16 sps:$4 sm:$0xff]  }
  0x8f   : > { %1107 = vmatpush1.bf16.msra.mxu0 %v1790_v59  ;;  %1193 = vmatpush1.bf16.msra.mxu1 %v1791_v60  ;;  %v1887_v59 = vld [vmem:[%s2184_s6 + $0x3c4] ss:$16 sps:$4 sm:$0xff]   ;;  %v1890_v60 = vld [vmem:[%s2184_s6 + $0x3cc] ss:$16 sps:$4 sm:$0xff]  }
  0x90   : > { %1108 = vmatprep.subr.bf16.mxu0 %v1792_v61  ;;  %1194 = vmatprep.subr.bf16.mxu1 %v1794_v62  ;;  %v1885_v61 = vld [vmem:[%s2184_s6 + $0x3c0] ss:$16 sps:$4 sm:$0xff]   ;;  %v1888_v62 = vld [vmem:[%s2184_s6 + $0x3c8] ss:$16 sps:$4 sm:$0xff]  }
  0x93   : > { %1109 = vmatpush1.bf16.msra.mxu0 %v1796_v63  ;;  %1195 = vmatpush1.bf16.msra.mxu1 %v1797_v0  ;;  %v1893_v63 = vld [vmem:[%s2184_s6 + $0x3e4] ss:$16 sps:$4 sm:$0xff]   ;;  %v1896_v0 = vld [vmem:[%s2184_s6 + $0x3ec] ss:$16 sps:$4 sm:$0xff]  }
  0x94   : > { %1121 = vmatprep.subr.bf16.mxu0 %v1803_v1  ;;  %1207 = vmatprep.subr.bf16.mxu1 %v1806_v2  ;;  %v1891_v1 = vld [vmem:[%s2184_s6 + $0x3e0] ss:$16 sps:$4 sm:$0xff]   ;;  %v1894_v2 = vld [vmem:[%s2184_s6 + $0x3e8] ss:$16 sps:$4 sm:$0xff]  }
  0x96   : > { %1111 = vmatmul.mubr.bf16.vlgmr.msra.gmra.mrb[0].mxu0 %v1798_v3  ;;  %1197 = vmatmul.mubr.bf16.vlgmr.msra.gmra.mrb[0].mxu1 %v1798_v3  ;;  %v1897_v3 = vld [vmem:[%s2364_s0 + $0x8] ss:$16 sps:$4 sm:$0xff]  }
  0x97   : > { %1122 = vmatpush1.bf16.msra.mxu0 %v1801_v4  ;;  %1208 = vmatpush1.bf16.msra.mxu1 %v1804_v5  ;;  %v1279_v4 = vlaneseq }
  0x98   : > { %1123 = vmatprep.subr.bf16.mxu0 %v1809_v6  ;;  %1209 = vmatprep.subr.bf16.mxu1 %v1812_v7 }
  0x99   : > { %1153 = vmatprep.mubr.bf16.mxu0 %v1899_v28  ;;  %1239 = vmatprep.mubr.bf16.mxu1 %v1899_v28  ;;  %v1280_v5 = vshrl.u32 %v1279_v4, 7 }
  0x9b   : > { %1124 = vmatpush1.bf16.msra.mxu0 %v1807_v8  ;;  %1210 = vmatpush1.bf16.msra.mxu1 %v1810_v9  ;;  %v1281_v6 = vsub.s32 0, %v1280_v5  ;;  %v1289_v7 = vsub.s32 2, %v1280_v5  ;;  %v1277_v8 = vld [vmem:[%s2192_s20] sm:$0xf]  ;;  %v1285_v9 = vsub.s32 1, %v1280_v5 }
  0x9c   : > { %1125 = vmatprep.subr.bf16.mxu0 %v1815_v10  ;;  %1211 = vmatprep.subr.bf16.mxu1 %v1818_v11  ;;  %v1293_v10 = vsub.s32 3, %v1280_v5 }
  0x9d   : > { %v1282_v11 = vrot.slane %v1277_v8, %v1281_v6 }
  0x9f   : > { %1126 = vmatpush1.bf16.msra.mxu0 %v1813_v12  ;;  %1212 = vmatpush1.bf16.msra.mxu1 %v1816_v13  ;;  %v1290_v12 = vrot.slane %v1277_v8, %v1289_v7 }
  0xa0   : > { %1127 = vmatprep.subr.bf16.mxu0 %v1821_v14  ;;  %1213 = vmatprep.subr.bf16.mxu1 %v1824_v15  ;;  %v1286_v15 = vrot.slane %v1277_v8, %v1285_v9 }
  0xa3   : > { %1128 = vmatpush1.bf16.msra.mxu0 %v1819_v16  ;;  %1214 = vmatpush1.bf16.msra.mxu1 %v1822_v17  ;;  %v1294_v16 = vrot.slane %v1277_v8, %v1293_v10 }
  0xa4   : > { %1129 = vmatprep.subr.bf16.mxu0 %v1827_v18  ;;  %1215 = vmatprep.subr.bf16.mxu1 %v1830_v19 }
  0xa7   : > { %1130 = vmatpush1.bf16.msra.mxu0 %v1825_v20  ;;  %1216 = vmatpush1.bf16.msra.mxu1 %v1828_v21 }
  0xa8   : > { %1131 = vmatprep.subr.bf16.mxu0 %v1833_v22  ;;  %1217 = vmatprep.subr.bf16.mxu1 %v1836_v23 }
  0xab   : > { %1132 = vmatpush1.bf16.msra.mxu0 %v1831_v24  ;;  %1218 = vmatpush1.bf16.msra.mxu1 %v1834_v25 }
  0xac   : > { %1133 = vmatprep.subr.bf16.mxu0 %v1839_v26  ;;  %1219 = vmatprep.subr.bf16.mxu1 %v1842_v27 }
  0xaf   : > { %1134 = vmatpush1.bf16.msra.mxu0 %v1837_v29  ;;  %1220 = vmatpush1.bf16.msra.mxu1 %v1840_v30 }
  0xb0   : > { %1135 = vmatprep.subr.bf16.mxu0 %v1845_v31  ;;  %1221 = vmatprep.subr.bf16.mxu1 %v1848_v32 }
  0xb3   : > { %1136 = vmatpush1.bf16.msra.mxu0 %v1843_v33  ;;  %1222 = vmatpush1.bf16.msra.mxu1 %v1846_v34 }
  0xb4   : > { %1137 = vmatprep.subr.bf16.mxu0 %v1851_v35  ;;  %1223 = vmatprep.subr.bf16.mxu1 %v1854_v36 }
  0xb7   : > { %1138 = vmatpush1.bf16.msra.mxu0 %v1849_v37  ;;  %1224 = vmatpush1.bf16.msra.mxu1 %v1852_v38 }
  0xb8   : > { %1139 = vmatprep.subr.bf16.mxu0 %v1857_v39  ;;  %1225 = vmatprep.subr.bf16.mxu1 %v1860_v40 }
  0xbb   : > { %1140 = vmatpush1.bf16.msra.mxu0 %v1855_v41  ;;  %1226 = vmatpush1.bf16.msra.mxu1 %v1858_v42 }
  0xbc   : > { %1141 = vmatprep.subr.bf16.mxu0 %v1863_v43  ;;  %1227 = vmatprep.subr.bf16.mxu1 %v1866_v44 }
  0xbf   : > { %1142 = vmatpush1.bf16.msra.mxu0 %v1861_v45  ;;  %1228 = vmatpush1.bf16.msra.mxu1 %v1864_v46 }
  0xc0   : > { %1143 = vmatprep.subr.bf16.mxu0 %v1869_v47  ;;  %1229 = vmatprep.subr.bf16.mxu1 %v1872_v48 }
  0xc3   : > { %1144 = vmatpush1.bf16.msra.mxu0 %v1867_v49  ;;  %1230 = vmatpush1.bf16.msra.mxu1 %v1870_v50 }
  0xc4   : > { %1145 = vmatprep.subr.bf16.mxu0 %v1875_v51  ;;  %1231 = vmatprep.subr.bf16.mxu1 %v1878_v52 }
  0xc7   : > { %1146 = vmatpush1.bf16.msra.mxu0 %v1873_v53  ;;  %1232 = vmatpush1.bf16.msra.mxu1 %v1876_v54 }
  0xc8   : > { %1147 = vmatprep.subr.bf16.mxu0 %v1881_v55  ;;  %1233 = vmatprep.subr.bf16.mxu1 %v1884_v56 }
  0xcb   : > { %1148 = vmatpush1.bf16.msra.mxu0 %v1879_v57  ;;  %1234 = vmatpush1.bf16.msra.mxu1 %v1882_v58 }
  0xcc   : > { %1149 = vmatprep.subr.bf16.mxu0 %v1887_v59  ;;  %1235 = vmatprep.subr.bf16.mxu1 %v1890_v60 }
  0xcf   : > { %1150 = vmatpush1.bf16.msra.mxu0 %v1885_v61  ;;  %1236 = vmatpush1.bf16.msra.mxu1 %v1888_v62 }
  0xd0   : > { %1151 = vmatprep.subr.bf16.mxu0 %v1893_v63  ;;  %1237 = vmatprep.subr.bf16.mxu1 %v1896_v0 }
  0xd3   : > { %1152 = vmatpush1.bf16.msra.mxu0 %v1891_v1  ;;  %1238 = vmatpush1.bf16.msra.mxu1 %v1894_v2 }
  0xd6   : > { %1154 = vmatmul.mubr.bf16.vlgmr.msra.gmra.mrb[0].mxu0 %v1897_v3  ;;  %1240 = vmatmul.mubr.bf16.vlgmr.msra.gmra.mrb[0].mxu1 %v1897_v3 }
 0x1a9   : > { %v1155_v13 = vpop.f32.mrb[0].mxu0  ;;  %v1241_v14 = vpop.f32.mrb[0].mxu1 }
 0x1aa   : > { %v1157_v17 = vpop.f32.mrb[1].mxu0  ;;  %v1243_v18 = vpop.f32.mrb[1].mxu1  ;;  %v1299_v21 = vadd.f32 %v1282_v11, %v1155_v13  ;;  %v1301_v22 = vadd.f32 %v1290_v12, %v1241_v14 }
 0x1ab   : > { %v1159_v19 = vpop.f32.mrb[2].mxu0  ;;  %v1245_v20 = vpop.f32.mrb[2].mxu1  ;;  %v1300_v25 = vadd.f32 %v1286_v15, %v1157_v17  ;;  %v1302_v26 = vadd.f32 %v1294_v16, %v1243_v18  ;;  %1329 = sbr.rel (!%p2377_p11) target bundleno = 442 (0x1ba), region = 52 }
 0x1ac   : > { %v1161_v23 = vpop.f32.mrb[3].mxu0  ;;  %v1247_v24 = vpop.f32.mrb[3].mxu1  ;;  %v1307_v27 = vmax.f32 %v1299_v21, 0.0  ;;  %v1309_v28 = vmax.f32 %v1301_v22, 0.0  ;;  %v1303_v29 = vadd.f32 %v1282_v11, %v1159_v19  ;;  %v1305_v30 = vadd.f32 %v1290_v12, %v1245_v20 }
 0x1ad   : > { %v1308_v31 = vmax.f32 %v1300_v25, 0.0  ;;  %v1310_v32 = vmax.f32 %v1302_v26, 0.0  ;;  %v1304_v33 = vadd.f32 %v1286_v15, %v1161_v23  ;;  %v1306_v34 = vadd.f32 %v1294_v16, %v1247_v24 }
 0x1ae   : > { %1315 = vst [vmem:[%s255_s5] sm:$0xff] %v1307_v27  ;;  %1317 = vst [vmem:[%s255_s5 + $0x10] sm:$0xff] %v1309_v28  ;;  %v1311_v35 = vmax.f32 %v1303_v29, 0.0  ;;  %v1313_v36 = vmax.f32 %v1305_v30, 0.0 }
 0x1af   : > { %1316 = vst [vmem:[%s255_s5 + $0x8] sm:$0xff] %v1308_v31  ;;  %1318 = vst [vmem:[%s255_s5 + $0x18] sm:$0xff] %v1310_v32  ;;  %v1312_v37 = vmax.f32 %v1304_v33, 0.0  ;;  %v1314_v38 = vmax.f32 %v1306_v34, 0.0 }
 0x1b0   : > { %1319 = vst [vmem:[%s255_s5 + $0x20] sm:$0xff] %v1311_v35  ;;  %1321 = vst [vmem:[%s255_s5 + $0x30] sm:$0xff] %v1313_v36 }
 0x1b1   : > { %1320 = vst [vmem:[%s255_s5 + $0x28] sm:$0xff] %v1312_v37  ;;  %1322 = vst [vmem:[%s255_s5 + $0x38] sm:$0xff] %v1314_v38 }
 0x1b5   : > { %v1345_v39 = vld [vmem:[%s255_s5] sm:$0xff]  ;;  %v1349_v41 = vld [vmem:[%s255_s5 + $0x10] sm:$0xff] }
 0x1b6   : > { %v1347_v40 = vld [vmem:[%s255_s5 + $0x8] sm:$0xff]  ;;  %v1351_v42 = vld [vmem:[%s255_s5 + $0x18] sm:$0xff]  ;;  %1346 = vst [vmem:[%s1332_s18] sm:$0xff] %v1345_v39  ;;  %1350 = vst [vmem:[%s1332_s18 + $0x10] sm:$0xff] %v1349_v41 }
 0x1b7   : > { %v1353_v43 = vld [vmem:[%s255_s5 + $0x20] sm:$0xff]  ;;  %1348 = vst [vmem:[%s1332_s18 + $0x8] sm:$0xff] %v1347_v40  ;;  %1352 = vst [vmem:[%s1332_s18 + $0x18] sm:$0xff] %v1351_v42  ;;  %v1357_v45 = vld [vmem:[%s255_s5 + $0x30] sm:$0xff] }
 0x1b8   : > { %v1355_v44 = vld [vmem:[%s255_s5 + $0x28] sm:$0xff]  ;;  %1354 = vst [vmem:[%s1332_s18 + $0x140] sm:$0xff] %v1353_v43  ;;  %v1359_v46 = vld [vmem:[%s255_s5 + $0x38] sm:$0xff]  ;;  %1358 = vst [vmem:[%s1332_s18 + $0x150] sm:$0xff] %v1357_v45 }
 0x1b9   : > { %1356 = vst [vmem:[%s1332_s18 + $0x148] sm:$0xff] %v1355_v44  ;;  %1360 = vst [vmem:[%s1332_s18 + $0x158] sm:$0xff] %v1359_v46 }
 0x1ba PF: > { %s19_s17 = sadd.s32 1, %s2014_s17   ;;  %s2378_s12 = smov %s1998_s13 }
 0x1bb   : > { %p16_p0 = scmp.ge.s32.totalorder %s19_s17, 12   ;;  %s2379_s13 = smov %s2002_s14 }
 0x1bc   : > { %s2380_s14 = smov %s2089_s24  ;;  %s2381_s15 = smov %s2010_s16 }
 0x1bd   : > { %s2382_s16 = smov %s2384_s19  ;;  %18 = sbr.rel (!%p16_p0) target bundleno = 6 (0x6), region = 119 }
 0x1c4   :  { %1376 = vsyncpa [#allocation3], 1 }
 0x1c5   :  { %1378 = vsyncpa [#allocation3 + $0x1], 1 }
 0x1c6   :  { %1379 = vsyncpa [#allocation5], 1 }
 0x1c7   :  { %1381 = vsyncpa [#allocation5 + $0x1], 1 }

// kernel: ori_sig_cnn_forward.6
= control target key start
LH: loop header
LB: loop body
LE: loop exit
PB: predicated region body
PF: predicated region fallthrough
CT: control target
= control target key end

     0   :  { %s5189_s12 = smov 0   ;;  %s5191_s13 = smov 0   ;;  %s6295_s0 = inlined_call_operand.vmem [shape: bf16[16,2560], index: 0, kind: input, shape index: {}]   ;;  %s6296_s1 = inlined_call_operand.vmem [shape: bf16[2560,1280], index: 1, kind: input, shape index: {}]   ;;  %s6297_s2 = inlined_call_operand.vmem [shape: f32[1,1280], index: 2, kind: input, shape index: {}]   ;;  %s6298_s3 = inlined_call_operand.vmem [shape: f32[16,1280], index: 3, kind: output, shape index: {}]  }
   0x1   :  { %s5193_s14 = smov 0   ;;  %s5195_s15 = smov 0  }
   0x2   :  { %s5197_s16 = smov 0  }
   0x3 LB: > { %s25_s17 = sadd.s32 1, %s5163_s15  ;;  %s4183_s18 = sadd.s32 4294967295, %s5167_s16   ;;  %s5167_s16 = sphi %s5197_s16, %s13_s16   ;;  %s5163_s15 = sphi %s5195_s15, %s6303_s15   ;;  %s5159_s14 = sphi %s5193_s14, %s6302_s14   ;;  %s5155_s13 = sphi %s5191_s13, %s6301_s13   ;;  %s5151_s12 = sphi %s5189_s12, %s6300_s12  }
   0x4   : > { %p27_p0 = scmp.ge.s32.totalorder %s25_s17, 5  ;;  %p67_p1 = scmp.ne.s32.totalorder %s5155_s13, %s5151_s12 }
   0x5   : > { %p68_p2 = scmp.eq.s32.totalorder %s5167_s16, 0  ;;  %p123_p4 = scmp.eq.s32.totalorder %s4183_s18, 4 }
   0x6   : > { %s6305_s17 = smov (%p27_p0, %s25_s17), 0  ;;  %s60_s20 = sadd.s32 1, %s5155_s13 }
   0x7   : > { %p69_p3 = por %p68_p2, %p67_p1  ;;  %s56_s19 = ssub.s32 %s5163_s15, %s6305_s17 }
   0x8   : > { %p58_p5 = scmp.eq.s32.totalorder %s56_s19, 0  ;;  %p5224_p6 = por %p123_p4, %p67_p1 }
   0x9   : > { %p4187_p7 = scmp.ge.s32.totalorder %s5167_s16, 5 }
   0xa   : > { %s5229_s22 = scalar_select %p58_p5, %s5155_s13, %s60_s20  }
   0xb   : > { %154 = sbr.rel (%p4187_p7) target bundleno = 183 (0xb7), region = 20 }
  0x12   : > { %157 = sbr.rel (!%p69_p3) target bundleno = 183 (0xb7), region = 24  ;;  %s159_s23 = sand.u32 (%p69_p3), 1, %s5155_s13  }
  0x13   : > { %s4538_s24 = sshll.u32 (%p69_p3), %s5163_s15, 3  ;;  %s4576_s25 = smul.u32 (%p69_p3), 2560, %s159_s23 }
  0x14   : > { %s5237_s28 = scalar_lea.vmem (%p69_p3), %s6296_s1, %s4538_s24 }
  0x15   : > { %v833_v0 = vld [vmem:[%s5237_s28] sm:$0xff] (%p69_p3)  ;;  %v835_v1 = vld [vmem:[%s5237_s28 + $0x28] sm:$0xff] (%p69_p3)  ;;  %v837_v2 = vld [vmem:[%s5237_s28 + $0x50] sm:$0xff] (%p69_p3)  ;;  %s5245_s29 = scalar_lea.vmem (%p69_p3), [#allocation2], %s4576_s25 }
  0x16   : > { %v839_v3 = vld [vmem:[%s5237_s28 + $0x78] sm:$0xff] (%p69_p3)  ;;  %v841_v4 = vld [vmem:[%s5237_s28 + $0xa0] sm:$0xff] (%p69_p3)  ;;  %v843_v5 = vld [vmem:[%s5237_s28 + $0xc8] sm:$0xff] (%p69_p3)  ;;  %834 = vst [vmem:[%s5245_s29] sm:$0xff] (%p69_p3), %v833_v0 }
  0x17   : > { %836 = vst [vmem:[%s5245_s29 + $0x8] sm:$0xff] (%p69_p3), %v835_v1  ;;  %838 = vst [vmem:[%s5245_s29 + $0x10] sm:$0xff] (%p69_p3), %v837_v2  ;;  %v845_v6 = vld [vmem:[%s5237_s28 + $0xf0] sm:$0xff] (%p69_p3)  ;;  %v847_v7 = vld [vmem:[%s5237_s28 + $0x118] sm:$0xff] (%p69_p3) }
  0x18   : > { %840 = vst [vmem:[%s5245_s29 + $0x18] sm:$0xff] (%p69_p3), %v839_v3  ;;  %842 = vst [vmem:[%s5245_s29 + $0x20] sm:$0xff] (%p69_p3), %v841_v4  ;;  %v849_v8 = vld [vmem:[%s5237_s28 + $0x140] sm:$0xff] (%p69_p3)  ;;  %v851_v9 = vld [vmem:[%s5237_s28 + $0x168] sm:$0xff] (%p69_p3) }
  0x19   : > { %844 = vst [vmem:[%s5245_s29 + $0x28] sm:$0xff] %v843_v5  ;;  %846 = vst [vmem:[%s5245_s29 + $0x30] sm:$0xff] %v845_v6  ;;  %v853_v10 = vld [vmem:[%s5237_s28 + $0x190] sm:$0xff]  ;;  %v855_v11 = vld [vmem:[%s5237_s28 + $0x1b8] sm:$0xff] }
  0x1a   : > { %848 = vst [vmem:[%s5245_s29 + $0x38] sm:$0xff] %v847_v7  ;;  %850 = vst [vmem:[%s5245_s29 + $0x40] sm:$0xff] %v849_v8  ;;  %v857_v12 = vld [vmem:[%s5237_s28 + $0x1e0] sm:$0xff]  ;;  %v859_v13 = vld [vmem:[%s5237_s28 + $0x208] sm:$0xff] }
  0x1b   : > { %852 = vst [vmem:[%s5245_s29 + $0x48] sm:$0xff] %v851_v9  ;;  %854 = vst [vmem:[%s5245_s29 + $0x50] sm:$0xff] %v853_v10  ;;  %v861_v14 = vld [vmem:[%s5237_s28 + $0x230] sm:$0xff]  ;;  %v863_v15 = vld [vmem:[%s5237_s28 + $0x258] sm:$0xff] }
  0x1c   : > { %856 = vst [vmem:[%s5245_s29 + $0x58] sm:$0xff] %v855_v11  ;;  %858 = vst [vmem:[%s5245_s29 + $0x60] sm:$0xff] %v857_v12  ;;  %v865_v16 = vld [vmem:[%s5237_s28 + $0x280] sm:$0xff]  ;;  %v867_v17 = vld [vmem:[%s5237_s28 + $0x2a8] sm:$0xff] }
  0x1d   : > { %860 = vst [vmem:[%s5245_s29 + $0x68] sm:$0xff] %v859_v13  ;;  %862 = vst [vmem:[%s5245_s29 + $0x70] sm:$0xff] %v861_v14  ;;  %v869_v18 = vld [vmem:[%s5237_s28 + $0x2d0] sm:$0xff]  ;;  %v871_v19 = vld [vmem:[%s5237_s28 + $0x2f8] sm:$0xff] }
  0x1e   : > { %864 = vst [vmem:[%s5245_s29 + $0x78] sm:$0xff] %v863_v15  ;;  %866 = vst [vmem:[%s5245_s29 + $0x80] sm:$0xff] %v865_v16  ;;  %v873_v20 = vld [vmem:[%s5237_s28 + $0x320] sm:$0xff]  ;;  %v875_v21 = vld [vmem:[%s5237_s28 + $0x348] sm:$0xff] }
  0x1f   : > { %868 = vst [vmem:[%s5245_s29 + $0x88] sm:$0xff] %v867_v17  ;;  %870 = vst [vmem:[%s5245_s29 + $0x90] sm:$0xff] %v869_v18  ;;  %v877_v22 = vld [vmem:[%s5237_s28 + $0x370] sm:$0xff]  ;;  %v879_v23 = vld [vmem:[%s5237_s28 + $0x398] sm:$0xff] }
  0x20   : > { %872 = vst [vmem:[%s5245_s29 + $0x98] sm:$0xff] %v871_v19  ;;  %874 = vst [vmem:[%s5245_s29 + $0xa0] sm:$0xff] %v873_v20  ;;  %v881_v24 = vld [vmem:[%s5237_s28 + $0x3c0] sm:$0xff]  ;;  %v883_v25 = vld [vmem:[%s5237_s28 + $0x3e8] sm:$0xff] }
  0x21   : > { %876 = vst [vmem:[%s5245_s29 + $0xa8] sm:$0xff] %v875_v21  ;;  %878 = vst [vmem:[%s5245_s29 + $0xb0] sm:$0xff] %v877_v22  ;;  %v885_v26 = vld [vmem:[%s5237_s28 + $0x410] sm:$0xff]  ;;  %v887_v27 = vld [vmem:[%s5237_s28 + $0x438] sm:$0xff] }
  0x22   : > { %880 = vst [vmem:[%s5245_s29 + $0xb8] sm:$0xff] %v879_v23  ;;  %882 = vst [vmem:[%s5245_s29 + $0xc0] sm:$0xff] %v881_v24  ;;  %v889_v28 = vld [vmem:[%s5237_s28 + $0x460] sm:$0xff]  ;;  %v891_v29 = vld [vmem:[%s5237_s28 + $0x488] sm:$0xff] }
  0x23   : > { %884 = vst [vmem:[%s5245_s29 + $0xc8] sm:$0xff] %v883_v25  ;;  %886 = vst [vmem:[%s5245_s29 + $0xd0] sm:$0xff] %v885_v26  ;;  %v893_v30 = vld [vmem:[%s5237_s28 + $0x4b0] sm:$0xff]  ;;  %v895_v31 = vld [vmem:[%s5237_s28 + $0x4d8] sm:$0xff] }
  0x24   : > { %888 = vst [vmem:[%s5245_s29 + $0xd8] sm:$0xff] %v887_v27  ;;  %890 = vst [vmem:[%s5245_s29 + $0xe0] sm:$0xff] %v889_v28  ;;  %v897_v32 = vld [vmem:[%s5237_s28 + $0x500] sm:$0xff]  ;;  %v899_v33 = vld [vmem:[%s5237_s28 + $0x528] sm:$0xff] }
  0x25   : > { %892 = vst [vmem:[%s5245_s29 + $0xe8] sm:$0xff] %v891_v29  ;;  %894 = vst [vmem:[%s5245_s29 + $0xf0] sm:$0xff] %v893_v30  ;;  %v901_v34 = vld [vmem:[%s5237_s28 + $0x550] sm:$0xff]  ;;  %v903_v35 = vld [vmem:[%s5237_s28 + $0x578] sm:$0xff] }
  0x26   : > { %896 = vst [vmem:[%s5245_s29 + $0xf8] sm:$0xff] %v895_v31  ;;  %898 = vst [vmem:[%s5245_s29 + $0x100] sm:$0xff] %v897_v32  ;;  %v905_v36 = vld [vmem:[%s5237_s28 + $0x5a0] sm:$0xff]  ;;  %v907_v37 = vld [vmem:[%s5237_s28 + $0x5c8] sm:$0xff] }
  0x27   : > { %900 = vst [vmem:[%s5245_s29 + $0x108] sm:$0xff] %v899_v33  ;;  %902 = vst [vmem:[%s5245_s29 + $0x110] sm:$0xff] %v901_v34  ;;  %v909_v38 = vld [vmem:[%s5237_s28 + $0x5f0] sm:$0xff]  ;;  %v911_v39 = vld [vmem:[%s5237_s28 + $0x618] sm:$0xff] }
  0x28   : > { %904 = vst [vmem:[%s5245_s29 + $0x118] sm:$0xff] %v903_v35  ;;  %906 = vst [vmem:[%s5245_s29 + $0x120] sm:$0xff] %v905_v36  ;;  %v913_v40 = vld [vmem:[%s5237_s28 + $0x640] sm:$0xff]  ;;  %v915_v41 = vld [vmem:[%s5237_s28 + $0x668] sm:$0xff] }
  0x29   : > { %908 = vst [vmem:[%s5245_s29 + $0x128] sm:$0xff] %v907_v37  ;;  %910 = vst [vmem:[%s5245_s29 + $0x130] sm:$0xff] %v909_v38  ;;  %v917_v42 = vld [vmem:[%s5237_s28 + $0x690] sm:$0xff]  ;;  %v919_v43 = vld [vmem:[%s5237_s28 + $0x6b8] sm:$0xff] }
  0x2a   : > { %912 = vst [vmem:[%s5245_s29 + $0x138] sm:$0xff] %v911_v39  ;;  %914 = vst [vmem:[%s5245_s29 + $0x140] sm:$0xff] %v913_v40  ;;  %v921_v44 = vld [vmem:[%s5237_s28 + $0x6e0] sm:$0xff]  ;;  %v923_v45 = vld [vmem:[%s5237_s28 + $0x708] sm:$0xff] }
  0x2b   : > { %916 = vst [vmem:[%s5245_s29 + $0x148] sm:$0xff] %v915_v41  ;;  %918 = vst [vmem:[%s5245_s29 + $0x150] sm:$0xff] %v917_v42  ;;  %v925_v46 = vld [vmem:[%s5237_s28 + $0x730] sm:$0xff]  ;;  %v927_v47 = vld [vmem:[%s5237_s28 + $0x758] sm:$0xff] }
  0x2c   : > { %920 = vst [vmem:[%s5245_s29 + $0x158] sm:$0xff] %v919_v43  ;;  %922 = vst [vmem:[%s5245_s29 + $0x160] sm:$0xff] %v921_v44  ;;  %v929_v48 = vld [vmem:[%s5237_s28 + $0x780] sm:$0xff]  ;;  %v931_v49 = vld [vmem:[%s5237_s28 + $0x7a8] sm:$0xff] }
  0x2d   : > { %924 = vst [vmem:[%s5245_s29 + $0x168] sm:$0xff] %v923_v45  ;;  %926 = vst [vmem:[%s5245_s29 + $0x170] sm:$0xff] %v925_v46  ;;  %v933_v50 = vld [vmem:[%s5237_s28 + $0x7d0] sm:$0xff]  ;;  %v935_v51 = vld [vmem:[%s5237_s28 + $0x7f8] sm:$0xff] }
  0x2e   : > { %928 = vst [vmem:[%s5245_s29 + $0x178] sm:$0xff] %v927_v47  ;;  %930 = vst [vmem:[%s5245_s29 + $0x180] sm:$0xff] %v929_v48  ;;  %v937_v52 = vld [vmem:[%s5237_s28 + $0x820] sm:$0xff]  ;;  %v939_v53 = vld [vmem:[%s5237_s28 + $0x848] sm:$0xff] }
  0x2f   : > { %932 = vst [vmem:[%s5245_s29 + $0x188] sm:$0xff] %v931_v49  ;;  %934 = vst [vmem:[%s5245_s29 + $0x190] sm:$0xff] %v933_v50  ;;  %v941_v54 = vld [vmem:[%s5237_s28 + $0x870] sm:$0xff]  ;;  %v943_v55 = vld [vmem:[%s5237_s28 + $0x898] sm:$0xff] }
  0x30   : > { %936 = vst [vmem:[%s5245_s29 + $0x198] sm:$0xff] %v935_v51  ;;  %938 = vst [vmem:[%s5245_s29 + $0x1a0] sm:$0xff] %v937_v52  ;;  %v945_v56 = vld [vmem:[%s5237_s28 + $0x8c0] sm:$0xff]  ;;  %v947_v57 = vld [vmem:[%s5237_s28 + $0x8e8] sm:$0xff] }
  0x31   : > { %940 = vst [vmem:[%s5245_s29 + $0x1a8] sm:$0xff] %v939_v53  ;;  %942 = vst [vmem:[%s5245_s29 + $0x1b0] sm:$0xff] %v941_v54  ;;  %v949_v58 = vld [vmem:[%s5237_s28 + $0x910] sm:$0xff]  ;;  %v951_v59 = vld [vmem:[%s5237_s28 + $0x938] sm:$0xff] }
  0x32   : > { %944 = vst [vmem:[%s5245_s29 + $0x1b8] sm:$0xff] %v943_v55  ;;  %946 = vst [vmem:[%s5245_s29 + $0x1c0] sm:$0xff] %v945_v56  ;;  %v953_v60 = vld [vmem:[%s5237_s28 + $0x960] sm:$0xff]  ;;  %v955_v61 = vld [vmem:[%s5237_s28 + $0x988] sm:$0xff] }
  0x33   : > { %948 = vst [vmem:[%s5245_s29 + $0x1c8] sm:$0xff] %v947_v57  ;;  %950 = vst [vmem:[%s5245_s29 + $0x1d0] sm:$0xff] %v949_v58  ;;  %v957_v62 = vld [vmem:[%s5237_s28 + $0x9b0] sm:$0xff]  ;;  %v959_v63 = vld [vmem:[%s5237_s28 + $0x9d8] sm:$0xff] }
  0x34   : > { %952 = vst [vmem:[%s5245_s29 + $0x1d8] sm:$0xff] %v951_v59  ;;  %954 = vst [vmem:[%s5245_s29 + $0x1e0] sm:$0xff] %v953_v60  ;;  %v961_v0 = vld [vmem:[%s5237_s28 + $0xa00] sm:$0xff]  ;;  %v963_v1 = vld [vmem:[%s5237_s28 + $0xa28] sm:$0xff] }
  0x35   : > { %956 = vst [vmem:[%s5245_s29 + $0x1e8] sm:$0xff] %v955_v61  ;;  %958 = vst [vmem:[%s5245_s29 + $0x1f0] sm:$0xff] %v957_v62  ;;  %v965_v2 = vld [vmem:[%s5237_s28 + $0xa50] sm:$0xff]  ;;  %v967_v3 = vld [vmem:[%s5237_s28 + $0xa78] sm:$0xff] }
  0x36   : > { %960 = vst [vmem:[%s5245_s29 + $0x1f8] sm:$0xff] %v959_v63  ;;  %962 = vst [vmem:[%s5245_s29 + $0x200] sm:$0xff] %v961_v0  ;;  %v969_v4 = vld [vmem:[%s5237_s28 + $0xaa0] sm:$0xff]  ;;  %v971_v5 = vld [vmem:[%s5237_s28 + $0xac8] sm:$0xff] }
  0x37   : > { %964 = vst [vmem:[%s5245_s29 + $0x208] sm:$0xff] %v963_v1  ;;  %966 = vst [vmem:[%s5245_s29 + $0x210] sm:$0xff] %v965_v2  ;;  %v973_v6 = vld [vmem:[%s5237_s28 + $0xaf0] sm:$0xff]  ;;  %v975_v7 = vld [vmem:[%s5237_s28 + $0xb18] sm:$0xff] }
  0x38   : > { %968 = vst [vmem:[%s5245_s29 + $0x218] sm:$0xff] %v967_v3  ;;  %970 = vst [vmem:[%s5245_s29 + $0x220] sm:$0xff] %v969_v4  ;;  %v977_v8 = vld [vmem:[%s5237_s28 + $0xb40] sm:$0xff]  ;;  %v979_v9 = vld [vmem:[%s5237_s28 + $0xb68] sm:$0xff] }
  0x39   : > { %972 = vst [vmem:[%s5245_s29 + $0x228] sm:$0xff] %v971_v5  ;;  %974 = vst [vmem:[%s5245_s29 + $0x230] sm:$0xff] %v973_v6  ;;  %v981_v10 = vld [vmem:[%s5237_s28 + $0xb90] sm:$0xff]  ;;  %v983_v11 = vld [vmem:[%s5237_s28 + $0xbb8] sm:$0xff] }
  0x3a   : > { %976 = vst [vmem:[%s5245_s29 + $0x238] sm:$0xff] %v975_v7  ;;  %978 = vst [vmem:[%s5245_s29 + $0x240] sm:$0xff] %v977_v8  ;;  %v985_v12 = vld [vmem:[%s5237_s28 + $0xbe0] sm:$0xff]  ;;  %v987_v13 = vld [vmem:[%s5237_s28 + $0xc08] sm:$0xff] }
  0x3b   : > { %980 = vst [vmem:[%s5245_s29 + $0x248] sm:$0xff] %v979_v9  ;;  %982 = vst [vmem:[%s5245_s29 + $0x250] sm:$0xff] %v981_v10  ;;  %v989_v14 = vld [vmem:[%s5237_s28 + $0xc30] sm:$0xff]  ;;  %v991_v15 = vld [vmem:[%s5237_s28 + $0xc58] sm:$0xff] }
  0x3c   : > { %984 = vst [vmem:[%s5245_s29 + $0x258] sm:$0xff] %v983_v11  ;;  %986 = vst [vmem:[%s5245_s29 + $0x260] sm:$0xff] %v985_v12  ;;  %v993_v16 = vld [vmem:[%s5237_s28 + $0xc80] sm:$0xff]  ;;  %v995_v17 = vld [vmem:[%s5237_s28 + $0xca8] sm:$0xff] }
  0x3d   : > { %988 = vst [vmem:[%s5245_s29 + $0x268] sm:$0xff] %v987_v13  ;;  %990 = vst [vmem:[%s5245_s29 + $0x270] sm:$0xff] %v989_v14  ;;  %v997_v18 = vld [vmem:[%s5237_s28 + $0xcd0] sm:$0xff]  ;;  %v999_v19 = vld [vmem:[%s5237_s28 + $0xcf8] sm:$0xff] }
  0x3e   : > { %992 = vst [vmem:[%s5245_s29 + $0x278] sm:$0xff] %v991_v15  ;;  %994 = vst [vmem:[%s5245_s29 + $0x280] sm:$0xff] %v993_v16  ;;  %v1001_v20 = vld [vmem:[%s5237_s28 + $0xd20] sm:$0xff]  ;;  %v1003_v21 = vld [vmem:[%s5237_s28 + $0xd48] sm:$0xff] }
  0x3f   : > { %996 = vst [vmem:[%s5245_s29 + $0x288] sm:$0xff] %v995_v17  ;;  %998 = vst [vmem:[%s5245_s29 + $0x290] sm:$0xff] %v997_v18  ;;  %v1005_v22 = vld [vmem:[%s5237_s28 + $0xd70] sm:$0xff]  ;;  %v1007_v23 = vld [vmem:[%s5237_s28 + $0xd98] sm:$0xff] }
  0x40   : > { %1000 = vst [vmem:[%s5245_s29 + $0x298] sm:$0xff] %v999_v19  ;;  %1002 = vst [vmem:[%s5245_s29 + $0x2a0] sm:$0xff] %v1001_v20  ;;  %v1009_v24 = vld [vmem:[%s5237_s28 + $0xdc0] sm:$0xff]  ;;  %v1011_v25 = vld [vmem:[%s5237_s28 + $0xde8] sm:$0xff] }
  0x41   : > { %1004 = vst [vmem:[%s5245_s29 + $0x2a8] sm:$0xff] %v1003_v21  ;;  %1006 = vst [vmem:[%s5245_s29 + $0x2b0] sm:$0xff] %v1005_v22  ;;  %v1013_v26 = vld [vmem:[%s5237_s28 + $0xe10] sm:$0xff]  ;;  %v1015_v27 = vld [vmem:[%s5237_s28 + $0xe38] sm:$0xff] }
  0x42   : > { %1008 = vst [vmem:[%s5245_s29 + $0x2b8] sm:$0xff] %v1007_v23  ;;  %1010 = vst [vmem:[%s5245_s29 + $0x2c0] sm:$0xff] %v1009_v24  ;;  %v1017_v28 = vld [vmem:[%s5237_s28 + $0xe60] sm:$0xff]  ;;  %v1019_v29 = vld [vmem:[%s5237_s28 + $0xe88] sm:$0xff] }
  0x43   : > { %1012 = vst [vmem:[%s5245_s29 + $0x2c8] sm:$0xff] %v1011_v25  ;;  %1014 = vst [vmem:[%s5245_s29 + $0x2d0] sm:$0xff] %v1013_v26  ;;  %v1021_v30 = vld [vmem:[%s5237_s28 + $0xeb0] sm:$0xff]  ;;  %v1023_v31 = vld [vmem:[%s5237_s28 + $0xed8] sm:$0xff] }
  0x44   : > { %1016 = vst [vmem:[%s5245_s29 + $0x2d8] sm:$0xff] %v1015_v27  ;;  %1018 = vst [vmem:[%s5245_s29 + $0x2e0] sm:$0xff] %v1017_v28  ;;  %v1025_v32 = vld [vmem:[%s5237_s28 + $0xf00] sm:$0xff]  ;;  %v1027_v33 = vld [vmem:[%s5237_s28 + $0xf28] sm:$0xff] }
  0x45   : > { %1020 = vst [vmem:[%s5245_s29 + $0x2e8] sm:$0xff] %v1019_v29  ;;  %1022 = vst [vmem:[%s5245_s29 + $0x2f0] sm:$0xff] %v1021_v30  ;;  %v1029_v34 = vld [vmem:[%s5237_s28 + $0xf50] sm:$0xff]  ;;  %v1031_v35 = vld [vmem:[%s5237_s28 + $0xf78] sm:$0xff] }
  0x46   : > { %1024 = vst [vmem:[%s5245_s29 + $0x2f8] sm:$0xff] %v1023_v31  ;;  %1026 = vst [vmem:[%s5245_s29 + $0x300] sm:$0xff] %v1025_v32  ;;  %v1033_v36 = vld [vmem:[%s5237_s28 + $0xfa0] sm:$0xff]  ;;  %v1035_v37 = vld [vmem:[%s5237_s28 + $0xfc8] sm:$0xff] }
  0x47   : > { %1028 = vst [vmem:[%s5245_s29 + $0x308] sm:$0xff] %v1027_v33  ;;  %1030 = vst [vmem:[%s5245_s29 + $0x310] sm:$0xff] %v1029_v34  ;;  %v1037_v38 = vld [vmem:[%s5237_s28 + $0xff0] sm:$0xff]  ;;  %v1039_v39 = vld [vmem:[%s5237_s28 + $0x1018] sm:$0xff] }
  0x48   : > { %1032 = vst [vmem:[%s5245_s29 + $0x318] sm:$0xff] %v1031_v35  ;;  %1034 = vst [vmem:[%s5245_s29 + $0x320] sm:$0xff] %v1033_v36  ;;  %v1041_v40 = vld [vmem:[%s5237_s28 + $0x1040] sm:$0xff]  ;;  %v1043_v41 = vld [vmem:[%s5237_s28 + $0x1068] sm:$0xff] }
  0x49   : > { %1036 = vst [vmem:[%s5245_s29 + $0x328] sm:$0xff] %v1035_v37  ;;  %1038 = vst [vmem:[%s5245_s29 + $0x330] sm:$0xff] %v1037_v38  ;;  %v1045_v42 = vld [vmem:[%s5237_s28 + $0x1090] sm:$0xff]  ;;  %v1047_v43 = vld [vmem:[%s5237_s28 + $0x10b8] sm:$0xff] }
  0x4a   : > { %1040 = vst [vmem:[%s5245_s29 + $0x338] sm:$0xff] %v1039_v39  ;;  %1042 = vst [vmem:[%s5245_s29 + $0x340] sm:$0xff] %v1041_v40  ;;  %v1049_v44 = vld [vmem:[%s5237_s28 + $0x10e0] sm:$0xff]  ;;  %v1051_v45 = vld [vmem:[%s5237_s28 + $0x1108] sm:$0xff] }
  0x4b   : > { %1044 = vst [vmem:[%s5245_s29 + $0x348] sm:$0xff] %v1043_v41  ;;  %1046 = vst [vmem:[%s5245_s29 + $0x350] sm:$0xff] %v1045_v42  ;;  %v1053_v46 = vld [vmem:[%s5237_s28 + $0x1130] sm:$0xff]  ;;  %v1055_v47 = vld [vmem:[%s5237_s28 + $0x1158] sm:$0xff] }
  0x4c   : > { %1048 = vst [vmem:[%s5245_s29 + $0x358] sm:$0xff] %v1047_v43  ;;  %1050 = vst [vmem:[%s5245_s29 + $0x360] sm:$0xff] %v1049_v44  ;;  %v1057_v48 = vld [vmem:[%s5237_s28 + $0x1180] sm:$0xff]  ;;  %v1059_v49 = vld [vmem:[%s5237_s28 + $0x11a8] sm:$0xff] }
  0x4d   : > { %1052 = vst [vmem:[%s5245_s29 + $0x368] sm:$0xff] %v1051_v45  ;;  %1054 = vst [vmem:[%s5245_s29 + $0x370] sm:$0xff] %v1053_v46  ;;  %v1061_v50 = vld [vmem:[%s5237_s28 + $0x11d0] sm:$0xff]  ;;  %v1063_v51 = vld [vmem:[%s5237_s28 + $0x11f8] sm:$0xff] }
  0x4e   : > { %1056 = vst [vmem:[%s5245_s29 + $0x378] sm:$0xff] %v1055_v47  ;;  %1058 = vst [vmem:[%s5245_s29 + $0x380] sm:$0xff] %v1057_v48  ;;  %v1065_v52 = vld [vmem:[%s5237_s28 + $0x1220] sm:$0xff]  ;;  %v1067_v53 = vld [vmem:[%s5237_s28 + $0x1248] sm:$0xff] }
  0x4f   : > { %1060 = vst [vmem:[%s5245_s29 + $0x388] sm:$0xff] %v1059_v49  ;;  %1062 = vst [vmem:[%s5245_s29 + $0x390] sm:$0xff] %v1061_v50  ;;  %v1069_v54 = vld [vmem:[%s5237_s28 + $0x1270] sm:$0xff]  ;;  %v1071_v55 = vld [vmem:[%s5237_s28 + $0x1298] sm:$0xff] }
  0x50   : > { %1064 = vst [vmem:[%s5245_s29 + $0x398] sm:$0xff] %v1063_v51  ;;  %1066 = vst [vmem:[%s5245_s29 + $0x3a0] sm:$0xff] %v1065_v52  ;;  %v1073_v56 = vld [vmem:[%s5237_s28 + $0x12c0] sm:$0xff]  ;;  %v1075_v57 = vld [vmem:[%s5237_s28 + $0x12e8] sm:$0xff] }
  0x51   : > { %1068 = vst [vmem:[%s5245_s29 + $0x3a8] sm:$0xff] %v1067_v53  ;;  %1070 = vst [vmem:[%s5245_s29 + $0x3b0] sm:$0xff] %v1069_v54  ;;  %v1077_v58 = vld [vmem:[%s5237_s28 + $0x1310] sm:$0xff]  ;;  %v1079_v59 = vld [vmem:[%s5237_s28 + $0x1338] sm:$0xff] }
  0x52   : > { %1072 = vst [vmem:[%s5245_s29 + $0x3b8] sm:$0xff] %v1071_v55  ;;  %1074 = vst [vmem:[%s5245_s29 + $0x3c0] sm:$0xff] %v1073_v56  ;;  %v1081_v60 = vld [vmem:[%s5237_s28 + $0x1360] sm:$0xff]  ;;  %v1083_v61 = vld [vmem:[%s5237_s28 + $0x1388] sm:$0xff] }
  0x53   : > { %1076 = vst [vmem:[%s5245_s29 + $0x3c8] sm:$0xff] %v1075_v57  ;;  %1078 = vst [vmem:[%s5245_s29 + $0x3d0] sm:$0xff] %v1077_v58  ;;  %v1085_v62 = vld [vmem:[%s5237_s28 + $0x13b0] sm:$0xff]  ;;  %v1087_v63 = vld [vmem:[%s5237_s28 + $0x13d8] sm:$0xff] }
  0x54   : > { %1080 = vst [vmem:[%s5245_s29 + $0x3d8] sm:$0xff] %v1079_v59  ;;  %1082 = vst [vmem:[%s5245_s29 + $0x3e0] sm:$0xff] %v1081_v60  ;;  %v1089_v0 = vld [vmem:[%s5237_s28 + $0x1400] sm:$0xff]  ;;  %v1091_v1 = vld [vmem:[%s5237_s28 + $0x1428] sm:$0xff] }
  0x55   : > { %1084 = vst [vmem:[%s5245_s29 + $0x3e8] sm:$0xff] %v1083_v61  ;;  %1086 = vst [vmem:[%s5245_s29 + $0x3f0] sm:$0xff] %v1085_v62  ;;  %v1093_v2 = vld [vmem:[%s5237_s28 + $0x1450] sm:$0xff]  ;;  %v1095_v3 = vld [vmem:[%s5237_s28 + $0x1478] sm:$0xff] }
  0x56   : > { %1088 = vst [vmem:[%s5245_s29 + $0x3f8] sm:$0xff] %v1087_v63  ;;  %1090 = vst [vmem:[%s5245_s29 + $0x400] sm:$0xff] %v1089_v0  ;;  %v1097_v4 = vld [vmem:[%s5237_s28 + $0x14a0] sm:$0xff]  ;;  %v1099_v5 = vld [vmem:[%s5237_s28 + $0x14c8] sm:$0xff] }
  0x57   : > { %1092 = vst [vmem:[%s5245_s29 + $0x408] sm:$0xff] %v1091_v1  ;;  %1094 = vst [vmem:[%s5245_s29 + $0x410] sm:$0xff] %v1093_v2  ;;  %v1101_v6 = vld [vmem:[%s5237_s28 + $0x14f0] sm:$0xff]  ;;  %v1103_v7 = vld [vmem:[%s5237_s28 + $0x1518] sm:$0xff] }
  0x58   : > { %1096 = vst [vmem:[%s5245_s29 + $0x418] sm:$0xff] %v1095_v3  ;;  %1098 = vst [vmem:[%s5245_s29 + $0x420] sm:$0xff] %v1097_v4  ;;  %v1105_v8 = vld [vmem:[%s5237_s28 + $0x1540] sm:$0xff]  ;;  %v1107_v9 = vld [vmem:[%s5237_s28 + $0x1568] sm:$0xff] }
  0x59   : > { %1100 = vst [vmem:[%s5245_s29 + $0x428] sm:$0xff] %v1099_v5  ;;  %1102 = vst [vmem:[%s5245_s29 + $0x430] sm:$0xff] %v1101_v6  ;;  %v1109_v10 = vld [vmem:[%s5237_s28 + $0x1590] sm:$0xff]  ;;  %v1111_v11 = vld [vmem:[%s5237_s28 + $0x15b8] sm:$0xff] }
  0x5a   : > { %1104 = vst [vmem:[%s5245_s29 + $0x438] sm:$0xff] %v1103_v7  ;;  %1106 = vst [vmem:[%s5245_s29 + $0x440] sm:$0xff] %v1105_v8  ;;  %v1113_v12 = vld [vmem:[%s5237_s28 + $0x15e0] sm:$0xff]  ;;  %v1115_v13 = vld [vmem:[%s5237_s28 + $0x1608] sm:$0xff] }
  0x5b   : > { %1108 = vst [vmem:[%s5245_s29 + $0x448] sm:$0xff] %v1107_v9  ;;  %1110 = vst [vmem:[%s5245_s29 + $0x450] sm:$0xff] %v1109_v10  ;;  %v1117_v14 = vld [vmem:[%s5237_s28 + $0x1630] sm:$0xff]  ;;  %v1119_v15 = vld [vmem:[%s5237_s28 + $0x1658] sm:$0xff] }
  0x5c   : > { %1112 = vst [vmem:[%s5245_s29 + $0x458] sm:$0xff] %v1111_v11  ;;  %1114 = vst [vmem:[%s5245_s29 + $0x460] sm:$0xff] %v1113_v12  ;;  %v1121_v16 = vld [vmem:[%s5237_s28 + $0x1680] sm:$0xff]  ;;  %v1123_v17 = vld [vmem:[%s5237_s28 + $0x16a8] sm:$0xff] }
  0x5d   : > { %1116 = vst [vmem:[%s5245_s29 + $0x468] sm:$0xff] %v1115_v13  ;;  %1118 = vst [vmem:[%s5245_s29 + $0x470] sm:$0xff] %v1117_v14  ;;  %v1125_v18 = vld [vmem:[%s5237_s28 + $0x16d0] sm:$0xff]  ;;  %v1127_v19 = vld [vmem:[%s5237_s28 + $0x16f8] sm:$0xff] }
  0x5e   : > { %1120 = vst [vmem:[%s5245_s29 + $0x478] sm:$0xff] %v1119_v15  ;;  %1122 = vst [vmem:[%s5245_s29 + $0x480] sm:$0xff] %v1121_v16  ;;  %v1129_v20 = vld [vmem:[%s5237_s28 + $0x1720] sm:$0xff]  ;;  %v1131_v21 = vld [vmem:[%s5237_s28 + $0x1748] sm:$0xff] }
  0x5f   : > { %1124 = vst [vmem:[%s5245_s29 + $0x488] sm:$0xff] %v1123_v17  ;;  %1126 = vst [vmem:[%s5245_s29 + $0x490] sm:$0xff] %v1125_v18  ;;  %v1133_v22 = vld [vmem:[%s5237_s28 + $0x1770] sm:$0xff]  ;;  %v1135_v23 = vld [vmem:[%s5237_s28 + $0x1798] sm:$0xff] }
  0x60   : > { %1128 = vst [vmem:[%s5245_s29 + $0x498] sm:$0xff] %v1127_v19  ;;  %1130 = vst [vmem:[%s5245_s29 + $0x4a0] sm:$0xff] %v1129_v20  ;;  %v1137_v24 = vld [vmem:[%s5237_s28 + $0x17c0] sm:$0xff]  ;;  %v1139_v25 = vld [vmem:[%s5237_s28 + $0x17e8] sm:$0xff] }
  0x61   : > { %1132 = vst [vmem:[%s5245_s29 + $0x4a8] sm:$0xff] %v1131_v21  ;;  %1134 = vst [vmem:[%s5245_s29 + $0x4b0] sm:$0xff] %v1133_v22  ;;  %v1141_v26 = vld [vmem:[%s5237_s28 + $0x1810] sm:$0xff]  ;;  %v1143_v27 = vld [vmem:[%s5237_s28 + $0x1838] sm:$0xff] }
  0x62   : > { %1136 = vst [vmem:[%s5245_s29 + $0x4b8] sm:$0xff] %v1135_v23  ;;  %1138 = vst [vmem:[%s5245_s29 + $0x4c0] sm:$0xff] %v1137_v24  ;;  %v1145_v28 = vld [vmem:[%s5237_s28 + $0x1860] sm:$0xff]  ;;  %v1147_v29 = vld [vmem:[%s5237_s28 + $0x1888] sm:$0xff] }
  0x63   : > { %1140 = vst [vmem:[%s5245_s29 + $0x4c8] sm:$0xff] %v1139_v25  ;;  %1142 = vst [vmem:[%s5245_s29 + $0x4d0] sm:$0xff] %v1141_v26  ;;  %v1149_v30 = vld [vmem:[%s5237_s28 + $0x18b0] sm:$0xff]  ;;  %v1151_v31 = vld [vmem:[%s5237_s28 + $0x18d8] sm:$0xff] }
  0x64   : > { %1144 = vst [vmem:[%s5245_s29 + $0x4d8] sm:$0xff] %v1143_v27  ;;  %1146 = vst [vmem:[%s5245_s29 + $0x4e0] sm:$0xff] %v1145_v28  ;;  %v1153_v32 = vld [vmem:[%s5237_s28 + $0x1900] sm:$0xff]  ;;  %v1155_v33 = vld [vmem:[%s5237_s28 + $0x1928] sm:$0xff] }
  0x65   : > { %1148 = vst [vmem:[%s5245_s29 + $0x4e8] sm:$0xff] %v1147_v29  ;;  %1150 = vst [vmem:[%s5245_s29 + $0x4f0] sm:$0xff] %v1149_v30  ;;  %v1157_v34 = vld [vmem:[%s5237_s28 + $0x1950] sm:$0xff]  ;;  %v1159_v35 = vld [vmem:[%s5237_s28 + $0x1978] sm:$0xff] }
  0x66   : > { %1152 = vst [vmem:[%s5245_s29 + $0x4f8] sm:$0xff] %v1151_v31  ;;  %1154 = vst [vmem:[%s5245_s29 + $0x500] sm:$0xff] %v1153_v32  ;;  %v1161_v36 = vld [vmem:[%s5237_s28 + $0x19a0] sm:$0xff]  ;;  %v1163_v37 = vld [vmem:[%s5237_s28 + $0x19c8] sm:$0xff] }
  0x67   : > { %1156 = vst [vmem:[%s5245_s29 + $0x508] sm:$0xff] %v1155_v33  ;;  %1158 = vst [vmem:[%s5245_s29 + $0x510] sm:$0xff] %v1157_v34  ;;  %v1165_v38 = vld [vmem:[%s5237_s28 + $0x19f0] sm:$0xff]  ;;  %v1167_v39 = vld [vmem:[%s5237_s28 + $0x1a18] sm:$0xff] }
  0x68   : > { %1160 = vst [vmem:[%s5245_s29 + $0x518] sm:$0xff] %v1159_v35  ;;  %1162 = vst [vmem:[%s5245_s29 + $0x520] sm:$0xff] %v1161_v36  ;;  %v1169_v40 = vld [vmem:[%s5237_s28 + $0x1a40] sm:$0xff]  ;;  %v1171_v41 = vld [vmem:[%s5237_s28 + $0x1a68] sm:$0xff] }
  0x69   : > { %1164 = vst [vmem:[%s5245_s29 + $0x528] sm:$0xff] %v1163_v37  ;;  %1166 = vst [vmem:[%s5245_s29 + $0x530] sm:$0xff] %v1165_v38  ;;  %v1173_v42 = vld [vmem:[%s5237_s28 + $0x1a90] sm:$0xff]  ;;  %v1175_v43 = vld [vmem:[%s5237_s28 + $0x1ab8] sm:$0xff] }
  0x6a   : > { %1168 = vst [vmem:[%s5245_s29 + $0x538] sm:$0xff] %v1167_v39  ;;  %1170 = vst [vmem:[%s5245_s29 + $0x540] sm:$0xff] %v1169_v40  ;;  %v1177_v44 = vld [vmem:[%s5237_s28 + $0x1ae0] sm:$0xff]  ;;  %v1179_v45 = vld [vmem:[%s5237_s28 + $0x1b08] sm:$0xff] }
  0x6b   : > { %1172 = vst [vmem:[%s5245_s29 + $0x548] sm:$0xff] %v1171_v41  ;;  %1174 = vst [vmem:[%s5245_s29 + $0x550] sm:$0xff] %v1173_v42  ;;  %v1181_v46 = vld [vmem:[%s5237_s28 + $0x1b30] sm:$0xff]  ;;  %v1183_v47 = vld [vmem:[%s5237_s28 + $0x1b58] sm:$0xff] }
  0x6c   : > { %1176 = vst [vmem:[%s5245_s29 + $0x558] sm:$0xff] %v1175_v43  ;;  %1178 = vst [vmem:[%s5245_s29 + $0x560] sm:$0xff] %v1177_v44  ;;  %v1185_v48 = vld [vmem:[%s5237_s28 + $0x1b80] sm:$0xff]  ;;  %v1187_v49 = vld [vmem:[%s5237_s28 + $0x1ba8] sm:$0xff] }
  0x6d   : > { %1180 = vst [vmem:[%s5245_s29 + $0x568] sm:$0xff] %v1179_v45  ;;  %1182 = vst [vmem:[%s5245_s29 + $0x570] sm:$0xff] %v1181_v46  ;;  %v1189_v50 = vld [vmem:[%s5237_s28 + $0x1bd0] sm:$0xff]  ;;  %v1191_v51 = vld [vmem:[%s5237_s28 + $0x1bf8] sm:$0xff] }
  0x6e   : > { %1184 = vst [vmem:[%s5245_s29 + $0x578] sm:$0xff] %v1183_v47  ;;  %1186 = vst [vmem:[%s5245_s29 + $0x580] sm:$0xff] %v1185_v48  ;;  %v1193_v52 = vld [vmem:[%s5237_s28 + $0x1c20] sm:$0xff]  ;;  %v1195_v53 = vld [vmem:[%s5237_s28 + $0x1c48] sm:$0xff] }
  0x6f   : > { %1188 = vst [vmem:[%s5245_s29 + $0x588] sm:$0xff] %v1187_v49  ;;  %1190 = vst [vmem:[%s5245_s29 + $0x590] sm:$0xff] %v1189_v50  ;;  %v1197_v54 = vld [vmem:[%s5237_s28 + $0x1c70] sm:$0xff]  ;;  %v1199_v55 = vld [vmem:[%s5237_s28 + $0x1c98] sm:$0xff] }
  0x70   : > { %1192 = vst [vmem:[%s5245_s29 + $0x598] sm:$0xff] %v1191_v51  ;;  %1194 = vst [vmem:[%s5245_s29 + $0x5a0] sm:$0xff] %v1193_v52  ;;  %v1201_v56 = vld [vmem:[%s5237_s28 + $0x1cc0] sm:$0xff]  ;;  %v1203_v57 = vld [vmem:[%s5237_s28 + $0x1ce8] sm:$0xff] }
  0x71   : > { %1196 = vst [vmem:[%s5245_s29 + $0x5a8] sm:$0xff] %v1195_v53  ;;  %1198 = vst [vmem:[%s5245_s29 + $0x5b0] sm:$0xff] %v1197_v54  ;;  %v1205_v58 = vld [vmem:[%s5237_s28 + $0x1d10] sm:$0xff]  ;;  %v1207_v59 = vld [vmem:[%s5237_s28 + $0x1d38] sm:$0xff] }
  0x72   : > { %1200 = vst [vmem:[%s5245_s29 + $0x5b8] sm:$0xff] %v1199_v55  ;;  %1202 = vst [vmem:[%s5245_s29 + $0x5c0] sm:$0xff] %v1201_v56  ;;  %v1209_v60 = vld [vmem:[%s5237_s28 + $0x1d60] sm:$0xff]  ;;  %v1211_v61 = vld [vmem:[%s5237_s28 + $0x1d88] sm:$0xff] }
  0x73   : > { %1204 = vst [vmem:[%s5245_s29 + $0x5c8] sm:$0xff] %v1203_v57  ;;  %1206 = vst [vmem:[%s5245_s29 + $0x5d0] sm:$0xff] %v1205_v58  ;;  %v1213_v62 = vld [vmem:[%s5237_s28 + $0x1db0] sm:$0xff]  ;;  %v1215_v63 = vld [vmem:[%s5237_s28 + $0x1dd8] sm:$0xff] }
  0x74   : > { %1208 = vst [vmem:[%s5245_s29 + $0x5d8] sm:$0xff] %v1207_v59  ;;  %1210 = vst [vmem:[%s5245_s29 + $0x5e0] sm:$0xff] %v1209_v60  ;;  %v1217_v0 = vld [vmem:[%s5237_s28 + $0x1e00] sm:$0xff]  ;;  %v1219_v1 = vld [vmem:[%s5237_s28 + $0x1e28] sm:$0xff] }
  0x75   : > { %1212 = vst [vmem:[%s5245_s29 + $0x5e8] sm:$0xff] %v1211_v61  ;;  %1214 = vst [vmem:[%s5245_s29 + $0x5f0] sm:$0xff] %v1213_v62  ;;  %v1221_v2 = vld [vmem:[%s5237_s28 + $0x1e50] sm:$0xff]  ;;  %v1223_v3 = vld [vmem:[%s5237_s28 + $0x1e78] sm:$0xff] }
  0x76   : > { %1216 = vst [vmem:[%s5245_s29 + $0x5f8] sm:$0xff] %v1215_v63  ;;  %1218 = vst [vmem:[%s5245_s29 + $0x600] sm:$0xff] %v1217_v0  ;;  %v1225_v4 = vld [vmem:[%s5237_s28 + $0x1ea0] sm:$0xff]  ;;  %v1227_v5 = vld [vmem:[%s5237_s28 + $0x1ec8] sm:$0xff] }
  0x77   : > { %1220 = vst [vmem:[%s5245_s29 + $0x608] sm:$0xff] %v1219_v1  ;;  %1222 = vst [vmem:[%s5245_s29 + $0x610] sm:$0xff] %v1221_v2  ;;  %v1229_v6 = vld [vmem:[%s5237_s28 + $0x1ef0] sm:$0xff]  ;;  %v1231_v7 = vld [vmem:[%s5237_s28 + $0x1f18] sm:$0xff] }
  0x78   : > { %1224 = vst [vmem:[%s5245_s29 + $0x618] sm:$0xff] %v1223_v3  ;;  %1226 = vst [vmem:[%s5245_s29 + $0x620] sm:$0xff] %v1225_v4  ;;  %v1233_v8 = vld [vmem:[%s5237_s28 + $0x1f40] sm:$0xff]  ;;  %v1235_v9 = vld [vmem:[%s5237_s28 + $0x1f68] sm:$0xff] }
  0x79   : > { %1228 = vst [vmem:[%s5245_s29 + $0x628] sm:$0xff] %v1227_v5  ;;  %1230 = vst [vmem:[%s5245_s29 + $0x630] sm:$0xff] %v1229_v6  ;;  %v1237_v10 = vld [vmem:[%s5237_s28 + $0x1f90] sm:$0xff]  ;;  %v1239_v11 = vld [vmem:[%s5237_s28 + $0x1fb8] sm:$0xff] }
  0x7a   : > { %1232 = vst [vmem:[%s5245_s29 + $0x638] sm:$0xff] %v1231_v7  ;;  %1234 = vst [vmem:[%s5245_s29 + $0x640] sm:$0xff] %v1233_v8  ;;  %v1241_v12 = vld [vmem:[%s5237_s28 + $0x1fe0] sm:$0xff]  ;;  %v1243_v13 = vld [vmem:[%s5237_s28 + $0x2008] sm:$0xff] }
  0x7b   : > { %1236 = vst [vmem:[%s5245_s29 + $0x648] sm:$0xff] %v1235_v9  ;;  %1238 = vst [vmem:[%s5245_s29 + $0x650] sm:$0xff] %v1237_v10  ;;  %v1245_v14 = vld [vmem:[%s5237_s28 + $0x2030] sm:$0xff]  ;;  %v1247_v15 = vld [vmem:[%s5237_s28 + $0x2058] sm:$0xff] }
  0x7c   : > { %1240 = vst [vmem:[%s5245_s29 + $0x658] sm:$0xff] %v1239_v11  ;;  %1242 = vst [vmem:[%s5245_s29 + $0x660] sm:$0xff] %v1241_v12  ;;  %v1249_v16 = vld [vmem:[%s5237_s28 + $0x2080] sm:$0xff]  ;;  %v1251_v17 = vld [vmem:[%s5237_s28 + $0x20a8] sm:$0xff] }
  0x7d   : > { %1244 = vst [vmem:[%s5245_s29 + $0x668] sm:$0xff] %v1243_v13  ;;  %1246 = vst [vmem:[%s5245_s29 + $0x670] sm:$0xff] %v1245_v14  ;;  %v1253_v18 = vld [vmem:[%s5237_s28 + $0x20d0] sm:$0xff]  ;;  %v1255_v19 = vld [vmem:[%s5237_s28 + $0x20f8] sm:$0xff] }
  0x7e   : > { %1248 = vst [vmem:[%s5245_s29 + $0x678] sm:$0xff] %v1247_v15  ;;  %1250 = vst [vmem:[%s5245_s29 + $0x680] sm:$0xff] %v1249_v16  ;;  %v1257_v20 = vld [vmem:[%s5237_s28 + $0x2120] sm:$0xff]  ;;  %v1259_v21 = vld [vmem:[%s5237_s28 + $0x2148] sm:$0xff] }
  0x7f   : > { %1252 = vst [vmem:[%s5245_s29 + $0x688] sm:$0xff] %v1251_v17  ;;  %1254 = vst [vmem:[%s5245_s29 + $0x690] sm:$0xff] %v1253_v18  ;;  %v1261_v22 = vld [vmem:[%s5237_s28 + $0x2170] sm:$0xff]  ;;  %v1263_v23 = vld [vmem:[%s5237_s28 + $0x2198] sm:$0xff] }
  0x80   : > { %1256 = vst [vmem:[%s5245_s29 + $0x698] sm:$0xff] %v1255_v19  ;;  %1258 = vst [vmem:[%s5245_s29 + $0x6a0] sm:$0xff] %v1257_v20  ;;  %v1265_v24 = vld [vmem:[%s5237_s28 + $0x21c0] sm:$0xff]  ;;  %v1267_v25 = vld [vmem:[%s5237_s28 + $0x21e8] sm:$0xff] }
  0x81   : > { %1260 = vst [vmem:[%s5245_s29 + $0x6a8] sm:$0xff] %v1259_v21  ;;  %1262 = vst [vmem:[%s5245_s29 + $0x6b0] sm:$0xff] %v1261_v22  ;;  %v1269_v26 = vld [vmem:[%s5237_s28 + $0x2210] sm:$0xff]  ;;  %v1271_v27 = vld [vmem:[%s5237_s28 + $0x2238] sm:$0xff] }
  0x82   : > { %1264 = vst [vmem:[%s5245_s29 + $0x6b8] sm:$0xff] %v1263_v23  ;;  %1266 = vst [vmem:[%s5245_s29 + $0x6c0] sm:$0xff] %v1265_v24  ;;  %v1273_v28 = vld [vmem:[%s5237_s28 + $0x2260] sm:$0xff]  ;;  %v1275_v29 = vld [vmem:[%s5237_s28 + $0x2288] sm:$0xff] }
  0x83   : > { %1268 = vst [vmem:[%s5245_s29 + $0x6c8] sm:$0xff] %v1267_v25  ;;  %1270 = vst [vmem:[%s5245_s29 + $0x6d0] sm:$0xff] %v1269_v26  ;;  %v1277_v30 = vld [vmem:[%s5237_s28 + $0x22b0] sm:$0xff]  ;;  %v1279_v31 = vld [vmem:[%s5237_s28 + $0x22d8] sm:$0xff] }
  0x84   : > { %1272 = vst [vmem:[%s5245_s29 + $0x6d8] sm:$0xff] %v1271_v27  ;;  %1274 = vst [vmem:[%s5245_s29 + $0x6e0] sm:$0xff] %v1273_v28  ;;  %v1281_v32 = vld [vmem:[%s5237_s28 + $0x2300] sm:$0xff]  ;;  %v1283_v33 = vld [vmem:[%s5237_s28 + $0x2328] sm:$0xff] }
  0x85   : > { %1276 = vst [vmem:[%s5245_s29 + $0x6e8] sm:$0xff] %v1275_v29  ;;  %1278 = vst [vmem:[%s5245_s29 + $0x6f0] sm:$0xff] %v1277_v30  ;;  %v1285_v34 = vld [vmem:[%s5237_s28 + $0x2350] sm:$0xff]  ;;  %v1287_v35 = vld [vmem:[%s5237_s28 + $0x2378] sm:$0xff] }
  0x86   : > { %1280 = vst [vmem:[%s5245_s29 + $0x6f8] sm:$0xff] %v1279_v31  ;;  %1282 = vst [vmem:[%s5245_s29 + $0x700] sm:$0xff] %v1281_v32  ;;  %v1289_v36 = vld [vmem:[%s5237_s28 + $0x23a0] sm:$0xff]  ;;  %v1291_v37 = vld [vmem:[%s5237_s28 + $0x23c8] sm:$0xff] }
  0x87   : > { %1284 = vst [vmem:[%s5245_s29 + $0x708] sm:$0xff] %v1283_v33  ;;  %1286 = vst [vmem:[%s5245_s29 + $0x710] sm:$0xff] %v1285_v34  ;;  %v1293_v38 = vld [vmem:[%s5237_s28 + $0x23f0] sm:$0xff]  ;;  %v1295_v39 = vld [vmem:[%s5237_s28 + $0x2418] sm:$0xff] }
  0x88   : > { %1288 = vst [vmem:[%s5245_s29 + $0x718] sm:$0xff] %v1287_v35  ;;  %1290 = vst [vmem:[%s5245_s29 + $0x720] sm:$0xff] %v1289_v36  ;;  %v1297_v40 = vld [vmem:[%s5237_s28 + $0x2440] sm:$0xff]  ;;  %v1299_v41 = vld [vmem:[%s5237_s28 + $0x2468] sm:$0xff] }
  0x89   : > { %1292 = vst [vmem:[%s5245_s29 + $0x728] sm:$0xff] %v1291_v37  ;;  %1294 = vst [vmem:[%s5245_s29 + $0x730] sm:$0xff] %v1293_v38  ;;  %v1301_v42 = vld [vmem:[%s5237_s28 + $0x2490] sm:$0xff]  ;;  %v1303_v43 = vld [vmem:[%s5237_s28 + $0x24b8] sm:$0xff] }
  0x8a   : > { %1296 = vst [vmem:[%s5245_s29 + $0x738] sm:$0xff] %v1295_v39  ;;  %1298 = vst [vmem:[%s5245_s29 + $0x740] sm:$0xff] %v1297_v40  ;;  %v1305_v44 = vld [vmem:[%s5237_s28 + $0x24e0] sm:$0xff]  ;;  %v1307_v45 = vld [vmem:[%s5237_s28 + $0x2508] sm:$0xff] }
  0x8b   : > { %1300 = vst [vmem:[%s5245_s29 + $0x748] sm:$0xff] %v1299_v41  ;;  %1302 = vst [vmem:[%s5245_s29 + $0x750] sm:$0xff] %v1301_v42  ;;  %v1309_v46 = vld [vmem:[%s5237_s28 + $0x2530] sm:$0xff]  ;;  %v1311_v47 = vld [vmem:[%s5237_s28 + $0x2558] sm:$0xff] }
  0x8c   : > { %1304 = vst [vmem:[%s5245_s29 + $0x758] sm:$0xff] %v1303_v43  ;;  %1306 = vst [vmem:[%s5245_s29 + $0x760] sm:$0xff] %v1305_v44  ;;  %v1313_v48 = vld [vmem:[%s5237_s28 + $0x2580] sm:$0xff]  ;;  %v1315_v49 = vld [vmem:[%s5237_s28 + $0x25a8] sm:$0xff] }
  0x8d   : > { %1308 = vst [vmem:[%s5245_s29 + $0x768] sm:$0xff] %v1307_v45  ;;  %1310 = vst [vmem:[%s5245_s29 + $0x770] sm:$0xff] %v1309_v46  ;;  %v1317_v50 = vld [vmem:[%s5237_s28 + $0x25d0] sm:$0xff]  ;;  %v1319_v51 = vld [vmem:[%s5237_s28 + $0x25f8] sm:$0xff] }
  0x8e   : > { %1312 = vst [vmem:[%s5245_s29 + $0x778] sm:$0xff] %v1311_v47  ;;  %1314 = vst [vmem:[%s5245_s29 + $0x780] sm:$0xff] %v1313_v48  ;;  %v1321_v52 = vld [vmem:[%s5237_s28 + $0x2620] sm:$0xff]  ;;  %v1323_v53 = vld [vmem:[%s5237_s28 + $0x2648] sm:$0xff] }
  0x8f   : > { %1316 = vst [vmem:[%s5245_s29 + $0x788] sm:$0xff] %v1315_v49  ;;  %1318 = vst [vmem:[%s5245_s29 + $0x790] sm:$0xff] %v1317_v50  ;;  %v1325_v54 = vld [vmem:[%s5237_s28 + $0x2670] sm:$0xff]  ;;  %v1327_v55 = vld [vmem:[%s5237_s28 + $0x2698] sm:$0xff] }
  0x90   : > { %1320 = vst [vmem:[%s5245_s29 + $0x798] sm:$0xff] %v1319_v51  ;;  %1322 = vst [vmem:[%s5245_s29 + $0x7a0] sm:$0xff] %v1321_v52  ;;  %v1329_v56 = vld [vmem:[%s5237_s28 + $0x26c0] sm:$0xff]  ;;  %v1331_v57 = vld [vmem:[%s5237_s28 + $0x26e8] sm:$0xff] }
  0x91   : > { %1324 = vst [vmem:[%s5245_s29 + $0x7a8] sm:$0xff] %v1323_v53  ;;  %1326 = vst [vmem:[%s5245_s29 + $0x7b0] sm:$0xff] %v1325_v54  ;;  %v1333_v58 = vld [vmem:[%s5237_s28 + $0x2710] sm:$0xff]  ;;  %v1335_v59 = vld [vmem:[%s5237_s28 + $0x2738] sm:$0xff] }
  0x92   : > { %1328 = vst [vmem:[%s5245_s29 + $0x7b8] sm:$0xff] %v1327_v55  ;;  %1330 = vst [vmem:[%s5245_s29 + $0x7c0] sm:$0xff] %v1329_v56  ;;  %v1337_v60 = vld [vmem:[%s5237_s28 + $0x2760] sm:$0xff]  ;;  %v1339_v61 = vld [vmem:[%s5237_s28 + $0x2788] sm:$0xff] }
  0x93   : > { %1332 = vst [vmem:[%s5245_s29 + $0x7c8] sm:$0xff] %v1331_v57  ;;  %1334 = vst [vmem:[%s5245_s29 + $0x7d0] sm:$0xff] %v1333_v58  ;;  %v1341_v62 = vld [vmem:[%s5237_s28 + $0x27b0] sm:$0xff]  ;;  %v1343_v63 = vld [vmem:[%s5237_s28 + $0x27d8] sm:$0xff] }
  0x94   : > { %1336 = vst [vmem:[%s5245_s29 + $0x7d8] sm:$0xff] %v1335_v59  ;;  %1338 = vst [vmem:[%s5245_s29 + $0x7e0] sm:$0xff] %v1337_v60  ;;  %v1345_v0 = vld [vmem:[%s5237_s28 + $0x2800] sm:$0xff]  ;;  %v1347_v1 = vld [vmem:[%s5237_s28 + $0x2828] sm:$0xff] }
  0x95   : > { %1340 = vst [vmem:[%s5245_s29 + $0x7e8] sm:$0xff] %v1339_v61  ;;  %1342 = vst [vmem:[%s5245_s29 + $0x7f0] sm:$0xff] %v1341_v62  ;;  %v1349_v2 = vld [vmem:[%s5237_s28 + $0x2850] sm:$0xff]  ;;  %v1351_v3 = vld [vmem:[%s5237_s28 + $0x2878] sm:$0xff] }
  0x96   : > { %1344 = vst [vmem:[%s5245_s29 + $0x7f8] sm:$0xff] %v1343_v63  ;;  %1346 = vst [vmem:[%s5245_s29 + $0x800] sm:$0xff] %v1345_v0  ;;  %v1353_v4 = vld [vmem:[%s5237_s28 + $0x28a0] sm:$0xff]  ;;  %v1355_v5 = vld [vmem:[%s5237_s28 + $0x28c8] sm:$0xff] }
  0x97   : > { %1348 = vst [vmem:[%s5245_s29 + $0x808] sm:$0xff] %v1347_v1  ;;  %1350 = vst [vmem:[%s5245_s29 + $0x810] sm:$0xff] %v1349_v2  ;;  %v1357_v6 = vld [vmem:[%s5237_s28 + $0x28f0] sm:$0xff]  ;;  %v1359_v7 = vld [vmem:[%s5237_s28 + $0x2918] sm:$0xff] }
  0x98   : > { %1352 = vst [vmem:[%s5245_s29 + $0x818] sm:$0xff] %v1351_v3  ;;  %1354 = vst [vmem:[%s5245_s29 + $0x820] sm:$0xff] %v1353_v4  ;;  %v1361_v8 = vld [vmem:[%s5237_s28 + $0x2940] sm:$0xff]  ;;  %v1363_v9 = vld [vmem:[%s5237_s28 + $0x2968] sm:$0xff] }
  0x99   : > { %1356 = vst [vmem:[%s5245_s29 + $0x828] sm:$0xff] %v1355_v5  ;;  %1358 = vst [vmem:[%s5245_s29 + $0x830] sm:$0xff] %v1357_v6  ;;  %v1365_v10 = vld [vmem:[%s5237_s28 + $0x2990] sm:$0xff]  ;;  %v1367_v11 = vld [vmem:[%s5237_s28 + $0x29b8] sm:$0xff] }
  0x9a   : > { %1360 = vst [vmem:[%s5245_s29 + $0x838] sm:$0xff] %v1359_v7  ;;  %1362 = vst [vmem:[%s5245_s29 + $0x840] sm:$0xff] %v1361_v8  ;;  %v1369_v12 = vld [vmem:[%s5237_s28 + $0x29e0] sm:$0xff]  ;;  %v1371_v13 = vld [vmem:[%s5237_s28 + $0x2a08] sm:$0xff] }
  0x9b   : > { %1364 = vst [vmem:[%s5245_s29 + $0x848] sm:$0xff] %v1363_v9  ;;  %1366 = vst [vmem:[%s5245_s29 + $0x850] sm:$0xff] %v1365_v10  ;;  %v1373_v14 = vld [vmem:[%s5237_s28 + $0x2a30] sm:$0xff]  ;;  %v1375_v15 = vld [vmem:[%s5237_s28 + $0x2a58] sm:$0xff] }
  0x9c   : > { %1368 = vst [vmem:[%s5245_s29 + $0x858] sm:$0xff] %v1367_v11  ;;  %1370 = vst [vmem:[%s5245_s29 + $0x860] sm:$0xff] %v1369_v12  ;;  %v1377_v16 = vld [vmem:[%s5237_s28 + $0x2a80] sm:$0xff]  ;;  %v1379_v17 = vld [vmem:[%s5237_s28 + $0x2aa8] sm:$0xff] }
  0x9d   : > { %1372 = vst [vmem:[%s5245_s29 + $0x868] sm:$0xff] %v1371_v13  ;;  %1374 = vst [vmem:[%s5245_s29 + $0x870] sm:$0xff] %v1373_v14  ;;  %v1381_v18 = vld [vmem:[%s5237_s28 + $0x2ad0] sm:$0xff]  ;;  %v1383_v19 = vld [vmem:[%s5237_s28 + $0x2af8] sm:$0xff] }
  0x9e   : > { %1376 = vst [vmem:[%s5245_s29 + $0x878] sm:$0xff] %v1375_v15  ;;  %1378 = vst [vmem:[%s5245_s29 + $0x880] sm:$0xff] %v1377_v16  ;;  %v1385_v20 = vld [vmem:[%s5237_s28 + $0x2b20] sm:$0xff]  ;;  %v1387_v21 = vld [vmem:[%s5237_s28 + $0x2b48] sm:$0xff] }
  0x9f   : > { %1380 = vst [vmem:[%s5245_s29 + $0x888] sm:$0xff] %v1379_v17  ;;  %1382 = vst [vmem:[%s5245_s29 + $0x890] sm:$0xff] %v1381_v18  ;;  %v1389_v22 = vld [vmem:[%s5237_s28 + $0x2b70] sm:$0xff]  ;;  %v1391_v23 = vld [vmem:[%s5237_s28 + $0x2b98] sm:$0xff] }
  0xa0   : > { %1384 = vst [vmem:[%s5245_s29 + $0x898] sm:$0xff] %v1383_v19  ;;  %1386 = vst [vmem:[%s5245_s29 + $0x8a0] sm:$0xff] %v1385_v20  ;;  %v1393_v24 = vld [vmem:[%s5237_s28 + $0x2bc0] sm:$0xff]  ;;  %v1395_v25 = vld [vmem:[%s5237_s28 + $0x2be8] sm:$0xff] }
  0xa1   : > { %1388 = vst [vmem:[%s5245_s29 + $0x8a8] sm:$0xff] %v1387_v21  ;;  %1390 = vst [vmem:[%s5245_s29 + $0x8b0] sm:$0xff] %v1389_v22  ;;  %v1397_v26 = vld [vmem:[%s5237_s28 + $0x2c10] sm:$0xff]  ;;  %v1399_v27 = vld [vmem:[%s5237_s28 + $0x2c38] sm:$0xff] }
  0xa2   : > { %1392 = vst [vmem:[%s5245_s29 + $0x8b8] sm:$0xff] %v1391_v23  ;;  %1394 = vst [vmem:[%s5245_s29 + $0x8c0] sm:$0xff] %v1393_v24  ;;  %v1401_v28 = vld [vmem:[%s5237_s28 + $0x2c60] sm:$0xff]  ;;  %v1403_v29 = vld [vmem:[%s5237_s28 + $0x2c88] sm:$0xff] }
  0xa3   : > { %1396 = vst [vmem:[%s5245_s29 + $0x8c8] sm:$0xff] %v1395_v25  ;;  %1398 = vst [vmem:[%s5245_s29 + $0x8d0] sm:$0xff] %v1397_v26  ;;  %v1405_v30 = vld [vmem:[%s5237_s28 + $0x2cb0] sm:$0xff]  ;;  %v1407_v31 = vld [vmem:[%s5237_s28 + $0x2cd8] sm:$0xff] }
  0xa4   : > { %1400 = vst [vmem:[%s5245_s29 + $0x8d8] sm:$0xff] %v1399_v27  ;;  %1402 = vst [vmem:[%s5245_s29 + $0x8e0] sm:$0xff] %v1401_v28  ;;  %v1409_v32 = vld [vmem:[%s5237_s28 + $0x2d00] sm:$0xff]  ;;  %v1411_v33 = vld [vmem:[%s5237_s28 + $0x2d28] sm:$0xff] }
  0xa5   : > { %1404 = vst [vmem:[%s5245_s29 + $0x8e8] sm:$0xff] %v1403_v29  ;;  %1406 = vst [vmem:[%s5245_s29 + $0x8f0] sm:$0xff] %v1405_v30  ;;  %v1413_v34 = vld [vmem:[%s5237_s28 + $0x2d50] sm:$0xff]  ;;  %v1415_v35 = vld [vmem:[%s5237_s28 + $0x2d78] sm:$0xff] }
  0xa6   : > { %1408 = vst [vmem:[%s5245_s29 + $0x8f8] sm:$0xff] %v1407_v31  ;;  %1410 = vst [vmem:[%s5245_s29 + $0x900] sm:$0xff] %v1409_v32  ;;  %v1417_v36 = vld [vmem:[%s5237_s28 + $0x2da0] sm:$0xff]  ;;  %v1419_v37 = vld [vmem:[%s5237_s28 + $0x2dc8] sm:$0xff] }
  0xa7   : > { %1412 = vst [vmem:[%s5245_s29 + $0x908] sm:$0xff] %v1411_v33  ;;  %1414 = vst [vmem:[%s5245_s29 + $0x910] sm:$0xff] %v1413_v34  ;;  %v1421_v38 = vld [vmem:[%s5237_s28 + $0x2df0] sm:$0xff]  ;;  %v1423_v39 = vld [vmem:[%s5237_s28 + $0x2e18] sm:$0xff] }
  0xa8   : > { %1416 = vst [vmem:[%s5245_s29 + $0x918] sm:$0xff] %v1415_v35  ;;  %1418 = vst [vmem:[%s5245_s29 + $0x920] sm:$0xff] %v1417_v36  ;;  %v1425_v40 = vld [vmem:[%s5237_s28 + $0x2e40] sm:$0xff]  ;;  %v1427_v41 = vld [vmem:[%s5237_s28 + $0x2e68] sm:$0xff] }
  0xa9   : > { %1420 = vst [vmem:[%s5245_s29 + $0x928] sm:$0xff] %v1419_v37  ;;  %1422 = vst [vmem:[%s5245_s29 + $0x930] sm:$0xff] %v1421_v38  ;;  %v1429_v42 = vld [vmem:[%s5237_s28 + $0x2e90] sm:$0xff]  ;;  %v1431_v43 = vld [vmem:[%s5237_s28 + $0x2eb8] sm:$0xff] }
  0xaa   : > { %1424 = vst [vmem:[%s5245_s29 + $0x938] sm:$0xff] %v1423_v39  ;;  %1426 = vst [vmem:[%s5245_s29 + $0x940] sm:$0xff] %v1425_v40  ;;  %v1433_v44 = vld [vmem:[%s5237_s28 + $0x2ee0] sm:$0xff]  ;;  %v1435_v45 = vld [vmem:[%s5237_s28 + $0x2f08] sm:$0xff] }
  0xab   : > { %1428 = vst [vmem:[%s5245_s29 + $0x948] sm:$0xff] %v1427_v41  ;;  %1430 = vst [vmem:[%s5245_s29 + $0x950] sm:$0xff] %v1429_v42  ;;  %v1437_v46 = vld [vmem:[%s5237_s28 + $0x2f30] sm:$0xff]  ;;  %v1439_v47 = vld [vmem:[%s5237_s28 + $0x2f58] sm:$0xff] }
  0xac   : > { %1432 = vst [vmem:[%s5245_s29 + $0x958] sm:$0xff] %v1431_v43  ;;  %1434 = vst [vmem:[%s5245_s29 + $0x960] sm:$0xff] %v1433_v44  ;;  %v1441_v48 = vld [vmem:[%s5237_s28 + $0x2f80] sm:$0xff]  ;;  %v1443_v49 = vld [vmem:[%s5237_s28 + $0x2fa8] sm:$0xff] }
  0xad   : > { %1436 = vst [vmem:[%s5245_s29 + $0x968] sm:$0xff] %v1435_v45  ;;  %1438 = vst [vmem:[%s5245_s29 + $0x970] sm:$0xff] %v1437_v46  ;;  %v1445_v50 = vld [vmem:[%s5237_s28 + $0x2fd0] sm:$0xff]  ;;  %v1447_v51 = vld [vmem:[%s5237_s28 + $0x2ff8] sm:$0xff] }
  0xae   : > { %1440 = vst [vmem:[%s5245_s29 + $0x978] sm:$0xff] %v1439_v47  ;;  %1442 = vst [vmem:[%s5245_s29 + $0x980] sm:$0xff] %v1441_v48  ;;  %v1449_v52 = vld [vmem:[%s5237_s28 + $0x3020] sm:$0xff]  ;;  %v1451_v53 = vld [vmem:[%s5237_s28 + $0x3048] sm:$0xff] }
  0xaf   : > { %1444 = vst [vmem:[%s5245_s29 + $0x988] sm:$0xff] %v1443_v49  ;;  %1446 = vst [vmem:[%s5245_s29 + $0x990] sm:$0xff] %v1445_v50  ;;  %v1453_v54 = vld [vmem:[%s5237_s28 + $0x3070] sm:$0xff]  ;;  %v1455_v55 = vld [vmem:[%s5237_s28 + $0x3098] sm:$0xff] }
  0xb0   : > { %1448 = vst [vmem:[%s5245_s29 + $0x998] sm:$0xff] %v1447_v51  ;;  %1450 = vst [vmem:[%s5245_s29 + $0x9a0] sm:$0xff] %v1449_v52  ;;  %v1457_v56 = vld [vmem:[%s5237_s28 + $0x30c0] sm:$0xff]  ;;  %v1459_v57 = vld [vmem:[%s5237_s28 + $0x30e8] sm:$0xff] }
  0xb1   : > { %1452 = vst [vmem:[%s5245_s29 + $0x9a8] sm:$0xff] %v1451_v53  ;;  %1454 = vst [vmem:[%s5245_s29 + $0x9b0] sm:$0xff] %v1453_v54  ;;  %v1461_v58 = vld [vmem:[%s5237_s28 + $0x3110] sm:$0xff]  ;;  %v1463_v59 = vld [vmem:[%s5237_s28 + $0x3138] sm:$0xff] }
  0xb2   : > { %1456 = vst [vmem:[%s5245_s29 + $0x9b8] sm:$0xff] %v1455_v55  ;;  %1458 = vst [vmem:[%s5245_s29 + $0x9c0] sm:$0xff] %v1457_v56  ;;  %v1465_v60 = vld [vmem:[%s5237_s28 + $0x3160] sm:$0xff]  ;;  %v1467_v61 = vld [vmem:[%s5237_s28 + $0x3188] sm:$0xff] }
  0xb3   : > { %1460 = vst [vmem:[%s5245_s29 + $0x9c8] sm:$0xff] %v1459_v57  ;;  %1462 = vst [vmem:[%s5245_s29 + $0x9d0] sm:$0xff] %v1461_v58  ;;  %v1469_v62 = vld [vmem:[%s5237_s28 + $0x31b0] sm:$0xff]  ;;  %v1471_v63 = vld [vmem:[%s5237_s28 + $0x31d8] sm:$0xff] }
  0xb4   : > { %1464 = vst [vmem:[%s5245_s29 + $0x9d8] sm:$0xff] %v1463_v59  ;;  %1466 = vst [vmem:[%s5245_s29 + $0x9e0] sm:$0xff] %v1465_v60 }
  0xb5   : > { %1468 = vst [vmem:[%s5245_s29 + $0x9e8] sm:$0xff] %v1467_v61  ;;  %1470 = vst [vmem:[%s5245_s29 + $0x9f0] sm:$0xff] %v1469_v62 }
  0xb6   : > { %1472 = vst [vmem:[%s5245_s29 + $0x9f8] sm:$0xff] %v1471_v63 }
  0xb7 PF: > { %p4190_p8 = scmp.ge.s32.totalorder %s5167_s16, 1  ;;  %p1485_p9 = scmp.lt.s32.totalorder %s5167_s16, 6 }
  0xb9   : > { %p1486_p10 = pnand %p4190_p8, %p1485_p9 }
  0xba   : > { %s1492_s30 = sand.u32 (!%p1486_p10), 1, %s5151_s12   ;;  %v4717_v0 = vld [vmem:[%s6295_s0 + $0x4] ss:$80 sps:$4 sm:$0xff] (!%p1486_p10)   ;;  %v4723_v1 = vld [vmem:[%s6295_s0 + $0x2c] ss:$80 sps:$4 sm:$0xff] (!%p1486_p10)   ;;  %s4192_s18 = sshll.u32 (!%p1486_p10), %s5159_s14, 1 }
  0xbb   : > { %1489 = sbr.rel (%p1486_p10) target bundleno = 743 (0x2e7), region = 66  ;;  %3621 = vmatprep.mubr.bf16.mxu1 (!%p1486_p10), %v4717_v0  ;;  %3836 = vmatprep.mubr.bf16.mxu0 (!%p1486_p10), %v4723_v1  ;;  %p1532_p11 = scmp.lt.s32.totalorder (!%p1486_p10), %s4192_s18, 9 }
  0xbc   : > { %s4577_s4 = smul.u32 (!%p1486_p10), 2560, %s1492_s30  ;;  %s4191_s23 = sshll.u32 (!%p1486_p10), %s1492_s30, 5 }
  0xbd   : > { %s1522_s24 = scalar_lea.vmem (!%p1486_p10), [#allocation3], %s4191_s23 }
  0xbe   : > { %s5892_s9 = scalar_lea.vmem (!%p1486_p10), [#allocation2], %s4577_s4 }
  0xbf   : > { %v4619_v2 = vld [vmem:[%s5892_s9 + $0x4] ss:$8 sps:$4 sm:$0xff] (!%p1486_p10)   ;;  %v4623_v4 = vld [vmem:[%s5892_s9] ss:$8 sps:$4 sm:$0xff] (!%p1486_p10)   ;;  %v4625_v6 = vld [vmem:[%s5892_s9 + $0x14] ss:$8 sps:$4 sm:$0xff] (!%p1486_p10)  }
  0xc0   : > { %v4621_v3 = vld [vmem:[%s5892_s9 + $0x504] ss:$8 sps:$4 sm:$0xff] (!%p1486_p10)   ;;  %3589 = vmatprep.subr.bf16.mxu1 (!%p1486_p10), %v4619_v2  ;;  %v4624_v5 = vld [vmem:[%s5892_s9 + $0x500] ss:$8 sps:$4 sm:$0xff] (!%p1486_p10)   ;;  %v4627_v7 = vld [vmem:[%s5892_s9 + $0x514] ss:$8 sps:$4 sm:$0xff] (!%p1486_p10)  }
  0xc1   : > { %3804 = vmatprep.subr.bf16.mxu0 (!%p1486_p10), %v4621_v3  ;;  %3590 = vmatpush1.bf16.msra.mxu1 (!%p1486_p10), %v4623_v4  ;;  %v4629_v8 = vld [vmem:[%s5892_s9 + $0x10] ss:$8 sps:$4 sm:$0xff] (!%p1486_p10)   ;;  %v4631_v10 = vld [vmem:[%s5892_s9 + $0x24] ss:$8 sps:$4 sm:$0xff] (!%p1486_p10)   ;;  %v4635_v12 = vld [vmem:[%s5892_s9 + $0x20] ss:$8 sps:$4 sm:$0xff] (!%p1486_p10)  }
  0xc2   : > { %3805 = vmatpush1.bf16.msra.mxu0 %v4624_v5  ;;  %3591 = vmatprep.subr.bf16.mxu1 %v4625_v6  ;;  %v4630_v9 = vld [vmem:[%s5892_s9 + $0x510] ss:$8 sps:$4 sm:$0xff]   ;;  %v4633_v11 = vld [vmem:[%s5892_s9 + $0x524] ss:$8 sps:$4 sm:$0xff]   ;;  %v4636_v13 = vld [vmem:[%s5892_s9 + $0x520] ss:$8 sps:$4 sm:$0xff]  }
  0xc3   : > { %3806 = vmatprep.subr.bf16.mxu0 %v4627_v7  ;;  %v4637_v14 = vld [vmem:[%s5892_s9 + $0x34] ss:$8 sps:$4 sm:$0xff]   ;;  %v4641_v16 = vld [vmem:[%s5892_s9 + $0x30] ss:$8 sps:$4 sm:$0xff]   ;;  %v4643_v18 = vld [vmem:[%s5892_s9 + $0x44] ss:$8 sps:$4 sm:$0xff]  }
  0xc4   : > { %v4639_v15 = vld [vmem:[%s5892_s9 + $0x534] ss:$8 sps:$4 sm:$0xff]   ;;  %v4642_v17 = vld [vmem:[%s5892_s9 + $0x530] ss:$8 sps:$4 sm:$0xff]   ;;  %v4645_v19 = vld [vmem:[%s5892_s9 + $0x544] ss:$8 sps:$4 sm:$0xff]  }
  0xc5   : > { %3592 = vmatpush1.bf16.msra.mxu1 %v4629_v8  ;;  %v4647_v20 = vld [vmem:[%s5892_s9 + $0x40] ss:$8 sps:$4 sm:$0xff]   ;;  %v4649_v22 = vld [vmem:[%s5892_s9 + $0x54] ss:$8 sps:$4 sm:$0xff]   ;;  %v4653_v24 = vld [vmem:[%s5892_s9 + $0x50] ss:$8 sps:$4 sm:$0xff]  }
  0xc6   : > { %3807 = vmatpush1.bf16.msra.mxu0 %v4630_v9  ;;  %3593 = vmatprep.subr.bf16.mxu1 %v4631_v10  ;;  %v4648_v21 = vld [vmem:[%s5892_s9 + $0x540] ss:$8 sps:$4 sm:$0xff]   ;;  %v4651_v23 = vld [vmem:[%s5892_s9 + $0x554] ss:$8 sps:$4 sm:$0xff]   ;;  %v4654_v25 = vld [vmem:[%s5892_s9 + $0x550] ss:$8 sps:$4 sm:$0xff]  }
  0xc7   : > { %3808 = vmatprep.subr.bf16.mxu0 %v4633_v11  ;;  %v4655_v26 = vld [vmem:[%s5892_s9 + $0x64] ss:$8 sps:$4 sm:$0xff]   ;;  %v4659_v28 = vld [vmem:[%s5892_s9 + $0x60] ss:$8 sps:$4 sm:$0xff]   ;;  %v4661_v30 = vld [vmem:[%s5892_s9 + $0x74] ss:$8 sps:$4 sm:$0xff]  }
  0xc8   : > { %v4657_v27 = vld [vmem:[%s5892_s9 + $0x564] ss:$8 sps:$4 sm:$0xff]   ;;  %v4660_v29 = vld [vmem:[%s5892_s9 + $0x560] ss:$8 sps:$4 sm:$0xff]   ;;  %v4663_v31 = vld [vmem:[%s5892_s9 + $0x574] ss:$8 sps:$4 sm:$0xff]  }
  0xc9   : > { %3594 = vmatpush1.bf16.msra.mxu1 %v4635_v12  ;;  %v4665_v32 = vld [vmem:[%s5892_s9 + $0x70] ss:$8 sps:$4 sm:$0xff]   ;;  %v4667_v34 = vld [vmem:[%s5892_s9 + $0x84] ss:$8 sps:$4 sm:$0xff]   ;;  %v4671_v36 = vld [vmem:[%s5892_s9 + $0x80] ss:$8 sps:$4 sm:$0xff]  }
  0xca   : > { %3809 = vmatpush1.bf16.msra.mxu0 %v4636_v13  ;;  %3595 = vmatprep.subr.bf16.mxu1 %v4637_v14  ;;  %v4666_v33 = vld [vmem:[%s5892_s9 + $0x570] ss:$8 sps:$4 sm:$0xff]   ;;  %v4669_v35 = vld [vmem:[%s5892_s9 + $0x584] ss:$8 sps:$4 sm:$0xff]   ;;  %v4672_v37 = vld [vmem:[%s5892_s9 + $0x580] ss:$8 sps:$4 sm:$0xff]  }
  0xcb   : > { %3810 = vmatprep.subr.bf16.mxu0 %v4639_v15  ;;  %v4673_v38 = vld [vmem:[%s5892_s9 + $0x94] ss:$8 sps:$4 sm:$0xff]   ;;  %v4677_v40 = vld [vmem:[%s5892_s9 + $0x90] ss:$8 sps:$4 sm:$0xff]   ;;  %v4679_v42 = vld [vmem:[%s5892_s9 + $0xa4] ss:$8 sps:$4 sm:$0xff]  }
  0xcc   : > { %v4675_v39 = vld [vmem:[%s5892_s9 + $0x594] ss:$8 sps:$4 sm:$0xff]   ;;  %v4678_v41 = vld [vmem:[%s5892_s9 + $0x590] ss:$8 sps:$4 sm:$0xff]   ;;  %v4681_v43 = vld [vmem:[%s5892_s9 + $0x5a4] ss:$8 sps:$4 sm:$0xff]  }
  0xcd   : > { %3596 = vmatpush1.bf16.msra.mxu1 %v4641_v16  ;;  %v4683_v44 = vld [vmem:[%s5892_s9 + $0xa0] ss:$8 sps:$4 sm:$0xff]   ;;  %v4685_v46 = vld [vmem:[%s5892_s9 + $0xb4] ss:$8 sps:$4 sm:$0xff]   ;;  %v4689_v48 = vld [vmem:[%s5892_s9 + $0xb0] ss:$8 sps:$4 sm:$0xff]  }
  0xce   : > { %3811 = vmatpush1.bf16.msra.mxu0 %v4642_v17  ;;  %3597 = vmatprep.subr.bf16.mxu1 %v4643_v18  ;;  %v4684_v45 = vld [vmem:[%s5892_s9 + $0x5a0] ss:$8 sps:$4 sm:$0xff]   ;;  %v4687_v47 = vld [vmem:[%s5892_s9 + $0x5b4] ss:$8 sps:$4 sm:$0xff]   ;;  %v4690_v49 = vld [vmem:[%s5892_s9 + $0x5b0] ss:$8 sps:$4 sm:$0xff]  }
  0xcf   : > { %3812 = vmatprep.subr.bf16.mxu0 %v4645_v19  ;;  %v4691_v50 = vld [vmem:[%s5892_s9 + $0xc4] ss:$8 sps:$4 sm:$0xff]   ;;  %v4695_v52 = vld [vmem:[%s5892_s9 + $0xc0] ss:$8 sps:$4 sm:$0xff]   ;;  %v4697_v54 = vld [vmem:[%s5892_s9 + $0xd4] ss:$8 sps:$4 sm:$0xff]  }
  0xd0   : > { %v4693_v51 = vld [vmem:[%s5892_s9 + $0x5c4] ss:$8 sps:$4 sm:$0xff]   ;;  %v4696_v53 = vld [vmem:[%s5892_s9 + $0x5c0] ss:$8 sps:$4 sm:$0xff]   ;;  %v4699_v55 = vld [vmem:[%s5892_s9 + $0x5d4] ss:$8 sps:$4 sm:$0xff]  }
  0xd1   : > { %3598 = vmatpush1.bf16.msra.mxu1 %v4647_v20  ;;  %v4701_v56 = vld [vmem:[%s5892_s9 + $0xd0] ss:$8 sps:$4 sm:$0xff]   ;;  %v4703_v58 = vld [vmem:[%s5892_s9 + $0xe4] ss:$8 sps:$4 sm:$0xff]   ;;  %v4707_v60 = vld [vmem:[%s5892_s9 + $0xe0] ss:$8 sps:$4 sm:$0xff]  }
  0xd2   : > { %3813 = vmatpush1.bf16.msra.mxu0 %v4648_v21  ;;  %3599 = vmatprep.subr.bf16.mxu1 %v4649_v22  ;;  %v4702_v57 = vld [vmem:[%s5892_s9 + $0x5d0] ss:$8 sps:$4 sm:$0xff]   ;;  %v4705_v59 = vld [vmem:[%s5892_s9 + $0x5e4] ss:$8 sps:$4 sm:$0xff]   ;;  %v4708_v61 = vld [vmem:[%s5892_s9 + $0x5e0] ss:$8 sps:$4 sm:$0xff]  }
  0xd3   : > { %3814 = vmatprep.subr.bf16.mxu0 %v4651_v23  ;;  %v4709_v62 = vld [vmem:[%s5892_s9 + $0xf4] ss:$8 sps:$4 sm:$0xff]   ;;  %v4713_v0 = vld [vmem:[%s5892_s9 + $0xf0] ss:$8 sps:$4 sm:$0xff]   ;;  %v4720_v2 = vld [vmem:[%s5892_s9 + $0x104] ss:$8 sps:$4 sm:$0xff]  }
  0xd4   : > { %v4711_v63 = vld [vmem:[%s5892_s9 + $0x5f4] ss:$8 sps:$4 sm:$0xff]   ;;  %v4714_v1 = vld [vmem:[%s5892_s9 + $0x5f0] ss:$8 sps:$4 sm:$0xff]   ;;  %v4726_v3 = vld [vmem:[%s5892_s9 + $0x604] ss:$8 sps:$4 sm:$0xff]  }
  0xd5   : > { %3600 = vmatpush1.bf16.msra.mxu1 %v4653_v24  ;;  %v4715_v4 = vld [vmem:[%s6295_s0] ss:$80 sps:$4 sm:$0xff]   ;;  %v4721_v5 = vld [vmem:[%s6295_s0 + $0x28] ss:$80 sps:$4 sm:$0xff]   ;;  %v4729_v8 = vld [vmem:[%s5892_s9 + $0x114] ss:$8 sps:$4 sm:$0xff]  }
  0xd6   : > { %3815 = vmatpush1.bf16.msra.mxu0 %v4654_v25  ;;  %3601 = vmatprep.subr.bf16.mxu1 %v4655_v26  ;;  %v4718_v6 = vld [vmem:[%s5892_s9 + $0x100] ss:$8 sps:$4 sm:$0xff]   ;;  %v4732_v9 = vld [vmem:[%s5892_s9 + $0x614] ss:$8 sps:$4 sm:$0xff]   ;;  %v4727_v10 = vld [vmem:[%s5892_s9 + $0x110] ss:$8 sps:$4 sm:$0xff]  }
  0xd7   : > { %3816 = vmatprep.subr.bf16.mxu0 %v4657_v27  ;;  %v4724_v7 = vld [vmem:[%s5892_s9 + $0x600] ss:$8 sps:$4 sm:$0xff]   ;;  %v4730_v11 = vld [vmem:[%s5892_s9 + $0x610] ss:$8 sps:$4 sm:$0xff]   ;;  %v4735_v12 = vld [vmem:[%s5892_s9 + $0x124] ss:$8 sps:$4 sm:$0xff]  }
  0xd8   : > { %v4738_v13 = vld [vmem:[%s5892_s9 + $0x624] ss:$8 sps:$4 sm:$0xff]   ;;  %v4733_v14 = vld [vmem:[%s5892_s9 + $0x120] ss:$8 sps:$4 sm:$0xff]   ;;  %v4741_v16 = vld [vmem:[%s5892_s9 + $0x134] ss:$8 sps:$4 sm:$0xff]  }
  0xd9   : > { %3602 = vmatpush1.bf16.msra.mxu1 %v4659_v28  ;;  %v4736_v15 = vld [vmem:[%s5892_s9 + $0x620] ss:$8 sps:$4 sm:$0xff]   ;;  %v4744_v17 = vld [vmem:[%s5892_s9 + $0x634] ss:$8 sps:$4 sm:$0xff]   ;;  %v4739_v18 = vld [vmem:[%s5892_s9 + $0x130] ss:$8 sps:$4 sm:$0xff]  }
  0xda   : > { %3817 = vmatpush1.bf16.msra.mxu0 %v4660_v29  ;;  %3603 = vmatprep.subr.bf16.mxu1 %v4661_v30  ;;  %v4742_v19 = vld [vmem:[%s5892_s9 + $0x630] ss:$8 sps:$4 sm:$0xff]   ;;  %v4747_v20 = vld [vmem:[%s5892_s9 + $0x144] ss:$8 sps:$4 sm:$0xff]   ;;  %v4745_v22 = vld [vmem:[%s5892_s9 + $0x140] ss:$8 sps:$4 sm:$0xff]  }
  0xdb   : > { %3818 = vmatprep.subr.bf16.mxu0 %v4663_v31  ;;  %v4750_v21 = vld [vmem:[%s5892_s9 + $0x644] ss:$8 sps:$4 sm:$0xff]   ;;  %v4748_v23 = vld [vmem:[%s5892_s9 + $0x640] ss:$8 sps:$4 sm:$0xff]   ;;  %v4753_v24 = vld [vmem:[%s5892_s9 + $0x154] ss:$8 sps:$4 sm:$0xff]  }
  0xdc   : > { %v4756_v25 = vld [vmem:[%s5892_s9 + $0x654] ss:$8 sps:$4 sm:$0xff]   ;;  %v4751_v26 = vld [vmem:[%s5892_s9 + $0x150] ss:$8 sps:$4 sm:$0xff]   ;;  %v4759_v28 = vld [vmem:[%s5892_s9 + $0x164] ss:$8 sps:$4 sm:$0xff]  }
  0xdd   : > { %3604 = vmatpush1.bf16.msra.mxu1 %v4665_v32  ;;  %v4754_v27 = vld [vmem:[%s5892_s9 + $0x650] ss:$8 sps:$4 sm:$0xff]   ;;  %v4762_v29 = vld [vmem:[%s5892_s9 + $0x664] ss:$8 sps:$4 sm:$0xff]   ;;  %v4757_v31 = vld [vmem:[%s5892_s9 + $0x160] ss:$8 sps:$4 sm:$0xff]  }
  0xde   : > { %3819 = vmatpush1.bf16.msra.mxu0 %v4666_v33  ;;  %3605 = vmatprep.subr.bf16.mxu1 %v4667_v34  ;;  %v4819_v30 = vld [vmem:[%s6295_s0 + $0xc] ss:$80 sps:$4 sm:$0xff]   ;;  %v4760_v32 = vld [vmem:[%s5892_s9 + $0x660] ss:$8 sps:$4 sm:$0xff]   ;;  %v4825_v33 = vld [vmem:[%s6295_s0 + $0x34] ss:$80 sps:$4 sm:$0xff]  }
  0xdf   : > { %3820 = vmatprep.subr.bf16.mxu0 %v4669_v35  ;;  %v4765_v34 = vld [vmem:[%s5892_s9 + $0x174] ss:$8 sps:$4 sm:$0xff]   ;;  %s6307_s18 = smov (!%p1532_p11, %s4192_s18), 9  ;;  %s4539_s12 = sshll.u32 (%p5224_p6), %s5159_s14, 4 }
  0xe0   : > { %v4768_v35 = vld [vmem:[%s5892_s9 + $0x674] ss:$8 sps:$4 sm:$0xff]   ;;  %s1534_s20 = scalar_lea.vmem %s6297_s2, %s6307_s18  ;;  %s4067_s26 = scalar_lea.vmem (%p5224_p6), %s6298_s3, %s4539_s12 }
  0xe1   : > { %3606 = vmatpush1.bf16.msra.mxu1 %v4671_v36  ;;  %v4763_v36 = vld [vmem:[%s5892_s9 + $0x170] ss:$8 sps:$4 sm:$0xff]  }
  0xe2   : > { %3821 = vmatpush1.bf16.msra.mxu0 %v4672_v37  ;;  %3607 = vmatprep.subr.bf16.mxu1 %v4673_v38  ;;  %v4766_v37 = vld [vmem:[%s5892_s9 + $0x670] ss:$8 sps:$4 sm:$0xff]   ;;  %v4771_v38 = vld [vmem:[%s5892_s9 + $0x184] ss:$8 sps:$4 sm:$0xff]  }
  0xe3   : > { %3822 = vmatprep.subr.bf16.mxu0 %v4675_v39  ;;  %v4774_v39 = vld [vmem:[%s5892_s9 + $0x684] ss:$8 sps:$4 sm:$0xff]  }
  0xe5   : > { %3608 = vmatpush1.bf16.msra.mxu1 %v4677_v40  ;;  %v4769_v40 = vld [vmem:[%s5892_s9 + $0x180] ss:$8 sps:$4 sm:$0xff]  }
  0xe6   : > { %3823 = vmatpush1.bf16.msra.mxu0 %v4678_v41  ;;  %3609 = vmatprep.subr.bf16.mxu1 %v4679_v42  ;;  %v4772_v41 = vld [vmem:[%s5892_s9 + $0x680] ss:$8 sps:$4 sm:$0xff]   ;;  %v4777_v42 = vld [vmem:[%s5892_s9 + $0x194] ss:$8 sps:$4 sm:$0xff]  }
  0xe7   : > { %3824 = vmatprep.subr.bf16.mxu0 %v4681_v43  ;;  %v4780_v43 = vld [vmem:[%s5892_s9 + $0x694] ss:$8 sps:$4 sm:$0xff]  }
  0xe9   : > { %3610 = vmatpush1.bf16.msra.mxu1 %v4683_v44  ;;  %v4775_v44 = vld [vmem:[%s5892_s9 + $0x190] ss:$8 sps:$4 sm:$0xff]  }
  0xea   : > { %3825 = vmatpush1.bf16.msra.mxu0 %v4684_v45  ;;  %3611 = vmatprep.subr.bf16.mxu1 %v4685_v46  ;;  %v4778_v45 = vld [vmem:[%s5892_s9 + $0x690] ss:$8 sps:$4 sm:$0xff]   ;;  %v4783_v46 = vld [vmem:[%s5892_s9 + $0x1a4] ss:$8 sps:$4 sm:$0xff]  }
  0xeb   : > { %3826 = vmatprep.subr.bf16.mxu0 %v4687_v47  ;;  %v4786_v47 = vld [vmem:[%s5892_s9 + $0x6a4] ss:$8 sps:$4 sm:$0xff]  }
  0xed   : > { %3612 = vmatpush1.bf16.msra.mxu1 %v4689_v48  ;;  %v4781_v48 = vld [vmem:[%s5892_s9 + $0x1a0] ss:$8 sps:$4 sm:$0xff]  }
  0xee   : > { %3827 = vmatpush1.bf16.msra.mxu0 %v4690_v49  ;;  %3613 = vmatprep.subr.bf16.mxu1 %v4691_v50  ;;  %v4784_v49 = vld [vmem:[%s5892_s9 + $0x6a0] ss:$8 sps:$4 sm:$0xff]   ;;  %v4789_v50 = vld [vmem:[%s5892_s9 + $0x1b4] ss:$8 sps:$4 sm:$0xff]  }
  0xef   : > { %3828 = vmatprep.subr.bf16.mxu0 %v4693_v51  ;;  %v4792_v51 = vld [vmem:[%s5892_s9 + $0x6b4] ss:$8 sps:$4 sm:$0xff]  }
  0xf1   : > { %3614 = vmatpush1.bf16.msra.mxu1 %v4695_v52  ;;  %v4787_v52 = vld [vmem:[%s5892_s9 + $0x1b0] ss:$8 sps:$4 sm:$0xff]  }
  0xf2   : > { %3829 = vmatpush1.bf16.msra.mxu0 %v4696_v53  ;;  %3615 = vmatprep.subr.bf16.mxu1 %v4697_v54  ;;  %v4790_v53 = vld [vmem:[%s5892_s9 + $0x6b0] ss:$8 sps:$4 sm:$0xff]   ;;  %v4795_v54 = vld [vmem:[%s5892_s9 + $0x1c4] ss:$8 sps:$4 sm:$0xff]  }
  0xf3   : > { %3830 = vmatprep.subr.bf16.mxu0 %v4699_v55  ;;  %v4798_v55 = vld [vmem:[%s5892_s9 + $0x6c4] ss:$8 sps:$4 sm:$0xff]  }
  0xf5   : > { %3616 = vmatpush1.bf16.msra.mxu1 %v4701_v56  ;;  %v4793_v56 = vld [vmem:[%s5892_s9 + $0x1c0] ss:$8 sps:$4 sm:$0xff]  }
  0xf6   : > { %3831 = vmatpush1.bf16.msra.mxu0 %v4702_v57  ;;  %3617 = vmatprep.subr.bf16.mxu1 %v4703_v58  ;;  %v4796_v57 = vld [vmem:[%s5892_s9 + $0x6c0] ss:$8 sps:$4 sm:$0xff]   ;;  %v4801_v58 = vld [vmem:[%s5892_s9 + $0x1d4] ss:$8 sps:$4 sm:$0xff]  }
  0xf7   : > { %3832 = vmatprep.subr.bf16.mxu0 %v4705_v59  ;;  %v4804_v59 = vld [vmem:[%s5892_s9 + $0x6d4] ss:$8 sps:$4 sm:$0xff]  }
  0xf9   : > { %3618 = vmatpush1.bf16.msra.mxu1 %v4707_v60  ;;  %v4799_v60 = vld [vmem:[%s5892_s9 + $0x1d0] ss:$8 sps:$4 sm:$0xff]  }
  0xfa   : > { %3833 = vmatpush1.bf16.msra.mxu0 %v4708_v61  ;;  %3619 = vmatprep.subr.bf16.mxu1 %v4709_v62  ;;  %v4802_v61 = vld [vmem:[%s5892_s9 + $0x6d0] ss:$8 sps:$4 sm:$0xff]   ;;  %v4807_v62 = vld [vmem:[%s5892_s9 + $0x1e4] ss:$8 sps:$4 sm:$0xff]  }
  0xfb   : > { %3834 = vmatprep.subr.bf16.mxu0 %v4711_v63  ;;  %v4810_v63 = vld [vmem:[%s5892_s9 + $0x6e4] ss:$8 sps:$4 sm:$0xff]  }
  0xfd   : > { %3620 = vmatpush1.bf16.msra.mxu1 %v4713_v0  ;;  %v4805_v0 = vld [vmem:[%s5892_s9 + $0x1e0] ss:$8 sps:$4 sm:$0xff]  }
  0xfe   : > { %3835 = vmatpush1.bf16.msra.mxu0 %v4714_v1  ;;  %3632 = vmatprep.subr.bf16.mxu1 %v4720_v2  ;;  %v4808_v1 = vld [vmem:[%s5892_s9 + $0x6e0] ss:$8 sps:$4 sm:$0xff]   ;;  %v4813_v2 = vld [vmem:[%s5892_s9 + $0x1f4] ss:$8 sps:$4 sm:$0xff]  }
  0xff   : > { %3847 = vmatprep.subr.bf16.mxu0 %v4726_v3  ;;  %v4816_v3 = vld [vmem:[%s5892_s9 + $0x6f4] ss:$8 sps:$4 sm:$0xff]  }
 0x100   : > { %3622 = vmatmul.mubr.bf16.vlgmr.msra.gmra.mrb[0].mxu1 %v4715_v4  ;;  %v4811_v4 = vld [vmem:[%s5892_s9 + $0x1f0] ss:$8 sps:$4 sm:$0xff]  }
 0x101   : > { %3837 = vmatmul.mubr.bf16.vlgmr.msra.gmra.mrb[0].mxu0 %v4721_v5  ;;  %3633 = vmatpush1.bf16.msra.mxu1 %v4718_v6  ;;  %v4814_v5 = vld [vmem:[%s5892_s9 + $0x6f0] ss:$8 sps:$4 sm:$0xff]   ;;  %v4822_v6 = vld [vmem:[%s5892_s9 + $0x204] ss:$8 sps:$4 sm:$0xff]  }
 0x102   : > { %3848 = vmatpush1.bf16.msra.mxu0 %v4724_v7  ;;  %3634 = vmatprep.subr.bf16.mxu1 %v4729_v8  ;;  %v4828_v7 = vld [vmem:[%s5892_s9 + $0x704] ss:$8 sps:$4 sm:$0xff]   ;;  %v4817_v8 = vld [vmem:[%s6295_s0 + $0x8] ss:$80 sps:$4 sm:$0xff]  }
 0x103   : > { %3849 = vmatprep.subr.bf16.mxu0 %v4732_v9  ;;  %3664 = vmatprep.mubr.bf16.mxu1 %v4819_v30  ;;  %v4820_v9 = vld [vmem:[%s5892_s9 + $0x200] ss:$8 sps:$4 sm:$0xff]   ;;  %v4855_v30 = vld [vmem:[%s5892_s9 + $0x254] ss:$8 sps:$4 sm:$0xff]  }
 0x104   : > { %3879 = vmatprep.mubr.bf16.mxu0 %v4825_v33  ;;  %v4856_v33 = vld [vmem:[%s5892_s9 + $0x750] ss:$8 sps:$4 sm:$0xff]  }
 0x105   : > { %3635 = vmatpush1.bf16.msra.mxu1 %v4727_v10  ;;  %v4823_v10 = vld [vmem:[%s6295_s0 + $0x30] ss:$80 sps:$4 sm:$0xff]  }
 0x106   : > { %3850 = vmatpush1.bf16.msra.mxu0 %v4730_v11  ;;  %3636 = vmatprep.subr.bf16.mxu1 %v4735_v12  ;;  %v4826_v11 = vld [vmem:[%s5892_s9 + $0x700] ss:$8 sps:$4 sm:$0xff]   ;;  %v4831_v12 = vld [vmem:[%s5892_s9 + $0x214] ss:$8 sps:$4 sm:$0xff]  }
 0x107   : > { %3851 = vmatprep.subr.bf16.mxu0 %v4738_v13  ;;  %v4834_v13 = vld [vmem:[%s5892_s9 + $0x714] ss:$8 sps:$4 sm:$0xff]  }
 0x109   : > { %3637 = vmatpush1.bf16.msra.mxu1 %v4733_v14  ;;  %v4829_v14 = vld [vmem:[%s5892_s9 + $0x210] ss:$8 sps:$4 sm:$0xff]  }
 0x10a   : > { %3852 = vmatpush1.bf16.msra.mxu0 %v4736_v15  ;;  %3638 = vmatprep.subr.bf16.mxu1 %v4741_v16  ;;  %v4921_v15 = vld [vmem:[%s6295_s0 + $0x14] ss:$80 sps:$4 sm:$0xff]   ;;  %v4832_v16 = vld [vmem:[%s5892_s9 + $0x710] ss:$8 sps:$4 sm:$0xff]  }
 0x10b   : > { %3853 = vmatprep.subr.bf16.mxu0 %v4744_v17  ;;  %v4837_v17 = vld [vmem:[%s5892_s9 + $0x224] ss:$8 sps:$4 sm:$0xff]  }
 0x10d   : > { %3639 = vmatpush1.bf16.msra.mxu1 %v4739_v18  ;;  %v4840_v18 = vld [vmem:[%s5892_s9 + $0x724] ss:$8 sps:$4 sm:$0xff]  }
 0x10e   : > { %3854 = vmatpush1.bf16.msra.mxu0 %v4742_v19  ;;  %3640 = vmatprep.subr.bf16.mxu1 %v4747_v20  ;;  %v4927_v19 = vld [vmem:[%s6295_s0 + $0x3c] ss:$80 sps:$4 sm:$0xff]   ;;  %v4835_v20 = vld [vmem:[%s5892_s9 + $0x220] ss:$8 sps:$4 sm:$0xff]  }
 0x10f   : > { %3855 = vmatprep.subr.bf16.mxu0 %v4750_v21  ;;  %v4838_v21 = vld [vmem:[%s5892_s9 + $0x720] ss:$8 sps:$4 sm:$0xff]  }
 0x111   : > { %3641 = vmatpush1.bf16.msra.mxu1 %v4745_v22  ;;  %v4843_v22 = vld [vmem:[%s5892_s9 + $0x234] ss:$8 sps:$4 sm:$0xff]  }
 0x112   : > { %3856 = vmatpush1.bf16.msra.mxu0 %v4748_v23  ;;  %3642 = vmatprep.subr.bf16.mxu1 %v4753_v24  ;;  %v4846_v23 = vld [vmem:[%s5892_s9 + $0x734] ss:$8 sps:$4 sm:$0xff]   ;;  %v4841_v24 = vld [vmem:[%s5892_s9 + $0x230] ss:$8 sps:$4 sm:$0xff]  }
 0x113   : > { %3857 = vmatprep.subr.bf16.mxu0 %v4756_v25  ;;  %v4844_v25 = vld [vmem:[%s5892_s9 + $0x730] ss:$8 sps:$4 sm:$0xff]  }
 0x115   : > { %3643 = vmatpush1.bf16.msra.mxu1 %v4751_v26  ;;  %v4849_v26 = vld [vmem:[%s5892_s9 + $0x244] ss:$8 sps:$4 sm:$0xff]  }
 0x116   : > { %3858 = vmatpush1.bf16.msra.mxu0 %v4754_v27  ;;  %3644 = vmatprep.subr.bf16.mxu1 %v4759_v28  ;;  %v4852_v27 = vld [vmem:[%s5892_s9 + $0x744] ss:$8 sps:$4 sm:$0xff]   ;;  %v4847_v28 = vld [vmem:[%s5892_s9 + $0x240] ss:$8 sps:$4 sm:$0xff]  }
 0x117   : > { %3859 = vmatprep.subr.bf16.mxu0 %v4762_v29  ;;  %v4850_v29 = vld [vmem:[%s5892_s9 + $0x740] ss:$8 sps:$4 sm:$0xff]  }
 0x119   : > { %3645 = vmatpush1.bf16.msra.mxu1 %v4757_v31  ;;  %v4858_v31 = vld [vmem:[%s5892_s9 + $0x754] ss:$8 sps:$4 sm:$0xff]  }
 0x11a   : > { %3860 = vmatpush1.bf16.msra.mxu0 %v4760_v32  ;;  %3646 = vmatprep.subr.bf16.mxu1 %v4765_v34  ;;  %v4853_v32 = vld [vmem:[%s5892_s9 + $0x250] ss:$8 sps:$4 sm:$0xff]   ;;  %v4861_v34 = vld [vmem:[%s5892_s9 + $0x264] ss:$8 sps:$4 sm:$0xff]  }
 0x11b   : > { %3861 = vmatprep.subr.bf16.mxu0 %v4768_v35  ;;  %v4864_v35 = vld [vmem:[%s5892_s9 + $0x764] ss:$8 sps:$4 sm:$0xff]  }
 0x11d   : > { %3647 = vmatpush1.bf16.msra.mxu1 %v4763_v36  ;;  %v4859_v36 = vld [vmem:[%s5892_s9 + $0x260] ss:$8 sps:$4 sm:$0xff]  }
 0x11e   : > { %3862 = vmatpush1.bf16.msra.mxu0 %v4766_v37  ;;  %3648 = vmatprep.subr.bf16.mxu1 %v4771_v38  ;;  %v4862_v37 = vld [vmem:[%s5892_s9 + $0x760] ss:$8 sps:$4 sm:$0xff]   ;;  %v4867_v38 = vld [vmem:[%s5892_s9 + $0x274] ss:$8 sps:$4 sm:$0xff]  }
 0x11f   : > { %3863 = vmatprep.subr.bf16.mxu0 %v4774_v39  ;;  %v4870_v39 = vld [vmem:[%s5892_s9 + $0x774] ss:$8 sps:$4 sm:$0xff]  }
 0x121   : > { %3649 = vmatpush1.bf16.msra.mxu1 %v4769_v40  ;;  %v4865_v40 = vld [vmem:[%s5892_s9 + $0x270] ss:$8 sps:$4 sm:$0xff]  }
 0x122   : > { %3864 = vmatpush1.bf16.msra.mxu0 %v4772_v41  ;;  %3650 = vmatprep.subr.bf16.mxu1 %v4777_v42  ;;  %v4868_v41 = vld [vmem:[%s5892_s9 + $0x770] ss:$8 sps:$4 sm:$0xff]   ;;  %v4873_v42 = vld [vmem:[%s5892_s9 + $0x284] ss:$8 sps:$4 sm:$0xff]  }
 0x123   : > { %3865 = vmatprep.subr.bf16.mxu0 %v4780_v43  ;;  %v4876_v43 = vld [vmem:[%s5892_s9 + $0x784] ss:$8 sps:$4 sm:$0xff]  }
 0x125   : > { %3651 = vmatpush1.bf16.msra.mxu1 %v4775_v44  ;;  %v4871_v44 = vld [vmem:[%s5892_s9 + $0x280] ss:$8 sps:$4 sm:$0xff]  }
 0x126   : > { %3866 = vmatpush1.bf16.msra.mxu0 %v4778_v45  ;;  %3652 = vmatprep.subr.bf16.mxu1 %v4783_v46  ;;  %v4874_v45 = vld [vmem:[%s5892_s9 + $0x780] ss:$8 sps:$4 sm:$0xff]   ;;  %v4879_v46 = vld [vmem:[%s5892_s9 + $0x294] ss:$8 sps:$4 sm:$0xff]  }
 0x127   : > { %3867 = vmatprep.subr.bf16.mxu0 %v4786_v47  ;;  %v4882_v47 = vld [vmem:[%s5892_s9 + $0x794] ss:$8 sps:$4 sm:$0xff]  }
 0x129   : > { %3653 = vmatpush1.bf16.msra.mxu1 %v4781_v48  ;;  %v4877_v48 = vld [vmem:[%s5892_s9 + $0x290] ss:$8 sps:$4 sm:$0xff]  }
 0x12a   : > { %3868 = vmatpush1.bf16.msra.mxu0 %v4784_v49  ;;  %3654 = vmatprep.subr.bf16.mxu1 %v4789_v50  ;;  %v4880_v49 = vld [vmem:[%s5892_s9 + $0x790] ss:$8 sps:$4 sm:$0xff]   ;;  %v4885_v50 = vld [vmem:[%s5892_s9 + $0x2a4] ss:$8 sps:$4 sm:$0xff]  }
 0x12b   : > { %3869 = vmatprep.subr.bf16.mxu0 %v4792_v51  ;;  %v4888_v51 = vld [vmem:[%s5892_s9 + $0x7a4] ss:$8 sps:$4 sm:$0xff]  }
 0x12d   : > { %3655 = vmatpush1.bf16.msra.mxu1 %v4787_v52  ;;  %v4883_v52 = vld [vmem:[%s5892_s9 + $0x2a0] ss:$8 sps:$4 sm:$0xff]  }
 0x12e   : > { %3870 = vmatpush1.bf16.msra.mxu0 %v4790_v53  ;;  %3656 = vmatprep.subr.bf16.mxu1 %v4795_v54  ;;  %v4886_v53 = vld [vmem:[%s5892_s9 + $0x7a0] ss:$8 sps:$4 sm:$0xff]   ;;  %v4891_v54 = vld [vmem:[%s5892_s9 + $0x2b4] ss:$8 sps:$4 sm:$0xff]  }
 0x12f   : > { %3871 = vmatprep.subr.bf16.mxu0 %v4798_v55  ;;  %v4894_v55 = vld [vmem:[%s5892_s9 + $0x7b4] ss:$8 sps:$4 sm:$0xff]  }
 0x131   : > { %3657 = vmatpush1.bf16.msra.mxu1 %v4793_v56  ;;  %v4889_v56 = vld [vmem:[%s5892_s9 + $0x2b0] ss:$8 sps:$4 sm:$0xff]  }
 0x132   : > { %3872 = vmatpush1.bf16.msra.mxu0 %v4796_v57  ;;  %3658 = vmatprep.subr.bf16.mxu1 %v4801_v58  ;;  %v4892_v57 = vld [vmem:[%s5892_s9 + $0x7b0] ss:$8 sps:$4 sm:$0xff]   ;;  %v4897_v58 = vld [vmem:[%s5892_s9 + $0x2c4] ss:$8 sps:$4 sm:$0xff]  }
 0x133   : > { %3873 = vmatprep.subr.bf16.mxu0 %v4804_v59  ;;  %v4900_v59 = vld [vmem:[%s5892_s9 + $0x7c4] ss:$8 sps:$4 sm:$0xff]  }
 0x135   : > { %3659 = vmatpush1.bf16.msra.mxu1 %v4799_v60  ;;  %v4895_v60 = vld [vmem:[%s5892_s9 + $0x2c0] ss:$8 sps:$4 sm:$0xff]  }
 0x136   : > { %3874 = vmatpush1.bf16.msra.mxu0 %v4802_v61  ;;  %3660 = vmatprep.subr.bf16.mxu1 %v4807_v62  ;;  %v4898_v61 = vld [vmem:[%s5892_s9 + $0x7c0] ss:$8 sps:$4 sm:$0xff]   ;;  %v4903_v62 = vld [vmem:[%s5892_s9 + $0x2d4] ss:$8 sps:$4 sm:$0xff]  }
 0x137   : > { %3875 = vmatprep.subr.bf16.mxu0 %v4810_v63  ;;  %v4906_v63 = vld [vmem:[%s5892_s9 + $0x7d4] ss:$8 sps:$4 sm:$0xff]  }
 0x139   : > { %3661 = vmatpush1.bf16.msra.mxu1 %v4805_v0  ;;  %v4901_v0 = vld [vmem:[%s5892_s9 + $0x2d0] ss:$8 sps:$4 sm:$0xff]  }
 0x13a   : > { %3876 = vmatpush1.bf16.msra.mxu0 %v4808_v1  ;;  %3662 = vmatprep.subr.bf16.mxu1 %v4813_v2  ;;  %v4904_v1 = vld [vmem:[%s5892_s9 + $0x7d0] ss:$8 sps:$4 sm:$0xff]   ;;  %v4909_v2 = vld [vmem:[%s5892_s9 + $0x2e4] ss:$8 sps:$4 sm:$0xff]  }
 0x13b   : > { %3877 = vmatprep.subr.bf16.mxu0 %v4816_v3  ;;  %v4912_v3 = vld [vmem:[%s5892_s9 + $0x7e4] ss:$8 sps:$4 sm:$0xff]  }
 0x13d   : > { %3663 = vmatpush1.bf16.msra.mxu1 %v4811_v4  ;;  %v4907_v4 = vld [vmem:[%s5892_s9 + $0x2e0] ss:$8 sps:$4 sm:$0xff]  }
 0x13e   : > { %3878 = vmatpush1.bf16.msra.mxu0 %v4814_v5  ;;  %3675 = vmatprep.subr.bf16.mxu1 %v4822_v6  ;;  %v4910_v5 = vld [vmem:[%s5892_s9 + $0x7e0] ss:$8 sps:$4 sm:$0xff]   ;;  %v4915_v6 = vld [vmem:[%s5892_s9 + $0x2f4] ss:$8 sps:$4 sm:$0xff]  }
 0x13f   : > { %3890 = vmatprep.subr.bf16.mxu0 %v4828_v7  ;;  %v4918_v7 = vld [vmem:[%s5892_s9 + $0x7f4] ss:$8 sps:$4 sm:$0xff]  }
 0x140   : > { %3665 = vmatmul.mubr.bf16.vlgmr.msra.gmra.mrb[0].mxu1 %v4817_v8  ;;  %v4913_v8 = vld [vmem:[%s5892_s9 + $0x2f0] ss:$8 sps:$4 sm:$0xff]  }
 0x141   : > { %3880 = vmatmul.mubr.bf16.vlgmr.msra.gmra.mrb[0].mxu0 %v4823_v10  ;;  %3676 = vmatpush1.bf16.msra.mxu1 %v4820_v9  ;;  %v4916_v9 = vld [vmem:[%s5892_s9 + $0x7f0] ss:$8 sps:$4 sm:$0xff]   ;;  %v4924_v10 = vld [vmem:[%s5892_s9 + $0x304] ss:$8 sps:$4 sm:$0xff]  }
 0x142   : > { %3891 = vmatpush1.bf16.msra.mxu0 %v4826_v11  ;;  %3677 = vmatprep.subr.bf16.mxu1 %v4831_v12  ;;  %v4930_v11 = vld [vmem:[%s5892_s9 + $0x804] ss:$8 sps:$4 sm:$0xff]   ;;  %v4919_v12 = vld [vmem:[%s6295_s0 + $0x10] ss:$80 sps:$4 sm:$0xff]  }
 0x143   : > { %3892 = vmatprep.subr.bf16.mxu0 %v4834_v13  ;;  %3707 = vmatprep.mubr.bf16.mxu1 %v4921_v15  ;;  %v4922_v13 = vld [vmem:[%s5892_s9 + $0x300] ss:$8 sps:$4 sm:$0xff]  }
 0x144   : > { %3922 = vmatprep.mubr.bf16.mxu0 %v4927_v19  ;;  %v4928_v15 = vld [vmem:[%s5892_s9 + $0x800] ss:$8 sps:$4 sm:$0xff]   ;;  %v5029_v19 = vld [vmem:[%s6295_s0 + $0x44] ss:$80 sps:$4 sm:$0xff]  }
 0x145   : > { %3678 = vmatpush1.bf16.msra.mxu1 %v4829_v14  ;;  %v4925_v14 = vld [vmem:[%s6295_s0 + $0x38] ss:$80 sps:$4 sm:$0xff]  }
 0x146   : > { %3893 = vmatpush1.bf16.msra.mxu0 %v4832_v16  ;;  %3679 = vmatprep.subr.bf16.mxu1 %v4837_v17  ;;  %v4933_v16 = vld [vmem:[%s5892_s9 + $0x314] ss:$8 sps:$4 sm:$0xff]  }
 0x147   : > { %3894 = vmatprep.subr.bf16.mxu0 %v4840_v18  ;;  %v4936_v17 = vld [vmem:[%s5892_s9 + $0x814] ss:$8 sps:$4 sm:$0xff]  }
 0x148   : > { %v5023_v18 = vld [vmem:[%s6295_s0 + $0x1c] ss:$80 sps:$4 sm:$0xff]  }
 0x149   : > { %3680 = vmatpush1.bf16.msra.mxu1 %v4835_v20  ;;  %v4931_v20 = vld [vmem:[%s5892_s9 + $0x310] ss:$8 sps:$4 sm:$0xff]  }
 0x14a   : > { %3895 = vmatpush1.bf16.msra.mxu0 %v4838_v21  ;;  %3681 = vmatprep.subr.bf16.mxu1 %v4843_v22  ;;  %v4934_v21 = vld [vmem:[%s5892_s9 + $0x810] ss:$8 sps:$4 sm:$0xff]   ;;  %v4939_v22 = vld [vmem:[%s5892_s9 + $0x324] ss:$8 sps:$4 sm:$0xff]  }
 0x14b   : > { %3896 = vmatprep.subr.bf16.mxu0 %v4846_v23  ;;  %v4942_v23 = vld [vmem:[%s5892_s9 + $0x824] ss:$8 sps:$4 sm:$0xff]  }
 0x14d   : > { %3682 = vmatpush1.bf16.msra.mxu1 %v4841_v24  ;;  %v4937_v24 = vld [vmem:[%s5892_s9 + $0x320] ss:$8 sps:$4 sm:$0xff]  }
 0x14e   : > { %3897 = vmatpush1.bf16.msra.mxu0 %v4844_v25  ;;  %3683 = vmatprep.subr.bf16.mxu1 %v4849_v26  ;;  %v4940_v25 = vld [vmem:[%s5892_s9 + $0x820] ss:$8 sps:$4 sm:$0xff]   ;;  %v4945_v26 = vld [vmem:[%s5892_s9 + $0x334] ss:$8 sps:$4 sm:$0xff]  }
 0x14f   : > { %3898 = vmatprep.subr.bf16.mxu0 %v4852_v27  ;;  %v4948_v27 = vld [vmem:[%s5892_s9 + $0x834] ss:$8 sps:$4 sm:$0xff]  }
 0x151   : > { %3684 = vmatpush1.bf16.msra.mxu1 %v4847_v28  ;;  %v4943_v28 = vld [vmem:[%s5892_s9 + $0x330] ss:$8 sps:$4 sm:$0xff]  }
 0x152   : > { %3899 = vmatpush1.bf16.msra.mxu0 %v4850_v29  ;;  %3685 = vmatprep.subr.bf16.mxu1 %v4855_v30  ;;  %v4946_v29 = vld [vmem:[%s5892_s9 + $0x830] ss:$8 sps:$4 sm:$0xff]   ;;  %v4951_v30 = vld [vmem:[%s5892_s9 + $0x344] ss:$8 sps:$4 sm:$0xff]  }
 0x153   : > { %3900 = vmatprep.subr.bf16.mxu0 %v4858_v31  ;;  %v4954_v31 = vld [vmem:[%s5892_s9 + $0x844] ss:$8 sps:$4 sm:$0xff]  }
 0x155   : > { %3686 = vmatpush1.bf16.msra.mxu1 %v4853_v32  ;;  %v4949_v32 = vld [vmem:[%s5892_s9 + $0x340] ss:$8 sps:$4 sm:$0xff]  }
 0x156   : > { %3901 = vmatpush1.bf16.msra.mxu0 %v4856_v33  ;;  %3687 = vmatprep.subr.bf16.mxu1 %v4861_v34  ;;  %v4952_v33 = vld [vmem:[%s5892_s9 + $0x840] ss:$8 sps:$4 sm:$0xff]   ;;  %v4957_v34 = vld [vmem:[%s5892_s9 + $0x354] ss:$8 sps:$4 sm:$0xff]  }
 0x157   : > { %3902 = vmatprep.subr.bf16.mxu0 %v4864_v35  ;;  %v4960_v35 = vld [vmem:[%s5892_s9 + $0x854] ss:$8 sps:$4 sm:$0xff]  }
 0x159   : > { %3688 = vmatpush1.bf16.msra.mxu1 %v4859_v36  ;;  %v4955_v36 = vld [vmem:[%s5892_s9 + $0x350] ss:$8 sps:$4 sm:$0xff]  }
 0x15a   : > { %3903 = vmatpush1.bf16.msra.mxu0 %v4862_v37  ;;  %3689 = vmatprep.subr.bf16.mxu1 %v4867_v38  ;;  %v4958_v37 = vld [vmem:[%s5892_s9 + $0x850] ss:$8 sps:$4 sm:$0xff]   ;;  %v4963_v38 = vld [vmem:[%s5892_s9 + $0x364] ss:$8 sps:$4 sm:$0xff]  }
 0x15b   : > { %3904 = vmatprep.subr.bf16.mxu0 %v4870_v39  ;;  %v4966_v39 = vld [vmem:[%s5892_s9 + $0x864] ss:$8 sps:$4 sm:$0xff]  }
 0x15d   : > { %3690 = vmatpush1.bf16.msra.mxu1 %v4865_v40  ;;  %v4961_v40 = vld [vmem:[%s5892_s9 + $0x360] ss:$8 sps:$4 sm:$0xff]  }
 0x15e   : > { %3905 = vmatpush1.bf16.msra.mxu0 %v4868_v41  ;;  %3691 = vmatprep.subr.bf16.mxu1 %v4873_v42  ;;  %v4964_v41 = vld [vmem:[%s5892_s9 + $0x860] ss:$8 sps:$4 sm:$0xff]   ;;  %v4969_v42 = vld [vmem:[%s5892_s9 + $0x374] ss:$8 sps:$4 sm:$0xff]  }
 0x15f   : > { %3906 = vmatprep.subr.bf16.mxu0 %v4876_v43  ;;  %v4972_v43 = vld [vmem:[%s5892_s9 + $0x874] ss:$8 sps:$4 sm:$0xff]  }
 0x161   : > { %3692 = vmatpush1.bf16.msra.mxu1 %v4871_v44  ;;  %v4967_v44 = vld [vmem:[%s5892_s9 + $0x370] ss:$8 sps:$4 sm:$0xff]  }
 0x162   : > { %3907 = vmatpush1.bf16.msra.mxu0 %v4874_v45  ;;  %3693 = vmatprep.subr.bf16.mxu1 %v4879_v46  ;;  %v4970_v45 = vld [vmem:[%s5892_s9 + $0x870] ss:$8 sps:$4 sm:$0xff]   ;;  %v4975_v46 = vld [vmem:[%s5892_s9 + $0x384] ss:$8 sps:$4 sm:$0xff]  }
 0x163   : > { %3908 = vmatprep.subr.bf16.mxu0 %v4882_v47  ;;  %v4978_v47 = vld [vmem:[%s5892_s9 + $0x884] ss:$8 sps:$4 sm:$0xff]  }
 0x165   : > { %3694 = vmatpush1.bf16.msra.mxu1 %v4877_v48  ;;  %v4973_v48 = vld [vmem:[%s5892_s9 + $0x380] ss:$8 sps:$4 sm:$0xff]  }
 0x166   : > { %3909 = vmatpush1.bf16.msra.mxu0 %v4880_v49  ;;  %3695 = vmatprep.subr.bf16.mxu1 %v4885_v50  ;;  %v4976_v49 = vld [vmem:[%s5892_s9 + $0x880] ss:$8 sps:$4 sm:$0xff]   ;;  %v4981_v50 = vld [vmem:[%s5892_s9 + $0x394] ss:$8 sps:$4 sm:$0xff]  }
 0x167   : > { %3910 = vmatprep.subr.bf16.mxu0 %v4888_v51  ;;  %v4984_v51 = vld [vmem:[%s5892_s9 + $0x894] ss:$8 sps:$4 sm:$0xff]  }
 0x169   : > { %3696 = vmatpush1.bf16.msra.mxu1 %v4883_v52  ;;  %v4979_v52 = vld [vmem:[%s5892_s9 + $0x390] ss:$8 sps:$4 sm:$0xff]  }
 0x16a   : > { %3911 = vmatpush1.bf16.msra.mxu0 %v4886_v53  ;;  %3697 = vmatprep.subr.bf16.mxu1 %v4891_v54  ;;  %v4982_v53 = vld [vmem:[%s5892_s9 + $0x890] ss:$8 sps:$4 sm:$0xff]   ;;  %v4987_v54 = vld [vmem:[%s5892_s9 + $0x3a4] ss:$8 sps:$4 sm:$0xff]  }
 0x16b   : > { %3912 = vmatprep.subr.bf16.mxu0 %v4894_v55  ;;  %v4990_v55 = vld [vmem:[%s5892_s9 + $0x8a4] ss:$8 sps:$4 sm:$0xff]  }
 0x16d   : > { %3698 = vmatpush1.bf16.msra.mxu1 %v4889_v56  ;;  %v4985_v56 = vld [vmem:[%s5892_s9 + $0x3a0] ss:$8 sps:$4 sm:$0xff]  }
 0x16e   : > { %3913 = vmatpush1.bf16.msra.mxu0 %v4892_v57  ;;  %3699 = vmatprep.subr.bf16.mxu1 %v4897_v58  ;;  %v4988_v57 = vld [vmem:[%s5892_s9 + $0x8a0] ss:$8 sps:$4 sm:$0xff]   ;;  %v4993_v58 = vld [vmem:[%s5892_s9 + $0x3b4] ss:$8 sps:$4 sm:$0xff]  }
 0x16f   : > { %3914 = vmatprep.subr.bf16.mxu0 %v4900_v59  ;;  %v4996_v59 = vld [vmem:[%s5892_s9 + $0x8b4] ss:$8 sps:$4 sm:$0xff]  }
 0x171   : > { %3700 = vmatpush1.bf16.msra.mxu1 %v4895_v60  ;;  %v4991_v60 = vld [vmem:[%s5892_s9 + $0x3b0] ss:$8 sps:$4 sm:$0xff]  }
 0x172   : > { %3915 = vmatpush1.bf16.msra.mxu0 %v4898_v61  ;;  %3701 = vmatprep.subr.bf16.mxu1 %v4903_v62  ;;  %v4994_v61 = vld [vmem:[%s5892_s9 + $0x8b0] ss:$8 sps:$4 sm:$0xff]   ;;  %v4999_v62 = vld [vmem:[%s5892_s9 + $0x3c4] ss:$8 sps:$4 sm:$0xff]  }
 0x173   : > { %3916 = vmatprep.subr.bf16.mxu0 %v4906_v63  ;;  %v5002_v63 = vld [vmem:[%s5892_s9 + $0x8c4] ss:$8 sps:$4 sm:$0xff]  }
 0x175   : > { %3702 = vmatpush1.bf16.msra.mxu1 %v4901_v0  ;;  %v4997_v0 = vld [vmem:[%s5892_s9 + $0x3c0] ss:$8 sps:$4 sm:$0xff]  }
 0x176   : > { %3917 = vmatpush1.bf16.msra.mxu0 %v4904_v1  ;;  %3703 = vmatprep.subr.bf16.mxu1 %v4909_v2  ;;  %v5000_v1 = vld [vmem:[%s5892_s9 + $0x8c0] ss:$8 sps:$4 sm:$0xff]   ;;  %v5005_v2 = vld [vmem:[%s5892_s9 + $0x3d4] ss:$8 sps:$4 sm:$0xff]  }
 0x177   : > { %3918 = vmatprep.subr.bf16.mxu0 %v4912_v3  ;;  %v5008_v3 = vld [vmem:[%s5892_s9 + $0x8d4] ss:$8 sps:$4 sm:$0xff]  }
 0x179   : > { %3704 = vmatpush1.bf16.msra.mxu1 %v4907_v4  ;;  %v5003_v4 = vld [vmem:[%s5892_s9 + $0x3d0] ss:$8 sps:$4 sm:$0xff]  }
 0x17a   : > { %3919 = vmatpush1.bf16.msra.mxu0 %v4910_v5  ;;  %3705 = vmatprep.subr.bf16.mxu1 %v4915_v6  ;;  %v5006_v5 = vld [vmem:[%s5892_s9 + $0x8d0] ss:$8 sps:$4 sm:$0xff]   ;;  %v5011_v6 = vld [vmem:[%s5892_s9 + $0x3e4] ss:$8 sps:$4 sm:$0xff]  }
 0x17b   : > { %3920 = vmatprep.subr.bf16.mxu0 %v4918_v7  ;;  %v5014_v7 = vld [vmem:[%s5892_s9 + $0x8e4] ss:$8 sps:$4 sm:$0xff]  }
 0x17d   : > { %3706 = vmatpush1.bf16.msra.mxu1 %v4913_v8  ;;  %v5009_v8 = vld [vmem:[%s5892_s9 + $0x3e0] ss:$8 sps:$4 sm:$0xff]  }
 0x17e   : > { %3921 = vmatpush1.bf16.msra.mxu0 %v4916_v9  ;;  %3718 = vmatprep.subr.bf16.mxu1 %v4924_v10  ;;  %v5012_v9 = vld [vmem:[%s5892_s9 + $0x8e0] ss:$8 sps:$4 sm:$0xff]   ;;  %v5017_v10 = vld [vmem:[%s5892_s9 + $0x3f4] ss:$8 sps:$4 sm:$0xff]  }
 0x17f   : > { %3933 = vmatprep.subr.bf16.mxu0 %v4930_v11  ;;  %v5020_v11 = vld [vmem:[%s5892_s9 + $0x8f4] ss:$8 sps:$4 sm:$0xff]  }
 0x180   : > { %3708 = vmatmul.mubr.bf16.vlgmr.msra.gmra.mrb[0].mxu1 %v4919_v12  ;;  %v5015_v12 = vld [vmem:[%s5892_s9 + $0x3f0] ss:$8 sps:$4 sm:$0xff]  }
 0x181   : > { %3923 = vmatmul.mubr.bf16.vlgmr.msra.gmra.mrb[0].mxu0 %v4925_v14  ;;  %3719 = vmatpush1.bf16.msra.mxu1 %v4922_v13  ;;  %v5018_v13 = vld [vmem:[%s5892_s9 + $0x8f0] ss:$8 sps:$4 sm:$0xff]   ;;  %v5026_v14 = vld [vmem:[%s5892_s9 + $0x404] ss:$8 sps:$4 sm:$0xff]  }
 0x182   : > { %3934 = vmatpush1.bf16.msra.mxu0 %v4928_v15  ;;  %3720 = vmatprep.subr.bf16.mxu1 %v4933_v16  ;;  %v5032_v15 = vld [vmem:[%s5892_s9 + $0x904] ss:$8 sps:$4 sm:$0xff]   ;;  %v5021_v16 = vld [vmem:[%s6295_s0 + $0x18] ss:$80 sps:$4 sm:$0xff]  }
 0x183   : > { %3935 = vmatprep.subr.bf16.mxu0 %v4936_v17  ;;  %3750 = vmatprep.mubr.bf16.mxu1 %v5023_v18  ;;  %v5027_v17 = vld [vmem:[%s6295_s0 + $0x40] ss:$80 sps:$4 sm:$0xff]  }
 0x184   : > { %3965 = vmatprep.mubr.bf16.mxu0 %v5029_v19  ;;  %v5024_v18 = vld [vmem:[%s5892_s9 + $0x400] ss:$8 sps:$4 sm:$0xff]  }
 0x185   : > { %3721 = vmatpush1.bf16.msra.mxu1 %v4931_v20  ;;  %v5030_v19 = vld [vmem:[%s5892_s9 + $0x900] ss:$8 sps:$4 sm:$0xff]   ;;  %v5035_v20 = vld [vmem:[%s5892_s9 + $0x414] ss:$8 sps:$4 sm:$0xff]  }
 0x186   : > { %3936 = vmatpush1.bf16.msra.mxu0 %v4934_v21  ;;  %3722 = vmatprep.subr.bf16.mxu1 %v4939_v22  ;;  %v5038_v21 = vld [vmem:[%s5892_s9 + $0x914] ss:$8 sps:$4 sm:$0xff]  }
 0x187   : > { %3937 = vmatprep.subr.bf16.mxu0 %v4942_v23  ;;  %v5125_v22 = vld [vmem:[%s6295_s0 + $0x24] ss:$80 sps:$4 sm:$0xff]   ;;  %v5128_v23 = vld [vmem:[%s6295_s0 + $0x4c] ss:$80 sps:$4 sm:$0xff]  }
 0x189   : > { %3723 = vmatpush1.bf16.msra.mxu1 %v4937_v24  ;;  %v5033_v24 = vld [vmem:[%s5892_s9 + $0x410] ss:$8 sps:$4 sm:$0xff]  }
 0x18a   : > { %3938 = vmatpush1.bf16.msra.mxu0 %v4940_v25  ;;  %3724 = vmatprep.subr.bf16.mxu1 %v4945_v26  ;;  %v5036_v25 = vld [vmem:[%s5892_s9 + $0x910] ss:$8 sps:$4 sm:$0xff]   ;;  %v5041_v26 = vld [vmem:[%s5892_s9 + $0x424] ss:$8 sps:$4 sm:$0xff]  }
 0x18b   : > { %3939 = vmatprep.subr.bf16.mxu0 %v4948_v27  ;;  %v5044_v27 = vld [vmem:[%s5892_s9 + $0x924] ss:$8 sps:$4 sm:$0xff]  }
 0x18d   : > { %3725 = vmatpush1.bf16.msra.mxu1 %v4943_v28  ;;  %v5039_v28 = vld [vmem:[%s5892_s9 + $0x420] ss:$8 sps:$4 sm:$0xff]  }
 0x18e   : > { %3940 = vmatpush1.bf16.msra.mxu0 %v4946_v29  ;;  %3726 = vmatprep.subr.bf16.mxu1 %v4951_v30  ;;  %v5042_v29 = vld [vmem:[%s5892_s9 + $0x920] ss:$8 sps:$4 sm:$0xff]   ;;  %v5047_v30 = vld [vmem:[%s5892_s9 + $0x434] ss:$8 sps:$4 sm:$0xff]  }
 0x18f   : > { %3941 = vmatprep.subr.bf16.mxu0 %v4954_v31  ;;  %v5050_v31 = vld [vmem:[%s5892_s9 + $0x934] ss:$8 sps:$4 sm:$0xff]  }
 0x191   : > { %3727 = vmatpush1.bf16.msra.mxu1 %v4949_v32  ;;  %v5045_v32 = vld [vmem:[%s5892_s9 + $0x430] ss:$8 sps:$4 sm:$0xff]  }
 0x192   : > { %3942 = vmatpush1.bf16.msra.mxu0 %v4952_v33  ;;  %3728 = vmatprep.subr.bf16.mxu1 %v4957_v34  ;;  %v5048_v33 = vld [vmem:[%s5892_s9 + $0x930] ss:$8 sps:$4 sm:$0xff]   ;;  %v5053_v34 = vld [vmem:[%s5892_s9 + $0x444] ss:$8 sps:$4 sm:$0xff]  }
 0x193   : > { %3943 = vmatprep.subr.bf16.mxu0 %v4960_v35  ;;  %v5056_v35 = vld [vmem:[%s5892_s9 + $0x944] ss:$8 sps:$4 sm:$0xff]  }
 0x195   : > { %3729 = vmatpush1.bf16.msra.mxu1 %v4955_v36  ;;  %v5051_v36 = vld [vmem:[%s5892_s9 + $0x440] ss:$8 sps:$4 sm:$0xff]  }
 0x196   : > { %3944 = vmatpush1.bf16.msra.mxu0 %v4958_v37  ;;  %3730 = vmatprep.subr.bf16.mxu1 %v4963_v38  ;;  %v5054_v37 = vld [vmem:[%s5892_s9 + $0x940] ss:$8 sps:$4 sm:$0xff]   ;;  %v5059_v38 = vld [vmem:[%s5892_s9 + $0x454] ss:$8 sps:$4 sm:$0xff]  }
 0x197   : > { %3945 = vmatprep.subr.bf16.mxu0 %v4966_v39  ;;  %v5062_v39 = vld [vmem:[%s5892_s9 + $0x954] ss:$8 sps:$4 sm:$0xff]  }
 0x199   : > { %3731 = vmatpush1.bf16.msra.mxu1 %v4961_v40  ;;  %v5057_v40 = vld [vmem:[%s5892_s9 + $0x450] ss:$8 sps:$4 sm:$0xff]  }
 0x19a   : > { %3946 = vmatpush1.bf16.msra.mxu0 %v4964_v41  ;;  %3732 = vmatprep.subr.bf16.mxu1 %v4969_v42  ;;  %v5060_v41 = vld [vmem:[%s5892_s9 + $0x950] ss:$8 sps:$4 sm:$0xff]   ;;  %v5065_v42 = vld [vmem:[%s5892_s9 + $0x464] ss:$8 sps:$4 sm:$0xff]  }
 0x19b   : > { %3947 = vmatprep.subr.bf16.mxu0 %v4972_v43  ;;  %v5068_v43 = vld [vmem:[%s5892_s9 + $0x964] ss:$8 sps:$4 sm:$0xff]  }
 0x19d   : > { %3733 = vmatpush1.bf16.msra.mxu1 %v4967_v44  ;;  %v5063_v44 = vld [vmem:[%s5892_s9 + $0x460] ss:$8 sps:$4 sm:$0xff]  }
 0x19e   : > { %3948 = vmatpush1.bf16.msra.mxu0 %v4970_v45  ;;  %3734 = vmatprep.subr.bf16.mxu1 %v4975_v46  ;;  %v5066_v45 = vld [vmem:[%s5892_s9 + $0x960] ss:$8 sps:$4 sm:$0xff]   ;;  %v5071_v46 = vld [vmem:[%s5892_s9 + $0x474] ss:$8 sps:$4 sm:$0xff]  }
 0x19f   : > { %3949 = vmatprep.subr.bf16.mxu0 %v4978_v47  ;;  %v5074_v47 = vld [vmem:[%s5892_s9 + $0x974] ss:$8 sps:$4 sm:$0xff]  }
 0x1a1   : > { %3735 = vmatpush1.bf16.msra.mxu1 %v4973_v48  ;;  %v5069_v48 = vld [vmem:[%s5892_s9 + $0x470] ss:$8 sps:$4 sm:$0xff]  }
 0x1a2   : > { %3950 = vmatpush1.bf16.msra.mxu0 %v4976_v49  ;;  %3736 = vmatprep.subr.bf16.mxu1 %v4981_v50  ;;  %v5072_v49 = vld [vmem:[%s5892_s9 + $0x970] ss:$8 sps:$4 sm:$0xff]   ;;  %v5077_v50 = vld [vmem:[%s5892_s9 + $0x484] ss:$8 sps:$4 sm:$0xff]  }
 0x1a3   : > { %3951 = vmatprep.subr.bf16.mxu0 %v4984_v51  ;;  %v5080_v51 = vld [vmem:[%s5892_s9 + $0x984] ss:$8 sps:$4 sm:$0xff]  }
 0x1a5   : > { %3737 = vmatpush1.bf16.msra.mxu1 %v4979_v52  ;;  %v5075_v52 = vld [vmem:[%s5892_s9 + $0x480] ss:$8 sps:$4 sm:$0xff]  }
 0x1a6   : > { %3952 = vmatpush1.bf16.msra.mxu0 %v4982_v53  ;;  %3738 = vmatprep.subr.bf16.mxu1 %v4987_v54  ;;  %v5078_v53 = vld [vmem:[%s5892_s9 + $0x980] ss:$8 sps:$4 sm:$0xff]   ;;  %v5083_v54 = vld [vmem:[%s5892_s9 + $0x494] ss:$8 sps:$4 sm:$0xff]  }
 0x1a7   : > { %3953 = vmatprep.subr.bf16.mxu0 %v4990_v55  ;;  %v5086_v55 = vld [vmem:[%s5892_s9 + $0x994] ss:$8 sps:$4 sm:$0xff]  }
 0x1a9   : > { %3739 = vmatpush1.bf16.msra.mxu1 %v4985_v56  ;;  %v5081_v56 = vld [vmem:[%s5892_s9 + $0x490] ss:$8 sps:$4 sm:$0xff]  }
 0x1aa   : > { %3954 = vmatpush1.bf16.msra.mxu0 %v4988_v57  ;;  %3740 = vmatprep.subr.bf16.mxu1 %v4993_v58  ;;  %v5084_v57 = vld [vmem:[%s5892_s9 + $0x990] ss:$8 sps:$4 sm:$0xff]   ;;  %v5089_v58 = vld [vmem:[%s5892_s9 + $0x4a4] ss:$8 sps:$4 sm:$0xff]  }
 0x1ab   : > { %3955 = vmatprep.subr.bf16.mxu0 %v4996_v59  ;;  %v5092_v59 = vld [vmem:[%s5892_s9 + $0x9a4] ss:$8 sps:$4 sm:$0xff]  }
 0x1ad   : > { %3741 = vmatpush1.bf16.msra.mxu1 %v4991_v60  ;;  %v5087_v60 = vld [vmem:[%s5892_s9 + $0x4a0] ss:$8 sps:$4 sm:$0xff]  }
 0x1ae   : > { %3956 = vmatpush1.bf16.msra.mxu0 %v4994_v61  ;;  %3742 = vmatprep.subr.bf16.mxu1 %v4999_v62  ;;  %v5090_v61 = vld [vmem:[%s5892_s9 + $0x9a0] ss:$8 sps:$4 sm:$0xff]   ;;  %v5095_v62 = vld [vmem:[%s5892_s9 + $0x4b4] ss:$8 sps:$4 sm:$0xff]  }
 0x1af   : > { %3957 = vmatprep.subr.bf16.mxu0 %v5002_v63  ;;  %v5098_v63 = vld [vmem:[%s5892_s9 + $0x9b4] ss:$8 sps:$4 sm:$0xff]  }
 0x1b1   : > { %3743 = vmatpush1.bf16.msra.mxu1 %v4997_v0  ;;  %v5093_v0 = vld [vmem:[%s5892_s9 + $0x4b0] ss:$8 sps:$4 sm:$0xff]  }
 0x1b2   : > { %3958 = vmatpush1.bf16.msra.mxu0 %v5000_v1  ;;  %3744 = vmatprep.subr.bf16.mxu1 %v5005_v2  ;;  %v5096_v1 = vld [vmem:[%s5892_s9 + $0x9b0] ss:$8 sps:$4 sm:$0xff]   ;;  %v5101_v2 = vld [vmem:[%s5892_s9 + $0x4c4] ss:$8 sps:$4 sm:$0xff]  }
 0x1b3   : > { %3959 = vmatprep.subr.bf16.mxu0 %v5008_v3  ;;  %v5104_v3 = vld [vmem:[%s5892_s9 + $0x9c4] ss:$8 sps:$4 sm:$0xff]  }
 0x1b5   : > { %3745 = vmatpush1.bf16.msra.mxu1 %v5003_v4  ;;  %v5099_v4 = vld [vmem:[%s5892_s9 + $0x4c0] ss:$8 sps:$4 sm:$0xff]  }
 0x1b6   : > { %3960 = vmatpush1.bf16.msra.mxu0 %v5006_v5  ;;  %3746 = vmatprep.subr.bf16.mxu1 %v5011_v6  ;;  %v5102_v5 = vld [vmem:[%s5892_s9 + $0x9c0] ss:$8 sps:$4 sm:$0xff]   ;;  %v5107_v6 = vld [vmem:[%s5892_s9 + $0x4d4] ss:$8 sps:$4 sm:$0xff]  }
 0x1b7   : > { %3961 = vmatprep.subr.bf16.mxu0 %v5014_v7  ;;  %v5110_v7 = vld [vmem:[%s5892_s9 + $0x9d4] ss:$8 sps:$4 sm:$0xff]  }
 0x1b9   : > { %3747 = vmatpush1.bf16.msra.mxu1 %v5009_v8  ;;  %v5105_v8 = vld [vmem:[%s5892_s9 + $0x4d0] ss:$8 sps:$4 sm:$0xff]  }
 0x1ba   : > { %3962 = vmatpush1.bf16.msra.mxu0 %v5012_v9  ;;  %3748 = vmatprep.subr.bf16.mxu1 %v5017_v10  ;;  %v5108_v9 = vld [vmem:[%s5892_s9 + $0x9d0] ss:$8 sps:$4 sm:$0xff]   ;;  %v5113_v10 = vld [vmem:[%s5892_s9 + $0x4e4] ss:$8 sps:$4 sm:$0xff]  }
 0x1bb   : > { %3963 = vmatprep.subr.bf16.mxu0 %v5020_v11  ;;  %v5116_v11 = vld [vmem:[%s5892_s9 + $0x9e4] ss:$8 sps:$4 sm:$0xff]  }
 0x1bd   : > { %3749 = vmatpush1.bf16.msra.mxu1 %v5015_v12  ;;  %v5111_v12 = vld [vmem:[%s5892_s9 + $0x4e0] ss:$8 sps:$4 sm:$0xff]  }
 0x1be   : > { %3964 = vmatpush1.bf16.msra.mxu0 %v5018_v13  ;;  %3761 = vmatprep.subr.bf16.mxu1 %v5026_v14  ;;  %v5114_v13 = vld [vmem:[%s5892_s9 + $0x9e0] ss:$8 sps:$4 sm:$0xff]   ;;  %v5119_v14 = vld [vmem:[%s5892_s9 + $0x4f4] ss:$8 sps:$4 sm:$0xff]  }
 0x1bf   : > { %3976 = vmatprep.subr.bf16.mxu0 %v5032_v15  ;;  %v5122_v15 = vld [vmem:[%s5892_s9 + $0x9f4] ss:$8 sps:$4 sm:$0xff]  }
 0x1c0   : > { %3751 = vmatmul.mubr.bf16.vlgmr.msra.gmra.mrb[0].mxu1 %v5021_v16  ;;  %v5117_v16 = vld [vmem:[%s5892_s9 + $0x4f0] ss:$8 sps:$4 sm:$0xff]  }
 0x1c1   : > { %3966 = vmatmul.mubr.bf16.vlgmr.msra.gmra.mrb[0].mxu0 %v5027_v17  ;;  %3762 = vmatpush1.bf16.msra.mxu1 %v5024_v18  ;;  %v5120_v17 = vld [vmem:[%s5892_s9 + $0x9f0] ss:$8 sps:$4 sm:$0xff]  }
 0x1c2   : > { %3977 = vmatpush1.bf16.msra.mxu0 %v5030_v19  ;;  %3763 = vmatprep.subr.bf16.mxu1 %v5035_v20  ;;  %v5123_v18 = vld [vmem:[%s6295_s0 + $0x20] ss:$80 sps:$4 sm:$0xff]   ;;  %v5126_v19 = vld [vmem:[%s6295_s0 + $0x48] ss:$80 sps:$4 sm:$0xff]   ;;  %v4036_v20 = vlaneseq }
 0x1c3   : > { %3978 = vmatprep.subr.bf16.mxu0 %v5038_v21  ;;  %3793 = vmatprep.mubr.bf16.mxu1 %v5125_v22 }
 0x1c4   : > { %4008 = vmatprep.mubr.bf16.mxu0 %v5128_v23  ;;  %v4037_v21 = vshrl.u32 %v4036_v20, 7  ;;  %v4034_v23 = vld [vmem:[%s1534_s20] sm:$0x3] }
 0x1c5   : > { %3764 = vmatpush1.bf16.msra.mxu1 %v5033_v24 }
 0x1c6   : > { %3979 = vmatpush1.bf16.msra.mxu0 %v5036_v25  ;;  %3765 = vmatprep.subr.bf16.mxu1 %v5041_v26  ;;  %v4038_v22 = vsub.s32 0, %v4037_v21  ;;  %v4042_v24 = vsub.s32 1, %v4037_v21 }
 0x1c7   : > { %3980 = vmatprep.subr.bf16.mxu0 %v5044_v27 }
 0x1c9   : > { %3766 = vmatpush1.bf16.msra.mxu1 %v5039_v28  ;;  %v4039_v28 = vrot.slane %v4034_v23, %v4038_v22 }
 0x1ca   : > { %3981 = vmatpush1.bf16.msra.mxu0 %v5042_v29  ;;  %3767 = vmatprep.subr.bf16.mxu1 %v5047_v30 }
 0x1cb   : > { %3982 = vmatprep.subr.bf16.mxu0 %v5050_v31 }
 0x1cd   : > { %3768 = vmatpush1.bf16.msra.mxu1 %v5045_v32  ;;  %v4043_v32 = vrot.slane %v4034_v23, %v4042_v24 }
 0x1ce   : > { %3983 = vmatpush1.bf16.msra.mxu0 %v5048_v33  ;;  %3769 = vmatprep.subr.bf16.mxu1 %v5053_v34 }
 0x1cf   : > { %3984 = vmatprep.subr.bf16.mxu0 %v5056_v35 }
 0x1d1   : > { %3770 = vmatpush1.bf16.msra.mxu1 %v5051_v36 }
 0x1d2   : > { %3985 = vmatpush1.bf16.msra.mxu0 %v5054_v37  ;;  %3771 = vmatprep.subr.bf16.mxu1 %v5059_v38 }
 0x1d3   : > { %3986 = vmatprep.subr.bf16.mxu0 %v5062_v39 }
 0x1d5   : > { %3772 = vmatpush1.bf16.msra.mxu1 %v5057_v40 }
 0x1d6   : > { %3987 = vmatpush1.bf16.msra.mxu0 %v5060_v41  ;;  %3773 = vmatprep.subr.bf16.mxu1 %v5065_v42 }
 0x1d7   : > { %3988 = vmatprep.subr.bf16.mxu0 %v5068_v43 }
 0x1d9   : > { %3774 = vmatpush1.bf16.msra.mxu1 %v5063_v44 }
 0x1da   : > { %3989 = vmatpush1.bf16.msra.mxu0 %v5066_v45  ;;  %3775 = vmatprep.subr.bf16.mxu1 %v5071_v46 }
 0x1db   : > { %3990 = vmatprep.subr.bf16.mxu0 %v5074_v47 }
 0x1dd   : > { %3776 = vmatpush1.bf16.msra.mxu1 %v5069_v48 }
 0x1de   : > { %3991 = vmatpush1.bf16.msra.mxu0 %v5072_v49  ;;  %3777 = vmatprep.subr.bf16.mxu1 %v5077_v50 }
 0x1df   : > { %3992 = vmatprep.subr.bf16.mxu0 %v5080_v51 }
 0x1e1   : > { %3778 = vmatpush1.bf16.msra.mxu1 %v5075_v52 }
 0x1e2   : > { %3993 = vmatpush1.bf16.msra.mxu0 %v5078_v53  ;;  %3779 = vmatprep.subr.bf16.mxu1 %v5083_v54 }
 0x1e3   : > { %3994 = vmatprep.subr.bf16.mxu0 %v5086_v55 }
 0x1e5   : > { %3780 = vmatpush1.bf16.msra.mxu1 %v5081_v56 }
 0x1e6   : > { %3995 = vmatpush1.bf16.msra.mxu0 %v5084_v57  ;;  %3781 = vmatprep.subr.bf16.mxu1 %v5089_v58 }
 0x1e7   : > { %3996 = vmatprep.subr.bf16.mxu0 %v5092_v59 }
 0x1e9   : > { %3782 = vmatpush1.bf16.msra.mxu1 %v5087_v60 }
 0x1ea   : > { %3997 = vmatpush1.bf16.msra.mxu0 %v5090_v61  ;;  %3783 = vmatprep.subr.bf16.mxu1 %v5095_v62 }
 0x1eb   : > { %3998 = vmatprep.subr.bf16.mxu0 %v5098_v63 }
 0x1ed   : > { %3784 = vmatpush1.bf16.msra.mxu1 %v5093_v0 }
 0x1ee   : > { %3999 = vmatpush1.bf16.msra.mxu0 %v5096_v1  ;;  %3785 = vmatprep.subr.bf16.mxu1 %v5101_v2 }
 0x1ef   : > { %4000 = vmatprep.subr.bf16.mxu0 %v5104_v3 }
 0x1f1   : > { %3786 = vmatpush1.bf16.msra.mxu1 %v5099_v4 }
 0x1f2   : > { %4001 = vmatpush1.bf16.msra.mxu0 %v5102_v5  ;;  %3787 = vmatprep.subr.bf16.mxu1 %v5107_v6 }
 0x1f3   : > { %4002 = vmatprep.subr.bf16.mxu0 %v5110_v7 }
 0x1f5   : > { %3788 = vmatpush1.bf16.msra.mxu1 %v5105_v8 }
 0x1f6   : > { %4003 = vmatpush1.bf16.msra.mxu0 %v5108_v9  ;;  %3789 = vmatprep.subr.bf16.mxu1 %v5113_v10 }
 0x1f7   : > { %4004 = vmatprep.subr.bf16.mxu0 %v5116_v11 }
 0x1f9   : > { %3790 = vmatpush1.bf16.msra.mxu1 %v5111_v12 }
 0x1fa   : > { %4005 = vmatpush1.bf16.msra.mxu0 %v5114_v13  ;;  %3791 = vmatprep.subr.bf16.mxu1 %v5119_v14 }
 0x1fb   : > { %4006 = vmatprep.subr.bf16.mxu0 %v5122_v15 }
 0x1fd   : > { %3792 = vmatpush1.bf16.msra.mxu1 %v5117_v16 }
 0x1fe   : > { %4007 = vmatpush1.bf16.msra.mxu0 %v5120_v17 }
 0x200   : > { %3794 = vmatmul.mubr.bf16.vlgmr.msra.gmra.mrb[0].mxu1 %v5123_v18 }
 0x201   : > { %4009 = vmatmul.mubr.bf16.vlgmr.msra.gmra.mrb[0].mxu0 %v5126_v19 }
 0x2d3   : > { %v3795_v25 = vpop.f32.mrb[0].mxu1 }
 0x2d4   : > { %v4010_v26 = vpop.f32.mrb[0].mxu0  ;;  %v3797_v29 = vpop.f32.mrb[1].mxu1 }
 0x2d5   : > { %v4540_v27 = vadd.f32 %v4010_v26, %v3795_v25  ;;  %v4012_v30 = vpop.f32.mrb[1].mxu0  ;;  %v3799_v33 = vpop.f32.mrb[2].mxu1 }
 0x2d6   : > { %v4541_v31 = vadd.f32 %v4012_v30, %v3797_v29  ;;  %v4014_v34 = vpop.f32.mrb[2].mxu0  ;;  %v3801_v36 = vpop.f32.mrb[3].mxu1 }
 0x2d7   : > { %v4542_v35 = vadd.f32 %v4014_v34, %v3799_v33  ;;  %v4016_v37 = vpop.f32.mrb[3].mxu0  ;;  %v4046_v39 = vadd.f32 %v4540_v27, %v4039_v28 }
 0x2d8   : > { %v4543_v38 = vadd.f32 %v4016_v37, %v3801_v36  ;;  %v4047_v40 = vadd.f32 %v4541_v31, %v4043_v32  ;;  %4064 = sbr.rel (!%p5224_p6) target bundleno = 743 (0x2e7), region = 82 }
 0x2d9   : > { %v4050_v41 = vmax.f32 %v4046_v39, 0.0  ;;  %v4048_v42 = vadd.f32 %v4542_v35, %v4039_v28 }
 0x2da   : > { %v4051_v43 = vmax.f32 %v4047_v40, 0.0  ;;  %v4049_v44 = vadd.f32 %v4543_v38, %v4043_v32 }
 0x2db   : > { %4054 = vst [vmem:[%s1522_s24] sm:$0xff] %v4050_v41  ;;  %v4052_v45 = vmax.f32 %v4048_v42, 0.0 }
 0x2dc   : > { %4055 = vst [vmem:[%s1522_s24 + $0x8] sm:$0xff] %v4051_v43  ;;  %v4053_v46 = vmax.f32 %v4049_v44, 0.0 }
 0x2dd   : > { %4056 = vst [vmem:[%s1522_s24 + $0x10] sm:$0xff] %v4052_v45 }
 0x2de   : > { %4057 = vst [vmem:[%s1522_s24 + $0x18] sm:$0xff] %v4053_v46 }
 0x2e2   : > { %v4080_v47 = vld [vmem:[%s1522_s24] sm:$0xff] }
 0x2e3   : > { %v4082_v48 = vld [vmem:[%s1522_s24 + $0x8] sm:$0xff]  ;;  %4081 = vst [vmem:[%s4067_s26] sm:$0xff] %v4080_v47 }
 0x2e4   : > { %v4084_v49 = vld [vmem:[%s1522_s24 + $0x10] sm:$0xff]  ;;  %4083 = vst [vmem:[%s4067_s26 + $0x8] sm:$0xff] %v4082_v48 }
 0x2e5   : > { %v4086_v50 = vld [vmem:[%s1522_s24 + $0x18] sm:$0xff]  ;;  %4085 = vst [vmem:[%s4067_s26 + $0x50] sm:$0xff] %v4084_v49 }
 0x2e6   : > { %4087 = vst [vmem:[%s4067_s26 + $0x58] sm:$0xff] %v4086_v50 }
 0x2e7 PF: > { %s13_s16 = sadd.s32 1, %s5167_s16   ;;  %s6300_s12 = smov %s5155_s13 }
 0x2e8   : > { %p10_p12 = scmp.ge.s32.totalorder %s13_s16, 7   ;;  %s6301_s13 = smov %s5229_s22 }
 0x2e9   : > { %s6302_s14 = smov %s5163_s15  ;;  %s6303_s15 = smov %s6305_s17 }
 0x2ea   :  { %12 = sbr.rel (!%p10_p12) target bundleno = 3 (0x3), region = 142 }

// kernel: ori_sig_cnn_forward.5
= control target key start
LH: loop header
LB: loop body
LE: loop exit
PB: predicated region body
PF: predicated region fallthrough
CT: control target
= control target key end

     0   :  { %8 = vsyncpa [#allocation3], 0  ;;  %s15387_s0 = inlined_call_operand.vmem [shape: bf16[16,5120], index: 0, kind: input, shape index: {}]   ;;  %s15388_s1 = inlined_call_operand.hbm [shape: bf16[5120,2560], index: 1, kind: input, shape index: {}]   ;;  %s15389_s2 = inlined_call_operand.vmem [shape: f32[1,2560], index: 2, kind: input, shape index: {}]   ;;  %s15390_s3 = inlined_call_operand.vmem [shape: f32[16,2560], index: 3, kind: output, shape index: {}]  }
   0x1   :  { %10 = vsyncpa [#allocation3 + $0x1], 0  ;;  %s13693_s12 = smov 0   ;;  %s13695_s13 = smov 0  }
   0x2   :  { %s13697_s14 = smov 0   ;;  %s13699_s15 = smov 0  }
   0x3   :  { %s13701_s16 = smov 0   ;;  %s13703_s17 = smov 0  }
   0x4 LB: > { %s10117_s18 = sadd.s32 4294967295, %s13667_s17   ;;  %s28_s19 = sadd.s32 1, %s13663_s16  ;;  %s13667_s17 = sphi %s13703_s17, %s16_s17   ;;  %s13663_s16 = sphi %s13701_s16, %s15401_s16   ;;  %s13659_s15 = sphi %s13699_s15, %s15400_s15   ;;  %s13655_s14 = sphi %s13697_s14, %s15399_s14   ;;  %s13651_s13 = sphi %s13695_s13, %s15398_s13   ;;  %s13647_s12 = sphi %s13693_s12, %s15397_s12  }
   0x5   : > { %p30_p0 = scmp.ge.s32.totalorder %s28_s19, 5  ;;  %s63_s20 = sadd.s32 1, %s13655_s14 }
   0x6   : > { %p70_p1 = scmp.ne.s32.totalorder %s13655_s14, %s13651_s13  ;;  %p71_p2 = scmp.eq.s32.totalorder %s13667_s17, 0 }
   0x7   : > { %s15403_s19 = smov (%p30_p0, %s28_s19), 0  ;;  %p76_p4 = scmp.ne.s32.totalorder %s13651_s13, %s13647_s12 }
   0x8   : > { %p13729_p3 = por %p71_p2, %p70_p1  ;;  %s59_s22 = ssub.s32 %s13663_s16, %s15403_s19 }
   0x9   : > { %p77_p5 = scmp.eq.s32.totalorder %s10117_s18, 0  ;;  %p61_p6 = scmp.eq.s32.totalorder %s59_s22, 0 }
   0xa   : > { %p126_p7 = scmp.eq.s32.totalorder %s10117_s18, 4  ;;  %p11614_p10 = scmp.lt.s32.totalorder %s13667_s17, 5 }
   0xb   : > { %p13736_p8 = por %p77_p5, %p76_p4  ;;  %s161_s26 = sand.u32 1, %s13655_s14  }
   0xc   : > { %s13741_s24 = scalar_select %p61_p6, %s13655_s14, %s63_s20  }
   0xd   : > { %p13743_p9 = por %p126_p7, %p70_p1  ;;  %s11452_s27 = sshll.u32 %s13663_s16, 8 }
   0xe   : > { %s11606_s28 = smul.u32 10240, %s161_s26  ;;  %s13753_s4 = scalar_lea.hbm %s15388_s1, %s11452_s27 }
   0xf   : > { %s15393_s25 = scalar_select %p13743_p9, 1, 0 }
  0x10   : > { %p13757_p11 = pnand %p11614_p10, %p13729_p3  ;;  %s165_s6 = scalar_lea.vmem [#allocation2], %s11606_s28 }
  0x11   : > { %s175_s7 = sshll.u32 %s165_s6, 4  ;;  %s13764_s8 = scalar_lea.sflag [#allocation3], %s161_s26  ;;  %s13761_s7 = int_to_ptr.vmem [resolvable:$true] %s175_s7 }
  0x12   : > { %s13587_s9 = scalar_lea.hbm %s13753_s4, 163840  ;;  %p13589_p0 = pneg %p13757_p11 }
  0x13   : > { %p13588_p13 = scmp.ne.s32.totalorder %s13753_s4, %s13587_s9  ;;  %s13592_s12 = scalar_lea.hbm %s15388_s1, 819200 }
  0x14   : > { %p13593_p3 = scmp.lt.u32.totalorder %s13753_s4, %s15388_s1  ;;  %p13594_p4 = scmp.lt.u32.totalorder %s13592_s12, %s13587_s9 }
  0x15   : > { %p13590_p1 = pnand %p13589_p0, %p13588_p13  ;;  %p13596_p6 = scmp.lt.u32.totalorder %s13587_s9, %s13753_s4 }
  0x16   : > { %p13595_p5 = por %p13594_p4, %p13593_p3 }
  0x17   : > { %p13591_p2 = pneg %p13590_p1 }
  0x18   : > { %p13597_p7 = por %p13596_p6, %p13595_p5 }
  0x1a   : > { %p13598_p10 = pnand %p13597_p7, %p13591_p2 }
  0x1c   : > { %13601 = shalt.err (!%p13598_p10)
}
  0x1d   : > { %s13602_s21 = scalar_lea.vmem %s13761_s7, 163840  ;;  %s13669_s22 = smov [#allocation2]  }
  0x1e   : > { %p13603_p13 = scmp.ne.s32.totalorder %s13761_s7, %s13602_s21  ;;  %s13607_s26 = sshll.u32 %s13669_s22, 4  ;;  %s13608_s26 = int_to_ptr.vmem [resolvable:$false] %s13607_s26 }
  0x1f   : > { %s13609_s27 = scalar_lea.vmem %s13608_s26, 327680  ;;  %p13610_p9 = scmp.lt.s32.totalorder %s13761_s7, %s13608_s26 }
  0x20   : > { %p13605_p1 = pnand %p13603_p13, %p13589_p0  ;;  %p13611_p3 = scmp.lt.s32.totalorder %s13609_s27, %s13602_s21 }
  0x22   : > { %p13606_p12 = pneg %p13605_p1  ;;  %p13612_p4 = por %p13611_p3, %p13610_p9 }
  0x24   : > { %p13613_p5 = pnand %p13612_p4, %p13606_p12 }
  0x26   : > { %13616 = shalt.err (!%p13613_p5)
}
  0x27   : > { %s13670_s28 = smov 1280   ;;  %s13671_s29 = smov 256  }
  0x28   : > { %s13672_s30 = smov 16   ;;  %p191_p0 = scmp.lt.s32.totalorder %s13667_s17, 6 }
  0x29   : > { %11613 = dma.hbm_to_vmem [thread:$0]  (!%p13757_p11), %s13753_s4, 163840, %s13761_s7, %s13764_s8, %s13670_s28, %s13671_s29, %s13672_s30  }
  0x2a   : > { %p15395_p2 = scmp.ge.s32.totalorder %s13667_s17, 1 }
  0x2c   : > { %p192_p6 = pnand %p15395_p2, %p191_p0 }
  0x2d   : > { %s13796_s6 = sand.u32 (!%p192_p6), 1, %s13651_s13  }
  0x2e   : > { %195 = sbr.rel (%p192_p6) target bundleno = 1563 (0x61b), region = 32  ;;  %s198_s10 = scalar_lea.sflag (!%p192_p6), [#allocation3], %s13796_s6 }
  0x2f   : > { %s11607_s9 = smul.u32 (!%p192_p6), 10240, %s13796_s6 }
  0x31   : > { %s13800_s11 = scalar_lea.vmem (!%p192_p6), [#allocation2], %s11607_s9 }
  0x35   : > { %13642 = dma.done.wait (%p13736_p8), %s198_s10, 163840  }
  0x36   : > { %13644 = vsyncadd (%p13736_p8), %s198_s10, 4294803456  ;;  %v11667_v0 = vld [vmem:[%s13800_s11 + $0x4] ss:$16 sps:$4 sm:$0xff]   ;;  %v11669_v1 = vld [vmem:[%s13800_s11 + $0xc] ss:$16 sps:$4 sm:$0xff]   ;;  %s10126_s28 = sshll.u32 %s13659_s15, 2 }
  0x37   : > { %8186 = vmatprep.subr.bf16.mxu0 %v11667_v0  ;;  %v11671_v2 = vld [vmem:[%s13800_s11] ss:$16 sps:$4 sm:$0xff]   ;;  %v11672_v3 = vld [vmem:[%s13800_s11 + $0x8] ss:$16 sps:$4 sm:$0xff]   ;;  %9046 = vmatprep.subr.bf16.mxu1 %v11669_v1  ;;  %v11673_v4 = vld [vmem:[%s13800_s11 + $0x24] ss:$16 sps:$4 sm:$0xff]  }
  0x38   : > { %8187 = vmatpush1.bf16.msra.mxu0 %v11671_v2  ;;  %9047 = vmatpush1.bf16.msra.mxu1 %v11672_v3  ;;  %v11675_v5 = vld [vmem:[%s13800_s11 + $0x2c] ss:$16 sps:$4 sm:$0xff]   ;;  %v11677_v6 = vld [vmem:[%s13800_s11 + $0x20] ss:$16 sps:$4 sm:$0xff]   ;;  %v11678_v7 = vld [vmem:[%s13800_s11 + $0x28] ss:$16 sps:$4 sm:$0xff]  }
  0x39   : > { %8188 = vmatprep.subr.bf16.mxu0 %v11673_v4  ;;  %9048 = vmatprep.subr.bf16.mxu1 %v11675_v5  ;;  %v11679_v8 = vld [vmem:[%s13800_s11 + $0x44] ss:$16 sps:$4 sm:$0xff]   ;;  %v11681_v9 = vld [vmem:[%s13800_s11 + $0x4c] ss:$16 sps:$4 sm:$0xff]   ;;  %v11683_v10 = vld [vmem:[%s13800_s11 + $0x40] ss:$16 sps:$4 sm:$0xff]  }
  0x3a   : > { %v11684_v11 = vld [vmem:[%s13800_s11 + $0x48] ss:$16 sps:$4 sm:$0xff]   ;;  %v11685_v12 = vld [vmem:[%s13800_s11 + $0x64] ss:$16 sps:$4 sm:$0xff]   ;;  %v11687_v13 = vld [vmem:[%s13800_s11 + $0x6c] ss:$16 sps:$4 sm:$0xff]  }
  0x3b   : > { %v11689_v14 = vld [vmem:[%s13800_s11 + $0x60] ss:$16 sps:$4 sm:$0xff]   ;;  %v11690_v15 = vld [vmem:[%s13800_s11 + $0x68] ss:$16 sps:$4 sm:$0xff]   ;;  %v11691_v16 = vld [vmem:[%s13800_s11 + $0x84] ss:$16 sps:$4 sm:$0xff]  }
  0x3c   : > { %8189 = vmatpush1.bf16.msra.mxu0 %v11677_v6  ;;  %9049 = vmatpush1.bf16.msra.mxu1 %v11678_v7  ;;  %v11693_v17 = vld [vmem:[%s13800_s11 + $0x8c] ss:$16 sps:$4 sm:$0xff]   ;;  %v11695_v18 = vld [vmem:[%s13800_s11 + $0x80] ss:$16 sps:$4 sm:$0xff]   ;;  %v11696_v19 = vld [vmem:[%s13800_s11 + $0x88] ss:$16 sps:$4 sm:$0xff]  }
  0x3d   : > { %8190 = vmatprep.subr.bf16.mxu0 %v11679_v8  ;;  %9050 = vmatprep.subr.bf16.mxu1 %v11681_v9  ;;  %v11697_v20 = vld [vmem:[%s13800_s11 + $0xa4] ss:$16 sps:$4 sm:$0xff]   ;;  %v11699_v21 = vld [vmem:[%s13800_s11 + $0xac] ss:$16 sps:$4 sm:$0xff]   ;;  %v11701_v22 = vld [vmem:[%s13800_s11 + $0xa0] ss:$16 sps:$4 sm:$0xff]  }
  0x3e   : > { %v11702_v23 = vld [vmem:[%s13800_s11 + $0xa8] ss:$16 sps:$4 sm:$0xff]   ;;  %v11703_v24 = vld [vmem:[%s13800_s11 + $0xc4] ss:$16 sps:$4 sm:$0xff]   ;;  %v11705_v25 = vld [vmem:[%s13800_s11 + $0xcc] ss:$16 sps:$4 sm:$0xff]  }
  0x3f   : > { %v11707_v26 = vld [vmem:[%s13800_s11 + $0xc0] ss:$16 sps:$4 sm:$0xff]   ;;  %v11708_v27 = vld [vmem:[%s13800_s11 + $0xc8] ss:$16 sps:$4 sm:$0xff]   ;;  %v11709_v28 = vld [vmem:[%s13800_s11 + $0xe4] ss:$16 sps:$4 sm:$0xff]  }
  0x40   : > { %8191 = vmatpush1.bf16.msra.mxu0 %v11683_v10  ;;  %9051 = vmatpush1.bf16.msra.mxu1 %v11684_v11  ;;  %v11711_v29 = vld [vmem:[%s13800_s11 + $0xec] ss:$16 sps:$4 sm:$0xff]   ;;  %v11713_v30 = vld [vmem:[%s13800_s11 + $0xe0] ss:$16 sps:$4 sm:$0xff]   ;;  %v11714_v31 = vld [vmem:[%s13800_s11 + $0xe8] ss:$16 sps:$4 sm:$0xff]  }
  0x41   : > { %8192 = vmatprep.subr.bf16.mxu0 %v11685_v12  ;;  %9052 = vmatprep.subr.bf16.mxu1 %v11687_v13  ;;  %v11715_v32 = vld [vmem:[%s13800_s11 + $0x104] ss:$16 sps:$4 sm:$0xff]   ;;  %v11717_v33 = vld [vmem:[%s13800_s11 + $0x10c] ss:$16 sps:$4 sm:$0xff]   ;;  %v11719_v34 = vld [vmem:[%s13800_s11 + $0x100] ss:$16 sps:$4 sm:$0xff]  }
  0x42   : > { %v11720_v35 = vld [vmem:[%s13800_s11 + $0x108] ss:$16 sps:$4 sm:$0xff]   ;;  %v11721_v36 = vld [vmem:[%s13800_s11 + $0x124] ss:$16 sps:$4 sm:$0xff]   ;;  %v11723_v37 = vld [vmem:[%s13800_s11 + $0x12c] ss:$16 sps:$4 sm:$0xff]  }
  0x43   : > { %v11725_v38 = vld [vmem:[%s13800_s11 + $0x120] ss:$16 sps:$4 sm:$0xff]   ;;  %v11726_v39 = vld [vmem:[%s13800_s11 + $0x128] ss:$16 sps:$4 sm:$0xff]   ;;  %v11727_v40 = vld [vmem:[%s13800_s11 + $0x144] ss:$16 sps:$4 sm:$0xff]  }
  0x44   : > { %8193 = vmatpush1.bf16.msra.mxu0 %v11689_v14  ;;  %9053 = vmatpush1.bf16.msra.mxu1 %v11690_v15  ;;  %v11729_v41 = vld [vmem:[%s13800_s11 + $0x14c] ss:$16 sps:$4 sm:$0xff]   ;;  %v11731_v42 = vld [vmem:[%s13800_s11 + $0x140] ss:$16 sps:$4 sm:$0xff]   ;;  %v11732_v43 = vld [vmem:[%s13800_s11 + $0x148] ss:$16 sps:$4 sm:$0xff]  }
  0x45   : > { %8194 = vmatprep.subr.bf16.mxu0 %v11691_v16  ;;  %9054 = vmatprep.subr.bf16.mxu1 %v11693_v17  ;;  %v11733_v44 = vld [vmem:[%s13800_s11 + $0x164] ss:$16 sps:$4 sm:$0xff]   ;;  %v11735_v45 = vld [vmem:[%s13800_s11 + $0x16c] ss:$16 sps:$4 sm:$0xff]   ;;  %v11737_v48 = vld [vmem:[%s13800_s11 + $0x160] ss:$16 sps:$4 sm:$0xff]  }
  0x46   : > { %v266_v46 = vld [vmem:[%s15387_s0] sm:$0xff]  ;;  %v11738_v49 = vld [vmem:[%s13800_s11 + $0x168] ss:$16 sps:$4 sm:$0xff]   ;;  %v11741_v52 = vld [vmem:[%s13800_s11 + $0x18c] ss:$16 sps:$4 sm:$0xff]   ;;  %p241_p8 = scmp.lt.s32.totalorder %s10126_s28, 19 }
  0x47   : > { %v286_v47 = vld [vmem:[%s15387_s0 + $0xa0] sm:$0xff]  ;;  %v11744_v54 = vld [vmem:[%s13800_s11 + $0x188] ss:$16 sps:$4 sm:$0xff]   ;;  %v11747_v56 = vld [vmem:[%s13800_s11 + $0x1ac] ss:$16 sps:$4 sm:$0xff]   ;;  %p15396_p9 = scmp.ne.s32.totalorder %s15393_s25, 0 }
  0x48   : > { %8195 = vmatpush1.bf16.msra.mxu0 %v11695_v18  ;;  %9055 = vmatpush1.bf16.msra.mxu1 %v11696_v19  ;;  %v10128_v50 = vcombine.high %v266_v46, %v286_v47  ;;  %v11739_v51 = vld [vmem:[%s13800_s11 + $0x184] ss:$16 sps:$4 sm:$0xff]   ;;  %v11743_v53 = vld [vmem:[%s13800_s11 + $0x180] ss:$16 sps:$4 sm:$0xff]   ;;  %v11750_v58 = vld [vmem:[%s13800_s11 + $0x1a8] ss:$16 sps:$4 sm:$0xff]   ;;  %v10127_v5 = vcombine.low %v266_v46, %v286_v47 }
  0x49   : > { %8196 = vmatprep.subr.bf16.mxu0 %v11697_v20  ;;  %9056 = vmatprep.subr.bf16.mxu1 %v11699_v21  ;;  %v11745_v55 = vld [vmem:[%s13800_s11 + $0x1a4] ss:$16 sps:$4 sm:$0xff]   ;;  %v11749_v57 = vld [vmem:[%s13800_s11 + $0x1a0] ss:$16 sps:$4 sm:$0xff]   ;;  %v11753_v60 = vld [vmem:[%s13800_s11 + $0x1cc] ss:$16 sps:$4 sm:$0xff]  }
  0x4a   : > { %8218 = vmatprep.mubr.bf16.mxu0 %v10128_v50  ;;  %9078 = vmatprep.mubr.bf16.mxu1 %v10128_v50  ;;  %v11751_v59 = vld [vmem:[%s13800_s11 + $0x1c4] ss:$16 sps:$4 sm:$0xff]   ;;  %v11755_v61 = vld [vmem:[%s13800_s11 + $0x1c0] ss:$16 sps:$4 sm:$0xff]   ;;  %v11756_v62 = vld [vmem:[%s13800_s11 + $0x1c8] ss:$16 sps:$4 sm:$0xff]  }
  0x4b   : > { %v11757_v63 = vld [vmem:[%s13800_s11 + $0x1e4] ss:$16 sps:$4 sm:$0xff]   ;;  %v11759_v0 = vld [vmem:[%s13800_s11 + $0x1ec] ss:$16 sps:$4 sm:$0xff]   ;;  %v11761_v1 = vld [vmem:[%s13800_s11 + $0x1e0] ss:$16 sps:$4 sm:$0xff]  }
  0x4c   : > { %8197 = vmatpush1.bf16.msra.mxu0 %v11701_v22  ;;  %9057 = vmatpush1.bf16.msra.mxu1 %v11702_v23  ;;  %v11762_v2 = vld [vmem:[%s13800_s11 + $0x1e8] ss:$16 sps:$4 sm:$0xff]   ;;  %v11765_v3 = vld [vmem:[%s13800_s11 + $0x204] ss:$16 sps:$4 sm:$0xff]   ;;  %v11768_v4 = vld [vmem:[%s13800_s11 + $0x20c] ss:$16 sps:$4 sm:$0xff]  }
  0x4d   : > { %8198 = vmatprep.subr.bf16.mxu0 %v11703_v24  ;;  %9058 = vmatprep.subr.bf16.mxu1 %v11705_v25  ;;  %v11763_v6 = vld [vmem:[%s13800_s11 + $0x200] ss:$16 sps:$4 sm:$0xff]   ;;  %v11766_v7 = vld [vmem:[%s13800_s11 + $0x208] ss:$16 sps:$4 sm:$0xff]   ;;  %v11771_v8 = vld [vmem:[%s13800_s11 + $0x224] ss:$16 sps:$4 sm:$0xff]  }
  0x4e   : > { %v11774_v9 = vld [vmem:[%s13800_s11 + $0x22c] ss:$16 sps:$4 sm:$0xff]   ;;  %v11769_v10 = vld [vmem:[%s13800_s11 + $0x220] ss:$16 sps:$4 sm:$0xff]   ;;  %v11772_v11 = vld [vmem:[%s13800_s11 + $0x228] ss:$16 sps:$4 sm:$0xff]  }
  0x4f   : > { %v11777_v12 = vld [vmem:[%s13800_s11 + $0x244] ss:$16 sps:$4 sm:$0xff]   ;;  %v11780_v13 = vld [vmem:[%s13800_s11 + $0x24c] ss:$16 sps:$4 sm:$0xff]   ;;  %v11775_v14 = vld [vmem:[%s13800_s11 + $0x240] ss:$16 sps:$4 sm:$0xff]  }
  0x50   : > { %8199 = vmatpush1.bf16.msra.mxu0 %v11707_v26  ;;  %9059 = vmatpush1.bf16.msra.mxu1 %v11708_v27  ;;  %v11778_v15 = vld [vmem:[%s13800_s11 + $0x248] ss:$16 sps:$4 sm:$0xff]   ;;  %v11783_v16 = vld [vmem:[%s13800_s11 + $0x264] ss:$16 sps:$4 sm:$0xff]   ;;  %v11786_v17 = vld [vmem:[%s13800_s11 + $0x26c] ss:$16 sps:$4 sm:$0xff]  }
  0x51   : > { %8200 = vmatprep.subr.bf16.mxu0 %v11709_v28  ;;  %9060 = vmatprep.subr.bf16.mxu1 %v11711_v29  ;;  %v11781_v18 = vld [vmem:[%s13800_s11 + $0x260] ss:$16 sps:$4 sm:$0xff]   ;;  %v11784_v19 = vld [vmem:[%s13800_s11 + $0x268] ss:$16 sps:$4 sm:$0xff]   ;;  %v11789_v20 = vld [vmem:[%s13800_s11 + $0x284] ss:$16 sps:$4 sm:$0xff]  }
  0x52   : > { %v11792_v21 = vld [vmem:[%s13800_s11 + $0x28c] ss:$16 sps:$4 sm:$0xff]   ;;  %v11787_v22 = vld [vmem:[%s13800_s11 + $0x280] ss:$16 sps:$4 sm:$0xff]   ;;  %v11790_v23 = vld [vmem:[%s13800_s11 + $0x288] ss:$16 sps:$4 sm:$0xff]  }
  0x53   : > { %v11795_v24 = vld [vmem:[%s13800_s11 + $0x2a4] ss:$16 sps:$4 sm:$0xff]   ;;  %v11798_v25 = vld [vmem:[%s13800_s11 + $0x2ac] ss:$16 sps:$4 sm:$0xff]   ;;  %v11793_v26 = vld [vmem:[%s13800_s11 + $0x2a0] ss:$16 sps:$4 sm:$0xff]  }
  0x54   : > { %8201 = vmatpush1.bf16.msra.mxu0 %v11713_v30  ;;  %9061 = vmatpush1.bf16.msra.mxu1 %v11714_v31  ;;  %v11796_v27 = vld [vmem:[%s13800_s11 + $0x2a8] ss:$16 sps:$4 sm:$0xff]   ;;  %v11801_v28 = vld [vmem:[%s13800_s11 + $0x2c4] ss:$16 sps:$4 sm:$0xff]   ;;  %v11804_v29 = vld [vmem:[%s13800_s11 + $0x2cc] ss:$16 sps:$4 sm:$0xff]  }
  0x55   : > { %8202 = vmatprep.subr.bf16.mxu0 %v11715_v32  ;;  %9062 = vmatprep.subr.bf16.mxu1 %v11717_v33  ;;  %v13905_v30 = vld [vmem:[%s15387_s0 + $0x8] sm:$0xff]  ;;  %v11799_v32 = vld [vmem:[%s13800_s11 + $0x2c0] ss:$16 sps:$4 sm:$0xff]   ;;  %v11825_v47 = vld [vmem:[%s13800_s11 + $0x344] ss:$16 sps:$4 sm:$0xff]   ;;  %s15405_s28 = smov (!%p241_p8, %s10126_s28), 19 }
  0x56   : > { %v13910_v31 = vld [vmem:[%s15387_s0 + $0xa8] sm:$0xff]  ;;  %s243_s9 = scalar_lea.vmem %s15389_s2, %s15405_s28 }
  0x57   : > { %v11802_v33 = vld [vmem:[%s13800_s11 + $0x2c8] ss:$16 sps:$4 sm:$0xff]  }
  0x58   : > { %8203 = vmatpush1.bf16.msra.mxu0 %v11719_v34  ;;  %9063 = vmatpush1.bf16.msra.mxu1 %v11720_v35  ;;  %v10130_v34 = vcombine.high %v13905_v30, %v13910_v31  ;;  %v11807_v35 = vld [vmem:[%s13800_s11 + $0x2e4] ss:$16 sps:$4 sm:$0xff]   ;;  %v11820_v46 = vld [vmem:[%s13800_s11 + $0x328] ss:$16 sps:$4 sm:$0xff]  }
  0x59   : > { %8204 = vmatprep.subr.bf16.mxu0 %v11721_v36  ;;  %9064 = vmatprep.subr.bf16.mxu1 %v11723_v37  ;;  %v11810_v36 = vld [vmem:[%s13800_s11 + $0x2ec] ss:$16 sps:$4 sm:$0xff]   ;;  %v11805_v37 = vld [vmem:[%s13800_s11 + $0x2e0] ss:$16 sps:$4 sm:$0xff]   ;;  %v11826_v50 = vld [vmem:[%s13800_s11 + $0x348] ss:$16 sps:$4 sm:$0xff]  }
  0x5c   : > { %8205 = vmatpush1.bf16.msra.mxu0 %v11725_v38  ;;  %9065 = vmatpush1.bf16.msra.mxu1 %v11726_v39  ;;  %v11808_v38 = vld [vmem:[%s13800_s11 + $0x2e8] ss:$16 sps:$4 sm:$0xff]   ;;  %v11813_v39 = vld [vmem:[%s13800_s11 + $0x304] ss:$16 sps:$4 sm:$0xff]  }
  0x5d   : > { %8206 = vmatprep.subr.bf16.mxu0 %v11727_v40  ;;  %9066 = vmatprep.subr.bf16.mxu1 %v11729_v41  ;;  %v11816_v40 = vld [vmem:[%s13800_s11 + $0x30c] ss:$16 sps:$4 sm:$0xff]   ;;  %v11811_v41 = vld [vmem:[%s13800_s11 + $0x300] ss:$16 sps:$4 sm:$0xff]  }
  0x60   : > { %8207 = vmatpush1.bf16.msra.mxu0 %v11731_v42  ;;  %9067 = vmatpush1.bf16.msra.mxu1 %v11732_v43  ;;  %v11814_v42 = vld [vmem:[%s13800_s11 + $0x308] ss:$16 sps:$4 sm:$0xff]   ;;  %v11819_v43 = vld [vmem:[%s13800_s11 + $0x324] ss:$16 sps:$4 sm:$0xff]  }
  0x61   : > { %8208 = vmatprep.subr.bf16.mxu0 %v11733_v44  ;;  %9068 = vmatprep.subr.bf16.mxu1 %v11735_v45  ;;  %v11822_v44 = vld [vmem:[%s13800_s11 + $0x32c] ss:$16 sps:$4 sm:$0xff]   ;;  %v11817_v45 = vld [vmem:[%s13800_s11 + $0x320] ss:$16 sps:$4 sm:$0xff]  }
  0x64   : > { %8209 = vmatpush1.bf16.msra.mxu0 %v11737_v48  ;;  %9069 = vmatpush1.bf16.msra.mxu1 %v11738_v49  ;;  %v11828_v48 = vld [vmem:[%s13800_s11 + $0x34c] ss:$16 sps:$4 sm:$0xff]   ;;  %v11823_v49 = vld [vmem:[%s13800_s11 + $0x340] ss:$16 sps:$4 sm:$0xff]  }
  0x65   : > { %8210 = vmatprep.subr.bf16.mxu0 %v11739_v51  ;;  %9070 = vmatprep.subr.bf16.mxu1 %v11741_v52  ;;  %v11831_v51 = vld [vmem:[%s13800_s11 + $0x364] ss:$16 sps:$4 sm:$0xff]   ;;  %v11834_v52 = vld [vmem:[%s13800_s11 + $0x36c] ss:$16 sps:$4 sm:$0xff]  }
  0x68   : > { %8211 = vmatpush1.bf16.msra.mxu0 %v11743_v53  ;;  %9071 = vmatpush1.bf16.msra.mxu1 %v11744_v54  ;;  %v11829_v53 = vld [vmem:[%s13800_s11 + $0x360] ss:$16 sps:$4 sm:$0xff]   ;;  %v11832_v54 = vld [vmem:[%s13800_s11 + $0x368] ss:$16 sps:$4 sm:$0xff]  }
  0x69   : > { %8212 = vmatprep.subr.bf16.mxu0 %v11745_v55  ;;  %9072 = vmatprep.subr.bf16.mxu1 %v11747_v56  ;;  %v11837_v55 = vld [vmem:[%s13800_s11 + $0x384] ss:$16 sps:$4 sm:$0xff]   ;;  %v11840_v56 = vld [vmem:[%s13800_s11 + $0x38c] ss:$16 sps:$4 sm:$0xff]  }
  0x6c   : > { %8213 = vmatpush1.bf16.msra.mxu0 %v11749_v57  ;;  %9073 = vmatpush1.bf16.msra.mxu1 %v11750_v58  ;;  %v11835_v57 = vld [vmem:[%s13800_s11 + $0x380] ss:$16 sps:$4 sm:$0xff]   ;;  %v11838_v58 = vld [vmem:[%s13800_s11 + $0x388] ss:$16 sps:$4 sm:$0xff]  }
  0x6d   : > { %8214 = vmatprep.subr.bf16.mxu0 %v11751_v59  ;;  %9074 = vmatprep.subr.bf16.mxu1 %v11753_v60  ;;  %v11843_v59 = vld [vmem:[%s13800_s11 + $0x3a4] ss:$16 sps:$4 sm:$0xff]   ;;  %v11846_v60 = vld [vmem:[%s13800_s11 + $0x3ac] ss:$16 sps:$4 sm:$0xff]  }
  0x70   : > { %8215 = vmatpush1.bf16.msra.mxu0 %v11755_v61  ;;  %9075 = vmatpush1.bf16.msra.mxu1 %v11756_v62  ;;  %v11841_v61 = vld [vmem:[%s13800_s11 + $0x3a0] ss:$16 sps:$4 sm:$0xff]   ;;  %v11844_v62 = vld [vmem:[%s13800_s11 + $0x3a8] ss:$16 sps:$4 sm:$0xff]  }
  0x71   : > { %8216 = vmatprep.subr.bf16.mxu0 %v11757_v63  ;;  %9076 = vmatprep.subr.bf16.mxu1 %v11759_v0  ;;  %v11849_v63 = vld [vmem:[%s13800_s11 + $0x3c4] ss:$16 sps:$4 sm:$0xff]   ;;  %v11852_v0 = vld [vmem:[%s13800_s11 + $0x3cc] ss:$16 sps:$4 sm:$0xff]  }
  0x74   : > { %8217 = vmatpush1.bf16.msra.mxu0 %v11761_v1  ;;  %9077 = vmatpush1.bf16.msra.mxu1 %v11762_v2  ;;  %v11847_v1 = vld [vmem:[%s13800_s11 + $0x3c0] ss:$16 sps:$4 sm:$0xff]   ;;  %v11850_v2 = vld [vmem:[%s13800_s11 + $0x3c8] ss:$16 sps:$4 sm:$0xff]  }
  0x75   : > { %8229 = vmatprep.subr.bf16.mxu0 %v11765_v3  ;;  %9089 = vmatprep.subr.bf16.mxu1 %v11768_v4  ;;  %v11855_v3 = vld [vmem:[%s13800_s11 + $0x3e4] ss:$16 sps:$4 sm:$0xff]   ;;  %v11858_v4 = vld [vmem:[%s13800_s11 + $0x3ec] ss:$16 sps:$4 sm:$0xff]  }
  0x77   : > { %8219 = vmatmul.mubr.bf16.vlgmr.msra.gmra.mrb[0].mxu0 %v10127_v5  ;;  %9079 = vmatmul.mubr.bf16.vlgmr.msra.gmra.mrb[0].mxu1 %v10127_v5  ;;  %v11853_v5 = vld [vmem:[%s13800_s11 + $0x3e0] ss:$16 sps:$4 sm:$0xff]  }
  0x78   : > { %8230 = vmatpush1.bf16.msra.mxu0 %v11763_v6  ;;  %9090 = vmatpush1.bf16.msra.mxu1 %v11766_v7  ;;  %v11856_v6 = vld [vmem:[%s13800_s11 + $0x3e8] ss:$16 sps:$4 sm:$0xff]   ;;  %v11861_v7 = vld [vmem:[%s13800_s11 + $0x404] ss:$16 sps:$4 sm:$0xff]  }
  0x79   : > { %8231 = vmatprep.subr.bf16.mxu0 %v11771_v8  ;;  %9091 = vmatprep.subr.bf16.mxu1 %v11774_v9  ;;  %v11864_v8 = vld [vmem:[%s13800_s11 + $0x40c] ss:$16 sps:$4 sm:$0xff]   ;;  %v10129_v9 = vcombine.low %v13905_v30, %v13910_v31  ;;  %v11886_v30 = vld [vmem:[%s13800_s11 + $0x488] ss:$16 sps:$4 sm:$0xff]   ;;  %v11891_v31 = vld [vmem:[%s13800_s11 + $0x4a4] ss:$16 sps:$4 sm:$0xff]  }
  0x7a   : > { %8261 = vmatprep.mubr.bf16.mxu0 %v10130_v34  ;;  %9121 = vmatprep.mubr.bf16.mxu1 %v10130_v34  ;;  %v11892_v34 = vld [vmem:[%s13800_s11 + $0x4a8] ss:$16 sps:$4 sm:$0xff]  }
  0x7c   : > { %8232 = vmatpush1.bf16.msra.mxu0 %v11769_v10  ;;  %9092 = vmatpush1.bf16.msra.mxu1 %v11772_v11  ;;  %v11859_v10 = vld [vmem:[%s13800_s11 + $0x400] ss:$16 sps:$4 sm:$0xff]   ;;  %v11862_v11 = vld [vmem:[%s13800_s11 + $0x408] ss:$16 sps:$4 sm:$0xff]  }
  0x7d   : > { %8233 = vmatprep.subr.bf16.mxu0 %v11777_v12  ;;  %9093 = vmatprep.subr.bf16.mxu1 %v11780_v13  ;;  %v11867_v12 = vld [vmem:[%s13800_s11 + $0x424] ss:$16 sps:$4 sm:$0xff]   ;;  %v11870_v13 = vld [vmem:[%s13800_s11 + $0x42c] ss:$16 sps:$4 sm:$0xff]  }
  0x80   : > { %8234 = vmatpush1.bf16.msra.mxu0 %v11775_v14  ;;  %9094 = vmatpush1.bf16.msra.mxu1 %v11778_v15  ;;  %v13963_v14 = vld [vmem:[%s15387_s0 + $0x10] sm:$0xff] }
  0x81   : > { %8235 = vmatprep.subr.bf16.mxu0 %v11783_v16  ;;  %9095 = vmatprep.subr.bf16.mxu1 %v11786_v17  ;;  %v13968_v15 = vld [vmem:[%s15387_s0 + $0xb0] sm:$0xff] }
  0x82   : > { %v10132_v16 = vcombine.high %v13963_v14, %v13968_v15  ;;  %v11865_v17 = vld [vmem:[%s13800_s11 + $0x420] ss:$16 sps:$4 sm:$0xff]  }
  0x84   : > { %8236 = vmatpush1.bf16.msra.mxu0 %v11781_v18  ;;  %9096 = vmatpush1.bf16.msra.mxu1 %v11784_v19  ;;  %v11868_v18 = vld [vmem:[%s13800_s11 + $0x428] ss:$16 sps:$4 sm:$0xff]   ;;  %v11873_v19 = vld [vmem:[%s13800_s11 + $0x444] ss:$16 sps:$4 sm:$0xff]  }
  0x85   : > { %8237 = vmatprep.subr.bf16.mxu0 %v11789_v20  ;;  %9097 = vmatprep.subr.bf16.mxu1 %v11792_v21  ;;  %v11876_v20 = vld [vmem:[%s13800_s11 + $0x44c] ss:$16 sps:$4 sm:$0xff]   ;;  %v11871_v21 = vld [vmem:[%s13800_s11 + $0x440] ss:$16 sps:$4 sm:$0xff]  }
  0x88   : > { %8238 = vmatpush1.bf16.msra.mxu0 %v11787_v22  ;;  %9098 = vmatpush1.bf16.msra.mxu1 %v11790_v23  ;;  %v11874_v22 = vld [vmem:[%s13800_s11 + $0x448] ss:$16 sps:$4 sm:$0xff]   ;;  %v11879_v23 = vld [vmem:[%s13800_s11 + $0x464] ss:$16 sps:$4 sm:$0xff]  }
  0x89   : > { %8239 = vmatprep.subr.bf16.mxu0 %v11795_v24  ;;  %9099 = vmatprep.subr.bf16.mxu1 %v11798_v25  ;;  %v11882_v24 = vld [vmem:[%s13800_s11 + $0x46c] ss:$16 sps:$4 sm:$0xff]   ;;  %v11877_v25 = vld [vmem:[%s13800_s11 + $0x460] ss:$16 sps:$4 sm:$0xff]  }
  0x8c   : > { %8240 = vmatpush1.bf16.msra.mxu0 %v11793_v26  ;;  %9100 = vmatpush1.bf16.msra.mxu1 %v11796_v27  ;;  %v11880_v26 = vld [vmem:[%s13800_s11 + $0x468] ss:$16 sps:$4 sm:$0xff]   ;;  %v11885_v27 = vld [vmem:[%s13800_s11 + $0x484] ss:$16 sps:$4 sm:$0xff]  }
  0x8d   : > { %8241 = vmatprep.subr.bf16.mxu0 %v11801_v28  ;;  %9101 = vmatprep.subr.bf16.mxu1 %v11804_v29  ;;  %v11888_v28 = vld [vmem:[%s13800_s11 + $0x48c] ss:$16 sps:$4 sm:$0xff]   ;;  %v11883_v29 = vld [vmem:[%s13800_s11 + $0x480] ss:$16 sps:$4 sm:$0xff]  }
  0x90   : > { %8242 = vmatpush1.bf16.msra.mxu0 %v11799_v32  ;;  %9102 = vmatpush1.bf16.msra.mxu1 %v11802_v33  ;;  %v11894_v32 = vld [vmem:[%s13800_s11 + $0x4ac] ss:$16 sps:$4 sm:$0xff]   ;;  %v11889_v33 = vld [vmem:[%s13800_s11 + $0x4a0] ss:$16 sps:$4 sm:$0xff]  }
  0x91   : > { %8243 = vmatprep.subr.bf16.mxu0 %v11807_v35  ;;  %9103 = vmatprep.subr.bf16.mxu1 %v11810_v36  ;;  %v11897_v35 = vld [vmem:[%s13800_s11 + $0x4c4] ss:$16 sps:$4 sm:$0xff]   ;;  %v11900_v36 = vld [vmem:[%s13800_s11 + $0x4cc] ss:$16 sps:$4 sm:$0xff]  }
  0x94   : > { %8244 = vmatpush1.bf16.msra.mxu0 %v11805_v37  ;;  %9104 = vmatpush1.bf16.msra.mxu1 %v11808_v38  ;;  %v11895_v37 = vld [vmem:[%s13800_s11 + $0x4c0] ss:$16 sps:$4 sm:$0xff]   ;;  %v11898_v38 = vld [vmem:[%s13800_s11 + $0x4c8] ss:$16 sps:$4 sm:$0xff]  }
  0x95   : > { %8245 = vmatprep.subr.bf16.mxu0 %v11813_v39  ;;  %9105 = vmatprep.subr.bf16.mxu1 %v11816_v40  ;;  %v11903_v39 = vld [vmem:[%s13800_s11 + $0x4e4] ss:$16 sps:$4 sm:$0xff]   ;;  %v11906_v40 = vld [vmem:[%s13800_s11 + $0x4ec] ss:$16 sps:$4 sm:$0xff]  }
  0x98   : > { %8246 = vmatpush1.bf16.msra.mxu0 %v11811_v41  ;;  %9106 = vmatpush1.bf16.msra.mxu1 %v11814_v42  ;;  %v11901_v41 = vld [vmem:[%s13800_s11 + $0x4e0] ss:$16 sps:$4 sm:$0xff]   ;;  %v11904_v42 = vld [vmem:[%s13800_s11 + $0x4e8] ss:$16 sps:$4 sm:$0xff]  }
  0x99   : > { %8247 = vmatprep.subr.bf16.mxu0 %v11819_v43  ;;  %9107 = vmatprep.subr.bf16.mxu1 %v11822_v44  ;;  %v11909_v43 = vld [vmem:[%s13800_s11 + $0x504] ss:$16 sps:$4 sm:$0xff]   ;;  %v11912_v44 = vld [vmem:[%s13800_s11 + $0x50c] ss:$16 sps:$4 sm:$0xff]  }
  0x9c   : > { %8248 = vmatpush1.bf16.msra.mxu0 %v11817_v45  ;;  %9108 = vmatpush1.bf16.msra.mxu1 %v11820_v46  ;;  %v11907_v45 = vld [vmem:[%s13800_s11 + $0x500] ss:$16 sps:$4 sm:$0xff]   ;;  %v11910_v46 = vld [vmem:[%s13800_s11 + $0x508] ss:$16 sps:$4 sm:$0xff]  }
  0x9d   : > { %8249 = vmatprep.subr.bf16.mxu0 %v11825_v47  ;;  %9109 = vmatprep.subr.bf16.mxu1 %v11828_v48  ;;  %v11915_v47 = vld [vmem:[%s13800_s11 + $0x524] ss:$16 sps:$4 sm:$0xff]   ;;  %v11918_v48 = vld [vmem:[%s13800_s11 + $0x52c] ss:$16 sps:$4 sm:$0xff]  }
  0xa0   : > { %8250 = vmatpush1.bf16.msra.mxu0 %v11823_v49  ;;  %9110 = vmatpush1.bf16.msra.mxu1 %v11826_v50  ;;  %v11913_v49 = vld [vmem:[%s13800_s11 + $0x520] ss:$16 sps:$4 sm:$0xff]   ;;  %v11916_v50 = vld [vmem:[%s13800_s11 + $0x528] ss:$16 sps:$4 sm:$0xff]  }
  0xa1   : > { %8251 = vmatprep.subr.bf16.mxu0 %v11831_v51  ;;  %9111 = vmatprep.subr.bf16.mxu1 %v11834_v52  ;;  %v11921_v51 = vld [vmem:[%s13800_s11 + $0x544] ss:$16 sps:$4 sm:$0xff]   ;;  %v11924_v52 = vld [vmem:[%s13800_s11 + $0x54c] ss:$16 sps:$4 sm:$0xff]  }
  0xa4   : > { %8252 = vmatpush1.bf16.msra.mxu0 %v11829_v53  ;;  %9112 = vmatpush1.bf16.msra.mxu1 %v11832_v54  ;;  %v11919_v53 = vld [vmem:[%s13800_s11 + $0x540] ss:$16 sps:$4 sm:$0xff]   ;;  %v11922_v54 = vld [vmem:[%s13800_s11 + $0x548] ss:$16 sps:$4 sm:$0xff]  }
  0xa5   : > { %8253 = vmatprep.subr.bf16.mxu0 %v11837_v55  ;;  %9113 = vmatprep.subr.bf16.mxu1 %v11840_v56  ;;  %v11927_v55 = vld [vmem:[%s13800_s11 + $0x564] ss:$16 sps:$4 sm:$0xff]   ;;  %v11930_v56 = vld [vmem:[%s13800_s11 + $0x56c] ss:$16 sps:$4 sm:$0xff]  }
  0xa8   : > { %8254 = vmatpush1.bf16.msra.mxu0 %v11835_v57  ;;  %9114 = vmatpush1.bf16.msra.mxu1 %v11838_v58  ;;  %v11925_v57 = vld [vmem:[%s13800_s11 + $0x560] ss:$16 sps:$4 sm:$0xff]   ;;  %v11928_v58 = vld [vmem:[%s13800_s11 + $0x568] ss:$16 sps:$4 sm:$0xff]  }
  0xa9   : > { %8255 = vmatprep.subr.bf16.mxu0 %v11843_v59  ;;  %9115 = vmatprep.subr.bf16.mxu1 %v11846_v60  ;;  %v11933_v59 = vld [vmem:[%s13800_s11 + $0x584] ss:$16 sps:$4 sm:$0xff]   ;;  %v11936_v60 = vld [vmem:[%s13800_s11 + $0x58c] ss:$16 sps:$4 sm:$0xff]  }
  0xac   : > { %8256 = vmatpush1.bf16.msra.mxu0 %v11841_v61  ;;  %9116 = vmatpush1.bf16.msra.mxu1 %v11844_v62  ;;  %v11931_v61 = vld [vmem:[%s13800_s11 + $0x580] ss:$16 sps:$4 sm:$0xff]   ;;  %v11934_v62 = vld [vmem:[%s13800_s11 + $0x588] ss:$16 sps:$4 sm:$0xff]  }
  0xad   : > { %8257 = vmatprep.subr.bf16.mxu0 %v11849_v63  ;;  %9117 = vmatprep.subr.bf16.mxu1 %v11852_v0  ;;  %v11939_v63 = vld [vmem:[%s13800_s11 + $0x5a4] ss:$16 sps:$4 sm:$0xff]   ;;  %v11942_v0 = vld [vmem:[%s13800_s11 + $0x5ac] ss:$16 sps:$4 sm:$0xff]  }
  0xb0   : > { %8258 = vmatpush1.bf16.msra.mxu0 %v11847_v1  ;;  %9118 = vmatpush1.bf16.msra.mxu1 %v11850_v2  ;;  %v11937_v1 = vld [vmem:[%s13800_s11 + $0x5a0] ss:$16 sps:$4 sm:$0xff]   ;;  %v11940_v2 = vld [vmem:[%s13800_s11 + $0x5a8] ss:$16 sps:$4 sm:$0xff]  }
  0xb1   : > { %8259 = vmatprep.subr.bf16.mxu0 %v11855_v3  ;;  %9119 = vmatprep.subr.bf16.mxu1 %v11858_v4  ;;  %v11945_v3 = vld [vmem:[%s13800_s11 + $0x5c4] ss:$16 sps:$4 sm:$0xff]   ;;  %v11948_v4 = vld [vmem:[%s13800_s11 + $0x5cc] ss:$16 sps:$4 sm:$0xff]  }
  0xb4   : > { %8260 = vmatpush1.bf16.msra.mxu0 %v11853_v5  ;;  %9120 = vmatpush1.bf16.msra.mxu1 %v11856_v6  ;;  %v11943_v5 = vld [vmem:[%s13800_s11 + $0x5c0] ss:$16 sps:$4 sm:$0xff]   ;;  %v11946_v6 = vld [vmem:[%s13800_s11 + $0x5c8] ss:$16 sps:$4 sm:$0xff]  }
  0xb5   : > { %8272 = vmatprep.subr.bf16.mxu0 %v11861_v7  ;;  %9132 = vmatprep.subr.bf16.mxu1 %v11864_v8  ;;  %v11951_v7 = vld [vmem:[%s13800_s11 + $0x5e4] ss:$16 sps:$4 sm:$0xff]   ;;  %v11954_v8 = vld [vmem:[%s13800_s11 + $0x5ec] ss:$16 sps:$4 sm:$0xff]  }
  0xb7   : > { %8262 = vmatmul.mubr.bf16.vlgmr.msra.gmra.mrb[0].mxu0 %v10129_v9  ;;  %9122 = vmatmul.mubr.bf16.vlgmr.msra.gmra.mrb[0].mxu1 %v10129_v9  ;;  %v11949_v9 = vld [vmem:[%s13800_s11 + $0x5e0] ss:$16 sps:$4 sm:$0xff]  }
  0xb8   : > { %8273 = vmatpush1.bf16.msra.mxu0 %v11859_v10  ;;  %9133 = vmatpush1.bf16.msra.mxu1 %v11862_v11  ;;  %v11952_v10 = vld [vmem:[%s13800_s11 + $0x5e8] ss:$16 sps:$4 sm:$0xff]   ;;  %v11957_v11 = vld [vmem:[%s13800_s11 + $0x604] ss:$16 sps:$4 sm:$0xff]  }
  0xb9   : > { %8274 = vmatprep.subr.bf16.mxu0 %v11867_v12  ;;  %9134 = vmatprep.subr.bf16.mxu1 %v11870_v13  ;;  %v11960_v12 = vld [vmem:[%s13800_s11 + $0x60c] ss:$16 sps:$4 sm:$0xff]   ;;  %v11955_v13 = vld [vmem:[%s13800_s11 + $0x600] ss:$16 sps:$4 sm:$0xff]  }
  0xba   : > { %8304 = vmatprep.mubr.bf16.mxu0 %v10132_v16  ;;  %9164 = vmatprep.mubr.bf16.mxu1 %v10132_v16  ;;  %v11958_v16 = vld [vmem:[%s13800_s11 + $0x608] ss:$16 sps:$4 sm:$0xff]  }
  0xbc   : > { %8275 = vmatpush1.bf16.msra.mxu0 %v11865_v17  ;;  %9135 = vmatpush1.bf16.msra.mxu1 %v11868_v18  ;;  %v10131_v17 = vcombine.low %v13963_v14, %v13968_v15  ;;  %v14039_v18 = vld [vmem:[%s15387_s0 + $0x18] sm:$0xff] }
  0xbd   : > { %8276 = vmatprep.subr.bf16.mxu0 %v11873_v19  ;;  %9136 = vmatprep.subr.bf16.mxu1 %v11876_v20  ;;  %v14044_v19 = vld [vmem:[%s15387_s0 + $0xb8] sm:$0xff]  ;;  %v11963_v20 = vld [vmem:[%s13800_s11 + $0x624] ss:$16 sps:$4 sm:$0xff]  }
  0xbe   : > { %v11966_v14 = vld [vmem:[%s13800_s11 + $0x62c] ss:$16 sps:$4 sm:$0xff]   ;;  %v10134_v15 = vcombine.high %v14039_v18, %v14044_v19 }
  0xc0   : > { %8277 = vmatpush1.bf16.msra.mxu0 %v11871_v21  ;;  %9137 = vmatpush1.bf16.msra.mxu1 %v11874_v22  ;;  %v11961_v21 = vld [vmem:[%s13800_s11 + $0x620] ss:$16 sps:$4 sm:$0xff]   ;;  %v11964_v22 = vld [vmem:[%s13800_s11 + $0x628] ss:$16 sps:$4 sm:$0xff]  }
  0xc1   : > { %8278 = vmatprep.subr.bf16.mxu0 %v11879_v23  ;;  %9138 = vmatprep.subr.bf16.mxu1 %v11882_v24  ;;  %v11969_v23 = vld [vmem:[%s13800_s11 + $0x644] ss:$16 sps:$4 sm:$0xff]   ;;  %v11972_v24 = vld [vmem:[%s13800_s11 + $0x64c] ss:$16 sps:$4 sm:$0xff]  }
  0xc4   : > { %8279 = vmatpush1.bf16.msra.mxu0 %v11877_v25  ;;  %9139 = vmatpush1.bf16.msra.mxu1 %v11880_v26  ;;  %v11967_v25 = vld [vmem:[%s13800_s11 + $0x640] ss:$16 sps:$4 sm:$0xff]   ;;  %v11970_v26 = vld [vmem:[%s13800_s11 + $0x648] ss:$16 sps:$4 sm:$0xff]  }
  0xc5   : > { %8280 = vmatprep.subr.bf16.mxu0 %v11885_v27  ;;  %9140 = vmatprep.subr.bf16.mxu1 %v11888_v28  ;;  %v11975_v27 = vld [vmem:[%s13800_s11 + $0x664] ss:$16 sps:$4 sm:$0xff]   ;;  %v11978_v28 = vld [vmem:[%s13800_s11 + $0x66c] ss:$16 sps:$4 sm:$0xff]  }
  0xc8   : > { %8281 = vmatpush1.bf16.msra.mxu0 %v11883_v29  ;;  %9141 = vmatpush1.bf16.msra.mxu1 %v11886_v30  ;;  %v11973_v29 = vld [vmem:[%s13800_s11 + $0x660] ss:$16 sps:$4 sm:$0xff]   ;;  %v11976_v30 = vld [vmem:[%s13800_s11 + $0x668] ss:$16 sps:$4 sm:$0xff]  }
  0xc9   : > { %8282 = vmatprep.subr.bf16.mxu0 %v11891_v31  ;;  %9142 = vmatprep.subr.bf16.mxu1 %v11894_v32  ;;  %v11981_v31 = vld [vmem:[%s13800_s11 + $0x684] ss:$16 sps:$4 sm:$0xff]   ;;  %v11984_v32 = vld [vmem:[%s13800_s11 + $0x68c] ss:$16 sps:$4 sm:$0xff]  }
  0xcc   : > { %8283 = vmatpush1.bf16.msra.mxu0 %v11889_v33  ;;  %9143 = vmatpush1.bf16.msra.mxu1 %v11892_v34  ;;  %v11979_v33 = vld [vmem:[%s13800_s11 + $0x680] ss:$16 sps:$4 sm:$0xff]   ;;  %v11982_v34 = vld [vmem:[%s13800_s11 + $0x688] ss:$16 sps:$4 sm:$0xff]  }
  0xcd   : > { %8284 = vmatprep.subr.bf16.mxu0 %v11897_v35  ;;  %9144 = vmatprep.subr.bf16.mxu1 %v11900_v36  ;;  %v11987_v35 = vld [vmem:[%s13800_s11 + $0x6a4] ss:$16 sps:$4 sm:$0xff]   ;;  %v11990_v36 = vld [vmem:[%s13800_s11 + $0x6ac] ss:$16 sps:$4 sm:$0xff]  }
  0xd0   : > { %8285 = vmatpush1.bf16.msra.mxu0 %v11895_v37  ;;  %9145 = vmatpush1.bf16.msra.mxu1 %v11898_v38  ;;  %v11985_v37 = vld [vmem:[%s13800_s11 + $0x6a0] ss:$16 sps:$4 sm:$0xff]   ;;  %v11988_v38 = vld [vmem:[%s13800_s11 + $0x6a8] ss:$16 sps:$4 sm:$0xff]  }
  0xd1   : > { %8286 = vmatprep.subr.bf16.mxu0 %v11903_v39  ;;  %9146 = vmatprep.subr.bf16.mxu1 %v11906_v40  ;;  %v11993_v39 = vld [vmem:[%s13800_s11 + $0x6c4] ss:$16 sps:$4 sm:$0xff]   ;;  %v11996_v40 = vld [vmem:[%s13800_s11 + $0x6cc] ss:$16 sps:$4 sm:$0xff]  }
  0xd4   : > { %8287 = vmatpush1.bf16.msra.mxu0 %v11901_v41  ;;  %9147 = vmatpush1.bf16.msra.mxu1 %v11904_v42  ;;  %v11991_v41 = vld [vmem:[%s13800_s11 + $0x6c0] ss:$16 sps:$4 sm:$0xff]   ;;  %v11994_v42 = vld [vmem:[%s13800_s11 + $0x6c8] ss:$16 sps:$4 sm:$0xff]  }
  0xd5   : > { %8288 = vmatprep.subr.bf16.mxu0 %v11909_v43  ;;  %9148 = vmatprep.subr.bf16.mxu1 %v11912_v44  ;;  %v11999_v43 = vld [vmem:[%s13800_s11 + $0x6e4] ss:$16 sps:$4 sm:$0xff]   ;;  %v12002_v44 = vld [vmem:[%s13800_s11 + $0x6ec] ss:$16 sps:$4 sm:$0xff]  }
  0xd8   : > { %8289 = vmatpush1.bf16.msra.mxu0 %v11907_v45  ;;  %9149 = vmatpush1.bf16.msra.mxu1 %v11910_v46  ;;  %v11997_v45 = vld [vmem:[%s13800_s11 + $0x6e0] ss:$16 sps:$4 sm:$0xff]   ;;  %v12000_v46 = vld [vmem:[%s13800_s11 + $0x6e8] ss:$16 sps:$4 sm:$0xff]  }
  0xd9   : > { %8290 = vmatprep.subr.bf16.mxu0 %v11915_v47  ;;  %9150 = vmatprep.subr.bf16.mxu1 %v11918_v48  ;;  %v12005_v47 = vld [vmem:[%s13800_s11 + $0x704] ss:$16 sps:$4 sm:$0xff]   ;;  %v12008_v48 = vld [vmem:[%s13800_s11 + $0x70c] ss:$16 sps:$4 sm:$0xff]  }
  0xdc   : > { %8291 = vmatpush1.bf16.msra.mxu0 %v11913_v49  ;;  %9151 = vmatpush1.bf16.msra.mxu1 %v11916_v50  ;;  %v12003_v49 = vld [vmem:[%s13800_s11 + $0x700] ss:$16 sps:$4 sm:$0xff]   ;;  %v12006_v50 = vld [vmem:[%s13800_s11 + $0x708] ss:$16 sps:$4 sm:$0xff]  }
  0xdd   : > { %8292 = vmatprep.subr.bf16.mxu0 %v11921_v51  ;;  %9152 = vmatprep.subr.bf16.mxu1 %v11924_v52  ;;  %v12011_v51 = vld [vmem:[%s13800_s11 + $0x724] ss:$16 sps:$4 sm:$0xff]   ;;  %v12014_v52 = vld [vmem:[%s13800_s11 + $0x72c] ss:$16 sps:$4 sm:$0xff]  }
  0xe0   : > { %8293 = vmatpush1.bf16.msra.mxu0 %v11919_v53  ;;  %9153 = vmatpush1.bf16.msra.mxu1 %v11922_v54  ;;  %v12009_v53 = vld [vmem:[%s13800_s11 + $0x720] ss:$16 sps:$4 sm:$0xff]   ;;  %v12012_v54 = vld [vmem:[%s13800_s11 + $0x728] ss:$16 sps:$4 sm:$0xff]  }
  0xe1   : > { %8294 = vmatprep.subr.bf16.mxu0 %v11927_v55  ;;  %9154 = vmatprep.subr.bf16.mxu1 %v11930_v56  ;;  %v12017_v55 = vld [vmem:[%s13800_s11 + $0x744] ss:$16 sps:$4 sm:$0xff]   ;;  %v12020_v56 = vld [vmem:[%s13800_s11 + $0x74c] ss:$16 sps:$4 sm:$0xff]  }
  0xe4   : > { %8295 = vmatpush1.bf16.msra.mxu0 %v11925_v57  ;;  %9155 = vmatpush1.bf16.msra.mxu1 %v11928_v58  ;;  %v12015_v57 = vld [vmem:[%s13800_s11 + $0x740] ss:$16 sps:$4 sm:$0xff]   ;;  %v12018_v58 = vld [vmem:[%s13800_s11 + $0x748] ss:$16 sps:$4 sm:$0xff]  }
  0xe5   : > { %8296 = vmatprep.subr.bf16.mxu0 %v11933_v59  ;;  %9156 = vmatprep.subr.bf16.mxu1 %v11936_v60  ;;  %v12023_v59 = vld [vmem:[%s13800_s11 + $0x764] ss:$16 sps:$4 sm:$0xff]   ;;  %v12026_v60 = vld [vmem:[%s13800_s11 + $0x76c] ss:$16 sps:$4 sm:$0xff]  }
  0xe8   : > { %8297 = vmatpush1.bf16.msra.mxu0 %v11931_v61  ;;  %9157 = vmatpush1.bf16.msra.mxu1 %v11934_v62  ;;  %v12021_v61 = vld [vmem:[%s13800_s11 + $0x760] ss:$16 sps:$4 sm:$0xff]   ;;  %v12024_v62 = vld [vmem:[%s13800_s11 + $0x768] ss:$16 sps:$4 sm:$0xff]  }
  0xe9   : > { %8298 = vmatprep.subr.bf16.mxu0 %v11939_v63  ;;  %9158 = vmatprep.subr.bf16.mxu1 %v11942_v0  ;;  %v12029_v63 = vld [vmem:[%s13800_s11 + $0x784] ss:$16 sps:$4 sm:$0xff]   ;;  %v12032_v0 = vld [vmem:[%s13800_s11 + $0x78c] ss:$16 sps:$4 sm:$0xff]  }
  0xec   : > { %8299 = vmatpush1.bf16.msra.mxu0 %v11937_v1  ;;  %9159 = vmatpush1.bf16.msra.mxu1 %v11940_v2  ;;  %v12027_v1 = vld [vmem:[%s13800_s11 + $0x780] ss:$16 sps:$4 sm:$0xff]   ;;  %v12030_v2 = vld [vmem:[%s13800_s11 + $0x788] ss:$16 sps:$4 sm:$0xff]  }
  0xed   : > { %8300 = vmatprep.subr.bf16.mxu0 %v11945_v3  ;;  %9160 = vmatprep.subr.bf16.mxu1 %v11948_v4  ;;  %v12035_v3 = vld [vmem:[%s13800_s11 + $0x7a4] ss:$16 sps:$4 sm:$0xff]   ;;  %v12038_v4 = vld [vmem:[%s13800_s11 + $0x7ac] ss:$16 sps:$4 sm:$0xff]  }
  0xf0   : > { %8301 = vmatpush1.bf16.msra.mxu0 %v11943_v5  ;;  %9161 = vmatpush1.bf16.msra.mxu1 %v11946_v6  ;;  %v12033_v5 = vld [vmem:[%s13800_s11 + $0x7a0] ss:$16 sps:$4 sm:$0xff]   ;;  %v12036_v6 = vld [vmem:[%s13800_s11 + $0x7a8] ss:$16 sps:$4 sm:$0xff]  }
  0xf1   : > { %8302 = vmatprep.subr.bf16.mxu0 %v11951_v7  ;;  %9162 = vmatprep.subr.bf16.mxu1 %v11954_v8  ;;  %v12041_v7 = vld [vmem:[%s13800_s11 + $0x7c4] ss:$16 sps:$4 sm:$0xff]   ;;  %v12044_v8 = vld [vmem:[%s13800_s11 + $0x7cc] ss:$16 sps:$4 sm:$0xff]  }
  0xf4   : > { %8303 = vmatpush1.bf16.msra.mxu0 %v11949_v9  ;;  %9163 = vmatpush1.bf16.msra.mxu1 %v11952_v10  ;;  %v12039_v9 = vld [vmem:[%s13800_s11 + $0x7c0] ss:$16 sps:$4 sm:$0xff]   ;;  %v12042_v10 = vld [vmem:[%s13800_s11 + $0x7c8] ss:$16 sps:$4 sm:$0xff]  }
  0xf5   : > { %8315 = vmatprep.subr.bf16.mxu0 %v11957_v11  ;;  %9175 = vmatprep.subr.bf16.mxu1 %v11960_v12  ;;  %v12047_v11 = vld [vmem:[%s13800_s11 + $0x7e4] ss:$16 sps:$4 sm:$0xff]   ;;  %v12050_v12 = vld [vmem:[%s13800_s11 + $0x7ec] ss:$16 sps:$4 sm:$0xff]  }
  0xf7   : > { %8305 = vmatmul.mubr.bf16.vlgmr.msra.gmra.mrb[0].mxu0 %v10131_v17  ;;  %9165 = vmatmul.mubr.bf16.vlgmr.msra.gmra.mrb[0].mxu1 %v10131_v17  ;;  %v12053_v17 = vld [vmem:[%s13800_s11 + $0x804] ss:$16 sps:$4 sm:$0xff]  }
  0xf8   : > { %8316 = vmatpush1.bf16.msra.mxu0 %v11955_v13  ;;  %9176 = vmatpush1.bf16.msra.mxu1 %v11958_v16  ;;  %v12045_v13 = vld [vmem:[%s13800_s11 + $0x7e0] ss:$16 sps:$4 sm:$0xff]   ;;  %v12048_v16 = vld [vmem:[%s13800_s11 + $0x7e8] ss:$16 sps:$4 sm:$0xff]  }
  0xf9   : > { %8317 = vmatprep.subr.bf16.mxu0 %v11963_v20  ;;  %9177 = vmatprep.subr.bf16.mxu1 %v11966_v14  ;;  %v12056_v20 = vld [vmem:[%s13800_s11 + $0x80c] ss:$16 sps:$4 sm:$0xff]   ;;  %v14113_v14 = vld [vmem:[%s15387_s0 + $0x20] sm:$0xff] }
  0xfa   : > { %8347 = vmatprep.mubr.bf16.mxu0 %v10134_v15  ;;  %9207 = vmatprep.mubr.bf16.mxu1 %v10134_v15  ;;  %v10133_v15 = vcombine.low %v14039_v18, %v14044_v19  ;;  %v12057_v19 = vld [vmem:[%s13800_s11 + $0x820] ss:$16 sps:$4 sm:$0xff]  }
  0xfc   : > { %8318 = vmatpush1.bf16.msra.mxu0 %v11961_v21  ;;  %9178 = vmatpush1.bf16.msra.mxu1 %v11964_v22  ;;  %v14120_v21 = vld [vmem:[%s15387_s0 + $0xc0] sm:$0xff] }
  0xfd   : > { %8319 = vmatprep.subr.bf16.mxu0 %v11969_v23  ;;  %9179 = vmatprep.subr.bf16.mxu1 %v11972_v24  ;;  %v12051_v22 = vld [vmem:[%s13800_s11 + $0x800] ss:$16 sps:$4 sm:$0xff]   ;;  %v12054_v23 = vld [vmem:[%s13800_s11 + $0x808] ss:$16 sps:$4 sm:$0xff]   ;;  %v12059_v24 = vld [vmem:[%s13800_s11 + $0x824] ss:$16 sps:$4 sm:$0xff]   ;;  %v10136_v18 = vcombine.high %v14113_v14, %v14120_v21 }
 0x100   : > { %8320 = vmatpush1.bf16.msra.mxu0 %v11967_v25  ;;  %9180 = vmatpush1.bf16.msra.mxu1 %v11970_v26  ;;  %v12062_v25 = vld [vmem:[%s13800_s11 + $0x82c] ss:$16 sps:$4 sm:$0xff]   ;;  %v12060_v26 = vld [vmem:[%s13800_s11 + $0x828] ss:$16 sps:$4 sm:$0xff]  }
 0x101   : > { %8321 = vmatprep.subr.bf16.mxu0 %v11975_v27  ;;  %9181 = vmatprep.subr.bf16.mxu1 %v11978_v28  ;;  %v12065_v27 = vld [vmem:[%s13800_s11 + $0x844] ss:$16 sps:$4 sm:$0xff]   ;;  %v12068_v28 = vld [vmem:[%s13800_s11 + $0x84c] ss:$16 sps:$4 sm:$0xff]  }
 0x104   : > { %8322 = vmatpush1.bf16.msra.mxu0 %v11973_v29  ;;  %9182 = vmatpush1.bf16.msra.mxu1 %v11976_v30  ;;  %v12063_v29 = vld [vmem:[%s13800_s11 + $0x840] ss:$16 sps:$4 sm:$0xff]   ;;  %v12066_v30 = vld [vmem:[%s13800_s11 + $0x848] ss:$16 sps:$4 sm:$0xff]  }
 0x105   : > { %8323 = vmatprep.subr.bf16.mxu0 %v11981_v31  ;;  %9183 = vmatprep.subr.bf16.mxu1 %v11984_v32  ;;  %v12071_v31 = vld [vmem:[%s13800_s11 + $0x864] ss:$16 sps:$4 sm:$0xff]   ;;  %v12074_v32 = vld [vmem:[%s13800_s11 + $0x86c] ss:$16 sps:$4 sm:$0xff]  }
 0x108   : > { %8324 = vmatpush1.bf16.msra.mxu0 %v11979_v33  ;;  %9184 = vmatpush1.bf16.msra.mxu1 %v11982_v34  ;;  %v12069_v33 = vld [vmem:[%s13800_s11 + $0x860] ss:$16 sps:$4 sm:$0xff]   ;;  %v12072_v34 = vld [vmem:[%s13800_s11 + $0x868] ss:$16 sps:$4 sm:$0xff]  }
 0x109   : > { %8325 = vmatprep.subr.bf16.mxu0 %v11987_v35  ;;  %9185 = vmatprep.subr.bf16.mxu1 %v11990_v36  ;;  %v12077_v35 = vld [vmem:[%s13800_s11 + $0x884] ss:$16 sps:$4 sm:$0xff]   ;;  %v12080_v36 = vld [vmem:[%s13800_s11 + $0x88c] ss:$16 sps:$4 sm:$0xff]  }
 0x10c   : > { %8326 = vmatpush1.bf16.msra.mxu0 %v11985_v37  ;;  %9186 = vmatpush1.bf16.msra.mxu1 %v11988_v38  ;;  %v12075_v37 = vld [vmem:[%s13800_s11 + $0x880] ss:$16 sps:$4 sm:$0xff]   ;;  %v12078_v38 = vld [vmem:[%s13800_s11 + $0x888] ss:$16 sps:$4 sm:$0xff]  }
 0x10d   : > { %8327 = vmatprep.subr.bf16.mxu0 %v11993_v39  ;;  %9187 = vmatprep.subr.bf16.mxu1 %v11996_v40  ;;  %v12083_v39 = vld [vmem:[%s13800_s11 + $0x8a4] ss:$16 sps:$4 sm:$0xff]   ;;  %v12086_v40 = vld [vmem:[%s13800_s11 + $0x8ac] ss:$16 sps:$4 sm:$0xff]  }
 0x110   : > { %8328 = vmatpush1.bf16.msra.mxu0 %v11991_v41  ;;  %9188 = vmatpush1.bf16.msra.mxu1 %v11994_v42  ;;  %v12081_v41 = vld [vmem:[%s13800_s11 + $0x8a0] ss:$16 sps:$4 sm:$0xff]   ;;  %v12084_v42 = vld [vmem:[%s13800_s11 + $0x8a8] ss:$16 sps:$4 sm:$0xff]  }
 0x111   : > { %8329 = vmatprep.subr.bf16.mxu0 %v11999_v43  ;;  %9189 = vmatprep.subr.bf16.mxu1 %v12002_v44  ;;  %v12089_v43 = vld [vmem:[%s13800_s11 + $0x8c4] ss:$16 sps:$4 sm:$0xff]   ;;  %v12092_v44 = vld [vmem:[%s13800_s11 + $0x8cc] ss:$16 sps:$4 sm:$0xff]  }
 0x114   : > { %8330 = vmatpush1.bf16.msra.mxu0 %v11997_v45  ;;  %9190 = vmatpush1.bf16.msra.mxu1 %v12000_v46  ;;  %v12087_v45 = vld [vmem:[%s13800_s11 + $0x8c0] ss:$16 sps:$4 sm:$0xff]   ;;  %v12090_v46 = vld [vmem:[%s13800_s11 + $0x8c8] ss:$16 sps:$4 sm:$0xff]  }
 0x115   : > { %8331 = vmatprep.subr.bf16.mxu0 %v12005_v47  ;;  %9191 = vmatprep.subr.bf16.mxu1 %v12008_v48  ;;  %v12095_v47 = vld [vmem:[%s13800_s11 + $0x8e4] ss:$16 sps:$4 sm:$0xff]   ;;  %v12098_v48 = vld [vmem:[%s13800_s11 + $0x8ec] ss:$16 sps:$4 sm:$0xff]  }
 0x118   : > { %8332 = vmatpush1.bf16.msra.mxu0 %v12003_v49  ;;  %9192 = vmatpush1.bf16.msra.mxu1 %v12006_v50  ;;  %v12093_v49 = vld [vmem:[%s13800_s11 + $0x8e0] ss:$16 sps:$4 sm:$0xff]   ;;  %v12096_v50 = vld [vmem:[%s13800_s11 + $0x8e8] ss:$16 sps:$4 sm:$0xff]  }
 0x119   : > { %8333 = vmatprep.subr.bf16.mxu0 %v12011_v51  ;;  %9193 = vmatprep.subr.bf16.mxu1 %v12014_v52  ;;  %v12101_v51 = vld [vmem:[%s13800_s11 + $0x904] ss:$16 sps:$4 sm:$0xff]   ;;  %v12104_v52 = vld [vmem:[%s13800_s11 + $0x90c] ss:$16 sps:$4 sm:$0xff]  }
 0x11c   : > { %8334 = vmatpush1.bf16.msra.mxu0 %v12009_v53  ;;  %9194 = vmatpush1.bf16.msra.mxu1 %v12012_v54  ;;  %v12099_v53 = vld [vmem:[%s13800_s11 + $0x900] ss:$16 sps:$4 sm:$0xff]   ;;  %v12102_v54 = vld [vmem:[%s13800_s11 + $0x908] ss:$16 sps:$4 sm:$0xff]  }
 0x11d   : > { %8335 = vmatprep.subr.bf16.mxu0 %v12017_v55  ;;  %9195 = vmatprep.subr.bf16.mxu1 %v12020_v56  ;;  %v12107_v55 = vld [vmem:[%s13800_s11 + $0x924] ss:$16 sps:$4 sm:$0xff]   ;;  %v12110_v56 = vld [vmem:[%s13800_s11 + $0x92c] ss:$16 sps:$4 sm:$0xff]  }
 0x120   : > { %8336 = vmatpush1.bf16.msra.mxu0 %v12015_v57  ;;  %9196 = vmatpush1.bf16.msra.mxu1 %v12018_v58  ;;  %v12105_v57 = vld [vmem:[%s13800_s11 + $0x920] ss:$16 sps:$4 sm:$0xff]   ;;  %v12108_v58 = vld [vmem:[%s13800_s11 + $0x928] ss:$16 sps:$4 sm:$0xff]  }
 0x121   : > { %8337 = vmatprep.subr.bf16.mxu0 %v12023_v59  ;;  %9197 = vmatprep.subr.bf16.mxu1 %v12026_v60  ;;  %v12113_v59 = vld [vmem:[%s13800_s11 + $0x944] ss:$16 sps:$4 sm:$0xff]   ;;  %v12116_v60 = vld [vmem:[%s13800_s11 + $0x94c] ss:$16 sps:$4 sm:$0xff]  }
 0x124   : > { %8338 = vmatpush1.bf16.msra.mxu0 %v12021_v61  ;;  %9198 = vmatpush1.bf16.msra.mxu1 %v12024_v62  ;;  %v12111_v61 = vld [vmem:[%s13800_s11 + $0x940] ss:$16 sps:$4 sm:$0xff]   ;;  %v12114_v62 = vld [vmem:[%s13800_s11 + $0x948] ss:$16 sps:$4 sm:$0xff]  }
 0x125   : > { %8339 = vmatprep.subr.bf16.mxu0 %v12029_v63  ;;  %9199 = vmatprep.subr.bf16.mxu1 %v12032_v0  ;;  %v12119_v63 = vld [vmem:[%s13800_s11 + $0x964] ss:$16 sps:$4 sm:$0xff]   ;;  %v12122_v0 = vld [vmem:[%s13800_s11 + $0x96c] ss:$16 sps:$4 sm:$0xff]  }
 0x128   : > { %8340 = vmatpush1.bf16.msra.mxu0 %v12027_v1  ;;  %9200 = vmatpush1.bf16.msra.mxu1 %v12030_v2  ;;  %v12117_v1 = vld [vmem:[%s13800_s11 + $0x960] ss:$16 sps:$4 sm:$0xff]   ;;  %v12120_v2 = vld [vmem:[%s13800_s11 + $0x968] ss:$16 sps:$4 sm:$0xff]  }
 0x129   : > { %8341 = vmatprep.subr.bf16.mxu0 %v12035_v3  ;;  %9201 = vmatprep.subr.bf16.mxu1 %v12038_v4  ;;  %v12125_v3 = vld [vmem:[%s13800_s11 + $0x984] ss:$16 sps:$4 sm:$0xff]   ;;  %v12128_v4 = vld [vmem:[%s13800_s11 + $0x98c] ss:$16 sps:$4 sm:$0xff]  }
 0x12c   : > { %8342 = vmatpush1.bf16.msra.mxu0 %v12033_v5  ;;  %9202 = vmatpush1.bf16.msra.mxu1 %v12036_v6  ;;  %v12123_v5 = vld [vmem:[%s13800_s11 + $0x980] ss:$16 sps:$4 sm:$0xff]   ;;  %v12126_v6 = vld [vmem:[%s13800_s11 + $0x988] ss:$16 sps:$4 sm:$0xff]  }
 0x12d   : > { %8343 = vmatprep.subr.bf16.mxu0 %v12041_v7  ;;  %9203 = vmatprep.subr.bf16.mxu1 %v12044_v8  ;;  %v12131_v7 = vld [vmem:[%s13800_s11 + $0x9a4] ss:$16 sps:$4 sm:$0xff]   ;;  %v12134_v8 = vld [vmem:[%s13800_s11 + $0x9ac] ss:$16 sps:$4 sm:$0xff]  }
 0x130   : > { %8344 = vmatpush1.bf16.msra.mxu0 %v12039_v9  ;;  %9204 = vmatpush1.bf16.msra.mxu1 %v12042_v10  ;;  %v12129_v9 = vld [vmem:[%s13800_s11 + $0x9a0] ss:$16 sps:$4 sm:$0xff]   ;;  %v12132_v10 = vld [vmem:[%s13800_s11 + $0x9a8] ss:$16 sps:$4 sm:$0xff]  }
 0x131   : > { %8345 = vmatprep.subr.bf16.mxu0 %v12047_v11  ;;  %9205 = vmatprep.subr.bf16.mxu1 %v12050_v12  ;;  %v12137_v11 = vld [vmem:[%s13800_s11 + $0x9c4] ss:$16 sps:$4 sm:$0xff]   ;;  %v12140_v12 = vld [vmem:[%s13800_s11 + $0x9cc] ss:$16 sps:$4 sm:$0xff]  }
 0x134   : > { %8346 = vmatpush1.bf16.msra.mxu0 %v12045_v13  ;;  %9206 = vmatpush1.bf16.msra.mxu1 %v12048_v16  ;;  %v12135_v13 = vld [vmem:[%s13800_s11 + $0x9c0] ss:$16 sps:$4 sm:$0xff]   ;;  %v12138_v16 = vld [vmem:[%s13800_s11 + $0x9c8] ss:$16 sps:$4 sm:$0xff]  }
 0x135   : > { %8358 = vmatprep.subr.bf16.mxu0 %v12053_v17  ;;  %9218 = vmatprep.subr.bf16.mxu1 %v12056_v20  ;;  %v12143_v17 = vld [vmem:[%s13800_s11 + $0x9e4] ss:$16 sps:$4 sm:$0xff]   ;;  %v12146_v20 = vld [vmem:[%s13800_s11 + $0x9ec] ss:$16 sps:$4 sm:$0xff]  }
 0x137   : > { %8348 = vmatmul.mubr.bf16.vlgmr.msra.gmra.mrb[0].mxu0 %v10133_v15  ;;  %9208 = vmatmul.mubr.bf16.vlgmr.msra.gmra.mrb[0].mxu1 %v10133_v15  ;;  %v12141_v15 = vld [vmem:[%s13800_s11 + $0x9e0] ss:$16 sps:$4 sm:$0xff]  }
 0x138   : > { %8359 = vmatpush1.bf16.msra.mxu0 %v12051_v22  ;;  %9219 = vmatpush1.bf16.msra.mxu1 %v12054_v23  ;;  %v12144_v22 = vld [vmem:[%s13800_s11 + $0x9e8] ss:$16 sps:$4 sm:$0xff]   ;;  %v12149_v23 = vld [vmem:[%s13800_s11 + $0xa04] ss:$16 sps:$4 sm:$0xff]  }
 0x139   : > { %8360 = vmatprep.subr.bf16.mxu0 %v12059_v24  ;;  %9220 = vmatprep.subr.bf16.mxu1 %v12062_v25  ;;  %v12152_v24 = vld [vmem:[%s13800_s11 + $0xa0c] ss:$16 sps:$4 sm:$0xff]  }
 0x13a   : > { %8390 = vmatprep.mubr.bf16.mxu0 %v10136_v18  ;;  %9250 = vmatprep.mubr.bf16.mxu1 %v10136_v18  ;;  %v14191_v25 = vld [vmem:[%s15387_s0 + $0x28] sm:$0xff] }
 0x13b   : > { %v14196_v18 = vld [vmem:[%s15387_s0 + $0xc8] sm:$0xff] }
 0x13c   : > { %8361 = vmatpush1.bf16.msra.mxu0 %v12057_v19  ;;  %9221 = vmatpush1.bf16.msra.mxu1 %v12060_v26  ;;  %v10135_v19 = vcombine.low %v14113_v14, %v14120_v21  ;;  %v12147_v26 = vld [vmem:[%s13800_s11 + $0xa00] ss:$16 sps:$4 sm:$0xff]   ;;  %v12156_v21 = vld [vmem:[%s13800_s11 + $0xa28] ss:$16 sps:$4 sm:$0xff]  }
 0x13d   : > { %8362 = vmatprep.subr.bf16.mxu0 %v12065_v27  ;;  %9222 = vmatprep.subr.bf16.mxu1 %v12068_v28  ;;  %v12150_v27 = vld [vmem:[%s13800_s11 + $0xa08] ss:$16 sps:$4 sm:$0xff]   ;;  %v12155_v28 = vld [vmem:[%s13800_s11 + $0xa24] ss:$16 sps:$4 sm:$0xff]   ;;  %v12153_v14 = vld [vmem:[%s13800_s11 + $0xa20] ss:$16 sps:$4 sm:$0xff]  }
 0x140   : > { %8363 = vmatpush1.bf16.msra.mxu0 %v12063_v29  ;;  %9223 = vmatpush1.bf16.msra.mxu1 %v12066_v30  ;;  %v12158_v29 = vld [vmem:[%s13800_s11 + $0xa2c] ss:$16 sps:$4 sm:$0xff]   ;;  %v10138_v30 = vcombine.high %v14191_v25, %v14196_v18 }
 0x141   : > { %8364 = vmatprep.subr.bf16.mxu0 %v12071_v31  ;;  %9224 = vmatprep.subr.bf16.mxu1 %v12074_v32  ;;  %v12161_v31 = vld [vmem:[%s13800_s11 + $0xa44] ss:$16 sps:$4 sm:$0xff]   ;;  %v12164_v32 = vld [vmem:[%s13800_s11 + $0xa4c] ss:$16 sps:$4 sm:$0xff]  }
 0x144   : > { %8365 = vmatpush1.bf16.msra.mxu0 %v12069_v33  ;;  %9225 = vmatpush1.bf16.msra.mxu1 %v12072_v34  ;;  %v12159_v33 = vld [vmem:[%s13800_s11 + $0xa40] ss:$16 sps:$4 sm:$0xff]   ;;  %v12162_v34 = vld [vmem:[%s13800_s11 + $0xa48] ss:$16 sps:$4 sm:$0xff]  }
 0x145   : > { %8366 = vmatprep.subr.bf16.mxu0 %v12077_v35  ;;  %9226 = vmatprep.subr.bf16.mxu1 %v12080_v36  ;;  %v12167_v35 = vld [vmem:[%s13800_s11 + $0xa64] ss:$16 sps:$4 sm:$0xff]   ;;  %v12170_v36 = vld [vmem:[%s13800_s11 + $0xa6c] ss:$16 sps:$4 sm:$0xff]  }
 0x148   : > { %8367 = vmatpush1.bf16.msra.mxu0 %v12075_v37  ;;  %9227 = vmatpush1.bf16.msra.mxu1 %v12078_v38  ;;  %v12165_v37 = vld [vmem:[%s13800_s11 + $0xa60] ss:$16 sps:$4 sm:$0xff]   ;;  %v12168_v38 = vld [vmem:[%s13800_s11 + $0xa68] ss:$16 sps:$4 sm:$0xff]  }
 0x149   : > { %8368 = vmatprep.subr.bf16.mxu0 %v12083_v39  ;;  %9228 = vmatprep.subr.bf16.mxu1 %v12086_v40  ;;  %v12173_v39 = vld [vmem:[%s13800_s11 + $0xa84] ss:$16 sps:$4 sm:$0xff]   ;;  %v12176_v40 = vld [vmem:[%s13800_s11 + $0xa8c] ss:$16 sps:$4 sm:$0xff]  }
 0x14c   : > { %8369 = vmatpush1.bf16.msra.mxu0 %v12081_v41  ;;  %9229 = vmatpush1.bf16.msra.mxu1 %v12084_v42  ;;  %v12171_v41 = vld [vmem:[%s13800_s11 + $0xa80] ss:$16 sps:$4 sm:$0xff]   ;;  %v12174_v42 = vld [vmem:[%s13800_s11 + $0xa88] ss:$16 sps:$4 sm:$0xff]  }
 0x14d   : > { %8370 = vmatprep.subr.bf16.mxu0 %v12089_v43  ;;  %9230 = vmatprep.subr.bf16.mxu1 %v12092_v44  ;;  %v12179_v43 = vld [vmem:[%s13800_s11 + $0xaa4] ss:$16 sps:$4 sm:$0xff]   ;;  %v12182_v44 = vld [vmem:[%s13800_s11 + $0xaac] ss:$16 sps:$4 sm:$0xff]  }
 0x150   : > { %8371 = vmatpush1.bf16.msra.mxu0 %v12087_v45  ;;  %9231 = vmatpush1.bf16.msra.mxu1 %v12090_v46  ;;  %v12177_v45 = vld [vmem:[%s13800_s11 + $0xaa0] ss:$16 sps:$4 sm:$0xff]   ;;  %v12180_v46 = vld [vmem:[%s13800_s11 + $0xaa8] ss:$16 sps:$4 sm:$0xff]  }
 0x151   : > { %8372 = vmatprep.subr.bf16.mxu0 %v12095_v47  ;;  %9232 = vmatprep.subr.bf16.mxu1 %v12098_v48  ;;  %v12185_v47 = vld [vmem:[%s13800_s11 + $0xac4] ss:$16 sps:$4 sm:$0xff]   ;;  %v12188_v48 = vld [vmem:[%s13800_s11 + $0xacc] ss:$16 sps:$4 sm:$0xff]  }
 0x154   : > { %8373 = vmatpush1.bf16.msra.mxu0 %v12093_v49  ;;  %9233 = vmatpush1.bf16.msra.mxu1 %v12096_v50  ;;  %v12183_v49 = vld [vmem:[%s13800_s11 + $0xac0] ss:$16 sps:$4 sm:$0xff]   ;;  %v12186_v50 = vld [vmem:[%s13800_s11 + $0xac8] ss:$16 sps:$4 sm:$0xff]  }
 0x155   : > { %8374 = vmatprep.subr.bf16.mxu0 %v12101_v51  ;;  %9234 = vmatprep.subr.bf16.mxu1 %v12104_v52  ;;  %v12191_v51 = vld [vmem:[%s13800_s11 + $0xae4] ss:$16 sps:$4 sm:$0xff]   ;;  %v12194_v52 = vld [vmem:[%s13800_s11 + $0xaec] ss:$16 sps:$4 sm:$0xff]  }
 0x158   : > { %8375 = vmatpush1.bf16.msra.mxu0 %v12099_v53  ;;  %9235 = vmatpush1.bf16.msra.mxu1 %v12102_v54  ;;  %v12189_v53 = vld [vmem:[%s13800_s11 + $0xae0] ss:$16 sps:$4 sm:$0xff]   ;;  %v12192_v54 = vld [vmem:[%s13800_s11 + $0xae8] ss:$16 sps:$4 sm:$0xff]  }
 0x159   : > { %8376 = vmatprep.subr.bf16.mxu0 %v12107_v55  ;;  %9236 = vmatprep.subr.bf16.mxu1 %v12110_v56  ;;  %v12197_v55 = vld [vmem:[%s13800_s11 + $0xb04] ss:$16 sps:$4 sm:$0xff]   ;;  %v12200_v56 = vld [vmem:[%s13800_s11 + $0xb0c] ss:$16 sps:$4 sm:$0xff]  }
 0x15c   : > { %8377 = vmatpush1.bf16.msra.mxu0 %v12105_v57  ;;  %9237 = vmatpush1.bf16.msra.mxu1 %v12108_v58  ;;  %v12195_v57 = vld [vmem:[%s13800_s11 + $0xb00] ss:$16 sps:$4 sm:$0xff]   ;;  %v12198_v58 = vld [vmem:[%s13800_s11 + $0xb08] ss:$16 sps:$4 sm:$0xff]  }
 0x15d   : > { %8378 = vmatprep.subr.bf16.mxu0 %v12113_v59  ;;  %9238 = vmatprep.subr.bf16.mxu1 %v12116_v60  ;;  %v12203_v59 = vld [vmem:[%s13800_s11 + $0xb24] ss:$16 sps:$4 sm:$0xff]   ;;  %v12206_v60 = vld [vmem:[%s13800_s11 + $0xb2c] ss:$16 sps:$4 sm:$0xff]  }
 0x160   : > { %8379 = vmatpush1.bf16.msra.mxu0 %v12111_v61  ;;  %9239 = vmatpush1.bf16.msra.mxu1 %v12114_v62  ;;  %v12201_v61 = vld [vmem:[%s13800_s11 + $0xb20] ss:$16 sps:$4 sm:$0xff]   ;;  %v12204_v62 = vld [vmem:[%s13800_s11 + $0xb28] ss:$16 sps:$4 sm:$0xff]  }
 0x161   : > { %8380 = vmatprep.subr.bf16.mxu0 %v12119_v63  ;;  %9240 = vmatprep.subr.bf16.mxu1 %v12122_v0  ;;  %v12209_v63 = vld [vmem:[%s13800_s11 + $0xb44] ss:$16 sps:$4 sm:$0xff]   ;;  %v12212_v0 = vld [vmem:[%s13800_s11 + $0xb4c] ss:$16 sps:$4 sm:$0xff]  }
 0x164   : > { %8381 = vmatpush1.bf16.msra.mxu0 %v12117_v1  ;;  %9241 = vmatpush1.bf16.msra.mxu1 %v12120_v2  ;;  %v12207_v1 = vld [vmem:[%s13800_s11 + $0xb40] ss:$16 sps:$4 sm:$0xff]   ;;  %v12210_v2 = vld [vmem:[%s13800_s11 + $0xb48] ss:$16 sps:$4 sm:$0xff]  }
 0x165   : > { %8382 = vmatprep.subr.bf16.mxu0 %v12125_v3  ;;  %9242 = vmatprep.subr.bf16.mxu1 %v12128_v4  ;;  %v12215_v3 = vld [vmem:[%s13800_s11 + $0xb64] ss:$16 sps:$4 sm:$0xff]   ;;  %v12218_v4 = vld [vmem:[%s13800_s11 + $0xb6c] ss:$16 sps:$4 sm:$0xff]  }
 0x168   : > { %8383 = vmatpush1.bf16.msra.mxu0 %v12123_v5  ;;  %9243 = vmatpush1.bf16.msra.mxu1 %v12126_v6  ;;  %v12213_v5 = vld [vmem:[%s13800_s11 + $0xb60] ss:$16 sps:$4 sm:$0xff]   ;;  %v12216_v6 = vld [vmem:[%s13800_s11 + $0xb68] ss:$16 sps:$4 sm:$0xff]  }
 0x169   : > { %8384 = vmatprep.subr.bf16.mxu0 %v12131_v7  ;;  %9244 = vmatprep.subr.bf16.mxu1 %v12134_v8  ;;  %v12221_v7 = vld [vmem:[%s13800_s11 + $0xb84] ss:$16 sps:$4 sm:$0xff]   ;;  %v12224_v8 = vld [vmem:[%s13800_s11 + $0xb8c] ss:$16 sps:$4 sm:$0xff]  }
 0x16c   : > { %8385 = vmatpush1.bf16.msra.mxu0 %v12129_v9  ;;  %9245 = vmatpush1.bf16.msra.mxu1 %v12132_v10  ;;  %v12219_v9 = vld [vmem:[%s13800_s11 + $0xb80] ss:$16 sps:$4 sm:$0xff]   ;;  %v12222_v10 = vld [vmem:[%s13800_s11 + $0xb88] ss:$16 sps:$4 sm:$0xff]  }
 0x16d   : > { %8386 = vmatprep.subr.bf16.mxu0 %v12137_v11  ;;  %9246 = vmatprep.subr.bf16.mxu1 %v12140_v12  ;;  %v12227_v11 = vld [vmem:[%s13800_s11 + $0xba4] ss:$16 sps:$4 sm:$0xff]   ;;  %v12230_v12 = vld [vmem:[%s13800_s11 + $0xbac] ss:$16 sps:$4 sm:$0xff]  }
 0x170   : > { %8387 = vmatpush1.bf16.msra.mxu0 %v12135_v13  ;;  %9247 = vmatpush1.bf16.msra.mxu1 %v12138_v16  ;;  %v12225_v13 = vld [vmem:[%s13800_s11 + $0xba0] ss:$16 sps:$4 sm:$0xff]   ;;  %v12228_v16 = vld [vmem:[%s13800_s11 + $0xba8] ss:$16 sps:$4 sm:$0xff]  }
 0x171   : > { %8388 = vmatprep.subr.bf16.mxu0 %v12143_v17  ;;  %9248 = vmatprep.subr.bf16.mxu1 %v12146_v20  ;;  %v12233_v17 = vld [vmem:[%s13800_s11 + $0xbc4] ss:$16 sps:$4 sm:$0xff]   ;;  %v12236_v20 = vld [vmem:[%s13800_s11 + $0xbcc] ss:$16 sps:$4 sm:$0xff]  }
 0x174   : > { %8389 = vmatpush1.bf16.msra.mxu0 %v12141_v15  ;;  %9249 = vmatpush1.bf16.msra.mxu1 %v12144_v22  ;;  %v12231_v15 = vld [vmem:[%s13800_s11 + $0xbc0] ss:$16 sps:$4 sm:$0xff]   ;;  %v12234_v22 = vld [vmem:[%s13800_s11 + $0xbc8] ss:$16 sps:$4 sm:$0xff]  }
 0x175   : > { %8401 = vmatprep.subr.bf16.mxu0 %v12149_v23  ;;  %9261 = vmatprep.subr.bf16.mxu1 %v12152_v24  ;;  %v12239_v23 = vld [vmem:[%s13800_s11 + $0xbe4] ss:$16 sps:$4 sm:$0xff]   ;;  %v12242_v24 = vld [vmem:[%s13800_s11 + $0xbec] ss:$16 sps:$4 sm:$0xff]  }
 0x177   : > { %8391 = vmatmul.mubr.bf16.vlgmr.msra.gmra.mrb[0].mxu0 %v10135_v19  ;;  %9251 = vmatmul.mubr.bf16.vlgmr.msra.gmra.mrb[0].mxu1 %v10135_v19  ;;  %v12237_v19 = vld [vmem:[%s13800_s11 + $0xbe0] ss:$16 sps:$4 sm:$0xff]  }
 0x178   : > { %8402 = vmatpush1.bf16.msra.mxu0 %v12147_v26  ;;  %9262 = vmatpush1.bf16.msra.mxu1 %v12150_v27  ;;  %v12240_v26 = vld [vmem:[%s13800_s11 + $0xbe8] ss:$16 sps:$4 sm:$0xff]   ;;  %v12245_v27 = vld [vmem:[%s13800_s11 + $0xc04] ss:$16 sps:$4 sm:$0xff]  }
 0x179   : > { %8403 = vmatprep.subr.bf16.mxu0 %v12155_v28  ;;  %9263 = vmatprep.subr.bf16.mxu1 %v12158_v29  ;;  %v12248_v28 = vld [vmem:[%s13800_s11 + $0xc0c] ss:$16 sps:$4 sm:$0xff]   ;;  %v14269_v29 = vld [vmem:[%s15387_s0 + $0x30] sm:$0xff] }
 0x17a   : > { %8433 = vmatprep.mubr.bf16.mxu0 %v10138_v30  ;;  %9293 = vmatprep.mubr.bf16.mxu1 %v10138_v30  ;;  %v14274_v30 = vld [vmem:[%s15387_s0 + $0xd0] sm:$0xff] }
 0x17c   : > { %8404 = vmatpush1.bf16.msra.mxu0 %v12153_v14  ;;  %9264 = vmatpush1.bf16.msra.mxu1 %v12156_v21  ;;  %v10137_v14 = vcombine.low %v14191_v25, %v14196_v18  ;;  %v12243_v21 = vld [vmem:[%s13800_s11 + $0xc00] ss:$16 sps:$4 sm:$0xff]   ;;  %v12252_v18 = vld [vmem:[%s13800_s11 + $0xc28] ss:$16 sps:$4 sm:$0xff]  }
 0x17d   : > { %8405 = vmatprep.subr.bf16.mxu0 %v12161_v31  ;;  %9265 = vmatprep.subr.bf16.mxu1 %v12164_v32  ;;  %v12246_v31 = vld [vmem:[%s13800_s11 + $0xc08] ss:$16 sps:$4 sm:$0xff]   ;;  %v12251_v32 = vld [vmem:[%s13800_s11 + $0xc24] ss:$16 sps:$4 sm:$0xff]   ;;  %v12249_v25 = vld [vmem:[%s13800_s11 + $0xc20] ss:$16 sps:$4 sm:$0xff]  }
 0x180   : > { %8406 = vmatpush1.bf16.msra.mxu0 %v12159_v33  ;;  %9266 = vmatpush1.bf16.msra.mxu1 %v12162_v34  ;;  %v12254_v33 = vld [vmem:[%s13800_s11 + $0xc2c] ss:$16 sps:$4 sm:$0xff]   ;;  %v10140_v34 = vcombine.high %v14269_v29, %v14274_v30 }
 0x181   : > { %8407 = vmatprep.subr.bf16.mxu0 %v12167_v35  ;;  %9267 = vmatprep.subr.bf16.mxu1 %v12170_v36  ;;  %v12257_v35 = vld [vmem:[%s13800_s11 + $0xc44] ss:$16 sps:$4 sm:$0xff]   ;;  %v12260_v36 = vld [vmem:[%s13800_s11 + $0xc4c] ss:$16 sps:$4 sm:$0xff]  }
 0x184   : > { %8408 = vmatpush1.bf16.msra.mxu0 %v12165_v37  ;;  %9268 = vmatpush1.bf16.msra.mxu1 %v12168_v38  ;;  %v12255_v37 = vld [vmem:[%s13800_s11 + $0xc40] ss:$16 sps:$4 sm:$0xff]   ;;  %v12258_v38 = vld [vmem:[%s13800_s11 + $0xc48] ss:$16 sps:$4 sm:$0xff]  }
 0x185   : > { %8409 = vmatprep.subr.bf16.mxu0 %v12173_v39  ;;  %9269 = vmatprep.subr.bf16.mxu1 %v12176_v40  ;;  %v12263_v39 = vld [vmem:[%s13800_s11 + $0xc64] ss:$16 sps:$4 sm:$0xff]   ;;  %v12266_v40 = vld [vmem:[%s13800_s11 + $0xc6c] ss:$16 sps:$4 sm:$0xff]  }
 0x188   : > { %8410 = vmatpush1.bf16.msra.mxu0 %v12171_v41  ;;  %9270 = vmatpush1.bf16.msra.mxu1 %v12174_v42  ;;  %v12261_v41 = vld [vmem:[%s13800_s11 + $0xc60] ss:$16 sps:$4 sm:$0xff]   ;;  %v12264_v42 = vld [vmem:[%s13800_s11 + $0xc68] ss:$16 sps:$4 sm:$0xff]  }
 0x189   : > { %8411 = vmatprep.subr.bf16.mxu0 %v12179_v43  ;;  %9271 = vmatprep.subr.bf16.mxu1 %v12182_v44  ;;  %v12269_v43 = vld [vmem:[%s13800_s11 + $0xc84] ss:$16 sps:$4 sm:$0xff]   ;;  %v12272_v44 = vld [vmem:[%s13800_s11 + $0xc8c] ss:$16 sps:$4 sm:$0xff]  }
 0x18c   : > { %8412 = vmatpush1.bf16.msra.mxu0 %v12177_v45  ;;  %9272 = vmatpush1.bf16.msra.mxu1 %v12180_v46  ;;  %v12267_v45 = vld [vmem:[%s13800_s11 + $0xc80] ss:$16 sps:$4 sm:$0xff]   ;;  %v12270_v46 = vld [vmem:[%s13800_s11 + $0xc88] ss:$16 sps:$4 sm:$0xff]  }
 0x18d   : > { %8413 = vmatprep.subr.bf16.mxu0 %v12185_v47  ;;  %9273 = vmatprep.subr.bf16.mxu1 %v12188_v48  ;;  %v12275_v47 = vld [vmem:[%s13800_s11 + $0xca4] ss:$16 sps:$4 sm:$0xff]   ;;  %v12278_v48 = vld [vmem:[%s13800_s11 + $0xcac] ss:$16 sps:$4 sm:$0xff]  }
 0x190   : > { %8414 = vmatpush1.bf16.msra.mxu0 %v12183_v49  ;;  %9274 = vmatpush1.bf16.msra.mxu1 %v12186_v50  ;;  %v12273_v49 = vld [vmem:[%s13800_s11 + $0xca0] ss:$16 sps:$4 sm:$0xff]   ;;  %v12276_v50 = vld [vmem:[%s13800_s11 + $0xca8] ss:$16 sps:$4 sm:$0xff]  }
 0x191   : > { %8415 = vmatprep.subr.bf16.mxu0 %v12191_v51  ;;  %9275 = vmatprep.subr.bf16.mxu1 %v12194_v52  ;;  %v12281_v51 = vld [vmem:[%s13800_s11 + $0xcc4] ss:$16 sps:$4 sm:$0xff]   ;;  %v12284_v52 = vld [vmem:[%s13800_s11 + $0xccc] ss:$16 sps:$4 sm:$0xff]  }
 0x194   : > { %8416 = vmatpush1.bf16.msra.mxu0 %v12189_v53  ;;  %9276 = vmatpush1.bf16.msra.mxu1 %v12192_v54  ;;  %v12279_v53 = vld [vmem:[%s13800_s11 + $0xcc0] ss:$16 sps:$4 sm:$0xff]   ;;  %v12282_v54 = vld [vmem:[%s13800_s11 + $0xcc8] ss:$16 sps:$4 sm:$0xff]  }
 0x195   : > { %8417 = vmatprep.subr.bf16.mxu0 %v12197_v55  ;;  %9277 = vmatprep.subr.bf16.mxu1 %v12200_v56  ;;  %v12287_v55 = vld [vmem:[%s13800_s11 + $0xce4] ss:$16 sps:$4 sm:$0xff]   ;;  %v12290_v56 = vld [vmem:[%s13800_s11 + $0xcec] ss:$16 sps:$4 sm:$0xff]  }
 0x198   : > { %8418 = vmatpush1.bf16.msra.mxu0 %v12195_v57  ;;  %9278 = vmatpush1.bf16.msra.mxu1 %v12198_v58  ;;  %v12285_v57 = vld [vmem:[%s13800_s11 + $0xce0] ss:$16 sps:$4 sm:$0xff]   ;;  %v12288_v58 = vld [vmem:[%s13800_s11 + $0xce8] ss:$16 sps:$4 sm:$0xff]  }
 0x199   : > { %8419 = vmatprep.subr.bf16.mxu0 %v12203_v59  ;;  %9279 = vmatprep.subr.bf16.mxu1 %v12206_v60  ;;  %v12293_v59 = vld [vmem:[%s13800_s11 + $0xd04] ss:$16 sps:$4 sm:$0xff]   ;;  %v12296_v60 = vld [vmem:[%s13800_s11 + $0xd0c] ss:$16 sps:$4 sm:$0xff]  }
 0x19c   : > { %8420 = vmatpush1.bf16.msra.mxu0 %v12201_v61  ;;  %9280 = vmatpush1.bf16.msra.mxu1 %v12204_v62  ;;  %v12291_v61 = vld [vmem:[%s13800_s11 + $0xd00] ss:$16 sps:$4 sm:$0xff]   ;;  %v12294_v62 = vld [vmem:[%s13800_s11 + $0xd08] ss:$16 sps:$4 sm:$0xff]  }
 0x19d   : > { %8421 = vmatprep.subr.bf16.mxu0 %v12209_v63  ;;  %9281 = vmatprep.subr.bf16.mxu1 %v12212_v0  ;;  %v12299_v63 = vld [vmem:[%s13800_s11 + $0xd24] ss:$16 sps:$4 sm:$0xff]   ;;  %v12302_v0 = vld [vmem:[%s13800_s11 + $0xd2c] ss:$16 sps:$4 sm:$0xff]  }
 0x1a0   : > { %8422 = vmatpush1.bf16.msra.mxu0 %v12207_v1  ;;  %9282 = vmatpush1.bf16.msra.mxu1 %v12210_v2  ;;  %v12297_v1 = vld [vmem:[%s13800_s11 + $0xd20] ss:$16 sps:$4 sm:$0xff]   ;;  %v12300_v2 = vld [vmem:[%s13800_s11 + $0xd28] ss:$16 sps:$4 sm:$0xff]  }
 0x1a1   : > { %8423 = vmatprep.subr.bf16.mxu0 %v12215_v3  ;;  %9283 = vmatprep.subr.bf16.mxu1 %v12218_v4  ;;  %v12305_v3 = vld [vmem:[%s13800_s11 + $0xd44] ss:$16 sps:$4 sm:$0xff]   ;;  %v12308_v4 = vld [vmem:[%s13800_s11 + $0xd4c] ss:$16 sps:$4 sm:$0xff]  }
 0x1a4   : > { %8424 = vmatpush1.bf16.msra.mxu0 %v12213_v5  ;;  %9284 = vmatpush1.bf16.msra.mxu1 %v12216_v6  ;;  %v12303_v5 = vld [vmem:[%s13800_s11 + $0xd40] ss:$16 sps:$4 sm:$0xff]   ;;  %v12306_v6 = vld [vmem:[%s13800_s11 + $0xd48] ss:$16 sps:$4 sm:$0xff]  }
 0x1a5   : > { %8425 = vmatprep.subr.bf16.mxu0 %v12221_v7  ;;  %9285 = vmatprep.subr.bf16.mxu1 %v12224_v8  ;;  %v12311_v7 = vld [vmem:[%s13800_s11 + $0xd64] ss:$16 sps:$4 sm:$0xff]   ;;  %v12314_v8 = vld [vmem:[%s13800_s11 + $0xd6c] ss:$16 sps:$4 sm:$0xff]  }
 0x1a8   : > { %8426 = vmatpush1.bf16.msra.mxu0 %v12219_v9  ;;  %9286 = vmatpush1.bf16.msra.mxu1 %v12222_v10  ;;  %v12309_v9 = vld [vmem:[%s13800_s11 + $0xd60] ss:$16 sps:$4 sm:$0xff]   ;;  %v12312_v10 = vld [vmem:[%s13800_s11 + $0xd68] ss:$16 sps:$4 sm:$0xff]  }
 0x1a9   : > { %8427 = vmatprep.subr.bf16.mxu0 %v12227_v11  ;;  %9287 = vmatprep.subr.bf16.mxu1 %v12230_v12  ;;  %v12317_v11 = vld [vmem:[%s13800_s11 + $0xd84] ss:$16 sps:$4 sm:$0xff]   ;;  %v12320_v12 = vld [vmem:[%s13800_s11 + $0xd8c] ss:$16 sps:$4 sm:$0xff]  }
 0x1ac   : > { %8428 = vmatpush1.bf16.msra.mxu0 %v12225_v13  ;;  %9288 = vmatpush1.bf16.msra.mxu1 %v12228_v16  ;;  %v12315_v13 = vld [vmem:[%s13800_s11 + $0xd80] ss:$16 sps:$4 sm:$0xff]   ;;  %v12318_v16 = vld [vmem:[%s13800_s11 + $0xd88] ss:$16 sps:$4 sm:$0xff]  }
 0x1ad   : > { %8429 = vmatprep.subr.bf16.mxu0 %v12233_v17  ;;  %9289 = vmatprep.subr.bf16.mxu1 %v12236_v20  ;;  %v12323_v17 = vld [vmem:[%s13800_s11 + $0xda4] ss:$16 sps:$4 sm:$0xff]   ;;  %v12326_v20 = vld [vmem:[%s13800_s11 + $0xdac] ss:$16 sps:$4 sm:$0xff]  }
 0x1b0   : > { %8430 = vmatpush1.bf16.msra.mxu0 %v12231_v15  ;;  %9290 = vmatpush1.bf16.msra.mxu1 %v12234_v22  ;;  %v12321_v15 = vld [vmem:[%s13800_s11 + $0xda0] ss:$16 sps:$4 sm:$0xff]   ;;  %v12324_v22 = vld [vmem:[%s13800_s11 + $0xda8] ss:$16 sps:$4 sm:$0xff]  }
 0x1b1   : > { %8431 = vmatprep.subr.bf16.mxu0 %v12239_v23  ;;  %9291 = vmatprep.subr.bf16.mxu1 %v12242_v24  ;;  %v12329_v23 = vld [vmem:[%s13800_s11 + $0xdc4] ss:$16 sps:$4 sm:$0xff]   ;;  %v12332_v24 = vld [vmem:[%s13800_s11 + $0xdcc] ss:$16 sps:$4 sm:$0xff]  }
 0x1b4   : > { %8432 = vmatpush1.bf16.msra.mxu0 %v12237_v19  ;;  %9292 = vmatpush1.bf16.msra.mxu1 %v12240_v26  ;;  %v12327_v19 = vld [vmem:[%s13800_s11 + $0xdc0] ss:$16 sps:$4 sm:$0xff]   ;;  %v12330_v26 = vld [vmem:[%s13800_s11 + $0xdc8] ss:$16 sps:$4 sm:$0xff]  }
 0x1b5   : > { %8444 = vmatprep.subr.bf16.mxu0 %v12245_v27  ;;  %9304 = vmatprep.subr.bf16.mxu1 %v12248_v28  ;;  %v12335_v27 = vld [vmem:[%s13800_s11 + $0xde4] ss:$16 sps:$4 sm:$0xff]   ;;  %v12338_v28 = vld [vmem:[%s13800_s11 + $0xdec] ss:$16 sps:$4 sm:$0xff]  }
 0x1b7   : > { %8434 = vmatmul.mubr.bf16.vlgmr.msra.gmra.mrb[0].mxu0 %v10137_v14  ;;  %9294 = vmatmul.mubr.bf16.vlgmr.msra.gmra.mrb[0].mxu1 %v10137_v14  ;;  %v12333_v14 = vld [vmem:[%s13800_s11 + $0xde0] ss:$16 sps:$4 sm:$0xff]  }
 0x1b8   : > { %8445 = vmatpush1.bf16.msra.mxu0 %v12243_v21  ;;  %9305 = vmatpush1.bf16.msra.mxu1 %v12246_v31  ;;  %v12336_v21 = vld [vmem:[%s13800_s11 + $0xde8] ss:$16 sps:$4 sm:$0xff]   ;;  %v12341_v31 = vld [vmem:[%s13800_s11 + $0xe04] ss:$16 sps:$4 sm:$0xff]  }
 0x1b9   : > { %8446 = vmatprep.subr.bf16.mxu0 %v12251_v32  ;;  %9306 = vmatprep.subr.bf16.mxu1 %v12254_v33  ;;  %v12344_v32 = vld [vmem:[%s13800_s11 + $0xe0c] ss:$16 sps:$4 sm:$0xff]  }
 0x1ba   : > { %8476 = vmatprep.mubr.bf16.mxu0 %v10140_v34  ;;  %9336 = vmatprep.mubr.bf16.mxu1 %v10140_v34  ;;  %v14347_v33 = vld [vmem:[%s15387_s0 + $0x38] sm:$0xff] }
 0x1bb   : > { %v14352_v34 = vld [vmem:[%s15387_s0 + $0xd8] sm:$0xff] }
 0x1bc   : > { %8447 = vmatpush1.bf16.msra.mxu0 %v12249_v25  ;;  %9307 = vmatpush1.bf16.msra.mxu1 %v12252_v18  ;;  %v10139_v25 = vcombine.low %v14269_v29, %v14274_v30  ;;  %v12339_v18 = vld [vmem:[%s13800_s11 + $0xe00] ss:$16 sps:$4 sm:$0xff]   ;;  %v12348_v30 = vld [vmem:[%s13800_s11 + $0xe28] ss:$16 sps:$4 sm:$0xff]  }
 0x1bd   : > { %8448 = vmatprep.subr.bf16.mxu0 %v12257_v35  ;;  %9308 = vmatprep.subr.bf16.mxu1 %v12260_v36  ;;  %v12342_v35 = vld [vmem:[%s13800_s11 + $0xe08] ss:$16 sps:$4 sm:$0xff]   ;;  %v12347_v36 = vld [vmem:[%s13800_s11 + $0xe24] ss:$16 sps:$4 sm:$0xff]   ;;  %v12345_v29 = vld [vmem:[%s13800_s11 + $0xe20] ss:$16 sps:$4 sm:$0xff]  }
 0x1c0   : > { %8449 = vmatpush1.bf16.msra.mxu0 %v12255_v37  ;;  %9309 = vmatpush1.bf16.msra.mxu1 %v12258_v38  ;;  %v12350_v37 = vld [vmem:[%s13800_s11 + $0xe2c] ss:$16 sps:$4 sm:$0xff]   ;;  %v10142_v38 = vcombine.high %v14347_v33, %v14352_v34 }
 0x1c1   : > { %8450 = vmatprep.subr.bf16.mxu0 %v12263_v39  ;;  %9310 = vmatprep.subr.bf16.mxu1 %v12266_v40  ;;  %v12353_v39 = vld [vmem:[%s13800_s11 + $0xe44] ss:$16 sps:$4 sm:$0xff]   ;;  %v12356_v40 = vld [vmem:[%s13800_s11 + $0xe4c] ss:$16 sps:$4 sm:$0xff]  }
 0x1c4   : > { %8451 = vmatpush1.bf16.msra.mxu0 %v12261_v41  ;;  %9311 = vmatpush1.bf16.msra.mxu1 %v12264_v42  ;;  %v12351_v41 = vld [vmem:[%s13800_s11 + $0xe40] ss:$16 sps:$4 sm:$0xff]   ;;  %v12354_v42 = vld [vmem:[%s13800_s11 + $0xe48] ss:$16 sps:$4 sm:$0xff]  }
 0x1c5   : > { %8452 = vmatprep.subr.bf16.mxu0 %v12269_v43  ;;  %9312 = vmatprep.subr.bf16.mxu1 %v12272_v44  ;;  %v12359_v43 = vld [vmem:[%s13800_s11 + $0xe64] ss:$16 sps:$4 sm:$0xff]   ;;  %v12362_v44 = vld [vmem:[%s13800_s11 + $0xe6c] ss:$16 sps:$4 sm:$0xff]  }
 0x1c8   : > { %8453 = vmatpush1.bf16.msra.mxu0 %v12267_v45  ;;  %9313 = vmatpush1.bf16.msra.mxu1 %v12270_v46  ;;  %v12357_v45 = vld [vmem:[%s13800_s11 + $0xe60] ss:$16 sps:$4 sm:$0xff]   ;;  %v12360_v46 = vld [vmem:[%s13800_s11 + $0xe68] ss:$16 sps:$4 sm:$0xff]  }
 0x1c9   : > { %8454 = vmatprep.subr.bf16.mxu0 %v12275_v47  ;;  %9314 = vmatprep.subr.bf16.mxu1 %v12278_v48  ;;  %v12365_v47 = vld [vmem:[%s13800_s11 + $0xe84] ss:$16 sps:$4 sm:$0xff]   ;;  %v12368_v48 = vld [vmem:[%s13800_s11 + $0xe8c] ss:$16 sps:$4 sm:$0xff]  }
 0x1cc   : > { %8455 = vmatpush1.bf16.msra.mxu0 %v12273_v49  ;;  %9315 = vmatpush1.bf16.msra.mxu1 %v12276_v50  ;;  %v12363_v49 = vld [vmem:[%s13800_s11 + $0xe80] ss:$16 sps:$4 sm:$0xff]   ;;  %v12366_v50 = vld [vmem:[%s13800_s11 + $0xe88] ss:$16 sps:$4 sm:$0xff]  }
 0x1cd   : > { %8456 = vmatprep.subr.bf16.mxu0 %v12281_v51  ;;  %9316 = vmatprep.subr.bf16.mxu1 %v12284_v52  ;;  %v12371_v51 = vld [vmem:[%s13800_s11 + $0xea4] ss:$16 sps:$4 sm:$0xff]   ;;  %v12374_v52 = vld [vmem:[%s13800_s11 + $0xeac] ss:$16 sps:$4 sm:$0xff]  }
 0x1d0   : > { %8457 = vmatpush1.bf16.msra.mxu0 %v12279_v53  ;;  %9317 = vmatpush1.bf16.msra.mxu1 %v12282_v54  ;;  %v12369_v53 = vld [vmem:[%s13800_s11 + $0xea0] ss:$16 sps:$4 sm:$0xff]   ;;  %v12372_v54 = vld [vmem:[%s13800_s11 + $0xea8] ss:$16 sps:$4 sm:$0xff]  }
 0x1d1   : > { %8458 = vmatprep.subr.bf16.mxu0 %v12287_v55  ;;  %9318 = vmatprep.subr.bf16.mxu1 %v12290_v56  ;;  %v12377_v55 = vld [vmem:[%s13800_s11 + $0xec4] ss:$16 sps:$4 sm:$0xff]   ;;  %v12380_v56 = vld [vmem:[%s13800_s11 + $0xecc] ss:$16 sps:$4 sm:$0xff]  }
 0x1d4   : > { %8459 = vmatpush1.bf16.msra.mxu0 %v12285_v57  ;;  %9319 = vmatpush1.bf16.msra.mxu1 %v12288_v58  ;;  %v12375_v57 = vld [vmem:[%s13800_s11 + $0xec0] ss:$16 sps:$4 sm:$0xff]   ;;  %v12378_v58 = vld [vmem:[%s13800_s11 + $0xec8] ss:$16 sps:$4 sm:$0xff]  }
 0x1d5   : > { %8460 = vmatprep.subr.bf16.mxu0 %v12293_v59  ;;  %9320 = vmatprep.subr.bf16.mxu1 %v12296_v60  ;;  %v12383_v59 = vld [vmem:[%s13800_s11 + $0xee4] ss:$16 sps:$4 sm:$0xff]   ;;  %v12386_v60 = vld [vmem:[%s13800_s11 + $0xeec] ss:$16 sps:$4 sm:$0xff]  }
 0x1d8   : > { %8461 = vmatpush1.bf16.msra.mxu0 %v12291_v61  ;;  %9321 = vmatpush1.bf16.msra.mxu1 %v12294_v62  ;;  %v12381_v61 = vld [vmem:[%s13800_s11 + $0xee0] ss:$16 sps:$4 sm:$0xff]   ;;  %v12384_v62 = vld [vmem:[%s13800_s11 + $0xee8] ss:$16 sps:$4 sm:$0xff]  }
 0x1d9   : > { %8462 = vmatprep.subr.bf16.mxu0 %v12299_v63  ;;  %9322 = vmatprep.subr.bf16.mxu1 %v12302_v0  ;;  %v12389_v63 = vld [vmem:[%s13800_s11 + $0xf04] ss:$16 sps:$4 sm:$0xff]   ;;  %v12392_v0 = vld [vmem:[%s13800_s11 + $0xf0c] ss:$16 sps:$4 sm:$0xff]  }
 0x1dc   : > { %8463 = vmatpush1.bf16.msra.mxu0 %v12297_v1  ;;  %9323 = vmatpush1.bf16.msra.mxu1 %v12300_v2  ;;  %v12387_v1 = vld [vmem:[%s13800_s11 + $0xf00] ss:$16 sps:$4 sm:$0xff]   ;;  %v12390_v2 = vld [vmem:[%s13800_s11 + $0xf08] ss:$16 sps:$4 sm:$0xff]  }
 0x1dd   : > { %8464 = vmatprep.subr.bf16.mxu0 %v12305_v3  ;;  %9324 = vmatprep.subr.bf16.mxu1 %v12308_v4  ;;  %v12395_v3 = vld [vmem:[%s13800_s11 + $0xf24] ss:$16 sps:$4 sm:$0xff]   ;;  %v12398_v4 = vld [vmem:[%s13800_s11 + $0xf2c] ss:$16 sps:$4 sm:$0xff]  }
 0x1e0   : > { %8465 = vmatpush1.bf16.msra.mxu0 %v12303_v5  ;;  %9325 = vmatpush1.bf16.msra.mxu1 %v12306_v6  ;;  %v12393_v5 = vld [vmem:[%s13800_s11 + $0xf20] ss:$16 sps:$4 sm:$0xff]   ;;  %v12396_v6 = vld [vmem:[%s13800_s11 + $0xf28] ss:$16 sps:$4 sm:$0xff]  }
 0x1e1   : > { %8466 = vmatprep.subr.bf16.mxu0 %v12311_v7  ;;  %9326 = vmatprep.subr.bf16.mxu1 %v12314_v8  ;;  %v12401_v7 = vld [vmem:[%s13800_s11 + $0xf44] ss:$16 sps:$4 sm:$0xff]   ;;  %v12404_v8 = vld [vmem:[%s13800_s11 + $0xf4c] ss:$16 sps:$4 sm:$0xff]  }
 0x1e4   : > { %8467 = vmatpush1.bf16.msra.mxu0 %v12309_v9  ;;  %9327 = vmatpush1.bf16.msra.mxu1 %v12312_v10  ;;  %v12399_v9 = vld [vmem:[%s13800_s11 + $0xf40] ss:$16 sps:$4 sm:$0xff]   ;;  %v12402_v10 = vld [vmem:[%s13800_s11 + $0xf48] ss:$16 sps:$4 sm:$0xff]  }
 0x1e5   : > { %8468 = vmatprep.subr.bf16.mxu0 %v12317_v11  ;;  %9328 = vmatprep.subr.bf16.mxu1 %v12320_v12  ;;  %v12407_v11 = vld [vmem:[%s13800_s11 + $0xf64] ss:$16 sps:$4 sm:$0xff]   ;;  %v12410_v12 = vld [vmem:[%s13800_s11 + $0xf6c] ss:$16 sps:$4 sm:$0xff]  }
 0x1e8   : > { %8469 = vmatpush1.bf16.msra.mxu0 %v12315_v13  ;;  %9329 = vmatpush1.bf16.msra.mxu1 %v12318_v16  ;;  %v12405_v13 = vld [vmem:[%s13800_s11 + $0xf60] ss:$16 sps:$4 sm:$0xff]   ;;  %v12408_v16 = vld [vmem:[%s13800_s11 + $0xf68] ss:$16 sps:$4 sm:$0xff]  }
 0x1e9   : > { %8470 = vmatprep.subr.bf16.mxu0 %v12323_v17  ;;  %9330 = vmatprep.subr.bf16.mxu1 %v12326_v20  ;;  %v12413_v17 = vld [vmem:[%s13800_s11 + $0xf84] ss:$16 sps:$4 sm:$0xff]   ;;  %v12416_v20 = vld [vmem:[%s13800_s11 + $0xf8c] ss:$16 sps:$4 sm:$0xff]  }
 0x1ec   : > { %8471 = vmatpush1.bf16.msra.mxu0 %v12321_v15  ;;  %9331 = vmatpush1.bf16.msra.mxu1 %v12324_v22  ;;  %v12411_v15 = vld [vmem:[%s13800_s11 + $0xf80] ss:$16 sps:$4 sm:$0xff]   ;;  %v12414_v22 = vld [vmem:[%s13800_s11 + $0xf88] ss:$16 sps:$4 sm:$0xff]  }
 0x1ed   : > { %8472 = vmatprep.subr.bf16.mxu0 %v12329_v23  ;;  %9332 = vmatprep.subr.bf16.mxu1 %v12332_v24  ;;  %v12419_v23 = vld [vmem:[%s13800_s11 + $0xfa4] ss:$16 sps:$4 sm:$0xff]   ;;  %v12422_v24 = vld [vmem:[%s13800_s11 + $0xfac] ss:$16 sps:$4 sm:$0xff]  }
 0x1f0   : > { %8473 = vmatpush1.bf16.msra.mxu0 %v12327_v19  ;;  %9333 = vmatpush1.bf16.msra.mxu1 %v12330_v26  ;;  %v12417_v19 = vld [vmem:[%s13800_s11 + $0xfa0] ss:$16 sps:$4 sm:$0xff]   ;;  %v12420_v26 = vld [vmem:[%s13800_s11 + $0xfa8] ss:$16 sps:$4 sm:$0xff]  }
 0x1f1   : > { %8474 = vmatprep.subr.bf16.mxu0 %v12335_v27  ;;  %9334 = vmatprep.subr.bf16.mxu1 %v12338_v28  ;;  %v12425_v27 = vld [vmem:[%s13800_s11 + $0xfc4] ss:$16 sps:$4 sm:$0xff]   ;;  %v12428_v28 = vld [vmem:[%s13800_s11 + $0xfcc] ss:$16 sps:$4 sm:$0xff]  }
 0x1f4   : > { %8475 = vmatpush1.bf16.msra.mxu0 %v12333_v14  ;;  %9335 = vmatpush1.bf16.msra.mxu1 %v12336_v21  ;;  %v12423_v14 = vld [vmem:[%s13800_s11 + $0xfc0] ss:$16 sps:$4 sm:$0xff]   ;;  %v12426_v21 = vld [vmem:[%s13800_s11 + $0xfc8] ss:$16 sps:$4 sm:$0xff]  }
 0x1f5   : > { %8487 = vmatprep.subr.bf16.mxu0 %v12341_v31  ;;  %9347 = vmatprep.subr.bf16.mxu1 %v12344_v32  ;;  %v12431_v31 = vld [vmem:[%s13800_s11 + $0xfe4] ss:$16 sps:$4 sm:$0xff]   ;;  %v12434_v32 = vld [vmem:[%s13800_s11 + $0xfec] ss:$16 sps:$4 sm:$0xff]  }
 0x1f7   : > { %8477 = vmatmul.mubr.bf16.vlgmr.msra.gmra.mrb[0].mxu0 %v10139_v25  ;;  %9337 = vmatmul.mubr.bf16.vlgmr.msra.gmra.mrb[0].mxu1 %v10139_v25  ;;  %v12429_v25 = vld [vmem:[%s13800_s11 + $0xfe0] ss:$16 sps:$4 sm:$0xff]  }
 0x1f8   : > { %8488 = vmatpush1.bf16.msra.mxu0 %v12339_v18  ;;  %9348 = vmatpush1.bf16.msra.mxu1 %v12342_v35  ;;  %v12432_v18 = vld [vmem:[%s13800_s11 + $0xfe8] ss:$16 sps:$4 sm:$0xff]   ;;  %v12437_v35 = vld [vmem:[%s13800_s11 + $0x1004] ss:$16 sps:$4 sm:$0xff]  }
 0x1f9   : > { %8489 = vmatprep.subr.bf16.mxu0 %v12347_v36  ;;  %9349 = vmatprep.subr.bf16.mxu1 %v12350_v37  ;;  %v12440_v36 = vld [vmem:[%s13800_s11 + $0x100c] ss:$16 sps:$4 sm:$0xff]   ;;  %v14425_v37 = vld [vmem:[%s15387_s0 + $0x40] sm:$0xff] }
 0x1fa   : > { %8519 = vmatprep.mubr.bf16.mxu0 %v10142_v38  ;;  %9379 = vmatprep.mubr.bf16.mxu1 %v10142_v38  ;;  %v14430_v38 = vld [vmem:[%s15387_s0 + $0xe0] sm:$0xff] }
 0x1fc   : > { %8490 = vmatpush1.bf16.msra.mxu0 %v12345_v29  ;;  %9350 = vmatpush1.bf16.msra.mxu1 %v12348_v30  ;;  %v10141_v29 = vcombine.low %v14347_v33, %v14352_v34  ;;  %v12435_v30 = vld [vmem:[%s13800_s11 + $0x1000] ss:$16 sps:$4 sm:$0xff]   ;;  %v12444_v34 = vld [vmem:[%s13800_s11 + $0x1028] ss:$16 sps:$4 sm:$0xff]  }
 0x1fd   : > { %8491 = vmatprep.subr.bf16.mxu0 %v12353_v39  ;;  %9351 = vmatprep.subr.bf16.mxu1 %v12356_v40  ;;  %v12438_v39 = vld [vmem:[%s13800_s11 + $0x1008] ss:$16 sps:$4 sm:$0xff]   ;;  %v12443_v40 = vld [vmem:[%s13800_s11 + $0x1024] ss:$16 sps:$4 sm:$0xff]   ;;  %v12441_v33 = vld [vmem:[%s13800_s11 + $0x1020] ss:$16 sps:$4 sm:$0xff]  }
 0x200   : > { %8492 = vmatpush1.bf16.msra.mxu0 %v12351_v41  ;;  %9352 = vmatpush1.bf16.msra.mxu1 %v12354_v42  ;;  %v12446_v41 = vld [vmem:[%s13800_s11 + $0x102c] ss:$16 sps:$4 sm:$0xff]   ;;  %v10144_v42 = vcombine.high %v14425_v37, %v14430_v38 }
 0x201   : > { %8493 = vmatprep.subr.bf16.mxu0 %v12359_v43  ;;  %9353 = vmatprep.subr.bf16.mxu1 %v12362_v44  ;;  %v12449_v43 = vld [vmem:[%s13800_s11 + $0x1044] ss:$16 sps:$4 sm:$0xff]   ;;  %v12452_v44 = vld [vmem:[%s13800_s11 + $0x104c] ss:$16 sps:$4 sm:$0xff]  }
 0x204   : > { %8494 = vmatpush1.bf16.msra.mxu0 %v12357_v45  ;;  %9354 = vmatpush1.bf16.msra.mxu1 %v12360_v46  ;;  %v12447_v45 = vld [vmem:[%s13800_s11 + $0x1040] ss:$16 sps:$4 sm:$0xff]   ;;  %v12450_v46 = vld [vmem:[%s13800_s11 + $0x1048] ss:$16 sps:$4 sm:$0xff]  }
 0x205   : > { %8495 = vmatprep.subr.bf16.mxu0 %v12365_v47  ;;  %9355 = vmatprep.subr.bf16.mxu1 %v12368_v48  ;;  %v12455_v47 = vld [vmem:[%s13800_s11 + $0x1064] ss:$16 sps:$4 sm:$0xff]   ;;  %v12458_v48 = vld [vmem:[%s13800_s11 + $0x106c] ss:$16 sps:$4 sm:$0xff]  }
 0x208   : > { %8496 = vmatpush1.bf16.msra.mxu0 %v12363_v49  ;;  %9356 = vmatpush1.bf16.msra.mxu1 %v12366_v50  ;;  %v12453_v49 = vld [vmem:[%s13800_s11 + $0x1060] ss:$16 sps:$4 sm:$0xff]   ;;  %v12456_v50 = vld [vmem:[%s13800_s11 + $0x1068] ss:$16 sps:$4 sm:$0xff]  }
 0x209   : > { %8497 = vmatprep.subr.bf16.mxu0 %v12371_v51  ;;  %9357 = vmatprep.subr.bf16.mxu1 %v12374_v52  ;;  %v12461_v51 = vld [vmem:[%s13800_s11 + $0x1084] ss:$16 sps:$4 sm:$0xff]   ;;  %v12464_v52 = vld [vmem:[%s13800_s11 + $0x108c] ss:$16 sps:$4 sm:$0xff]  }
 0x20c   : > { %8498 = vmatpush1.bf16.msra.mxu0 %v12369_v53  ;;  %9358 = vmatpush1.bf16.msra.mxu1 %v12372_v54  ;;  %v12459_v53 = vld [vmem:[%s13800_s11 + $0x1080] ss:$16 sps:$4 sm:$0xff]   ;;  %v12462_v54 = vld [vmem:[%s13800_s11 + $0x1088] ss:$16 sps:$4 sm:$0xff]  }
 0x20d   : > { %8499 = vmatprep.subr.bf16.mxu0 %v12377_v55  ;;  %9359 = vmatprep.subr.bf16.mxu1 %v12380_v56  ;;  %v12467_v55 = vld [vmem:[%s13800_s11 + $0x10a4] ss:$16 sps:$4 sm:$0xff]   ;;  %v12470_v56 = vld [vmem:[%s13800_s11 + $0x10ac] ss:$16 sps:$4 sm:$0xff]  }
 0x210   : > { %8500 = vmatpush1.bf16.msra.mxu0 %v12375_v57  ;;  %9360 = vmatpush1.bf16.msra.mxu1 %v12378_v58  ;;  %v12465_v57 = vld [vmem:[%s13800_s11 + $0x10a0] ss:$16 sps:$4 sm:$0xff]   ;;  %v12468_v58 = vld [vmem:[%s13800_s11 + $0x10a8] ss:$16 sps:$4 sm:$0xff]  }
 0x211   : > { %8501 = vmatprep.subr.bf16.mxu0 %v12383_v59  ;;  %9361 = vmatprep.subr.bf16.mxu1 %v12386_v60  ;;  %v12473_v59 = vld [vmem:[%s13800_s11 + $0x10c4] ss:$16 sps:$4 sm:$0xff]   ;;  %v12476_v60 = vld [vmem:[%s13800_s11 + $0x10cc] ss:$16 sps:$4 sm:$0xff]  }
 0x214   : > { %8502 = vmatpush1.bf16.msra.mxu0 %v12381_v61  ;;  %9362 = vmatpush1.bf16.msra.mxu1 %v12384_v62  ;;  %v12471_v61 = vld [vmem:[%s13800_s11 + $0x10c0] ss:$16 sps:$4 sm:$0xff]   ;;  %v12474_v62 = vld [vmem:[%s13800_s11 + $0x10c8] ss:$16 sps:$4 sm:$0xff]  }
 0x215   : > { %8503 = vmatprep.subr.bf16.mxu0 %v12389_v63  ;;  %9363 = vmatprep.subr.bf16.mxu1 %v12392_v0  ;;  %v12479_v63 = vld [vmem:[%s13800_s11 + $0x10e4] ss:$16 sps:$4 sm:$0xff]   ;;  %v12482_v0 = vld [vmem:[%s13800_s11 + $0x10ec] ss:$16 sps:$4 sm:$0xff]  }
 0x218   : > { %8504 = vmatpush1.bf16.msra.mxu0 %v12387_v1  ;;  %9364 = vmatpush1.bf16.msra.mxu1 %v12390_v2  ;;  %v12477_v1 = vld [vmem:[%s13800_s11 + $0x10e0] ss:$16 sps:$4 sm:$0xff]   ;;  %v12480_v2 = vld [vmem:[%s13800_s11 + $0x10e8] ss:$16 sps:$4 sm:$0xff]  }
 0x219   : > { %8505 = vmatprep.subr.bf16.mxu0 %v12395_v3  ;;  %9365 = vmatprep.subr.bf16.mxu1 %v12398_v4  ;;  %v12485_v3 = vld [vmem:[%s13800_s11 + $0x1104] ss:$16 sps:$4 sm:$0xff]   ;;  %v12488_v4 = vld [vmem:[%s13800_s11 + $0x110c] ss:$16 sps:$4 sm:$0xff]  }
 0x21c   : > { %8506 = vmatpush1.bf16.msra.mxu0 %v12393_v5  ;;  %9366 = vmatpush1.bf16.msra.mxu1 %v12396_v6  ;;  %v12483_v5 = vld [vmem:[%s13800_s11 + $0x1100] ss:$16 sps:$4 sm:$0xff]   ;;  %v12486_v6 = vld [vmem:[%s13800_s11 + $0x1108] ss:$16 sps:$4 sm:$0xff]  }
 0x21d   : > { %8507 = vmatprep.subr.bf16.mxu0 %v12401_v7  ;;  %9367 = vmatprep.subr.bf16.mxu1 %v12404_v8  ;;  %v12491_v7 = vld [vmem:[%s13800_s11 + $0x1124] ss:$16 sps:$4 sm:$0xff]   ;;  %v12494_v8 = vld [vmem:[%s13800_s11 + $0x112c] ss:$16 sps:$4 sm:$0xff]  }
 0x220   : > { %8508 = vmatpush1.bf16.msra.mxu0 %v12399_v9  ;;  %9368 = vmatpush1.bf16.msra.mxu1 %v12402_v10  ;;  %v12489_v9 = vld [vmem:[%s13800_s11 + $0x1120] ss:$16 sps:$4 sm:$0xff]   ;;  %v12492_v10 = vld [vmem:[%s13800_s11 + $0x1128] ss:$16 sps:$4 sm:$0xff]  }
 0x221   : > { %8509 = vmatprep.subr.bf16.mxu0 %v12407_v11  ;;  %9369 = vmatprep.subr.bf16.mxu1 %v12410_v12  ;;  %v12497_v11 = vld [vmem:[%s13800_s11 + $0x1144] ss:$16 sps:$4 sm:$0xff]   ;;  %v12500_v12 = vld [vmem:[%s13800_s11 + $0x114c] ss:$16 sps:$4 sm:$0xff]  }
 0x224   : > { %8510 = vmatpush1.bf16.msra.mxu0 %v12405_v13  ;;  %9370 = vmatpush1.bf16.msra.mxu1 %v12408_v16  ;;  %v12495_v13 = vld [vmem:[%s13800_s11 + $0x1140] ss:$16 sps:$4 sm:$0xff]   ;;  %v12498_v16 = vld [vmem:[%s13800_s11 + $0x1148] ss:$16 sps:$4 sm:$0xff]  }
 0x225   : > { %8511 = vmatprep.subr.bf16.mxu0 %v12413_v17  ;;  %9371 = vmatprep.subr.bf16.mxu1 %v12416_v20  ;;  %v12503_v17 = vld [vmem:[%s13800_s11 + $0x1164] ss:$16 sps:$4 sm:$0xff]   ;;  %v12506_v20 = vld [vmem:[%s13800_s11 + $0x116c] ss:$16 sps:$4 sm:$0xff]  }
 0x228   : > { %8512 = vmatpush1.bf16.msra.mxu0 %v12411_v15  ;;  %9372 = vmatpush1.bf16.msra.mxu1 %v12414_v22  ;;  %v12501_v15 = vld [vmem:[%s13800_s11 + $0x1160] ss:$16 sps:$4 sm:$0xff]   ;;  %v12504_v22 = vld [vmem:[%s13800_s11 + $0x1168] ss:$16 sps:$4 sm:$0xff]  }
 0x229   : > { %8513 = vmatprep.subr.bf16.mxu0 %v12419_v23  ;;  %9373 = vmatprep.subr.bf16.mxu1 %v12422_v24  ;;  %v12509_v23 = vld [vmem:[%s13800_s11 + $0x1184] ss:$16 sps:$4 sm:$0xff]   ;;  %v12512_v24 = vld [vmem:[%s13800_s11 + $0x118c] ss:$16 sps:$4 sm:$0xff]  }
 0x22c   : > { %8514 = vmatpush1.bf16.msra.mxu0 %v12417_v19  ;;  %9374 = vmatpush1.bf16.msra.mxu1 %v12420_v26  ;;  %v12507_v19 = vld [vmem:[%s13800_s11 + $0x1180] ss:$16 sps:$4 sm:$0xff]   ;;  %v12510_v26 = vld [vmem:[%s13800_s11 + $0x1188] ss:$16 sps:$4 sm:$0xff]  }
 0x22d   : > { %8515 = vmatprep.subr.bf16.mxu0 %v12425_v27  ;;  %9375 = vmatprep.subr.bf16.mxu1 %v12428_v28  ;;  %v12515_v27 = vld [vmem:[%s13800_s11 + $0x11a4] ss:$16 sps:$4 sm:$0xff]   ;;  %v12518_v28 = vld [vmem:[%s13800_s11 + $0x11ac] ss:$16 sps:$4 sm:$0xff]  }
 0x230   : > { %8516 = vmatpush1.bf16.msra.mxu0 %v12423_v14  ;;  %9376 = vmatpush1.bf16.msra.mxu1 %v12426_v21  ;;  %v12513_v14 = vld [vmem:[%s13800_s11 + $0x11a0] ss:$16 sps:$4 sm:$0xff]   ;;  %v12516_v21 = vld [vmem:[%s13800_s11 + $0x11a8] ss:$16 sps:$4 sm:$0xff]  }
 0x231   : > { %8517 = vmatprep.subr.bf16.mxu0 %v12431_v31  ;;  %9377 = vmatprep.subr.bf16.mxu1 %v12434_v32  ;;  %v12521_v31 = vld [vmem:[%s13800_s11 + $0x11c4] ss:$16 sps:$4 sm:$0xff]   ;;  %v12524_v32 = vld [vmem:[%s13800_s11 + $0x11cc] ss:$16 sps:$4 sm:$0xff]  }
 0x234   : > { %8518 = vmatpush1.bf16.msra.mxu0 %v12429_v25  ;;  %9378 = vmatpush1.bf16.msra.mxu1 %v12432_v18  ;;  %v12519_v25 = vld [vmem:[%s13800_s11 + $0x11c0] ss:$16 sps:$4 sm:$0xff]   ;;  %v12522_v18 = vld [vmem:[%s13800_s11 + $0x11c8] ss:$16 sps:$4 sm:$0xff]  }
 0x235   : > { %8530 = vmatprep.subr.bf16.mxu0 %v12437_v35  ;;  %9390 = vmatprep.subr.bf16.mxu1 %v12440_v36  ;;  %v12527_v35 = vld [vmem:[%s13800_s11 + $0x11e4] ss:$16 sps:$4 sm:$0xff]   ;;  %v12530_v36 = vld [vmem:[%s13800_s11 + $0x11ec] ss:$16 sps:$4 sm:$0xff]  }
 0x237   : > { %8520 = vmatmul.mubr.bf16.vlgmr.msra.gmra.mrb[0].mxu0 %v10141_v29  ;;  %9380 = vmatmul.mubr.bf16.vlgmr.msra.gmra.mrb[0].mxu1 %v10141_v29  ;;  %v12525_v29 = vld [vmem:[%s13800_s11 + $0x11e0] ss:$16 sps:$4 sm:$0xff]  }
 0x238   : > { %8531 = vmatpush1.bf16.msra.mxu0 %v12435_v30  ;;  %9391 = vmatpush1.bf16.msra.mxu1 %v12438_v39  ;;  %v12528_v30 = vld [vmem:[%s13800_s11 + $0x11e8] ss:$16 sps:$4 sm:$0xff]   ;;  %v12533_v39 = vld [vmem:[%s13800_s11 + $0x1204] ss:$16 sps:$4 sm:$0xff]  }
 0x239   : > { %8532 = vmatprep.subr.bf16.mxu0 %v12443_v40  ;;  %9392 = vmatprep.subr.bf16.mxu1 %v12446_v41  ;;  %v12536_v40 = vld [vmem:[%s13800_s11 + $0x120c] ss:$16 sps:$4 sm:$0xff]  }
 0x23a   : > { %8562 = vmatprep.mubr.bf16.mxu0 %v10144_v42  ;;  %9422 = vmatprep.mubr.bf16.mxu1 %v10144_v42  ;;  %v14503_v41 = vld [vmem:[%s15387_s0 + $0x48] sm:$0xff] }
 0x23b   : > { %v14508_v42 = vld [vmem:[%s15387_s0 + $0xe8] sm:$0xff] }
 0x23c   : > { %8533 = vmatpush1.bf16.msra.mxu0 %v12441_v33  ;;  %9393 = vmatpush1.bf16.msra.mxu1 %v12444_v34  ;;  %v10143_v33 = vcombine.low %v14425_v37, %v14430_v38  ;;  %v12531_v34 = vld [vmem:[%s13800_s11 + $0x1200] ss:$16 sps:$4 sm:$0xff]   ;;  %v12540_v38 = vld [vmem:[%s13800_s11 + $0x1228] ss:$16 sps:$4 sm:$0xff]  }
 0x23d   : > { %8534 = vmatprep.subr.bf16.mxu0 %v12449_v43  ;;  %9394 = vmatprep.subr.bf16.mxu1 %v12452_v44  ;;  %v12534_v43 = vld [vmem:[%s13800_s11 + $0x1208] ss:$16 sps:$4 sm:$0xff]   ;;  %v12539_v44 = vld [vmem:[%s13800_s11 + $0x1224] ss:$16 sps:$4 sm:$0xff]   ;;  %v12537_v37 = vld [vmem:[%s13800_s11 + $0x1220] ss:$16 sps:$4 sm:$0xff]  }
 0x240   : > { %8535 = vmatpush1.bf16.msra.mxu0 %v12447_v45  ;;  %9395 = vmatpush1.bf16.msra.mxu1 %v12450_v46  ;;  %v12542_v45 = vld [vmem:[%s13800_s11 + $0x122c] ss:$16 sps:$4 sm:$0xff]   ;;  %v10146_v46 = vcombine.high %v14503_v41, %v14508_v42 }
 0x241   : > { %8536 = vmatprep.subr.bf16.mxu0 %v12455_v47  ;;  %9396 = vmatprep.subr.bf16.mxu1 %v12458_v48  ;;  %v12545_v47 = vld [vmem:[%s13800_s11 + $0x1244] ss:$16 sps:$4 sm:$0xff]   ;;  %v12548_v48 = vld [vmem:[%s13800_s11 + $0x124c] ss:$16 sps:$4 sm:$0xff]  }
 0x244   : > { %8537 = vmatpush1.bf16.msra.mxu0 %v12453_v49  ;;  %9397 = vmatpush1.bf16.msra.mxu1 %v12456_v50  ;;  %v12543_v49 = vld [vmem:[%s13800_s11 + $0x1240] ss:$16 sps:$4 sm:$0xff]   ;;  %v12546_v50 = vld [vmem:[%s13800_s11 + $0x1248] ss:$16 sps:$4 sm:$0xff]  }
 0x245   : > { %8538 = vmatprep.subr.bf16.mxu0 %v12461_v51  ;;  %9398 = vmatprep.subr.bf16.mxu1 %v12464_v52  ;;  %v12551_v51 = vld [vmem:[%s13800_s11 + $0x1264] ss:$16 sps:$4 sm:$0xff]   ;;  %v12554_v52 = vld [vmem:[%s13800_s11 + $0x126c] ss:$16 sps:$4 sm:$0xff]  }
 0x248   : > { %8539 = vmatpush1.bf16.msra.mxu0 %v12459_v53  ;;  %9399 = vmatpush1.bf16.msra.mxu1 %v12462_v54  ;;  %v12549_v53 = vld [vmem:[%s13800_s11 + $0x1260] ss:$16 sps:$4 sm:$0xff]   ;;  %v12552_v54 = vld [vmem:[%s13800_s11 + $0x1268] ss:$16 sps:$4 sm:$0xff]  }
 0x249   : > { %8540 = vmatprep.subr.bf16.mxu0 %v12467_v55  ;;  %9400 = vmatprep.subr.bf16.mxu1 %v12470_v56  ;;  %v12557_v55 = vld [vmem:[%s13800_s11 + $0x1284] ss:$16 sps:$4 sm:$0xff]   ;;  %v12560_v56 = vld [vmem:[%s13800_s11 + $0x128c] ss:$16 sps:$4 sm:$0xff]  }
 0x24c   : > { %8541 = vmatpush1.bf16.msra.mxu0 %v12465_v57  ;;  %9401 = vmatpush1.bf16.msra.mxu1 %v12468_v58  ;;  %v12555_v57 = vld [vmem:[%s13800_s11 + $0x1280] ss:$16 sps:$4 sm:$0xff]   ;;  %v12558_v58 = vld [vmem:[%s13800_s11 + $0x1288] ss:$16 sps:$4 sm:$0xff]  }
 0x24d   : > { %8542 = vmatprep.subr.bf16.mxu0 %v12473_v59  ;;  %9402 = vmatprep.subr.bf16.mxu1 %v12476_v60  ;;  %v12563_v59 = vld [vmem:[%s13800_s11 + $0x12a4] ss:$16 sps:$4 sm:$0xff]   ;;  %v12566_v60 = vld [vmem:[%s13800_s11 + $0x12ac] ss:$16 sps:$4 sm:$0xff]  }
 0x250   : > { %8543 = vmatpush1.bf16.msra.mxu0 %v12471_v61  ;;  %9403 = vmatpush1.bf16.msra.mxu1 %v12474_v62  ;;  %v12561_v61 = vld [vmem:[%s13800_s11 + $0x12a0] ss:$16 sps:$4 sm:$0xff]   ;;  %v12564_v62 = vld [vmem:[%s13800_s11 + $0x12a8] ss:$16 sps:$4 sm:$0xff]  }
 0x251   : > { %8544 = vmatprep.subr.bf16.mxu0 %v12479_v63  ;;  %9404 = vmatprep.subr.bf16.mxu1 %v12482_v0  ;;  %v12569_v63 = vld [vmem:[%s13800_s11 + $0x12c4] ss:$16 sps:$4 sm:$0xff]   ;;  %v12572_v0 = vld [vmem:[%s13800_s11 + $0x12cc] ss:$16 sps:$4 sm:$0xff]  }
 0x254   : > { %8545 = vmatpush1.bf16.msra.mxu0 %v12477_v1  ;;  %9405 = vmatpush1.bf16.msra.mxu1 %v12480_v2  ;;  %v12567_v1 = vld [vmem:[%s13800_s11 + $0x12c0] ss:$16 sps:$4 sm:$0xff]   ;;  %v12570_v2 = vld [vmem:[%s13800_s11 + $0x12c8] ss:$16 sps:$4 sm:$0xff]  }
 0x255   : > { %8546 = vmatprep.subr.bf16.mxu0 %v12485_v3  ;;  %9406 = vmatprep.subr.bf16.mxu1 %v12488_v4  ;;  %v12575_v3 = vld [vmem:[%s13800_s11 + $0x12e4] ss:$16 sps:$4 sm:$0xff]   ;;  %v12578_v4 = vld [vmem:[%s13800_s11 + $0x12ec] ss:$16 sps:$4 sm:$0xff]  }
 0x258   : > { %8547 = vmatpush1.bf16.msra.mxu0 %v12483_v5  ;;  %9407 = vmatpush1.bf16.msra.mxu1 %v12486_v6  ;;  %v12573_v5 = vld [vmem:[%s13800_s11 + $0x12e0] ss:$16 sps:$4 sm:$0xff]   ;;  %v12576_v6 = vld [vmem:[%s13800_s11 + $0x12e8] ss:$16 sps:$4 sm:$0xff]  }
 0x259   : > { %8548 = vmatprep.subr.bf16.mxu0 %v12491_v7  ;;  %9408 = vmatprep.subr.bf16.mxu1 %v12494_v8  ;;  %v12581_v7 = vld [vmem:[%s13800_s11 + $0x1304] ss:$16 sps:$4 sm:$0xff]   ;;  %v12584_v8 = vld [vmem:[%s13800_s11 + $0x130c] ss:$16 sps:$4 sm:$0xff]  }
 0x25c   : > { %8549 = vmatpush1.bf16.msra.mxu0 %v12489_v9  ;;  %9409 = vmatpush1.bf16.msra.mxu1 %v12492_v10  ;;  %v12579_v9 = vld [vmem:[%s13800_s11 + $0x1300] ss:$16 sps:$4 sm:$0xff]   ;;  %v12582_v10 = vld [vmem:[%s13800_s11 + $0x1308] ss:$16 sps:$4 sm:$0xff]  }
 0x25d   : > { %8550 = vmatprep.subr.bf16.mxu0 %v12497_v11  ;;  %9410 = vmatprep.subr.bf16.mxu1 %v12500_v12  ;;  %v12587_v11 = vld [vmem:[%s13800_s11 + $0x1324] ss:$16 sps:$4 sm:$0xff]   ;;  %v12590_v12 = vld [vmem:[%s13800_s11 + $0x132c] ss:$16 sps:$4 sm:$0xff]  }
 0x260   : > { %8551 = vmatpush1.bf16.msra.mxu0 %v12495_v13  ;;  %9411 = vmatpush1.bf16.msra.mxu1 %v12498_v16  ;;  %v12585_v13 = vld [vmem:[%s13800_s11 + $0x1320] ss:$16 sps:$4 sm:$0xff]   ;;  %v12588_v16 = vld [vmem:[%s13800_s11 + $0x1328] ss:$16 sps:$4 sm:$0xff]  }
 0x261   : > { %8552 = vmatprep.subr.bf16.mxu0 %v12503_v17  ;;  %9412 = vmatprep.subr.bf16.mxu1 %v12506_v20  ;;  %v12593_v17 = vld [vmem:[%s13800_s11 + $0x1344] ss:$16 sps:$4 sm:$0xff]   ;;  %v12596_v20 = vld [vmem:[%s13800_s11 + $0x134c] ss:$16 sps:$4 sm:$0xff]  }
 0x264   : > { %8553 = vmatpush1.bf16.msra.mxu0 %v12501_v15  ;;  %9413 = vmatpush1.bf16.msra.mxu1 %v12504_v22  ;;  %v12591_v15 = vld [vmem:[%s13800_s11 + $0x1340] ss:$16 sps:$4 sm:$0xff]   ;;  %v12594_v22 = vld [vmem:[%s13800_s11 + $0x1348] ss:$16 sps:$4 sm:$0xff]  }
 0x265   : > { %8554 = vmatprep.subr.bf16.mxu0 %v12509_v23  ;;  %9414 = vmatprep.subr.bf16.mxu1 %v12512_v24  ;;  %v12599_v23 = vld [vmem:[%s13800_s11 + $0x1364] ss:$16 sps:$4 sm:$0xff]   ;;  %v12602_v24 = vld [vmem:[%s13800_s11 + $0x136c] ss:$16 sps:$4 sm:$0xff]  }
 0x268   : > { %8555 = vmatpush1.bf16.msra.mxu0 %v12507_v19  ;;  %9415 = vmatpush1.bf16.msra.mxu1 %v12510_v26  ;;  %v12597_v19 = vld [vmem:[%s13800_s11 + $0x1360] ss:$16 sps:$4 sm:$0xff]   ;;  %v12600_v26 = vld [vmem:[%s13800_s11 + $0x1368] ss:$16 sps:$4 sm:$0xff]  }
 0x269   : > { %8556 = vmatprep.subr.bf16.mxu0 %v12515_v27  ;;  %9416 = vmatprep.subr.bf16.mxu1 %v12518_v28  ;;  %v12605_v27 = vld [vmem:[%s13800_s11 + $0x1384] ss:$16 sps:$4 sm:$0xff]   ;;  %v12608_v28 = vld [vmem:[%s13800_s11 + $0x138c] ss:$16 sps:$4 sm:$0xff]  }
 0x26c   : > { %8557 = vmatpush1.bf16.msra.mxu0 %v12513_v14  ;;  %9417 = vmatpush1.bf16.msra.mxu1 %v12516_v21  ;;  %v12603_v14 = vld [vmem:[%s13800_s11 + $0x1380] ss:$16 sps:$4 sm:$0xff]   ;;  %v12606_v21 = vld [vmem:[%s13800_s11 + $0x1388] ss:$16 sps:$4 sm:$0xff]  }
 0x26d   : > { %8558 = vmatprep.subr.bf16.mxu0 %v12521_v31  ;;  %9418 = vmatprep.subr.bf16.mxu1 %v12524_v32  ;;  %v12611_v31 = vld [vmem:[%s13800_s11 + $0x13a4] ss:$16 sps:$4 sm:$0xff]   ;;  %v12614_v32 = vld [vmem:[%s13800_s11 + $0x13ac] ss:$16 sps:$4 sm:$0xff]  }
 0x270   : > { %8559 = vmatpush1.bf16.msra.mxu0 %v12519_v25  ;;  %9419 = vmatpush1.bf16.msra.mxu1 %v12522_v18  ;;  %v12609_v25 = vld [vmem:[%s13800_s11 + $0x13a0] ss:$16 sps:$4 sm:$0xff]   ;;  %v12612_v18 = vld [vmem:[%s13800_s11 + $0x13a8] ss:$16 sps:$4 sm:$0xff]  }
 0x271   : > { %8560 = vmatprep.subr.bf16.mxu0 %v12527_v35  ;;  %9420 = vmatprep.subr.bf16.mxu1 %v12530_v36  ;;  %v12617_v35 = vld [vmem:[%s13800_s11 + $0x13c4] ss:$16 sps:$4 sm:$0xff]   ;;  %v12620_v36 = vld [vmem:[%s13800_s11 + $0x13cc] ss:$16 sps:$4 sm:$0xff]  }
 0x274   : > { %8561 = vmatpush1.bf16.msra.mxu0 %v12525_v29  ;;  %9421 = vmatpush1.bf16.msra.mxu1 %v12528_v30  ;;  %v12615_v29 = vld [vmem:[%s13800_s11 + $0x13c0] ss:$16 sps:$4 sm:$0xff]   ;;  %v12618_v30 = vld [vmem:[%s13800_s11 + $0x13c8] ss:$16 sps:$4 sm:$0xff]  }
 0x275   : > { %8573 = vmatprep.subr.bf16.mxu0 %v12533_v39  ;;  %9433 = vmatprep.subr.bf16.mxu1 %v12536_v40  ;;  %v12623_v39 = vld [vmem:[%s13800_s11 + $0x13e4] ss:$16 sps:$4 sm:$0xff]   ;;  %v12626_v40 = vld [vmem:[%s13800_s11 + $0x13ec] ss:$16 sps:$4 sm:$0xff]  }
 0x277   : > { %8563 = vmatmul.mubr.bf16.vlgmr.msra.gmra.mrb[0].mxu0 %v10143_v33  ;;  %9423 = vmatmul.mubr.bf16.vlgmr.msra.gmra.mrb[0].mxu1 %v10143_v33  ;;  %v12621_v33 = vld [vmem:[%s13800_s11 + $0x13e0] ss:$16 sps:$4 sm:$0xff]  }
 0x278   : > { %8574 = vmatpush1.bf16.msra.mxu0 %v12531_v34  ;;  %9434 = vmatpush1.bf16.msra.mxu1 %v12534_v43  ;;  %v12624_v34 = vld [vmem:[%s13800_s11 + $0x13e8] ss:$16 sps:$4 sm:$0xff]   ;;  %v12629_v43 = vld [vmem:[%s13800_s11 + $0x1404] ss:$16 sps:$4 sm:$0xff]  }
 0x279   : > { %8575 = vmatprep.subr.bf16.mxu0 %v12539_v44  ;;  %9435 = vmatprep.subr.bf16.mxu1 %v12542_v45  ;;  %v12632_v44 = vld [vmem:[%s13800_s11 + $0x140c] ss:$16 sps:$4 sm:$0xff]   ;;  %v14581_v45 = vld [vmem:[%s15387_s0 + $0x50] sm:$0xff] }
 0x27a   : > { %8605 = vmatprep.mubr.bf16.mxu0 %v10146_v46  ;;  %9465 = vmatprep.mubr.bf16.mxu1 %v10146_v46  ;;  %v14586_v46 = vld [vmem:[%s15387_s0 + $0xf0] sm:$0xff] }
 0x27c   : > { %8576 = vmatpush1.bf16.msra.mxu0 %v12537_v37  ;;  %9436 = vmatpush1.bf16.msra.mxu1 %v12540_v38  ;;  %v10145_v37 = vcombine.low %v14503_v41, %v14508_v42  ;;  %v12627_v38 = vld [vmem:[%s13800_s11 + $0x1400] ss:$16 sps:$4 sm:$0xff]   ;;  %v12636_v42 = vld [vmem:[%s13800_s11 + $0x1428] ss:$16 sps:$4 sm:$0xff]  }
 0x27d   : > { %8577 = vmatprep.subr.bf16.mxu0 %v12545_v47  ;;  %9437 = vmatprep.subr.bf16.mxu1 %v12548_v48  ;;  %v12630_v47 = vld [vmem:[%s13800_s11 + $0x1408] ss:$16 sps:$4 sm:$0xff]   ;;  %v12635_v48 = vld [vmem:[%s13800_s11 + $0x1424] ss:$16 sps:$4 sm:$0xff]   ;;  %v12633_v41 = vld [vmem:[%s13800_s11 + $0x1420] ss:$16 sps:$4 sm:$0xff]  }
 0x280   : > { %8578 = vmatpush1.bf16.msra.mxu0 %v12543_v49  ;;  %9438 = vmatpush1.bf16.msra.mxu1 %v12546_v50  ;;  %v12638_v49 = vld [vmem:[%s13800_s11 + $0x142c] ss:$16 sps:$4 sm:$0xff]   ;;  %v10148_v50 = vcombine.high %v14581_v45, %v14586_v46 }
 0x281   : > { %8579 = vmatprep.subr.bf16.mxu0 %v12551_v51  ;;  %9439 = vmatprep.subr.bf16.mxu1 %v12554_v52  ;;  %v12641_v51 = vld [vmem:[%s13800_s11 + $0x1444] ss:$16 sps:$4 sm:$0xff]   ;;  %v12644_v52 = vld [vmem:[%s13800_s11 + $0x144c] ss:$16 sps:$4 sm:$0xff]  }
 0x284   : > { %8580 = vmatpush1.bf16.msra.mxu0 %v12549_v53  ;;  %9440 = vmatpush1.bf16.msra.mxu1 %v12552_v54  ;;  %v12639_v53 = vld [vmem:[%s13800_s11 + $0x1440] ss:$16 sps:$4 sm:$0xff]   ;;  %v12642_v54 = vld [vmem:[%s13800_s11 + $0x1448] ss:$16 sps:$4 sm:$0xff]  }
 0x285   : > { %8581 = vmatprep.subr.bf16.mxu0 %v12557_v55  ;;  %9441 = vmatprep.subr.bf16.mxu1 %v12560_v56  ;;  %v12647_v55 = vld [vmem:[%s13800_s11 + $0x1464] ss:$16 sps:$4 sm:$0xff]   ;;  %v12650_v56 = vld [vmem:[%s13800_s11 + $0x146c] ss:$16 sps:$4 sm:$0xff]  }
 0x288   : > { %8582 = vmatpush1.bf16.msra.mxu0 %v12555_v57  ;;  %9442 = vmatpush1.bf16.msra.mxu1 %v12558_v58  ;;  %v12645_v57 = vld [vmem:[%s13800_s11 + $0x1460] ss:$16 sps:$4 sm:$0xff]   ;;  %v12648_v58 = vld [vmem:[%s13800_s11 + $0x1468] ss:$16 sps:$4 sm:$0xff]  }
 0x289   : > { %8583 = vmatprep.subr.bf16.mxu0 %v12563_v59  ;;  %9443 = vmatprep.subr.bf16.mxu1 %v12566_v60  ;;  %v12653_v59 = vld [vmem:[%s13800_s11 + $0x1484] ss:$16 sps:$4 sm:$0xff]   ;;  %v12656_v60 = vld [vmem:[%s13800_s11 + $0x148c] ss:$16 sps:$4 sm:$0xff]  }
 0x28c   : > { %8584 = vmatpush1.bf16.msra.mxu0 %v12561_v61  ;;  %9444 = vmatpush1.bf16.msra.mxu1 %v12564_v62  ;;  %v12651_v61 = vld [vmem:[%s13800_s11 + $0x1480] ss:$16 sps:$4 sm:$0xff]   ;;  %v12654_v62 = vld [vmem:[%s13800_s11 + $0x1488] ss:$16 sps:$4 sm:$0xff]  }
 0x28d   : > { %8585 = vmatprep.subr.bf16.mxu0 %v12569_v63  ;;  %9445 = vmatprep.subr.bf16.mxu1 %v12572_v0  ;;  %v12659_v63 = vld [vmem:[%s13800_s11 + $0x14a4] ss:$16 sps:$4 sm:$0xff]   ;;  %v12662_v0 = vld [vmem:[%s13800_s11 + $0x14ac] ss:$16 sps:$4 sm:$0xff]  }
 0x290   : > { %8586 = vmatpush1.bf16.msra.mxu0 %v12567_v1  ;;  %9446 = vmatpush1.bf16.msra.mxu1 %v12570_v2  ;;  %v12657_v1 = vld [vmem:[%s13800_s11 + $0x14a0] ss:$16 sps:$4 sm:$0xff]   ;;  %v12660_v2 = vld [vmem:[%s13800_s11 + $0x14a8] ss:$16 sps:$4 sm:$0xff]  }
 0x291   : > { %8587 = vmatprep.subr.bf16.mxu0 %v12575_v3  ;;  %9447 = vmatprep.subr.bf16.mxu1 %v12578_v4  ;;  %v12665_v3 = vld [vmem:[%s13800_s11 + $0x14c4] ss:$16 sps:$4 sm:$0xff]   ;;  %v12668_v4 = vld [vmem:[%s13800_s11 + $0x14cc] ss:$16 sps:$4 sm:$0xff]  }
 0x294   : > { %8588 = vmatpush1.bf16.msra.mxu0 %v12573_v5  ;;  %9448 = vmatpush1.bf16.msra.mxu1 %v12576_v6  ;;  %v12663_v5 = vld [vmem:[%s13800_s11 + $0x14c0] ss:$16 sps:$4 sm:$0xff]   ;;  %v12666_v6 = vld [vmem:[%s13800_s11 + $0x14c8] ss:$16 sps:$4 sm:$0xff]  }
 0x295   : > { %8589 = vmatprep.subr.bf16.mxu0 %v12581_v7  ;;  %9449 = vmatprep.subr.bf16.mxu1 %v12584_v8  ;;  %v12671_v7 = vld [vmem:[%s13800_s11 + $0x14e4] ss:$16 sps:$4 sm:$0xff]   ;;  %v12674_v8 = vld [vmem:[%s13800_s11 + $0x14ec] ss:$16 sps:$4 sm:$0xff]  }
 0x298   : > { %8590 = vmatpush1.bf16.msra.mxu0 %v12579_v9  ;;  %9450 = vmatpush1.bf16.msra.mxu1 %v12582_v10  ;;  %v12669_v9 = vld [vmem:[%s13800_s11 + $0x14e0] ss:$16 sps:$4 sm:$0xff]   ;;  %v12672_v10 = vld [vmem:[%s13800_s11 + $0x14e8] ss:$16 sps:$4 sm:$0xff]  }
 0x299   : > { %8591 = vmatprep.subr.bf16.mxu0 %v12587_v11  ;;  %9451 = vmatprep.subr.bf16.mxu1 %v12590_v12  ;;  %v12677_v11 = vld [vmem:[%s13800_s11 + $0x1504] ss:$16 sps:$4 sm:$0xff]   ;;  %v12680_v12 = vld [vmem:[%s13800_s11 + $0x150c] ss:$16 sps:$4 sm:$0xff]  }
 0x29c   : > { %8592 = vmatpush1.bf16.msra.mxu0 %v12585_v13  ;;  %9452 = vmatpush1.bf16.msra.mxu1 %v12588_v16  ;;  %v12675_v13 = vld [vmem:[%s13800_s11 + $0x1500] ss:$16 sps:$4 sm:$0xff]   ;;  %v12678_v16 = vld [vmem:[%s13800_s11 + $0x1508] ss:$16 sps:$4 sm:$0xff]  }
 0x29d   : > { %8593 = vmatprep.subr.bf16.mxu0 %v12593_v17  ;;  %9453 = vmatprep.subr.bf16.mxu1 %v12596_v20  ;;  %v12683_v17 = vld [vmem:[%s13800_s11 + $0x1524] ss:$16 sps:$4 sm:$0xff]   ;;  %v12686_v20 = vld [vmem:[%s13800_s11 + $0x152c] ss:$16 sps:$4 sm:$0xff]  }
 0x2a0   : > { %8594 = vmatpush1.bf16.msra.mxu0 %v12591_v15  ;;  %9454 = vmatpush1.bf16.msra.mxu1 %v12594_v22  ;;  %v12681_v15 = vld [vmem:[%s13800_s11 + $0x1520] ss:$16 sps:$4 sm:$0xff]   ;;  %v12684_v22 = vld [vmem:[%s13800_s11 + $0x1528] ss:$16 sps:$4 sm:$0xff]  }
 0x2a1   : > { %8595 = vmatprep.subr.bf16.mxu0 %v12599_v23  ;;  %9455 = vmatprep.subr.bf16.mxu1 %v12602_v24  ;;  %v12689_v23 = vld [vmem:[%s13800_s11 + $0x1544] ss:$16 sps:$4 sm:$0xff]   ;;  %v12692_v24 = vld [vmem:[%s13800_s11 + $0x154c] ss:$16 sps:$4 sm:$0xff]  }
 0x2a4   : > { %8596 = vmatpush1.bf16.msra.mxu0 %v12597_v19  ;;  %9456 = vmatpush1.bf16.msra.mxu1 %v12600_v26  ;;  %v12687_v19 = vld [vmem:[%s13800_s11 + $0x1540] ss:$16 sps:$4 sm:$0xff]   ;;  %v12690_v26 = vld [vmem:[%s13800_s11 + $0x1548] ss:$16 sps:$4 sm:$0xff]  }
 0x2a5   : > { %8597 = vmatprep.subr.bf16.mxu0 %v12605_v27  ;;  %9457 = vmatprep.subr.bf16.mxu1 %v12608_v28  ;;  %v12695_v27 = vld [vmem:[%s13800_s11 + $0x1564] ss:$16 sps:$4 sm:$0xff]   ;;  %v12698_v28 = vld [vmem:[%s13800_s11 + $0x156c] ss:$16 sps:$4 sm:$0xff]  }
 0x2a8   : > { %8598 = vmatpush1.bf16.msra.mxu0 %v12603_v14  ;;  %9458 = vmatpush1.bf16.msra.mxu1 %v12606_v21  ;;  %v12693_v14 = vld [vmem:[%s13800_s11 + $0x1560] ss:$16 sps:$4 sm:$0xff]   ;;  %v12696_v21 = vld [vmem:[%s13800_s11 + $0x1568] ss:$16 sps:$4 sm:$0xff]  }
 0x2a9   : > { %8599 = vmatprep.subr.bf16.mxu0 %v12611_v31  ;;  %9459 = vmatprep.subr.bf16.mxu1 %v12614_v32  ;;  %v12701_v31 = vld [vmem:[%s13800_s11 + $0x1584] ss:$16 sps:$4 sm:$0xff]   ;;  %v12704_v32 = vld [vmem:[%s13800_s11 + $0x158c] ss:$16 sps:$4 sm:$0xff]  }
 0x2ac   : > { %8600 = vmatpush1.bf16.msra.mxu0 %v12609_v25  ;;  %9460 = vmatpush1.bf16.msra.mxu1 %v12612_v18  ;;  %v12699_v25 = vld [vmem:[%s13800_s11 + $0x1580] ss:$16 sps:$4 sm:$0xff]   ;;  %v12702_v18 = vld [vmem:[%s13800_s11 + $0x1588] ss:$16 sps:$4 sm:$0xff]  }
 0x2ad   : > { %8601 = vmatprep.subr.bf16.mxu0 %v12617_v35  ;;  %9461 = vmatprep.subr.bf16.mxu1 %v12620_v36  ;;  %v12707_v35 = vld [vmem:[%s13800_s11 + $0x15a4] ss:$16 sps:$4 sm:$0xff]   ;;  %v12710_v36 = vld [vmem:[%s13800_s11 + $0x15ac] ss:$16 sps:$4 sm:$0xff]  }
 0x2b0   : > { %8602 = vmatpush1.bf16.msra.mxu0 %v12615_v29  ;;  %9462 = vmatpush1.bf16.msra.mxu1 %v12618_v30  ;;  %v12705_v29 = vld [vmem:[%s13800_s11 + $0x15a0] ss:$16 sps:$4 sm:$0xff]   ;;  %v12708_v30 = vld [vmem:[%s13800_s11 + $0x15a8] ss:$16 sps:$4 sm:$0xff]  }
 0x2b1   : > { %8603 = vmatprep.subr.bf16.mxu0 %v12623_v39  ;;  %9463 = vmatprep.subr.bf16.mxu1 %v12626_v40  ;;  %v12713_v39 = vld [vmem:[%s13800_s11 + $0x15c4] ss:$16 sps:$4 sm:$0xff]   ;;  %v12716_v40 = vld [vmem:[%s13800_s11 + $0x15cc] ss:$16 sps:$4 sm:$0xff]  }
 0x2b4   : > { %8604 = vmatpush1.bf16.msra.mxu0 %v12621_v33  ;;  %9464 = vmatpush1.bf16.msra.mxu1 %v12624_v34  ;;  %v12711_v33 = vld [vmem:[%s13800_s11 + $0x15c0] ss:$16 sps:$4 sm:$0xff]   ;;  %v12714_v34 = vld [vmem:[%s13800_s11 + $0x15c8] ss:$16 sps:$4 sm:$0xff]  }
 0x2b5   : > { %8616 = vmatprep.subr.bf16.mxu0 %v12629_v43  ;;  %9476 = vmatprep.subr.bf16.mxu1 %v12632_v44  ;;  %v12719_v43 = vld [vmem:[%s13800_s11 + $0x15e4] ss:$16 sps:$4 sm:$0xff]   ;;  %v12722_v44 = vld [vmem:[%s13800_s11 + $0x15ec] ss:$16 sps:$4 sm:$0xff]  }
 0x2b7   : > { %8606 = vmatmul.mubr.bf16.vlgmr.msra.gmra.mrb[0].mxu0 %v10145_v37  ;;  %9466 = vmatmul.mubr.bf16.vlgmr.msra.gmra.mrb[0].mxu1 %v10145_v37  ;;  %v12717_v37 = vld [vmem:[%s13800_s11 + $0x15e0] ss:$16 sps:$4 sm:$0xff]  }
 0x2b8   : > { %8617 = vmatpush1.bf16.msra.mxu0 %v12627_v38  ;;  %9477 = vmatpush1.bf16.msra.mxu1 %v12630_v47  ;;  %v12720_v38 = vld [vmem:[%s13800_s11 + $0x15e8] ss:$16 sps:$4 sm:$0xff]   ;;  %v12725_v47 = vld [vmem:[%s13800_s11 + $0x1604] ss:$16 sps:$4 sm:$0xff]  }
 0x2b9   : > { %8618 = vmatprep.subr.bf16.mxu0 %v12635_v48  ;;  %9478 = vmatprep.subr.bf16.mxu1 %v12638_v49  ;;  %v12728_v48 = vld [vmem:[%s13800_s11 + $0x160c] ss:$16 sps:$4 sm:$0xff]  }
 0x2ba   : > { %8648 = vmatprep.mubr.bf16.mxu0 %v10148_v50  ;;  %9508 = vmatprep.mubr.bf16.mxu1 %v10148_v50  ;;  %v14659_v49 = vld [vmem:[%s15387_s0 + $0x58] sm:$0xff] }
 0x2bb   : > { %v14664_v50 = vld [vmem:[%s15387_s0 + $0xf8] sm:$0xff] }
 0x2bc   : > { %8619 = vmatpush1.bf16.msra.mxu0 %v12633_v41  ;;  %9479 = vmatpush1.bf16.msra.mxu1 %v12636_v42  ;;  %v10147_v41 = vcombine.low %v14581_v45, %v14586_v46  ;;  %v12723_v42 = vld [vmem:[%s13800_s11 + $0x1600] ss:$16 sps:$4 sm:$0xff]   ;;  %v12732_v46 = vld [vmem:[%s13800_s11 + $0x1628] ss:$16 sps:$4 sm:$0xff]  }
 0x2bd   : > { %8620 = vmatprep.subr.bf16.mxu0 %v12641_v51  ;;  %9480 = vmatprep.subr.bf16.mxu1 %v12644_v52  ;;  %v12726_v51 = vld [vmem:[%s13800_s11 + $0x1608] ss:$16 sps:$4 sm:$0xff]   ;;  %v12731_v52 = vld [vmem:[%s13800_s11 + $0x1624] ss:$16 sps:$4 sm:$0xff]   ;;  %v12729_v45 = vld [vmem:[%s13800_s11 + $0x1620] ss:$16 sps:$4 sm:$0xff]  }
 0x2c0   : > { %8621 = vmatpush1.bf16.msra.mxu0 %v12639_v53  ;;  %9481 = vmatpush1.bf16.msra.mxu1 %v12642_v54  ;;  %v12734_v53 = vld [vmem:[%s13800_s11 + $0x162c] ss:$16 sps:$4 sm:$0xff]   ;;  %v10150_v54 = vcombine.high %v14659_v49, %v14664_v50 }
 0x2c1   : > { %8622 = vmatprep.subr.bf16.mxu0 %v12647_v55  ;;  %9482 = vmatprep.subr.bf16.mxu1 %v12650_v56  ;;  %v12737_v55 = vld [vmem:[%s13800_s11 + $0x1644] ss:$16 sps:$4 sm:$0xff]   ;;  %v12740_v56 = vld [vmem:[%s13800_s11 + $0x164c] ss:$16 sps:$4 sm:$0xff]  }
 0x2c4   : > { %8623 = vmatpush1.bf16.msra.mxu0 %v12645_v57  ;;  %9483 = vmatpush1.bf16.msra.mxu1 %v12648_v58  ;;  %v12735_v57 = vld [vmem:[%s13800_s11 + $0x1640] ss:$16 sps:$4 sm:$0xff]   ;;  %v12738_v58 = vld [vmem:[%s13800_s11 + $0x1648] ss:$16 sps:$4 sm:$0xff]  }
 0x2c5   : > { %8624 = vmatprep.subr.bf16.mxu0 %v12653_v59  ;;  %9484 = vmatprep.subr.bf16.mxu1 %v12656_v60  ;;  %v12743_v59 = vld [vmem:[%s13800_s11 + $0x1664] ss:$16 sps:$4 sm:$0xff]   ;;  %v12746_v60 = vld [vmem:[%s13800_s11 + $0x166c] ss:$16 sps:$4 sm:$0xff]  }
 0x2c8   : > { %8625 = vmatpush1.bf16.msra.mxu0 %v12651_v61  ;;  %9485 = vmatpush1.bf16.msra.mxu1 %v12654_v62  ;;  %v12741_v61 = vld [vmem:[%s13800_s11 + $0x1660] ss:$16 sps:$4 sm:$0xff]   ;;  %v12744_v62 = vld [vmem:[%s13800_s11 + $0x1668] ss:$16 sps:$4 sm:$0xff]  }
 0x2c9   : > { %8626 = vmatprep.subr.bf16.mxu0 %v12659_v63  ;;  %9486 = vmatprep.subr.bf16.mxu1 %v12662_v0  ;;  %v12749_v63 = vld [vmem:[%s13800_s11 + $0x1684] ss:$16 sps:$4 sm:$0xff]   ;;  %v12752_v0 = vld [vmem:[%s13800_s11 + $0x168c] ss:$16 sps:$4 sm:$0xff]  }
 0x2cc   : > { %8627 = vmatpush1.bf16.msra.mxu0 %v12657_v1  ;;  %9487 = vmatpush1.bf16.msra.mxu1 %v12660_v2  ;;  %v12747_v1 = vld [vmem:[%s13800_s11 + $0x1680] ss:$16 sps:$4 sm:$0xff]   ;;  %v12750_v2 = vld [vmem:[%s13800_s11 + $0x1688] ss:$16 sps:$4 sm:$0xff]  }
 0x2cd   : > { %8628 = vmatprep.subr.bf16.mxu0 %v12665_v3  ;;  %9488 = vmatprep.subr.bf16.mxu1 %v12668_v4  ;;  %v12755_v3 = vld [vmem:[%s13800_s11 + $0x16a4] ss:$16 sps:$4 sm:$0xff]   ;;  %v12758_v4 = vld [vmem:[%s13800_s11 + $0x16ac] ss:$16 sps:$4 sm:$0xff]  }
 0x2d0   : > { %8629 = vmatpush1.bf16.msra.mxu0 %v12663_v5  ;;  %9489 = vmatpush1.bf16.msra.mxu1 %v12666_v6  ;;  %v12753_v5 = vld [vmem:[%s13800_s11 + $0x16a0] ss:$16 sps:$4 sm:$0xff]   ;;  %v12756_v6 = vld [vmem:[%s13800_s11 + $0x16a8] ss:$16 sps:$4 sm:$0xff]  }
 0x2d1   : > { %8630 = vmatprep.subr.bf16.mxu0 %v12671_v7  ;;  %9490 = vmatprep.subr.bf16.mxu1 %v12674_v8  ;;  %v12761_v7 = vld [vmem:[%s13800_s11 + $0x16c4] ss:$16 sps:$4 sm:$0xff]   ;;  %v12764_v8 = vld [vmem:[%s13800_s11 + $0x16cc] ss:$16 sps:$4 sm:$0xff]  }
 0x2d4   : > { %8631 = vmatpush1.bf16.msra.mxu0 %v12669_v9  ;;  %9491 = vmatpush1.bf16.msra.mxu1 %v12672_v10  ;;  %v12759_v9 = vld [vmem:[%s13800_s11 + $0x16c0] ss:$16 sps:$4 sm:$0xff]   ;;  %v12762_v10 = vld [vmem:[%s13800_s11 + $0x16c8] ss:$16 sps:$4 sm:$0xff]  }
 0x2d5   : > { %8632 = vmatprep.subr.bf16.mxu0 %v12677_v11  ;;  %9492 = vmatprep.subr.bf16.mxu1 %v12680_v12  ;;  %v12767_v11 = vld [vmem:[%s13800_s11 + $0x16e4] ss:$16 sps:$4 sm:$0xff]   ;;  %v12770_v12 = vld [vmem:[%s13800_s11 + $0x16ec] ss:$16 sps:$4 sm:$0xff]  }
 0x2d8   : > { %8633 = vmatpush1.bf16.msra.mxu0 %v12675_v13  ;;  %9493 = vmatpush1.bf16.msra.mxu1 %v12678_v16  ;;  %v12765_v13 = vld [vmem:[%s13800_s11 + $0x16e0] ss:$16 sps:$4 sm:$0xff]   ;;  %v12768_v16 = vld [vmem:[%s13800_s11 + $0x16e8] ss:$16 sps:$4 sm:$0xff]  }
 0x2d9   : > { %8634 = vmatprep.subr.bf16.mxu0 %v12683_v17  ;;  %9494 = vmatprep.subr.bf16.mxu1 %v12686_v20  ;;  %v12773_v17 = vld [vmem:[%s13800_s11 + $0x1704] ss:$16 sps:$4 sm:$0xff]   ;;  %v12776_v20 = vld [vmem:[%s13800_s11 + $0x170c] ss:$16 sps:$4 sm:$0xff]  }
 0x2dc   : > { %8635 = vmatpush1.bf16.msra.mxu0 %v12681_v15  ;;  %9495 = vmatpush1.bf16.msra.mxu1 %v12684_v22  ;;  %v12771_v15 = vld [vmem:[%s13800_s11 + $0x1700] ss:$16 sps:$4 sm:$0xff]   ;;  %v12774_v22 = vld [vmem:[%s13800_s11 + $0x1708] ss:$16 sps:$4 sm:$0xff]  }
 0x2dd   : > { %8636 = vmatprep.subr.bf16.mxu0 %v12689_v23  ;;  %9496 = vmatprep.subr.bf16.mxu1 %v12692_v24  ;;  %v12779_v23 = vld [vmem:[%s13800_s11 + $0x1724] ss:$16 sps:$4 sm:$0xff]   ;;  %v12782_v24 = vld [vmem:[%s13800_s11 + $0x172c] ss:$16 sps:$4 sm:$0xff]  }
 0x2e0   : > { %8637 = vmatpush1.bf16.msra.mxu0 %v12687_v19  ;;  %9497 = vmatpush1.bf16.msra.mxu1 %v12690_v26  ;;  %v12777_v19 = vld [vmem:[%s13800_s11 + $0x1720] ss:$16 sps:$4 sm:$0xff]   ;;  %v12780_v26 = vld [vmem:[%s13800_s11 + $0x1728] ss:$16 sps:$4 sm:$0xff]  }
 0x2e1   : > { %8638 = vmatprep.subr.bf16.mxu0 %v12695_v27  ;;  %9498 = vmatprep.subr.bf16.mxu1 %v12698_v28  ;;  %v12785_v27 = vld [vmem:[%s13800_s11 + $0x1744] ss:$16 sps:$4 sm:$0xff]   ;;  %v12788_v28 = vld [vmem:[%s13800_s11 + $0x174c] ss:$16 sps:$4 sm:$0xff]  }
 0x2e4   : > { %8639 = vmatpush1.bf16.msra.mxu0 %v12693_v14  ;;  %9499 = vmatpush1.bf16.msra.mxu1 %v12696_v21  ;;  %v12783_v14 = vld [vmem:[%s13800_s11 + $0x1740] ss:$16 sps:$4 sm:$0xff]   ;;  %v12786_v21 = vld [vmem:[%s13800_s11 + $0x1748] ss:$16 sps:$4 sm:$0xff]  }
 0x2e5   : > { %8640 = vmatprep.subr.bf16.mxu0 %v12701_v31  ;;  %9500 = vmatprep.subr.bf16.mxu1 %v12704_v32  ;;  %v12791_v31 = vld [vmem:[%s13800_s11 + $0x1764] ss:$16 sps:$4 sm:$0xff]   ;;  %v12794_v32 = vld [vmem:[%s13800_s11 + $0x176c] ss:$16 sps:$4 sm:$0xff]  }
 0x2e8   : > { %8641 = vmatpush1.bf16.msra.mxu0 %v12699_v25  ;;  %9501 = vmatpush1.bf16.msra.mxu1 %v12702_v18  ;;  %v12789_v25 = vld [vmem:[%s13800_s11 + $0x1760] ss:$16 sps:$4 sm:$0xff]   ;;  %v12792_v18 = vld [vmem:[%s13800_s11 + $0x1768] ss:$16 sps:$4 sm:$0xff]  }
 0x2e9   : > { %8642 = vmatprep.subr.bf16.mxu0 %v12707_v35  ;;  %9502 = vmatprep.subr.bf16.mxu1 %v12710_v36  ;;  %v12797_v35 = vld [vmem:[%s13800_s11 + $0x1784] ss:$16 sps:$4 sm:$0xff]   ;;  %v12800_v36 = vld [vmem:[%s13800_s11 + $0x178c] ss:$16 sps:$4 sm:$0xff]  }
 0x2ec   : > { %8643 = vmatpush1.bf16.msra.mxu0 %v12705_v29  ;;  %9503 = vmatpush1.bf16.msra.mxu1 %v12708_v30  ;;  %v12795_v29 = vld [vmem:[%s13800_s11 + $0x1780] ss:$16 sps:$4 sm:$0xff]   ;;  %v12798_v30 = vld [vmem:[%s13800_s11 + $0x1788] ss:$16 sps:$4 sm:$0xff]  }
 0x2ed   : > { %8644 = vmatprep.subr.bf16.mxu0 %v12713_v39  ;;  %9504 = vmatprep.subr.bf16.mxu1 %v12716_v40  ;;  %v12803_v39 = vld [vmem:[%s13800_s11 + $0x17a4] ss:$16 sps:$4 sm:$0xff]   ;;  %v12806_v40 = vld [vmem:[%s13800_s11 + $0x17ac] ss:$16 sps:$4 sm:$0xff]  }
 0x2f0   : > { %8645 = vmatpush1.bf16.msra.mxu0 %v12711_v33  ;;  %9505 = vmatpush1.bf16.msra.mxu1 %v12714_v34  ;;  %v12801_v33 = vld [vmem:[%s13800_s11 + $0x17a0] ss:$16 sps:$4 sm:$0xff]   ;;  %v12804_v34 = vld [vmem:[%s13800_s11 + $0x17a8] ss:$16 sps:$4 sm:$0xff]  }
 0x2f1   : > { %8646 = vmatprep.subr.bf16.mxu0 %v12719_v43  ;;  %9506 = vmatprep.subr.bf16.mxu1 %v12722_v44  ;;  %v12809_v43 = vld [vmem:[%s13800_s11 + $0x17c4] ss:$16 sps:$4 sm:$0xff]   ;;  %v12812_v44 = vld [vmem:[%s13800_s11 + $0x17cc] ss:$16 sps:$4 sm:$0xff]  }
 0x2f4   : > { %8647 = vmatpush1.bf16.msra.mxu0 %v12717_v37  ;;  %9507 = vmatpush1.bf16.msra.mxu1 %v12720_v38  ;;  %v12807_v37 = vld [vmem:[%s13800_s11 + $0x17c0] ss:$16 sps:$4 sm:$0xff]   ;;  %v12810_v38 = vld [vmem:[%s13800_s11 + $0x17c8] ss:$16 sps:$4 sm:$0xff]  }
 0x2f5   : > { %8659 = vmatprep.subr.bf16.mxu0 %v12725_v47  ;;  %9519 = vmatprep.subr.bf16.mxu1 %v12728_v48  ;;  %v12815_v47 = vld [vmem:[%s13800_s11 + $0x17e4] ss:$16 sps:$4 sm:$0xff]   ;;  %v12818_v48 = vld [vmem:[%s13800_s11 + $0x17ec] ss:$16 sps:$4 sm:$0xff]  }
 0x2f7   : > { %8649 = vmatmul.mubr.bf16.vlgmr.msra.gmra.mrb[0].mxu0 %v10147_v41  ;;  %9509 = vmatmul.mubr.bf16.vlgmr.msra.gmra.mrb[0].mxu1 %v10147_v41  ;;  %v12813_v41 = vld [vmem:[%s13800_s11 + $0x17e0] ss:$16 sps:$4 sm:$0xff]  }
 0x2f8   : > { %8660 = vmatpush1.bf16.msra.mxu0 %v12723_v42  ;;  %9520 = vmatpush1.bf16.msra.mxu1 %v12726_v51  ;;  %v12816_v42 = vld [vmem:[%s13800_s11 + $0x17e8] ss:$16 sps:$4 sm:$0xff]   ;;  %v12821_v51 = vld [vmem:[%s13800_s11 + $0x1804] ss:$16 sps:$4 sm:$0xff]  }
 0x2f9   : > { %8661 = vmatprep.subr.bf16.mxu0 %v12731_v52  ;;  %9521 = vmatprep.subr.bf16.mxu1 %v12734_v53  ;;  %v12824_v52 = vld [vmem:[%s13800_s11 + $0x180c] ss:$16 sps:$4 sm:$0xff]   ;;  %v10149_v53 = vcombine.low %v14659_v49, %v14664_v50  ;;  %v12827_v49 = vld [vmem:[%s13800_s11 + $0x1824] ss:$16 sps:$4 sm:$0xff]  }
 0x2fa   : > { %8691 = vmatprep.mubr.bf16.mxu0 %v10150_v54  ;;  %9551 = vmatprep.mubr.bf16.mxu1 %v10150_v54  ;;  %v14739_v54 = vld [vmem:[%s15387_s0 + $0x60] sm:$0xff]  ;;  %v12830_v50 = vld [vmem:[%s13800_s11 + $0x182c] ss:$16 sps:$4 sm:$0xff]  }
 0x2fc   : > { %8662 = vmatpush1.bf16.msra.mxu0 %v12729_v45  ;;  %9522 = vmatpush1.bf16.msra.mxu1 %v12732_v46  ;;  %v14744_v45 = vld [vmem:[%s15387_s0 + $0x100] sm:$0xff] }
 0x2fd   : > { %8663 = vmatprep.subr.bf16.mxu0 %v12737_v55  ;;  %9523 = vmatprep.subr.bf16.mxu1 %v12740_v56  ;;  %v12819_v46 = vld [vmem:[%s13800_s11 + $0x1800] ss:$16 sps:$4 sm:$0xff]   ;;  %v12822_v55 = vld [vmem:[%s13800_s11 + $0x1808] ss:$16 sps:$4 sm:$0xff]   ;;  %v10152_v56 = vcombine.high %v14739_v54, %v14744_v45 }
 0x300   : > { %8664 = vmatpush1.bf16.msra.mxu0 %v12735_v57  ;;  %9524 = vmatpush1.bf16.msra.mxu1 %v12738_v58  ;;  %v12825_v57 = vld [vmem:[%s13800_s11 + $0x1820] ss:$16 sps:$4 sm:$0xff]   ;;  %v12828_v58 = vld [vmem:[%s13800_s11 + $0x1828] ss:$16 sps:$4 sm:$0xff]  }
 0x301   : > { %8665 = vmatprep.subr.bf16.mxu0 %v12743_v59  ;;  %9525 = vmatprep.subr.bf16.mxu1 %v12746_v60  ;;  %v12833_v59 = vld [vmem:[%s13800_s11 + $0x1844] ss:$16 sps:$4 sm:$0xff]   ;;  %v12836_v60 = vld [vmem:[%s13800_s11 + $0x184c] ss:$16 sps:$4 sm:$0xff]  }
 0x304   : > { %8666 = vmatpush1.bf16.msra.mxu0 %v12741_v61  ;;  %9526 = vmatpush1.bf16.msra.mxu1 %v12744_v62  ;;  %v12831_v61 = vld [vmem:[%s13800_s11 + $0x1840] ss:$16 sps:$4 sm:$0xff]   ;;  %v12834_v62 = vld [vmem:[%s13800_s11 + $0x1848] ss:$16 sps:$4 sm:$0xff]  }
 0x305   : > { %8667 = vmatprep.subr.bf16.mxu0 %v12749_v63  ;;  %9527 = vmatprep.subr.bf16.mxu1 %v12752_v0  ;;  %v12839_v63 = vld [vmem:[%s13800_s11 + $0x1864] ss:$16 sps:$4 sm:$0xff]   ;;  %v12842_v0 = vld [vmem:[%s13800_s11 + $0x186c] ss:$16 sps:$4 sm:$0xff]  }
 0x308   : > { %8668 = vmatpush1.bf16.msra.mxu0 %v12747_v1  ;;  %9528 = vmatpush1.bf16.msra.mxu1 %v12750_v2  ;;  %v12837_v1 = vld [vmem:[%s13800_s11 + $0x1860] ss:$16 sps:$4 sm:$0xff]   ;;  %v12840_v2 = vld [vmem:[%s13800_s11 + $0x1868] ss:$16 sps:$4 sm:$0xff]  }
 0x309   : > { %8669 = vmatprep.subr.bf16.mxu0 %v12755_v3  ;;  %9529 = vmatprep.subr.bf16.mxu1 %v12758_v4  ;;  %v12845_v3 = vld [vmem:[%s13800_s11 + $0x1884] ss:$16 sps:$4 sm:$0xff]   ;;  %v12848_v4 = vld [vmem:[%s13800_s11 + $0x188c] ss:$16 sps:$4 sm:$0xff]  }
 0x30c   : > { %8670 = vmatpush1.bf16.msra.mxu0 %v12753_v5  ;;  %9530 = vmatpush1.bf16.msra.mxu1 %v12756_v6  ;;  %v12843_v5 = vld [vmem:[%s13800_s11 + $0x1880] ss:$16 sps:$4 sm:$0xff]   ;;  %v12846_v6 = vld [vmem:[%s13800_s11 + $0x1888] ss:$16 sps:$4 sm:$0xff]  }
 0x30d   : > { %8671 = vmatprep.subr.bf16.mxu0 %v12761_v7  ;;  %9531 = vmatprep.subr.bf16.mxu1 %v12764_v8  ;;  %v12851_v7 = vld [vmem:[%s13800_s11 + $0x18a4] ss:$16 sps:$4 sm:$0xff]   ;;  %v12854_v8 = vld [vmem:[%s13800_s11 + $0x18ac] ss:$16 sps:$4 sm:$0xff]  }
 0x310   : > { %8672 = vmatpush1.bf16.msra.mxu0 %v12759_v9  ;;  %9532 = vmatpush1.bf16.msra.mxu1 %v12762_v10  ;;  %v12849_v9 = vld [vmem:[%s13800_s11 + $0x18a0] ss:$16 sps:$4 sm:$0xff]   ;;  %v12852_v10 = vld [vmem:[%s13800_s11 + $0x18a8] ss:$16 sps:$4 sm:$0xff]  }
 0x311   : > { %8673 = vmatprep.subr.bf16.mxu0 %v12767_v11  ;;  %9533 = vmatprep.subr.bf16.mxu1 %v12770_v12  ;;  %v12857_v11 = vld [vmem:[%s13800_s11 + $0x18c4] ss:$16 sps:$4 sm:$0xff]   ;;  %v12860_v12 = vld [vmem:[%s13800_s11 + $0x18cc] ss:$16 sps:$4 sm:$0xff]  }
 0x314   : > { %8674 = vmatpush1.bf16.msra.mxu0 %v12765_v13  ;;  %9534 = vmatpush1.bf16.msra.mxu1 %v12768_v16  ;;  %v12855_v13 = vld [vmem:[%s13800_s11 + $0x18c0] ss:$16 sps:$4 sm:$0xff]   ;;  %v12858_v16 = vld [vmem:[%s13800_s11 + $0x18c8] ss:$16 sps:$4 sm:$0xff]  }
 0x315   : > { %8675 = vmatprep.subr.bf16.mxu0 %v12773_v17  ;;  %9535 = vmatprep.subr.bf16.mxu1 %v12776_v20  ;;  %v12863_v17 = vld [vmem:[%s13800_s11 + $0x18e4] ss:$16 sps:$4 sm:$0xff]   ;;  %v12866_v20 = vld [vmem:[%s13800_s11 + $0x18ec] ss:$16 sps:$4 sm:$0xff]  }
 0x318   : > { %8676 = vmatpush1.bf16.msra.mxu0 %v12771_v15  ;;  %9536 = vmatpush1.bf16.msra.mxu1 %v12774_v22  ;;  %v12861_v15 = vld [vmem:[%s13800_s11 + $0x18e0] ss:$16 sps:$4 sm:$0xff]   ;;  %v12864_v22 = vld [vmem:[%s13800_s11 + $0x18e8] ss:$16 sps:$4 sm:$0xff]  }
 0x319   : > { %8677 = vmatprep.subr.bf16.mxu0 %v12779_v23  ;;  %9537 = vmatprep.subr.bf16.mxu1 %v12782_v24  ;;  %v12869_v23 = vld [vmem:[%s13800_s11 + $0x1904] ss:$16 sps:$4 sm:$0xff]   ;;  %v12872_v24 = vld [vmem:[%s13800_s11 + $0x190c] ss:$16 sps:$4 sm:$0xff]  }
 0x31c   : > { %8678 = vmatpush1.bf16.msra.mxu0 %v12777_v19  ;;  %9538 = vmatpush1.bf16.msra.mxu1 %v12780_v26  ;;  %v12867_v19 = vld [vmem:[%s13800_s11 + $0x1900] ss:$16 sps:$4 sm:$0xff]   ;;  %v12870_v26 = vld [vmem:[%s13800_s11 + $0x1908] ss:$16 sps:$4 sm:$0xff]  }
 0x31d   : > { %8679 = vmatprep.subr.bf16.mxu0 %v12785_v27  ;;  %9539 = vmatprep.subr.bf16.mxu1 %v12788_v28  ;;  %v12875_v27 = vld [vmem:[%s13800_s11 + $0x1924] ss:$16 sps:$4 sm:$0xff]   ;;  %v12878_v28 = vld [vmem:[%s13800_s11 + $0x192c] ss:$16 sps:$4 sm:$0xff]  }
 0x320   : > { %8680 = vmatpush1.bf16.msra.mxu0 %v12783_v14  ;;  %9540 = vmatpush1.bf16.msra.mxu1 %v12786_v21  ;;  %v12873_v14 = vld [vmem:[%s13800_s11 + $0x1920] ss:$16 sps:$4 sm:$0xff]   ;;  %v12876_v21 = vld [vmem:[%s13800_s11 + $0x1928] ss:$16 sps:$4 sm:$0xff]  }
 0x321   : > { %8681 = vmatprep.subr.bf16.mxu0 %v12791_v31  ;;  %9541 = vmatprep.subr.bf16.mxu1 %v12794_v32  ;;  %v12881_v31 = vld [vmem:[%s13800_s11 + $0x1944] ss:$16 sps:$4 sm:$0xff]   ;;  %v12884_v32 = vld [vmem:[%s13800_s11 + $0x194c] ss:$16 sps:$4 sm:$0xff]  }
 0x324   : > { %8682 = vmatpush1.bf16.msra.mxu0 %v12789_v25  ;;  %9542 = vmatpush1.bf16.msra.mxu1 %v12792_v18  ;;  %v12879_v25 = vld [vmem:[%s13800_s11 + $0x1940] ss:$16 sps:$4 sm:$0xff]   ;;  %v12882_v18 = vld [vmem:[%s13800_s11 + $0x1948] ss:$16 sps:$4 sm:$0xff]  }
 0x325   : > { %8683 = vmatprep.subr.bf16.mxu0 %v12797_v35  ;;  %9543 = vmatprep.subr.bf16.mxu1 %v12800_v36  ;;  %v12887_v35 = vld [vmem:[%s13800_s11 + $0x1964] ss:$16 sps:$4 sm:$0xff]   ;;  %v12890_v36 = vld [vmem:[%s13800_s11 + $0x196c] ss:$16 sps:$4 sm:$0xff]  }
 0x328   : > { %8684 = vmatpush1.bf16.msra.mxu0 %v12795_v29  ;;  %9544 = vmatpush1.bf16.msra.mxu1 %v12798_v30  ;;  %v12885_v29 = vld [vmem:[%s13800_s11 + $0x1960] ss:$16 sps:$4 sm:$0xff]   ;;  %v12888_v30 = vld [vmem:[%s13800_s11 + $0x1968] ss:$16 sps:$4 sm:$0xff]  }
 0x329   : > { %8685 = vmatprep.subr.bf16.mxu0 %v12803_v39  ;;  %9545 = vmatprep.subr.bf16.mxu1 %v12806_v40  ;;  %v12893_v39 = vld [vmem:[%s13800_s11 + $0x1984] ss:$16 sps:$4 sm:$0xff]   ;;  %v12896_v40 = vld [vmem:[%s13800_s11 + $0x198c] ss:$16 sps:$4 sm:$0xff]  }
 0x32c   : > { %8686 = vmatpush1.bf16.msra.mxu0 %v12801_v33  ;;  %9546 = vmatpush1.bf16.msra.mxu1 %v12804_v34  ;;  %v12891_v33 = vld [vmem:[%s13800_s11 + $0x1980] ss:$16 sps:$4 sm:$0xff]   ;;  %v12894_v34 = vld [vmem:[%s13800_s11 + $0x1988] ss:$16 sps:$4 sm:$0xff]  }
 0x32d   : > { %8687 = vmatprep.subr.bf16.mxu0 %v12809_v43  ;;  %9547 = vmatprep.subr.bf16.mxu1 %v12812_v44  ;;  %v12899_v43 = vld [vmem:[%s13800_s11 + $0x19a4] ss:$16 sps:$4 sm:$0xff]   ;;  %v12902_v44 = vld [vmem:[%s13800_s11 + $0x19ac] ss:$16 sps:$4 sm:$0xff]  }
 0x330   : > { %8688 = vmatpush1.bf16.msra.mxu0 %v12807_v37  ;;  %9548 = vmatpush1.bf16.msra.mxu1 %v12810_v38  ;;  %v12897_v37 = vld [vmem:[%s13800_s11 + $0x19a0] ss:$16 sps:$4 sm:$0xff]   ;;  %v12900_v38 = vld [vmem:[%s13800_s11 + $0x19a8] ss:$16 sps:$4 sm:$0xff]  }
 0x331   : > { %8689 = vmatprep.subr.bf16.mxu0 %v12815_v47  ;;  %9549 = vmatprep.subr.bf16.mxu1 %v12818_v48  ;;  %v12905_v47 = vld [vmem:[%s13800_s11 + $0x19c4] ss:$16 sps:$4 sm:$0xff]   ;;  %v12908_v48 = vld [vmem:[%s13800_s11 + $0x19cc] ss:$16 sps:$4 sm:$0xff]  }
 0x334   : > { %8690 = vmatpush1.bf16.msra.mxu0 %v12813_v41  ;;  %9550 = vmatpush1.bf16.msra.mxu1 %v12816_v42  ;;  %v12903_v41 = vld [vmem:[%s13800_s11 + $0x19c0] ss:$16 sps:$4 sm:$0xff]   ;;  %v12906_v42 = vld [vmem:[%s13800_s11 + $0x19c8] ss:$16 sps:$4 sm:$0xff]  }
 0x335   : > { %8702 = vmatprep.subr.bf16.mxu0 %v12821_v51  ;;  %9562 = vmatprep.subr.bf16.mxu1 %v12824_v52  ;;  %v12911_v51 = vld [vmem:[%s13800_s11 + $0x19e4] ss:$16 sps:$4 sm:$0xff]   ;;  %v12914_v52 = vld [vmem:[%s13800_s11 + $0x19ec] ss:$16 sps:$4 sm:$0xff]  }
 0x337   : > { %8692 = vmatmul.mubr.bf16.vlgmr.msra.gmra.mrb[0].mxu0 %v10149_v53  ;;  %9552 = vmatmul.mubr.bf16.vlgmr.msra.gmra.mrb[0].mxu1 %v10149_v53  ;;  %v12909_v53 = vld [vmem:[%s13800_s11 + $0x19e0] ss:$16 sps:$4 sm:$0xff]  }
 0x338   : > { %8703 = vmatpush1.bf16.msra.mxu0 %v12819_v46  ;;  %9563 = vmatpush1.bf16.msra.mxu1 %v12822_v55  ;;  %v12912_v46 = vld [vmem:[%s13800_s11 + $0x19e8] ss:$16 sps:$4 sm:$0xff]   ;;  %v12917_v55 = vld [vmem:[%s13800_s11 + $0x1a04] ss:$16 sps:$4 sm:$0xff]  }
 0x339   : > { %8704 = vmatprep.subr.bf16.mxu0 %v12827_v49  ;;  %9564 = vmatprep.subr.bf16.mxu1 %v12830_v50  ;;  %v12920_v49 = vld [vmem:[%s13800_s11 + $0x1a0c] ss:$16 sps:$4 sm:$0xff]   ;;  %v10151_v50 = vcombine.low %v14739_v54, %v14744_v45  ;;  %v12923_v54 = vld [vmem:[%s13800_s11 + $0x1a24] ss:$16 sps:$4 sm:$0xff]  }
 0x33a   : > { %8734 = vmatprep.mubr.bf16.mxu0 %v10152_v56  ;;  %9594 = vmatprep.mubr.bf16.mxu1 %v10152_v56  ;;  %v14817_v56 = vld [vmem:[%s15387_s0 + $0x68] sm:$0xff] }
 0x33b   : > { %v12926_v45 = vld [vmem:[%s13800_s11 + $0x1a2c] ss:$16 sps:$4 sm:$0xff]  }
 0x33c   : > { %8705 = vmatpush1.bf16.msra.mxu0 %v12825_v57  ;;  %9565 = vmatpush1.bf16.msra.mxu1 %v12828_v58  ;;  %v14822_v57 = vld [vmem:[%s15387_s0 + $0x108] sm:$0xff]  ;;  %v12915_v58 = vld [vmem:[%s13800_s11 + $0x1a00] ss:$16 sps:$4 sm:$0xff]  }
 0x33d   : > { %8706 = vmatprep.subr.bf16.mxu0 %v12833_v59  ;;  %9566 = vmatprep.subr.bf16.mxu1 %v12836_v60  ;;  %v12918_v59 = vld [vmem:[%s13800_s11 + $0x1a08] ss:$16 sps:$4 sm:$0xff]   ;;  %v10154_v60 = vcombine.high %v14817_v56, %v14822_v57 }
 0x340   : > { %8707 = vmatpush1.bf16.msra.mxu0 %v12831_v61  ;;  %9567 = vmatpush1.bf16.msra.mxu1 %v12834_v62  ;;  %v12921_v61 = vld [vmem:[%s13800_s11 + $0x1a20] ss:$16 sps:$4 sm:$0xff]   ;;  %v12924_v62 = vld [vmem:[%s13800_s11 + $0x1a28] ss:$16 sps:$4 sm:$0xff]  }
 0x341   : > { %8708 = vmatprep.subr.bf16.mxu0 %v12839_v63  ;;  %9568 = vmatprep.subr.bf16.mxu1 %v12842_v0  ;;  %v12929_v63 = vld [vmem:[%s13800_s11 + $0x1a44] ss:$16 sps:$4 sm:$0xff]   ;;  %v12932_v0 = vld [vmem:[%s13800_s11 + $0x1a4c] ss:$16 sps:$4 sm:$0xff]  }
 0x344   : > { %8709 = vmatpush1.bf16.msra.mxu0 %v12837_v1  ;;  %9569 = vmatpush1.bf16.msra.mxu1 %v12840_v2  ;;  %v12927_v1 = vld [vmem:[%s13800_s11 + $0x1a40] ss:$16 sps:$4 sm:$0xff]   ;;  %v12930_v2 = vld [vmem:[%s13800_s11 + $0x1a48] ss:$16 sps:$4 sm:$0xff]  }
 0x345   : > { %8710 = vmatprep.subr.bf16.mxu0 %v12845_v3  ;;  %9570 = vmatprep.subr.bf16.mxu1 %v12848_v4  ;;  %v12935_v3 = vld [vmem:[%s13800_s11 + $0x1a64] ss:$16 sps:$4 sm:$0xff]   ;;  %v12938_v4 = vld [vmem:[%s13800_s11 + $0x1a6c] ss:$16 sps:$4 sm:$0xff]  }
 0x348   : > { %8711 = vmatpush1.bf16.msra.mxu0 %v12843_v5  ;;  %9571 = vmatpush1.bf16.msra.mxu1 %v12846_v6  ;;  %v12933_v5 = vld [vmem:[%s13800_s11 + $0x1a60] ss:$16 sps:$4 sm:$0xff]   ;;  %v12936_v6 = vld [vmem:[%s13800_s11 + $0x1a68] ss:$16 sps:$4 sm:$0xff]  }
 0x349   : > { %8712 = vmatprep.subr.bf16.mxu0 %v12851_v7  ;;  %9572 = vmatprep.subr.bf16.mxu1 %v12854_v8  ;;  %v12941_v7 = vld [vmem:[%s13800_s11 + $0x1a84] ss:$16 sps:$4 sm:$0xff]   ;;  %v12944_v8 = vld [vmem:[%s13800_s11 + $0x1a8c] ss:$16 sps:$4 sm:$0xff]  }
 0x34c   : > { %8713 = vmatpush1.bf16.msra.mxu0 %v12849_v9  ;;  %9573 = vmatpush1.bf16.msra.mxu1 %v12852_v10  ;;  %v12939_v9 = vld [vmem:[%s13800_s11 + $0x1a80] ss:$16 sps:$4 sm:$0xff]   ;;  %v12942_v10 = vld [vmem:[%s13800_s11 + $0x1a88] ss:$16 sps:$4 sm:$0xff]  }
 0x34d   : > { %8714 = vmatprep.subr.bf16.mxu0 %v12857_v11  ;;  %9574 = vmatprep.subr.bf16.mxu1 %v12860_v12  ;;  %v12947_v11 = vld [vmem:[%s13800_s11 + $0x1aa4] ss:$16 sps:$4 sm:$0xff]   ;;  %v12950_v12 = vld [vmem:[%s13800_s11 + $0x1aac] ss:$16 sps:$4 sm:$0xff]  }
 0x350   : > { %8715 = vmatpush1.bf16.msra.mxu0 %v12855_v13  ;;  %9575 = vmatpush1.bf16.msra.mxu1 %v12858_v16  ;;  %v12945_v13 = vld [vmem:[%s13800_s11 + $0x1aa0] ss:$16 sps:$4 sm:$0xff]   ;;  %v12948_v16 = vld [vmem:[%s13800_s11 + $0x1aa8] ss:$16 sps:$4 sm:$0xff]  }
 0x351   : > { %8716 = vmatprep.subr.bf16.mxu0 %v12863_v17  ;;  %9576 = vmatprep.subr.bf16.mxu1 %v12866_v20  ;;  %v12953_v17 = vld [vmem:[%s13800_s11 + $0x1ac4] ss:$16 sps:$4 sm:$0xff]   ;;  %v12956_v20 = vld [vmem:[%s13800_s11 + $0x1acc] ss:$16 sps:$4 sm:$0xff]  }
 0x354   : > { %8717 = vmatpush1.bf16.msra.mxu0 %v12861_v15  ;;  %9577 = vmatpush1.bf16.msra.mxu1 %v12864_v22  ;;  %v12951_v15 = vld [vmem:[%s13800_s11 + $0x1ac0] ss:$16 sps:$4 sm:$0xff]   ;;  %v12954_v22 = vld [vmem:[%s13800_s11 + $0x1ac8] ss:$16 sps:$4 sm:$0xff]  }
 0x355   : > { %8718 = vmatprep.subr.bf16.mxu0 %v12869_v23  ;;  %9578 = vmatprep.subr.bf16.mxu1 %v12872_v24  ;;  %v12959_v23 = vld [vmem:[%s13800_s11 + $0x1ae4] ss:$16 sps:$4 sm:$0xff]   ;;  %v12962_v24 = vld [vmem:[%s13800_s11 + $0x1aec] ss:$16 sps:$4 sm:$0xff]  }
 0x358   : > { %8719 = vmatpush1.bf16.msra.mxu0 %v12867_v19  ;;  %9579 = vmatpush1.bf16.msra.mxu1 %v12870_v26  ;;  %v12957_v19 = vld [vmem:[%s13800_s11 + $0x1ae0] ss:$16 sps:$4 sm:$0xff]   ;;  %v12960_v26 = vld [vmem:[%s13800_s11 + $0x1ae8] ss:$16 sps:$4 sm:$0xff]  }
 0x359   : > { %8720 = vmatprep.subr.bf16.mxu0 %v12875_v27  ;;  %9580 = vmatprep.subr.bf16.mxu1 %v12878_v28  ;;  %v12965_v27 = vld [vmem:[%s13800_s11 + $0x1b04] ss:$16 sps:$4 sm:$0xff]   ;;  %v12968_v28 = vld [vmem:[%s13800_s11 + $0x1b0c] ss:$16 sps:$4 sm:$0xff]  }
 0x35c   : > { %8721 = vmatpush1.bf16.msra.mxu0 %v12873_v14  ;;  %9581 = vmatpush1.bf16.msra.mxu1 %v12876_v21  ;;  %v12963_v14 = vld [vmem:[%s13800_s11 + $0x1b00] ss:$16 sps:$4 sm:$0xff]   ;;  %v12966_v21 = vld [vmem:[%s13800_s11 + $0x1b08] ss:$16 sps:$4 sm:$0xff]  }
 0x35d   : > { %8722 = vmatprep.subr.bf16.mxu0 %v12881_v31  ;;  %9582 = vmatprep.subr.bf16.mxu1 %v12884_v32  ;;  %v12971_v31 = vld [vmem:[%s13800_s11 + $0x1b24] ss:$16 sps:$4 sm:$0xff]   ;;  %v12974_v32 = vld [vmem:[%s13800_s11 + $0x1b2c] ss:$16 sps:$4 sm:$0xff]  }
 0x360   : > { %8723 = vmatpush1.bf16.msra.mxu0 %v12879_v25  ;;  %9583 = vmatpush1.bf16.msra.mxu1 %v12882_v18  ;;  %v12969_v25 = vld [vmem:[%s13800_s11 + $0x1b20] ss:$16 sps:$4 sm:$0xff]   ;;  %v12972_v18 = vld [vmem:[%s13800_s11 + $0x1b28] ss:$16 sps:$4 sm:$0xff]  }
 0x361   : > { %8724 = vmatprep.subr.bf16.mxu0 %v12887_v35  ;;  %9584 = vmatprep.subr.bf16.mxu1 %v12890_v36  ;;  %v12977_v35 = vld [vmem:[%s13800_s11 + $0x1b44] ss:$16 sps:$4 sm:$0xff]   ;;  %v12980_v36 = vld [vmem:[%s13800_s11 + $0x1b4c] ss:$16 sps:$4 sm:$0xff]  }
 0x364   : > { %8725 = vmatpush1.bf16.msra.mxu0 %v12885_v29  ;;  %9585 = vmatpush1.bf16.msra.mxu1 %v12888_v30  ;;  %v12975_v29 = vld [vmem:[%s13800_s11 + $0x1b40] ss:$16 sps:$4 sm:$0xff]   ;;  %v12978_v30 = vld [vmem:[%s13800_s11 + $0x1b48] ss:$16 sps:$4 sm:$0xff]  }
 0x365   : > { %8726 = vmatprep.subr.bf16.mxu0 %v12893_v39  ;;  %9586 = vmatprep.subr.bf16.mxu1 %v12896_v40  ;;  %v12983_v39 = vld [vmem:[%s13800_s11 + $0x1b64] ss:$16 sps:$4 sm:$0xff]   ;;  %v12986_v40 = vld [vmem:[%s13800_s11 + $0x1b6c] ss:$16 sps:$4 sm:$0xff]  }
 0x368   : > { %8727 = vmatpush1.bf16.msra.mxu0 %v12891_v33  ;;  %9587 = vmatpush1.bf16.msra.mxu1 %v12894_v34  ;;  %v12981_v33 = vld [vmem:[%s13800_s11 + $0x1b60] ss:$16 sps:$4 sm:$0xff]   ;;  %v12984_v34 = vld [vmem:[%s13800_s11 + $0x1b68] ss:$16 sps:$4 sm:$0xff]  }
 0x369   : > { %8728 = vmatprep.subr.bf16.mxu0 %v12899_v43  ;;  %9588 = vmatprep.subr.bf16.mxu1 %v12902_v44  ;;  %v12989_v43 = vld [vmem:[%s13800_s11 + $0x1b84] ss:$16 sps:$4 sm:$0xff]   ;;  %v12992_v44 = vld [vmem:[%s13800_s11 + $0x1b8c] ss:$16 sps:$4 sm:$0xff]  }
 0x36c   : > { %8729 = vmatpush1.bf16.msra.mxu0 %v12897_v37  ;;  %9589 = vmatpush1.bf16.msra.mxu1 %v12900_v38  ;;  %v12987_v37 = vld [vmem:[%s13800_s11 + $0x1b80] ss:$16 sps:$4 sm:$0xff]   ;;  %v12990_v38 = vld [vmem:[%s13800_s11 + $0x1b88] ss:$16 sps:$4 sm:$0xff]  }
 0x36d   : > { %8730 = vmatprep.subr.bf16.mxu0 %v12905_v47  ;;  %9590 = vmatprep.subr.bf16.mxu1 %v12908_v48  ;;  %v12995_v47 = vld [vmem:[%s13800_s11 + $0x1ba4] ss:$16 sps:$4 sm:$0xff]   ;;  %v12998_v48 = vld [vmem:[%s13800_s11 + $0x1bac] ss:$16 sps:$4 sm:$0xff]  }
 0x370   : > { %8731 = vmatpush1.bf16.msra.mxu0 %v12903_v41  ;;  %9591 = vmatpush1.bf16.msra.mxu1 %v12906_v42  ;;  %v12993_v41 = vld [vmem:[%s13800_s11 + $0x1ba0] ss:$16 sps:$4 sm:$0xff]   ;;  %v12996_v42 = vld [vmem:[%s13800_s11 + $0x1ba8] ss:$16 sps:$4 sm:$0xff]  }
 0x371   : > { %8732 = vmatprep.subr.bf16.mxu0 %v12911_v51  ;;  %9592 = vmatprep.subr.bf16.mxu1 %v12914_v52  ;;  %v13001_v51 = vld [vmem:[%s13800_s11 + $0x1bc4] ss:$16 sps:$4 sm:$0xff]   ;;  %v13004_v52 = vld [vmem:[%s13800_s11 + $0x1bcc] ss:$16 sps:$4 sm:$0xff]  }
 0x374   : > { %8733 = vmatpush1.bf16.msra.mxu0 %v12909_v53  ;;  %9593 = vmatpush1.bf16.msra.mxu1 %v12912_v46  ;;  %v12999_v53 = vld [vmem:[%s13800_s11 + $0x1bc0] ss:$16 sps:$4 sm:$0xff]   ;;  %v13002_v46 = vld [vmem:[%s13800_s11 + $0x1bc8] ss:$16 sps:$4 sm:$0xff]  }
 0x375   : > { %8745 = vmatprep.subr.bf16.mxu0 %v12917_v55  ;;  %9605 = vmatprep.subr.bf16.mxu1 %v12920_v49  ;;  %v13007_v55 = vld [vmem:[%s13800_s11 + $0x1be4] ss:$16 sps:$4 sm:$0xff]   ;;  %v13010_v49 = vld [vmem:[%s13800_s11 + $0x1bec] ss:$16 sps:$4 sm:$0xff]  }
 0x377   : > { %8735 = vmatmul.mubr.bf16.vlgmr.msra.gmra.mrb[0].mxu0 %v10151_v50  ;;  %9595 = vmatmul.mubr.bf16.vlgmr.msra.gmra.mrb[0].mxu1 %v10151_v50  ;;  %v13005_v50 = vld [vmem:[%s13800_s11 + $0x1be0] ss:$16 sps:$4 sm:$0xff]  }
 0x378   : > { %8746 = vmatpush1.bf16.msra.mxu0 %v12915_v58  ;;  %9606 = vmatpush1.bf16.msra.mxu1 %v12918_v59  ;;  %v13008_v58 = vld [vmem:[%s13800_s11 + $0x1be8] ss:$16 sps:$4 sm:$0xff]   ;;  %v13013_v59 = vld [vmem:[%s13800_s11 + $0x1c04] ss:$16 sps:$4 sm:$0xff]  }
 0x379   : > { %8747 = vmatprep.subr.bf16.mxu0 %v12923_v54  ;;  %9607 = vmatprep.subr.bf16.mxu1 %v12926_v45  ;;  %v13016_v54 = vld [vmem:[%s13800_s11 + $0x1c0c] ss:$16 sps:$4 sm:$0xff]   ;;  %v10153_v45 = vcombine.low %v14817_v56, %v14822_v57  ;;  %v13019_v56 = vld [vmem:[%s13800_s11 + $0x1c24] ss:$16 sps:$4 sm:$0xff]  }
 0x37a   : > { %8777 = vmatprep.mubr.bf16.mxu0 %v10154_v60  ;;  %9637 = vmatprep.mubr.bf16.mxu1 %v10154_v60  ;;  %v14895_v60 = vld [vmem:[%s15387_s0 + $0x70] sm:$0xff]  ;;  %v13022_v57 = vld [vmem:[%s13800_s11 + $0x1c2c] ss:$16 sps:$4 sm:$0xff]  }
 0x37c   : > { %8748 = vmatpush1.bf16.msra.mxu0 %v12921_v61  ;;  %9608 = vmatpush1.bf16.msra.mxu1 %v12924_v62  ;;  %v14900_v61 = vld [vmem:[%s15387_s0 + $0x110] sm:$0xff] }
 0x37d   : > { %8749 = vmatprep.subr.bf16.mxu0 %v12929_v63  ;;  %9609 = vmatprep.subr.bf16.mxu1 %v12932_v0  ;;  %v13011_v62 = vld [vmem:[%s13800_s11 + $0x1c00] ss:$16 sps:$4 sm:$0xff]   ;;  %v13014_v63 = vld [vmem:[%s13800_s11 + $0x1c08] ss:$16 sps:$4 sm:$0xff]   ;;  %v10156_v0 = vcombine.high %v14895_v60, %v14900_v61 }
 0x380   : > { %8750 = vmatpush1.bf16.msra.mxu0 %v12927_v1  ;;  %9610 = vmatpush1.bf16.msra.mxu1 %v12930_v2  ;;  %v13017_v1 = vld [vmem:[%s13800_s11 + $0x1c20] ss:$16 sps:$4 sm:$0xff]   ;;  %v13020_v2 = vld [vmem:[%s13800_s11 + $0x1c28] ss:$16 sps:$4 sm:$0xff]  }
 0x381   : > { %8751 = vmatprep.subr.bf16.mxu0 %v12935_v3  ;;  %9611 = vmatprep.subr.bf16.mxu1 %v12938_v4  ;;  %v13025_v3 = vld [vmem:[%s13800_s11 + $0x1c44] ss:$16 sps:$4 sm:$0xff]   ;;  %v13028_v4 = vld [vmem:[%s13800_s11 + $0x1c4c] ss:$16 sps:$4 sm:$0xff]  }
 0x384   : > { %8752 = vmatpush1.bf16.msra.mxu0 %v12933_v5  ;;  %9612 = vmatpush1.bf16.msra.mxu1 %v12936_v6  ;;  %v13023_v5 = vld [vmem:[%s13800_s11 + $0x1c40] ss:$16 sps:$4 sm:$0xff]   ;;  %v13026_v6 = vld [vmem:[%s13800_s11 + $0x1c48] ss:$16 sps:$4 sm:$0xff]  }
 0x385   : > { %8753 = vmatprep.subr.bf16.mxu0 %v12941_v7  ;;  %9613 = vmatprep.subr.bf16.mxu1 %v12944_v8  ;;  %v13031_v7 = vld [vmem:[%s13800_s11 + $0x1c64] ss:$16 sps:$4 sm:$0xff]   ;;  %v13034_v8 = vld [vmem:[%s13800_s11 + $0x1c6c] ss:$16 sps:$4 sm:$0xff]  }
 0x388   : > { %8754 = vmatpush1.bf16.msra.mxu0 %v12939_v9  ;;  %9614 = vmatpush1.bf16.msra.mxu1 %v12942_v10  ;;  %v13029_v9 = vld [vmem:[%s13800_s11 + $0x1c60] ss:$16 sps:$4 sm:$0xff]   ;;  %v13032_v10 = vld [vmem:[%s13800_s11 + $0x1c68] ss:$16 sps:$4 sm:$0xff]  }
 0x389   : > { %8755 = vmatprep.subr.bf16.mxu0 %v12947_v11  ;;  %9615 = vmatprep.subr.bf16.mxu1 %v12950_v12  ;;  %v13037_v11 = vld [vmem:[%s13800_s11 + $0x1c84] ss:$16 sps:$4 sm:$0xff]   ;;  %v13040_v12 = vld [vmem:[%s13800_s11 + $0x1c8c] ss:$16 sps:$4 sm:$0xff]  }
 0x38c   : > { %8756 = vmatpush1.bf16.msra.mxu0 %v12945_v13  ;;  %9616 = vmatpush1.bf16.msra.mxu1 %v12948_v16  ;;  %v13035_v13 = vld [vmem:[%s13800_s11 + $0x1c80] ss:$16 sps:$4 sm:$0xff]   ;;  %v13038_v16 = vld [vmem:[%s13800_s11 + $0x1c88] ss:$16 sps:$4 sm:$0xff]  }
 0x38d   : > { %8757 = vmatprep.subr.bf16.mxu0 %v12953_v17  ;;  %9617 = vmatprep.subr.bf16.mxu1 %v12956_v20  ;;  %v13043_v17 = vld [vmem:[%s13800_s11 + $0x1ca4] ss:$16 sps:$4 sm:$0xff]   ;;  %v13046_v20 = vld [vmem:[%s13800_s11 + $0x1cac] ss:$16 sps:$4 sm:$0xff]  }
 0x390   : > { %8758 = vmatpush1.bf16.msra.mxu0 %v12951_v15  ;;  %9618 = vmatpush1.bf16.msra.mxu1 %v12954_v22  ;;  %v13041_v15 = vld [vmem:[%s13800_s11 + $0x1ca0] ss:$16 sps:$4 sm:$0xff]   ;;  %v13044_v22 = vld [vmem:[%s13800_s11 + $0x1ca8] ss:$16 sps:$4 sm:$0xff]  }
 0x391   : > { %8759 = vmatprep.subr.bf16.mxu0 %v12959_v23  ;;  %9619 = vmatprep.subr.bf16.mxu1 %v12962_v24  ;;  %v13049_v23 = vld [vmem:[%s13800_s11 + $0x1cc4] ss:$16 sps:$4 sm:$0xff]   ;;  %v13052_v24 = vld [vmem:[%s13800_s11 + $0x1ccc] ss:$16 sps:$4 sm:$0xff]  }
 0x394   : > { %8760 = vmatpush1.bf16.msra.mxu0 %v12957_v19  ;;  %9620 = vmatpush1.bf16.msra.mxu1 %v12960_v26  ;;  %v13047_v19 = vld [vmem:[%s13800_s11 + $0x1cc0] ss:$16 sps:$4 sm:$0xff]   ;;  %v13050_v26 = vld [vmem:[%s13800_s11 + $0x1cc8] ss:$16 sps:$4 sm:$0xff]  }
 0x395   : > { %8761 = vmatprep.subr.bf16.mxu0 %v12965_v27  ;;  %9621 = vmatprep.subr.bf16.mxu1 %v12968_v28  ;;  %v13055_v27 = vld [vmem:[%s13800_s11 + $0x1ce4] ss:$16 sps:$4 sm:$0xff]   ;;  %v13058_v28 = vld [vmem:[%s13800_s11 + $0x1cec] ss:$16 sps:$4 sm:$0xff]  }
 0x398   : > { %8762 = vmatpush1.bf16.msra.mxu0 %v12963_v14  ;;  %9622 = vmatpush1.bf16.msra.mxu1 %v12966_v21  ;;  %v13053_v14 = vld [vmem:[%s13800_s11 + $0x1ce0] ss:$16 sps:$4 sm:$0xff]   ;;  %v13056_v21 = vld [vmem:[%s13800_s11 + $0x1ce8] ss:$16 sps:$4 sm:$0xff]  }
 0x399   : > { %8763 = vmatprep.subr.bf16.mxu0 %v12971_v31  ;;  %9623 = vmatprep.subr.bf16.mxu1 %v12974_v32  ;;  %v13061_v31 = vld [vmem:[%s13800_s11 + $0x1d04] ss:$16 sps:$4 sm:$0xff]   ;;  %v13064_v32 = vld [vmem:[%s13800_s11 + $0x1d0c] ss:$16 sps:$4 sm:$0xff]  }
 0x39c   : > { %8764 = vmatpush1.bf16.msra.mxu0 %v12969_v25  ;;  %9624 = vmatpush1.bf16.msra.mxu1 %v12972_v18  ;;  %v13059_v25 = vld [vmem:[%s13800_s11 + $0x1d00] ss:$16 sps:$4 sm:$0xff]   ;;  %v13062_v18 = vld [vmem:[%s13800_s11 + $0x1d08] ss:$16 sps:$4 sm:$0xff]  }
 0x39d   : > { %8765 = vmatprep.subr.bf16.mxu0 %v12977_v35  ;;  %9625 = vmatprep.subr.bf16.mxu1 %v12980_v36  ;;  %v13067_v35 = vld [vmem:[%s13800_s11 + $0x1d24] ss:$16 sps:$4 sm:$0xff]   ;;  %v13070_v36 = vld [vmem:[%s13800_s11 + $0x1d2c] ss:$16 sps:$4 sm:$0xff]  }
 0x3a0   : > { %8766 = vmatpush1.bf16.msra.mxu0 %v12975_v29  ;;  %9626 = vmatpush1.bf16.msra.mxu1 %v12978_v30  ;;  %v13065_v29 = vld [vmem:[%s13800_s11 + $0x1d20] ss:$16 sps:$4 sm:$0xff]   ;;  %v13068_v30 = vld [vmem:[%s13800_s11 + $0x1d28] ss:$16 sps:$4 sm:$0xff]  }
 0x3a1   : > { %8767 = vmatprep.subr.bf16.mxu0 %v12983_v39  ;;  %9627 = vmatprep.subr.bf16.mxu1 %v12986_v40  ;;  %v13073_v39 = vld [vmem:[%s13800_s11 + $0x1d44] ss:$16 sps:$4 sm:$0xff]   ;;  %v13076_v40 = vld [vmem:[%s13800_s11 + $0x1d4c] ss:$16 sps:$4 sm:$0xff]  }
 0x3a4   : > { %8768 = vmatpush1.bf16.msra.mxu0 %v12981_v33  ;;  %9628 = vmatpush1.bf16.msra.mxu1 %v12984_v34  ;;  %v13071_v33 = vld [vmem:[%s13800_s11 + $0x1d40] ss:$16 sps:$4 sm:$0xff]   ;;  %v13074_v34 = vld [vmem:[%s13800_s11 + $0x1d48] ss:$16 sps:$4 sm:$0xff]  }
 0x3a5   : > { %8769 = vmatprep.subr.bf16.mxu0 %v12989_v43  ;;  %9629 = vmatprep.subr.bf16.mxu1 %v12992_v44  ;;  %v13079_v43 = vld [vmem:[%s13800_s11 + $0x1d64] ss:$16 sps:$4 sm:$0xff]   ;;  %v13082_v44 = vld [vmem:[%s13800_s11 + $0x1d6c] ss:$16 sps:$4 sm:$0xff]  }
 0x3a8   : > { %8770 = vmatpush1.bf16.msra.mxu0 %v12987_v37  ;;  %9630 = vmatpush1.bf16.msra.mxu1 %v12990_v38  ;;  %v13077_v37 = vld [vmem:[%s13800_s11 + $0x1d60] ss:$16 sps:$4 sm:$0xff]   ;;  %v13080_v38 = vld [vmem:[%s13800_s11 + $0x1d68] ss:$16 sps:$4 sm:$0xff]  }
 0x3a9   : > { %8771 = vmatprep.subr.bf16.mxu0 %v12995_v47  ;;  %9631 = vmatprep.subr.bf16.mxu1 %v12998_v48  ;;  %v13085_v47 = vld [vmem:[%s13800_s11 + $0x1d84] ss:$16 sps:$4 sm:$0xff]   ;;  %v13088_v48 = vld [vmem:[%s13800_s11 + $0x1d8c] ss:$16 sps:$4 sm:$0xff]  }
 0x3ac   : > { %8772 = vmatpush1.bf16.msra.mxu0 %v12993_v41  ;;  %9632 = vmatpush1.bf16.msra.mxu1 %v12996_v42  ;;  %v13083_v41 = vld [vmem:[%s13800_s11 + $0x1d80] ss:$16 sps:$4 sm:$0xff]   ;;  %v13086_v42 = vld [vmem:[%s13800_s11 + $0x1d88] ss:$16 sps:$4 sm:$0xff]  }
 0x3ad   : > { %8773 = vmatprep.subr.bf16.mxu0 %v13001_v51  ;;  %9633 = vmatprep.subr.bf16.mxu1 %v13004_v52  ;;  %v13091_v51 = vld [vmem:[%s13800_s11 + $0x1da4] ss:$16 sps:$4 sm:$0xff]   ;;  %v13094_v52 = vld [vmem:[%s13800_s11 + $0x1dac] ss:$16 sps:$4 sm:$0xff]  }
 0x3b0   : > { %8774 = vmatpush1.bf16.msra.mxu0 %v12999_v53  ;;  %9634 = vmatpush1.bf16.msra.mxu1 %v13002_v46  ;;  %v13089_v53 = vld [vmem:[%s13800_s11 + $0x1da0] ss:$16 sps:$4 sm:$0xff]   ;;  %v13092_v46 = vld [vmem:[%s13800_s11 + $0x1da8] ss:$16 sps:$4 sm:$0xff]  }
 0x3b1   : > { %8775 = vmatprep.subr.bf16.mxu0 %v13007_v55  ;;  %9635 = vmatprep.subr.bf16.mxu1 %v13010_v49  ;;  %v13097_v55 = vld [vmem:[%s13800_s11 + $0x1dc4] ss:$16 sps:$4 sm:$0xff]   ;;  %v13100_v49 = vld [vmem:[%s13800_s11 + $0x1dcc] ss:$16 sps:$4 sm:$0xff]  }
 0x3b4   : > { %8776 = vmatpush1.bf16.msra.mxu0 %v13005_v50  ;;  %9636 = vmatpush1.bf16.msra.mxu1 %v13008_v58  ;;  %v13095_v50 = vld [vmem:[%s13800_s11 + $0x1dc0] ss:$16 sps:$4 sm:$0xff]   ;;  %v13098_v58 = vld [vmem:[%s13800_s11 + $0x1dc8] ss:$16 sps:$4 sm:$0xff]  }
 0x3b5   : > { %8788 = vmatprep.subr.bf16.mxu0 %v13013_v59  ;;  %9648 = vmatprep.subr.bf16.mxu1 %v13016_v54  ;;  %v13103_v59 = vld [vmem:[%s13800_s11 + $0x1de4] ss:$16 sps:$4 sm:$0xff]   ;;  %v13106_v54 = vld [vmem:[%s13800_s11 + $0x1dec] ss:$16 sps:$4 sm:$0xff]  }
 0x3b7   : > { %8778 = vmatmul.mubr.bf16.vlgmr.msra.gmra.mrb[0].mxu0 %v10153_v45  ;;  %9638 = vmatmul.mubr.bf16.vlgmr.msra.gmra.mrb[0].mxu1 %v10153_v45  ;;  %v13101_v45 = vld [vmem:[%s13800_s11 + $0x1de0] ss:$16 sps:$4 sm:$0xff]  }
 0x3b8   : > { %8789 = vmatpush1.bf16.msra.mxu0 %v13011_v62  ;;  %9649 = vmatpush1.bf16.msra.mxu1 %v13014_v63  ;;  %v13104_v62 = vld [vmem:[%s13800_s11 + $0x1de8] ss:$16 sps:$4 sm:$0xff]   ;;  %v13109_v63 = vld [vmem:[%s13800_s11 + $0x1e04] ss:$16 sps:$4 sm:$0xff]  }
 0x3b9   : > { %8790 = vmatprep.subr.bf16.mxu0 %v13019_v56  ;;  %9650 = vmatprep.subr.bf16.mxu1 %v13022_v57  ;;  %v13112_v56 = vld [vmem:[%s13800_s11 + $0x1e0c] ss:$16 sps:$4 sm:$0xff]   ;;  %v10155_v57 = vcombine.low %v14895_v60, %v14900_v61  ;;  %v13115_v60 = vld [vmem:[%s13800_s11 + $0x1e24] ss:$16 sps:$4 sm:$0xff]  }
 0x3ba   : > { %8820 = vmatprep.mubr.bf16.mxu0 %v10156_v0  ;;  %9680 = vmatprep.mubr.bf16.mxu1 %v10156_v0  ;;  %v14973_v0 = vld [vmem:[%s15387_s0 + $0x78] sm:$0xff] }
 0x3bb   : > { %v13118_v61 = vld [vmem:[%s13800_s11 + $0x1e2c] ss:$16 sps:$4 sm:$0xff]  }
 0x3bc   : > { %8791 = vmatpush1.bf16.msra.mxu0 %v13017_v1  ;;  %9651 = vmatpush1.bf16.msra.mxu1 %v13020_v2  ;;  %v14978_v1 = vld [vmem:[%s15387_s0 + $0x118] sm:$0xff]  ;;  %v13107_v2 = vld [vmem:[%s13800_s11 + $0x1e00] ss:$16 sps:$4 sm:$0xff]  }
 0x3bd   : > { %8792 = vmatprep.subr.bf16.mxu0 %v13025_v3  ;;  %9652 = vmatprep.subr.bf16.mxu1 %v13028_v4  ;;  %v13110_v3 = vld [vmem:[%s13800_s11 + $0x1e08] ss:$16 sps:$4 sm:$0xff]   ;;  %v10158_v4 = vcombine.high %v14973_v0, %v14978_v1 }
 0x3c0   : > { %8793 = vmatpush1.bf16.msra.mxu0 %v13023_v5  ;;  %9653 = vmatpush1.bf16.msra.mxu1 %v13026_v6  ;;  %v13113_v5 = vld [vmem:[%s13800_s11 + $0x1e20] ss:$16 sps:$4 sm:$0xff]   ;;  %v13116_v6 = vld [vmem:[%s13800_s11 + $0x1e28] ss:$16 sps:$4 sm:$0xff]  }
 0x3c1   : > { %8794 = vmatprep.subr.bf16.mxu0 %v13031_v7  ;;  %9654 = vmatprep.subr.bf16.mxu1 %v13034_v8  ;;  %v13121_v7 = vld [vmem:[%s13800_s11 + $0x1e44] ss:$16 sps:$4 sm:$0xff]   ;;  %v13124_v8 = vld [vmem:[%s13800_s11 + $0x1e4c] ss:$16 sps:$4 sm:$0xff]  }
 0x3c4   : > { %8795 = vmatpush1.bf16.msra.mxu0 %v13029_v9  ;;  %9655 = vmatpush1.bf16.msra.mxu1 %v13032_v10  ;;  %v13119_v9 = vld [vmem:[%s13800_s11 + $0x1e40] ss:$16 sps:$4 sm:$0xff]   ;;  %v13122_v10 = vld [vmem:[%s13800_s11 + $0x1e48] ss:$16 sps:$4 sm:$0xff]  }
 0x3c5   : > { %8796 = vmatprep.subr.bf16.mxu0 %v13037_v11  ;;  %9656 = vmatprep.subr.bf16.mxu1 %v13040_v12  ;;  %v13127_v11 = vld [vmem:[%s13800_s11 + $0x1e64] ss:$16 sps:$4 sm:$0xff]   ;;  %v13130_v12 = vld [vmem:[%s13800_s11 + $0x1e6c] ss:$16 sps:$4 sm:$0xff]  }
 0x3c8   : > { %8797 = vmatpush1.bf16.msra.mxu0 %v13035_v13  ;;  %9657 = vmatpush1.bf16.msra.mxu1 %v13038_v16  ;;  %v13125_v13 = vld [vmem:[%s13800_s11 + $0x1e60] ss:$16 sps:$4 sm:$0xff]   ;;  %v13128_v16 = vld [vmem:[%s13800_s11 + $0x1e68] ss:$16 sps:$4 sm:$0xff]  }
 0x3c9   : > { %8798 = vmatprep.subr.bf16.mxu0 %v13043_v17  ;;  %9658 = vmatprep.subr.bf16.mxu1 %v13046_v20  ;;  %v13133_v17 = vld [vmem:[%s13800_s11 + $0x1e84] ss:$16 sps:$4 sm:$0xff]   ;;  %v13136_v20 = vld [vmem:[%s13800_s11 + $0x1e8c] ss:$16 sps:$4 sm:$0xff]  }
 0x3cc   : > { %8799 = vmatpush1.bf16.msra.mxu0 %v13041_v15  ;;  %9659 = vmatpush1.bf16.msra.mxu1 %v13044_v22  ;;  %v13131_v15 = vld [vmem:[%s13800_s11 + $0x1e80] ss:$16 sps:$4 sm:$0xff]   ;;  %v13134_v22 = vld [vmem:[%s13800_s11 + $0x1e88] ss:$16 sps:$4 sm:$0xff]  }
 0x3cd   : > { %8800 = vmatprep.subr.bf16.mxu0 %v13049_v23  ;;  %9660 = vmatprep.subr.bf16.mxu1 %v13052_v24  ;;  %v13139_v23 = vld [vmem:[%s13800_s11 + $0x1ea4] ss:$16 sps:$4 sm:$0xff]   ;;  %v13142_v24 = vld [vmem:[%s13800_s11 + $0x1eac] ss:$16 sps:$4 sm:$0xff]  }
 0x3d0   : > { %8801 = vmatpush1.bf16.msra.mxu0 %v13047_v19  ;;  %9661 = vmatpush1.bf16.msra.mxu1 %v13050_v26  ;;  %v13137_v19 = vld [vmem:[%s13800_s11 + $0x1ea0] ss:$16 sps:$4 sm:$0xff]   ;;  %v13140_v26 = vld [vmem:[%s13800_s11 + $0x1ea8] ss:$16 sps:$4 sm:$0xff]  }
 0x3d1   : > { %8802 = vmatprep.subr.bf16.mxu0 %v13055_v27  ;;  %9662 = vmatprep.subr.bf16.mxu1 %v13058_v28  ;;  %v13145_v27 = vld [vmem:[%s13800_s11 + $0x1ec4] ss:$16 sps:$4 sm:$0xff]   ;;  %v13148_v28 = vld [vmem:[%s13800_s11 + $0x1ecc] ss:$16 sps:$4 sm:$0xff]  }
 0x3d4   : > { %8803 = vmatpush1.bf16.msra.mxu0 %v13053_v14  ;;  %9663 = vmatpush1.bf16.msra.mxu1 %v13056_v21  ;;  %v13143_v14 = vld [vmem:[%s13800_s11 + $0x1ec0] ss:$16 sps:$4 sm:$0xff]   ;;  %v13146_v21 = vld [vmem:[%s13800_s11 + $0x1ec8] ss:$16 sps:$4 sm:$0xff]  }
 0x3d5   : > { %8804 = vmatprep.subr.bf16.mxu0 %v13061_v31  ;;  %9664 = vmatprep.subr.bf16.mxu1 %v13064_v32  ;;  %v13151_v31 = vld [vmem:[%s13800_s11 + $0x1ee4] ss:$16 sps:$4 sm:$0xff]   ;;  %v13154_v32 = vld [vmem:[%s13800_s11 + $0x1eec] ss:$16 sps:$4 sm:$0xff]  }
 0x3d8   : > { %8805 = vmatpush1.bf16.msra.mxu0 %v13059_v25  ;;  %9665 = vmatpush1.bf16.msra.mxu1 %v13062_v18  ;;  %v13149_v25 = vld [vmem:[%s13800_s11 + $0x1ee0] ss:$16 sps:$4 sm:$0xff]   ;;  %v13152_v18 = vld [vmem:[%s13800_s11 + $0x1ee8] ss:$16 sps:$4 sm:$0xff]  }
 0x3d9   : > { %8806 = vmatprep.subr.bf16.mxu0 %v13067_v35  ;;  %9666 = vmatprep.subr.bf16.mxu1 %v13070_v36  ;;  %v13157_v35 = vld [vmem:[%s13800_s11 + $0x1f04] ss:$16 sps:$4 sm:$0xff]   ;;  %v13160_v36 = vld [vmem:[%s13800_s11 + $0x1f0c] ss:$16 sps:$4 sm:$0xff]  }
 0x3dc   : > { %8807 = vmatpush1.bf16.msra.mxu0 %v13065_v29  ;;  %9667 = vmatpush1.bf16.msra.mxu1 %v13068_v30  ;;  %v13155_v29 = vld [vmem:[%s13800_s11 + $0x1f00] ss:$16 sps:$4 sm:$0xff]   ;;  %v13158_v30 = vld [vmem:[%s13800_s11 + $0x1f08] ss:$16 sps:$4 sm:$0xff]  }
 0x3dd   : > { %8808 = vmatprep.subr.bf16.mxu0 %v13073_v39  ;;  %9668 = vmatprep.subr.bf16.mxu1 %v13076_v40  ;;  %v13163_v39 = vld [vmem:[%s13800_s11 + $0x1f24] ss:$16 sps:$4 sm:$0xff]   ;;  %v13166_v40 = vld [vmem:[%s13800_s11 + $0x1f2c] ss:$16 sps:$4 sm:$0xff]  }
 0x3e0   : > { %8809 = vmatpush1.bf16.msra.mxu0 %v13071_v33  ;;  %9669 = vmatpush1.bf16.msra.mxu1 %v13074_v34  ;;  %v13161_v33 = vld [vmem:[%s13800_s11 + $0x1f20] ss:$16 sps:$4 sm:$0xff]   ;;  %v13164_v34 = vld [vmem:[%s13800_s11 + $0x1f28] ss:$16 sps:$4 sm:$0xff]  }
 0x3e1   : > { %8810 = vmatprep.subr.bf16.mxu0 %v13079_v43  ;;  %9670 = vmatprep.subr.bf16.mxu1 %v13082_v44  ;;  %v13169_v43 = vld [vmem:[%s13800_s11 + $0x1f44] ss:$16 sps:$4 sm:$0xff]   ;;  %v13172_v44 = vld [vmem:[%s13800_s11 + $0x1f4c] ss:$16 sps:$4 sm:$0xff]  }
 0x3e4   : > { %8811 = vmatpush1.bf16.msra.mxu0 %v13077_v37  ;;  %9671 = vmatpush1.bf16.msra.mxu1 %v13080_v38  ;;  %v13167_v37 = vld [vmem:[%s13800_s11 + $0x1f40] ss:$16 sps:$4 sm:$0xff]   ;;  %v13170_v38 = vld [vmem:[%s13800_s11 + $0x1f48] ss:$16 sps:$4 sm:$0xff]  }
 0x3e5   : > { %8812 = vmatprep.subr.bf16.mxu0 %v13085_v47  ;;  %9672 = vmatprep.subr.bf16.mxu1 %v13088_v48  ;;  %v13175_v47 = vld [vmem:[%s13800_s11 + $0x1f64] ss:$16 sps:$4 sm:$0xff]   ;;  %v13178_v48 = vld [vmem:[%s13800_s11 + $0x1f6c] ss:$16 sps:$4 sm:$0xff]  }
 0x3e8   : > { %8813 = vmatpush1.bf16.msra.mxu0 %v13083_v41  ;;  %9673 = vmatpush1.bf16.msra.mxu1 %v13086_v42  ;;  %v13173_v41 = vld [vmem:[%s13800_s11 + $0x1f60] ss:$16 sps:$4 sm:$0xff]   ;;  %v13176_v42 = vld [vmem:[%s13800_s11 + $0x1f68] ss:$16 sps:$4 sm:$0xff]  }
 0x3e9   : > { %8814 = vmatprep.subr.bf16.mxu0 %v13091_v51  ;;  %9674 = vmatprep.subr.bf16.mxu1 %v13094_v52  ;;  %v13181_v51 = vld [vmem:[%s13800_s11 + $0x1f84] ss:$16 sps:$4 sm:$0xff]   ;;  %v13184_v52 = vld [vmem:[%s13800_s11 + $0x1f8c] ss:$16 sps:$4 sm:$0xff]  }
 0x3ec   : > { %8815 = vmatpush1.bf16.msra.mxu0 %v13089_v53  ;;  %9675 = vmatpush1.bf16.msra.mxu1 %v13092_v46  ;;  %v13179_v53 = vld [vmem:[%s13800_s11 + $0x1f80] ss:$16 sps:$4 sm:$0xff]   ;;  %v13182_v46 = vld [vmem:[%s13800_s11 + $0x1f88] ss:$16 sps:$4 sm:$0xff]  }
 0x3ed   : > { %8816 = vmatprep.subr.bf16.mxu0 %v13097_v55  ;;  %9676 = vmatprep.subr.bf16.mxu1 %v13100_v49  ;;  %v13187_v55 = vld [vmem:[%s13800_s11 + $0x1fa4] ss:$16 sps:$4 sm:$0xff]   ;;  %v13190_v49 = vld [vmem:[%s13800_s11 + $0x1fac] ss:$16 sps:$4 sm:$0xff]  }
 0x3f0   : > { %8817 = vmatpush1.bf16.msra.mxu0 %v13095_v50  ;;  %9677 = vmatpush1.bf16.msra.mxu1 %v13098_v58  ;;  %v13185_v50 = vld [vmem:[%s13800_s11 + $0x1fa0] ss:$16 sps:$4 sm:$0xff]   ;;  %v13188_v58 = vld [vmem:[%s13800_s11 + $0x1fa8] ss:$16 sps:$4 sm:$0xff]  }
 0x3f1   : > { %8818 = vmatprep.subr.bf16.mxu0 %v13103_v59  ;;  %9678 = vmatprep.subr.bf16.mxu1 %v13106_v54  ;;  %v13193_v59 = vld [vmem:[%s13800_s11 + $0x1fc4] ss:$16 sps:$4 sm:$0xff]   ;;  %v13196_v54 = vld [vmem:[%s13800_s11 + $0x1fcc] ss:$16 sps:$4 sm:$0xff]  }
 0x3f4   : > { %8819 = vmatpush1.bf16.msra.mxu0 %v13101_v45  ;;  %9679 = vmatpush1.bf16.msra.mxu1 %v13104_v62  ;;  %v13191_v45 = vld [vmem:[%s13800_s11 + $0x1fc0] ss:$16 sps:$4 sm:$0xff]   ;;  %v13194_v62 = vld [vmem:[%s13800_s11 + $0x1fc8] ss:$16 sps:$4 sm:$0xff]  }
 0x3f5   : > { %8831 = vmatprep.subr.bf16.mxu0 %v13109_v63  ;;  %9691 = vmatprep.subr.bf16.mxu1 %v13112_v56  ;;  %v13199_v63 = vld [vmem:[%s13800_s11 + $0x1fe4] ss:$16 sps:$4 sm:$0xff]   ;;  %v13202_v56 = vld [vmem:[%s13800_s11 + $0x1fec] ss:$16 sps:$4 sm:$0xff]  }
 0x3f7   : > { %8821 = vmatmul.mubr.bf16.vlgmr.msra.gmra.mrb[0].mxu0 %v10155_v57  ;;  %9681 = vmatmul.mubr.bf16.vlgmr.msra.gmra.mrb[0].mxu1 %v10155_v57  ;;  %v13197_v57 = vld [vmem:[%s13800_s11 + $0x1fe0] ss:$16 sps:$4 sm:$0xff]  }
 0x3f8   : > { %8832 = vmatpush1.bf16.msra.mxu0 %v13107_v2  ;;  %9692 = vmatpush1.bf16.msra.mxu1 %v13110_v3  ;;  %v13200_v2 = vld [vmem:[%s13800_s11 + $0x1fe8] ss:$16 sps:$4 sm:$0xff]   ;;  %v13205_v3 = vld [vmem:[%s13800_s11 + $0x2004] ss:$16 sps:$4 sm:$0xff]  }
 0x3f9   : > { %8833 = vmatprep.subr.bf16.mxu0 %v13115_v60  ;;  %9693 = vmatprep.subr.bf16.mxu1 %v13118_v61  ;;  %v13208_v60 = vld [vmem:[%s13800_s11 + $0x200c] ss:$16 sps:$4 sm:$0xff]   ;;  %v10157_v61 = vcombine.low %v14973_v0, %v14978_v1  ;;  %v13211_v0 = vld [vmem:[%s13800_s11 + $0x2024] ss:$16 sps:$4 sm:$0xff]  }
 0x3fa   : > { %8863 = vmatprep.mubr.bf16.mxu0 %v10158_v4  ;;  %9723 = vmatprep.mubr.bf16.mxu1 %v10158_v4  ;;  %v15051_v4 = vld [vmem:[%s15387_s0 + $0x80] sm:$0xff]  ;;  %v13214_v1 = vld [vmem:[%s13800_s11 + $0x202c] ss:$16 sps:$4 sm:$0xff]  }
 0x3fc   : > { %8834 = vmatpush1.bf16.msra.mxu0 %v13113_v5  ;;  %9694 = vmatpush1.bf16.msra.mxu1 %v13116_v6  ;;  %v15056_v5 = vld [vmem:[%s15387_s0 + $0x120] sm:$0xff] }
 0x3fd   : > { %8835 = vmatprep.subr.bf16.mxu0 %v13121_v7  ;;  %9695 = vmatprep.subr.bf16.mxu1 %v13124_v8  ;;  %v13203_v6 = vld [vmem:[%s13800_s11 + $0x2000] ss:$16 sps:$4 sm:$0xff]   ;;  %v13206_v7 = vld [vmem:[%s13800_s11 + $0x2008] ss:$16 sps:$4 sm:$0xff]   ;;  %v10160_v8 = vcombine.high %v15051_v4, %v15056_v5 }
 0x400   : > { %8836 = vmatpush1.bf16.msra.mxu0 %v13119_v9  ;;  %9696 = vmatpush1.bf16.msra.mxu1 %v13122_v10  ;;  %v13209_v9 = vld [vmem:[%s13800_s11 + $0x2020] ss:$16 sps:$4 sm:$0xff]   ;;  %v13212_v10 = vld [vmem:[%s13800_s11 + $0x2028] ss:$16 sps:$4 sm:$0xff]  }
 0x401   : > { %8837 = vmatprep.subr.bf16.mxu0 %v13127_v11  ;;  %9697 = vmatprep.subr.bf16.mxu1 %v13130_v12  ;;  %v13217_v11 = vld [vmem:[%s13800_s11 + $0x2044] ss:$16 sps:$4 sm:$0xff]   ;;  %v13220_v12 = vld [vmem:[%s13800_s11 + $0x204c] ss:$16 sps:$4 sm:$0xff]  }
 0x404   : > { %8838 = vmatpush1.bf16.msra.mxu0 %v13125_v13  ;;  %9698 = vmatpush1.bf16.msra.mxu1 %v13128_v16  ;;  %v13215_v13 = vld [vmem:[%s13800_s11 + $0x2040] ss:$16 sps:$4 sm:$0xff]   ;;  %v13218_v16 = vld [vmem:[%s13800_s11 + $0x2048] ss:$16 sps:$4 sm:$0xff]  }
 0x405   : > { %8839 = vmatprep.subr.bf16.mxu0 %v13133_v17  ;;  %9699 = vmatprep.subr.bf16.mxu1 %v13136_v20  ;;  %v13223_v17 = vld [vmem:[%s13800_s11 + $0x2064] ss:$16 sps:$4 sm:$0xff]   ;;  %v13226_v20 = vld [vmem:[%s13800_s11 + $0x206c] ss:$16 sps:$4 sm:$0xff]  }
 0x408   : > { %8840 = vmatpush1.bf16.msra.mxu0 %v13131_v15  ;;  %9700 = vmatpush1.bf16.msra.mxu1 %v13134_v22  ;;  %v13221_v15 = vld [vmem:[%s13800_s11 + $0x2060] ss:$16 sps:$4 sm:$0xff]   ;;  %v13224_v22 = vld [vmem:[%s13800_s11 + $0x2068] ss:$16 sps:$4 sm:$0xff]  }
 0x409   : > { %8841 = vmatprep.subr.bf16.mxu0 %v13139_v23  ;;  %9701 = vmatprep.subr.bf16.mxu1 %v13142_v24  ;;  %v13229_v23 = vld [vmem:[%s13800_s11 + $0x2084] ss:$16 sps:$4 sm:$0xff]   ;;  %v13232_v24 = vld [vmem:[%s13800_s11 + $0x208c] ss:$16 sps:$4 sm:$0xff]  }
 0x40c   : > { %8842 = vmatpush1.bf16.msra.mxu0 %v13137_v19  ;;  %9702 = vmatpush1.bf16.msra.mxu1 %v13140_v26  ;;  %v13227_v19 = vld [vmem:[%s13800_s11 + $0x2080] ss:$16 sps:$4 sm:$0xff]   ;;  %v13230_v26 = vld [vmem:[%s13800_s11 + $0x2088] ss:$16 sps:$4 sm:$0xff]  }
 0x40d   : > { %8843 = vmatprep.subr.bf16.mxu0 %v13145_v27  ;;  %9703 = vmatprep.subr.bf16.mxu1 %v13148_v28  ;;  %v13235_v27 = vld [vmem:[%s13800_s11 + $0x20a4] ss:$16 sps:$4 sm:$0xff]   ;;  %v13238_v28 = vld [vmem:[%s13800_s11 + $0x20ac] ss:$16 sps:$4 sm:$0xff]  }
 0x410   : > { %8844 = vmatpush1.bf16.msra.mxu0 %v13143_v14  ;;  %9704 = vmatpush1.bf16.msra.mxu1 %v13146_v21  ;;  %v13233_v14 = vld [vmem:[%s13800_s11 + $0x20a0] ss:$16 sps:$4 sm:$0xff]   ;;  %v13236_v21 = vld [vmem:[%s13800_s11 + $0x20a8] ss:$16 sps:$4 sm:$0xff]  }
 0x411   : > { %8845 = vmatprep.subr.bf16.mxu0 %v13151_v31  ;;  %9705 = vmatprep.subr.bf16.mxu1 %v13154_v32  ;;  %v13241_v31 = vld [vmem:[%s13800_s11 + $0x20c4] ss:$16 sps:$4 sm:$0xff]   ;;  %v13244_v32 = vld [vmem:[%s13800_s11 + $0x20cc] ss:$16 sps:$4 sm:$0xff]  }
 0x414   : > { %8846 = vmatpush1.bf16.msra.mxu0 %v13149_v25  ;;  %9706 = vmatpush1.bf16.msra.mxu1 %v13152_v18  ;;  %v13239_v25 = vld [vmem:[%s13800_s11 + $0x20c0] ss:$16 sps:$4 sm:$0xff]   ;;  %v13242_v18 = vld [vmem:[%s13800_s11 + $0x20c8] ss:$16 sps:$4 sm:$0xff]  }
 0x415   : > { %8847 = vmatprep.subr.bf16.mxu0 %v13157_v35  ;;  %9707 = vmatprep.subr.bf16.mxu1 %v13160_v36  ;;  %v13247_v35 = vld [vmem:[%s13800_s11 + $0x20e4] ss:$16 sps:$4 sm:$0xff]   ;;  %v13250_v36 = vld [vmem:[%s13800_s11 + $0x20ec] ss:$16 sps:$4 sm:$0xff]  }
 0x418   : > { %8848 = vmatpush1.bf16.msra.mxu0 %v13155_v29  ;;  %9708 = vmatpush1.bf16.msra.mxu1 %v13158_v30  ;;  %v13245_v29 = vld [vmem:[%s13800_s11 + $0x20e0] ss:$16 sps:$4 sm:$0xff]   ;;  %v13248_v30 = vld [vmem:[%s13800_s11 + $0x20e8] ss:$16 sps:$4 sm:$0xff]  }
 0x419   : > { %8849 = vmatprep.subr.bf16.mxu0 %v13163_v39  ;;  %9709 = vmatprep.subr.bf16.mxu1 %v13166_v40  ;;  %v13253_v39 = vld [vmem:[%s13800_s11 + $0x2104] ss:$16 sps:$4 sm:$0xff]   ;;  %v13256_v40 = vld [vmem:[%s13800_s11 + $0x210c] ss:$16 sps:$4 sm:$0xff]  }
 0x41c   : > { %8850 = vmatpush1.bf16.msra.mxu0 %v13161_v33  ;;  %9710 = vmatpush1.bf16.msra.mxu1 %v13164_v34  ;;  %v13251_v33 = vld [vmem:[%s13800_s11 + $0x2100] ss:$16 sps:$4 sm:$0xff]   ;;  %v13254_v34 = vld [vmem:[%s13800_s11 + $0x2108] ss:$16 sps:$4 sm:$0xff]  }
 0x41d   : > { %8851 = vmatprep.subr.bf16.mxu0 %v13169_v43  ;;  %9711 = vmatprep.subr.bf16.mxu1 %v13172_v44  ;;  %v13259_v43 = vld [vmem:[%s13800_s11 + $0x2124] ss:$16 sps:$4 sm:$0xff]   ;;  %v13262_v44 = vld [vmem:[%s13800_s11 + $0x212c] ss:$16 sps:$4 sm:$0xff]  }
 0x420   : > { %8852 = vmatpush1.bf16.msra.mxu0 %v13167_v37  ;;  %9712 = vmatpush1.bf16.msra.mxu1 %v13170_v38  ;;  %v13257_v37 = vld [vmem:[%s13800_s11 + $0x2120] ss:$16 sps:$4 sm:$0xff]   ;;  %v13260_v38 = vld [vmem:[%s13800_s11 + $0x2128] ss:$16 sps:$4 sm:$0xff]  }
 0x421   : > { %8853 = vmatprep.subr.bf16.mxu0 %v13175_v47  ;;  %9713 = vmatprep.subr.bf16.mxu1 %v13178_v48  ;;  %v13265_v47 = vld [vmem:[%s13800_s11 + $0x2144] ss:$16 sps:$4 sm:$0xff]   ;;  %v13268_v48 = vld [vmem:[%s13800_s11 + $0x214c] ss:$16 sps:$4 sm:$0xff]  }
 0x424   : > { %8854 = vmatpush1.bf16.msra.mxu0 %v13173_v41  ;;  %9714 = vmatpush1.bf16.msra.mxu1 %v13176_v42  ;;  %v13263_v41 = vld [vmem:[%s13800_s11 + $0x2140] ss:$16 sps:$4 sm:$0xff]   ;;  %v13266_v42 = vld [vmem:[%s13800_s11 + $0x2148] ss:$16 sps:$4 sm:$0xff]  }
 0x425   : > { %8855 = vmatprep.subr.bf16.mxu0 %v13181_v51  ;;  %9715 = vmatprep.subr.bf16.mxu1 %v13184_v52  ;;  %v13271_v51 = vld [vmem:[%s13800_s11 + $0x2164] ss:$16 sps:$4 sm:$0xff]   ;;  %v13274_v52 = vld [vmem:[%s13800_s11 + $0x216c] ss:$16 sps:$4 sm:$0xff]  }
 0x428   : > { %8856 = vmatpush1.bf16.msra.mxu0 %v13179_v53  ;;  %9716 = vmatpush1.bf16.msra.mxu1 %v13182_v46  ;;  %v13269_v53 = vld [vmem:[%s13800_s11 + $0x2160] ss:$16 sps:$4 sm:$0xff]   ;;  %v13272_v46 = vld [vmem:[%s13800_s11 + $0x2168] ss:$16 sps:$4 sm:$0xff]  }
 0x429   : > { %8857 = vmatprep.subr.bf16.mxu0 %v13187_v55  ;;  %9717 = vmatprep.subr.bf16.mxu1 %v13190_v49  ;;  %v13277_v55 = vld [vmem:[%s13800_s11 + $0x2184] ss:$16 sps:$4 sm:$0xff]   ;;  %v13280_v49 = vld [vmem:[%s13800_s11 + $0x218c] ss:$16 sps:$4 sm:$0xff]  }
 0x42c   : > { %8858 = vmatpush1.bf16.msra.mxu0 %v13185_v50  ;;  %9718 = vmatpush1.bf16.msra.mxu1 %v13188_v58  ;;  %v13275_v50 = vld [vmem:[%s13800_s11 + $0x2180] ss:$16 sps:$4 sm:$0xff]   ;;  %v13278_v58 = vld [vmem:[%s13800_s11 + $0x2188] ss:$16 sps:$4 sm:$0xff]  }
 0x42d   : > { %8859 = vmatprep.subr.bf16.mxu0 %v13193_v59  ;;  %9719 = vmatprep.subr.bf16.mxu1 %v13196_v54  ;;  %v13283_v59 = vld [vmem:[%s13800_s11 + $0x21a4] ss:$16 sps:$4 sm:$0xff]   ;;  %v13286_v54 = vld [vmem:[%s13800_s11 + $0x21ac] ss:$16 sps:$4 sm:$0xff]  }
 0x430   : > { %8860 = vmatpush1.bf16.msra.mxu0 %v13191_v45  ;;  %9720 = vmatpush1.bf16.msra.mxu1 %v13194_v62  ;;  %v13281_v45 = vld [vmem:[%s13800_s11 + $0x21a0] ss:$16 sps:$4 sm:$0xff]   ;;  %v13284_v62 = vld [vmem:[%s13800_s11 + $0x21a8] ss:$16 sps:$4 sm:$0xff]  }
 0x431   : > { %8861 = vmatprep.subr.bf16.mxu0 %v13199_v63  ;;  %9721 = vmatprep.subr.bf16.mxu1 %v13202_v56  ;;  %v13289_v63 = vld [vmem:[%s13800_s11 + $0x21c4] ss:$16 sps:$4 sm:$0xff]   ;;  %v13292_v56 = vld [vmem:[%s13800_s11 + $0x21cc] ss:$16 sps:$4 sm:$0xff]  }
 0x434   : > { %8862 = vmatpush1.bf16.msra.mxu0 %v13197_v57  ;;  %9722 = vmatpush1.bf16.msra.mxu1 %v13200_v2  ;;  %v13287_v57 = vld [vmem:[%s13800_s11 + $0x21c0] ss:$16 sps:$4 sm:$0xff]   ;;  %v13290_v2 = vld [vmem:[%s13800_s11 + $0x21c8] ss:$16 sps:$4 sm:$0xff]  }
 0x435   : > { %8874 = vmatprep.subr.bf16.mxu0 %v13205_v3  ;;  %9734 = vmatprep.subr.bf16.mxu1 %v13208_v60  ;;  %v13295_v3 = vld [vmem:[%s13800_s11 + $0x21e4] ss:$16 sps:$4 sm:$0xff]   ;;  %v13298_v60 = vld [vmem:[%s13800_s11 + $0x21ec] ss:$16 sps:$4 sm:$0xff]  }
 0x437   : > { %8864 = vmatmul.mubr.bf16.vlgmr.msra.gmra.mrb[0].mxu0 %v10157_v61  ;;  %9724 = vmatmul.mubr.bf16.vlgmr.msra.gmra.mrb[0].mxu1 %v10157_v61  ;;  %v13293_v61 = vld [vmem:[%s13800_s11 + $0x21e0] ss:$16 sps:$4 sm:$0xff]  }
 0x438   : > { %8875 = vmatpush1.bf16.msra.mxu0 %v13203_v6  ;;  %9735 = vmatpush1.bf16.msra.mxu1 %v13206_v7  ;;  %v13296_v6 = vld [vmem:[%s13800_s11 + $0x21e8] ss:$16 sps:$4 sm:$0xff]   ;;  %v13301_v7 = vld [vmem:[%s13800_s11 + $0x2204] ss:$16 sps:$4 sm:$0xff]  }
 0x439   : > { %8876 = vmatprep.subr.bf16.mxu0 %v13211_v0  ;;  %9736 = vmatprep.subr.bf16.mxu1 %v13214_v1  ;;  %v13304_v0 = vld [vmem:[%s13800_s11 + $0x220c] ss:$16 sps:$4 sm:$0xff]   ;;  %v10159_v1 = vcombine.low %v15051_v4, %v15056_v5  ;;  %v13307_v4 = vld [vmem:[%s13800_s11 + $0x2224] ss:$16 sps:$4 sm:$0xff]  }
 0x43a   : > { %8906 = vmatprep.mubr.bf16.mxu0 %v10160_v8  ;;  %9766 = vmatprep.mubr.bf16.mxu1 %v10160_v8  ;;  %v15129_v8 = vld [vmem:[%s15387_s0 + $0x88] sm:$0xff] }
 0x43b   : > { %v13310_v5 = vld [vmem:[%s13800_s11 + $0x222c] ss:$16 sps:$4 sm:$0xff]  }
 0x43c   : > { %8877 = vmatpush1.bf16.msra.mxu0 %v13209_v9  ;;  %9737 = vmatpush1.bf16.msra.mxu1 %v13212_v10  ;;  %v15134_v9 = vld [vmem:[%s15387_s0 + $0x128] sm:$0xff]  ;;  %v13299_v10 = vld [vmem:[%s13800_s11 + $0x2200] ss:$16 sps:$4 sm:$0xff]  }
 0x43d   : > { %8878 = vmatprep.subr.bf16.mxu0 %v13217_v11  ;;  %9738 = vmatprep.subr.bf16.mxu1 %v13220_v12  ;;  %v13302_v11 = vld [vmem:[%s13800_s11 + $0x2208] ss:$16 sps:$4 sm:$0xff]   ;;  %v10162_v12 = vcombine.high %v15129_v8, %v15134_v9 }
 0x440   : > { %8879 = vmatpush1.bf16.msra.mxu0 %v13215_v13  ;;  %9739 = vmatpush1.bf16.msra.mxu1 %v13218_v16  ;;  %v13305_v13 = vld [vmem:[%s13800_s11 + $0x2220] ss:$16 sps:$4 sm:$0xff]   ;;  %v13308_v16 = vld [vmem:[%s13800_s11 + $0x2228] ss:$16 sps:$4 sm:$0xff]  }
 0x441   : > { %8880 = vmatprep.subr.bf16.mxu0 %v13223_v17  ;;  %9740 = vmatprep.subr.bf16.mxu1 %v13226_v20  ;;  %v13313_v17 = vld [vmem:[%s13800_s11 + $0x2244] ss:$16 sps:$4 sm:$0xff]   ;;  %v13316_v20 = vld [vmem:[%s13800_s11 + $0x224c] ss:$16 sps:$4 sm:$0xff]  }
 0x444   : > { %8881 = vmatpush1.bf16.msra.mxu0 %v13221_v15  ;;  %9741 = vmatpush1.bf16.msra.mxu1 %v13224_v22  ;;  %v13311_v15 = vld [vmem:[%s13800_s11 + $0x2240] ss:$16 sps:$4 sm:$0xff]   ;;  %v13314_v22 = vld [vmem:[%s13800_s11 + $0x2248] ss:$16 sps:$4 sm:$0xff]  }
 0x445   : > { %8882 = vmatprep.subr.bf16.mxu0 %v13229_v23  ;;  %9742 = vmatprep.subr.bf16.mxu1 %v13232_v24  ;;  %v13319_v23 = vld [vmem:[%s13800_s11 + $0x2264] ss:$16 sps:$4 sm:$0xff]   ;;  %v13322_v24 = vld [vmem:[%s13800_s11 + $0x226c] ss:$16 sps:$4 sm:$0xff]  }
 0x448   : > { %8883 = vmatpush1.bf16.msra.mxu0 %v13227_v19  ;;  %9743 = vmatpush1.bf16.msra.mxu1 %v13230_v26  ;;  %v13317_v19 = vld [vmem:[%s13800_s11 + $0x2260] ss:$16 sps:$4 sm:$0xff]   ;;  %v13320_v26 = vld [vmem:[%s13800_s11 + $0x2268] ss:$16 sps:$4 sm:$0xff]  }
 0x449   : > { %8884 = vmatprep.subr.bf16.mxu0 %v13235_v27  ;;  %9744 = vmatprep.subr.bf16.mxu1 %v13238_v28  ;;  %v13325_v27 = vld [vmem:[%s13800_s11 + $0x2284] ss:$16 sps:$4 sm:$0xff]   ;;  %v13328_v28 = vld [vmem:[%s13800_s11 + $0x228c] ss:$16 sps:$4 sm:$0xff]  }
 0x44c   : > { %8885 = vmatpush1.bf16.msra.mxu0 %v13233_v14  ;;  %9745 = vmatpush1.bf16.msra.mxu1 %v13236_v21  ;;  %v13323_v14 = vld [vmem:[%s13800_s11 + $0x2280] ss:$16 sps:$4 sm:$0xff]   ;;  %v13326_v21 = vld [vmem:[%s13800_s11 + $0x2288] ss:$16 sps:$4 sm:$0xff]  }
 0x44d   : > { %8886 = vmatprep.subr.bf16.mxu0 %v13241_v31  ;;  %9746 = vmatprep.subr.bf16.mxu1 %v13244_v32  ;;  %v13331_v31 = vld [vmem:[%s13800_s11 + $0x22a4] ss:$16 sps:$4 sm:$0xff]   ;;  %v13334_v32 = vld [vmem:[%s13800_s11 + $0x22ac] ss:$16 sps:$4 sm:$0xff]  }
 0x450   : > { %8887 = vmatpush1.bf16.msra.mxu0 %v13239_v25  ;;  %9747 = vmatpush1.bf16.msra.mxu1 %v13242_v18  ;;  %v13329_v25 = vld [vmem:[%s13800_s11 + $0x22a0] ss:$16 sps:$4 sm:$0xff]   ;;  %v13332_v18 = vld [vmem:[%s13800_s11 + $0x22a8] ss:$16 sps:$4 sm:$0xff]  }
 0x451   : > { %8888 = vmatprep.subr.bf16.mxu0 %v13247_v35  ;;  %9748 = vmatprep.subr.bf16.mxu1 %v13250_v36  ;;  %v13337_v35 = vld [vmem:[%s13800_s11 + $0x22c4] ss:$16 sps:$4 sm:$0xff]   ;;  %v13340_v36 = vld [vmem:[%s13800_s11 + $0x22cc] ss:$16 sps:$4 sm:$0xff]  }
 0x454   : > { %8889 = vmatpush1.bf16.msra.mxu0 %v13245_v29  ;;  %9749 = vmatpush1.bf16.msra.mxu1 %v13248_v30  ;;  %v13335_v29 = vld [vmem:[%s13800_s11 + $0x22c0] ss:$16 sps:$4 sm:$0xff]   ;;  %v13338_v30 = vld [vmem:[%s13800_s11 + $0x22c8] ss:$16 sps:$4 sm:$0xff]  }
 0x455   : > { %8890 = vmatprep.subr.bf16.mxu0 %v13253_v39  ;;  %9750 = vmatprep.subr.bf16.mxu1 %v13256_v40  ;;  %v13343_v39 = vld [vmem:[%s13800_s11 + $0x22e4] ss:$16 sps:$4 sm:$0xff]   ;;  %v13346_v40 = vld [vmem:[%s13800_s11 + $0x22ec] ss:$16 sps:$4 sm:$0xff]  }
 0x458   : > { %8891 = vmatpush1.bf16.msra.mxu0 %v13251_v33  ;;  %9751 = vmatpush1.bf16.msra.mxu1 %v13254_v34  ;;  %v13341_v33 = vld [vmem:[%s13800_s11 + $0x22e0] ss:$16 sps:$4 sm:$0xff]   ;;  %v13344_v34 = vld [vmem:[%s13800_s11 + $0x22e8] ss:$16 sps:$4 sm:$0xff]  }
 0x459   : > { %8892 = vmatprep.subr.bf16.mxu0 %v13259_v43  ;;  %9752 = vmatprep.subr.bf16.mxu1 %v13262_v44  ;;  %v13349_v43 = vld [vmem:[%s13800_s11 + $0x2304] ss:$16 sps:$4 sm:$0xff]   ;;  %v13352_v44 = vld [vmem:[%s13800_s11 + $0x230c] ss:$16 sps:$4 sm:$0xff]  }
 0x45c   : > { %8893 = vmatpush1.bf16.msra.mxu0 %v13257_v37  ;;  %9753 = vmatpush1.bf16.msra.mxu1 %v13260_v38  ;;  %v13347_v37 = vld [vmem:[%s13800_s11 + $0x2300] ss:$16 sps:$4 sm:$0xff]   ;;  %v13350_v38 = vld [vmem:[%s13800_s11 + $0x2308] ss:$16 sps:$4 sm:$0xff]  }
 0x45d   : > { %8894 = vmatprep.subr.bf16.mxu0 %v13265_v47  ;;  %9754 = vmatprep.subr.bf16.mxu1 %v13268_v48  ;;  %v13355_v47 = vld [vmem:[%s13800_s11 + $0x2324] ss:$16 sps:$4 sm:$0xff]   ;;  %v13358_v48 = vld [vmem:[%s13800_s11 + $0x232c] ss:$16 sps:$4 sm:$0xff]  }
 0x460   : > { %8895 = vmatpush1.bf16.msra.mxu0 %v13263_v41  ;;  %9755 = vmatpush1.bf16.msra.mxu1 %v13266_v42  ;;  %v13353_v41 = vld [vmem:[%s13800_s11 + $0x2320] ss:$16 sps:$4 sm:$0xff]   ;;  %v13356_v42 = vld [vmem:[%s13800_s11 + $0x2328] ss:$16 sps:$4 sm:$0xff]  }
 0x461   : > { %8896 = vmatprep.subr.bf16.mxu0 %v13271_v51  ;;  %9756 = vmatprep.subr.bf16.mxu1 %v13274_v52  ;;  %v13361_v51 = vld [vmem:[%s13800_s11 + $0x2344] ss:$16 sps:$4 sm:$0xff]   ;;  %v13364_v52 = vld [vmem:[%s13800_s11 + $0x234c] ss:$16 sps:$4 sm:$0xff]  }
 0x464   : > { %8897 = vmatpush1.bf16.msra.mxu0 %v13269_v53  ;;  %9757 = vmatpush1.bf16.msra.mxu1 %v13272_v46  ;;  %v13359_v53 = vld [vmem:[%s13800_s11 + $0x2340] ss:$16 sps:$4 sm:$0xff]   ;;  %v13362_v46 = vld [vmem:[%s13800_s11 + $0x2348] ss:$16 sps:$4 sm:$0xff]  }
 0x465   : > { %8898 = vmatprep.subr.bf16.mxu0 %v13277_v55  ;;  %9758 = vmatprep.subr.bf16.mxu1 %v13280_v49  ;;  %v13367_v55 = vld [vmem:[%s13800_s11 + $0x2364] ss:$16 sps:$4 sm:$0xff]   ;;  %v13370_v49 = vld [vmem:[%s13800_s11 + $0x236c] ss:$16 sps:$4 sm:$0xff]  }
 0x468   : > { %8899 = vmatpush1.bf16.msra.mxu0 %v13275_v50  ;;  %9759 = vmatpush1.bf16.msra.mxu1 %v13278_v58  ;;  %v13365_v50 = vld [vmem:[%s13800_s11 + $0x2360] ss:$16 sps:$4 sm:$0xff]   ;;  %v13368_v58 = vld [vmem:[%s13800_s11 + $0x2368] ss:$16 sps:$4 sm:$0xff]  }
 0x469   : > { %8900 = vmatprep.subr.bf16.mxu0 %v13283_v59  ;;  %9760 = vmatprep.subr.bf16.mxu1 %v13286_v54  ;;  %v13373_v59 = vld [vmem:[%s13800_s11 + $0x2384] ss:$16 sps:$4 sm:$0xff]   ;;  %v13376_v54 = vld [vmem:[%s13800_s11 + $0x238c] ss:$16 sps:$4 sm:$0xff]  }
 0x46c   : > { %8901 = vmatpush1.bf16.msra.mxu0 %v13281_v45  ;;  %9761 = vmatpush1.bf16.msra.mxu1 %v13284_v62  ;;  %v13371_v45 = vld [vmem:[%s13800_s11 + $0x2380] ss:$16 sps:$4 sm:$0xff]   ;;  %v13374_v62 = vld [vmem:[%s13800_s11 + $0x2388] ss:$16 sps:$4 sm:$0xff]  }
 0x46d   : > { %8902 = vmatprep.subr.bf16.mxu0 %v13289_v63  ;;  %9762 = vmatprep.subr.bf16.mxu1 %v13292_v56  ;;  %v13379_v63 = vld [vmem:[%s13800_s11 + $0x23a4] ss:$16 sps:$4 sm:$0xff]   ;;  %v13382_v56 = vld [vmem:[%s13800_s11 + $0x23ac] ss:$16 sps:$4 sm:$0xff]  }
 0x470   : > { %8903 = vmatpush1.bf16.msra.mxu0 %v13287_v57  ;;  %9763 = vmatpush1.bf16.msra.mxu1 %v13290_v2  ;;  %v13377_v57 = vld [vmem:[%s13800_s11 + $0x23a0] ss:$16 sps:$4 sm:$0xff]   ;;  %v13380_v2 = vld [vmem:[%s13800_s11 + $0x23a8] ss:$16 sps:$4 sm:$0xff]  }
 0x471   : > { %8904 = vmatprep.subr.bf16.mxu0 %v13295_v3  ;;  %9764 = vmatprep.subr.bf16.mxu1 %v13298_v60  ;;  %v13385_v3 = vld [vmem:[%s13800_s11 + $0x23c4] ss:$16 sps:$4 sm:$0xff]   ;;  %v13388_v60 = vld [vmem:[%s13800_s11 + $0x23cc] ss:$16 sps:$4 sm:$0xff]  }
 0x474   : > { %8905 = vmatpush1.bf16.msra.mxu0 %v13293_v61  ;;  %9765 = vmatpush1.bf16.msra.mxu1 %v13296_v6  ;;  %v13383_v61 = vld [vmem:[%s13800_s11 + $0x23c0] ss:$16 sps:$4 sm:$0xff]   ;;  %v13386_v6 = vld [vmem:[%s13800_s11 + $0x23c8] ss:$16 sps:$4 sm:$0xff]  }
 0x475   : > { %8917 = vmatprep.subr.bf16.mxu0 %v13301_v7  ;;  %9777 = vmatprep.subr.bf16.mxu1 %v13304_v0  ;;  %v13391_v7 = vld [vmem:[%s13800_s11 + $0x23e4] ss:$16 sps:$4 sm:$0xff]   ;;  %v13394_v0 = vld [vmem:[%s13800_s11 + $0x23ec] ss:$16 sps:$4 sm:$0xff]  }
 0x477   : > { %8907 = vmatmul.mubr.bf16.vlgmr.msra.gmra.mrb[0].mxu0 %v10159_v1  ;;  %9767 = vmatmul.mubr.bf16.vlgmr.msra.gmra.mrb[0].mxu1 %v10159_v1  ;;  %v13389_v1 = vld [vmem:[%s13800_s11 + $0x23e0] ss:$16 sps:$4 sm:$0xff]  }
 0x478   : > { %8918 = vmatpush1.bf16.msra.mxu0 %v13299_v10  ;;  %9778 = vmatpush1.bf16.msra.mxu1 %v13302_v11  ;;  %v13392_v10 = vld [vmem:[%s13800_s11 + $0x23e8] ss:$16 sps:$4 sm:$0xff]   ;;  %v13397_v11 = vld [vmem:[%s13800_s11 + $0x2404] ss:$16 sps:$4 sm:$0xff]  }
 0x479   : > { %8919 = vmatprep.subr.bf16.mxu0 %v13307_v4  ;;  %9779 = vmatprep.subr.bf16.mxu1 %v13310_v5  ;;  %v13400_v4 = vld [vmem:[%s13800_s11 + $0x240c] ss:$16 sps:$4 sm:$0xff]   ;;  %v10161_v5 = vcombine.low %v15129_v8, %v15134_v9  ;;  %v13403_v8 = vld [vmem:[%s13800_s11 + $0x2424] ss:$16 sps:$4 sm:$0xff]  }
 0x47a   : > { %8949 = vmatprep.mubr.bf16.mxu0 %v10162_v12  ;;  %9809 = vmatprep.mubr.bf16.mxu1 %v10162_v12  ;;  %v15207_v12 = vld [vmem:[%s15387_s0 + $0x90] sm:$0xff]  ;;  %v13406_v9 = vld [vmem:[%s13800_s11 + $0x242c] ss:$16 sps:$4 sm:$0xff]  }
 0x47c   : > { %8920 = vmatpush1.bf16.msra.mxu0 %v13305_v13  ;;  %9780 = vmatpush1.bf16.msra.mxu1 %v13308_v16  ;;  %v15212_v13 = vld [vmem:[%s15387_s0 + $0x130] sm:$0xff] }
 0x47d   : > { %8921 = vmatprep.subr.bf16.mxu0 %v13313_v17  ;;  %9781 = vmatprep.subr.bf16.mxu1 %v13316_v20  ;;  %v13395_v16 = vld [vmem:[%s13800_s11 + $0x2400] ss:$16 sps:$4 sm:$0xff]   ;;  %v13398_v17 = vld [vmem:[%s13800_s11 + $0x2408] ss:$16 sps:$4 sm:$0xff]   ;;  %v10164_v20 = vcombine.high %v15207_v12, %v15212_v13 }
 0x480   : > { %8922 = vmatpush1.bf16.msra.mxu0 %v13311_v15  ;;  %9782 = vmatpush1.bf16.msra.mxu1 %v13314_v22  ;;  %v13401_v15 = vld [vmem:[%s13800_s11 + $0x2420] ss:$16 sps:$4 sm:$0xff]   ;;  %v13404_v22 = vld [vmem:[%s13800_s11 + $0x2428] ss:$16 sps:$4 sm:$0xff]  }
 0x481   : > { %8923 = vmatprep.subr.bf16.mxu0 %v13319_v23  ;;  %9783 = vmatprep.subr.bf16.mxu1 %v13322_v24  ;;  %v13409_v23 = vld [vmem:[%s13800_s11 + $0x2444] ss:$16 sps:$4 sm:$0xff]   ;;  %v13412_v24 = vld [vmem:[%s13800_s11 + $0x244c] ss:$16 sps:$4 sm:$0xff]  }
 0x484   : > { %8924 = vmatpush1.bf16.msra.mxu0 %v13317_v19  ;;  %9784 = vmatpush1.bf16.msra.mxu1 %v13320_v26  ;;  %v13407_v19 = vld [vmem:[%s13800_s11 + $0x2440] ss:$16 sps:$4 sm:$0xff]   ;;  %v13410_v26 = vld [vmem:[%s13800_s11 + $0x2448] ss:$16 sps:$4 sm:$0xff]  }
 0x485   : > { %8925 = vmatprep.subr.bf16.mxu0 %v13325_v27  ;;  %9785 = vmatprep.subr.bf16.mxu1 %v13328_v28  ;;  %v13415_v27 = vld [vmem:[%s13800_s11 + $0x2464] ss:$16 sps:$4 sm:$0xff]   ;;  %v13418_v28 = vld [vmem:[%s13800_s11 + $0x246c] ss:$16 sps:$4 sm:$0xff]  }
 0x488   : > { %8926 = vmatpush1.bf16.msra.mxu0 %v13323_v14  ;;  %9786 = vmatpush1.bf16.msra.mxu1 %v13326_v21  ;;  %v13413_v14 = vld [vmem:[%s13800_s11 + $0x2460] ss:$16 sps:$4 sm:$0xff]   ;;  %v13416_v21 = vld [vmem:[%s13800_s11 + $0x2468] ss:$16 sps:$4 sm:$0xff]  }
 0x489   : > { %8927 = vmatprep.subr.bf16.mxu0 %v13331_v31  ;;  %9787 = vmatprep.subr.bf16.mxu1 %v13334_v32  ;;  %v13421_v31 = vld [vmem:[%s13800_s11 + $0x2484] ss:$16 sps:$4 sm:$0xff]   ;;  %v13424_v32 = vld [vmem:[%s13800_s11 + $0x248c] ss:$16 sps:$4 sm:$0xff]  }
 0x48c   : > { %8928 = vmatpush1.bf16.msra.mxu0 %v13329_v25  ;;  %9788 = vmatpush1.bf16.msra.mxu1 %v13332_v18  ;;  %v13419_v25 = vld [vmem:[%s13800_s11 + $0x2480] ss:$16 sps:$4 sm:$0xff]   ;;  %v13422_v18 = vld [vmem:[%s13800_s11 + $0x2488] ss:$16 sps:$4 sm:$0xff]  }
 0x48d   : > { %8929 = vmatprep.subr.bf16.mxu0 %v13337_v35  ;;  %9789 = vmatprep.subr.bf16.mxu1 %v13340_v36  ;;  %v13427_v35 = vld [vmem:[%s13800_s11 + $0x24a4] ss:$16 sps:$4 sm:$0xff]   ;;  %v13430_v36 = vld [vmem:[%s13800_s11 + $0x24ac] ss:$16 sps:$4 sm:$0xff]  }
 0x490   : > { %8930 = vmatpush1.bf16.msra.mxu0 %v13335_v29  ;;  %9790 = vmatpush1.bf16.msra.mxu1 %v13338_v30  ;;  %v13425_v29 = vld [vmem:[%s13800_s11 + $0x24a0] ss:$16 sps:$4 sm:$0xff]   ;;  %v13428_v30 = vld [vmem:[%s13800_s11 + $0x24a8] ss:$16 sps:$4 sm:$0xff]  }
 0x491   : > { %8931 = vmatprep.subr.bf16.mxu0 %v13343_v39  ;;  %9791 = vmatprep.subr.bf16.mxu1 %v13346_v40  ;;  %v13433_v39 = vld [vmem:[%s13800_s11 + $0x24c4] ss:$16 sps:$4 sm:$0xff]   ;;  %v13436_v40 = vld [vmem:[%s13800_s11 + $0x24cc] ss:$16 sps:$4 sm:$0xff]  }
 0x494   : > { %8932 = vmatpush1.bf16.msra.mxu0 %v13341_v33  ;;  %9792 = vmatpush1.bf16.msra.mxu1 %v13344_v34  ;;  %v13431_v33 = vld [vmem:[%s13800_s11 + $0x24c0] ss:$16 sps:$4 sm:$0xff]   ;;  %v13434_v34 = vld [vmem:[%s13800_s11 + $0x24c8] ss:$16 sps:$4 sm:$0xff]  }
 0x495   : > { %8933 = vmatprep.subr.bf16.mxu0 %v13349_v43  ;;  %9793 = vmatprep.subr.bf16.mxu1 %v13352_v44  ;;  %v13439_v43 = vld [vmem:[%s13800_s11 + $0x24e4] ss:$16 sps:$4 sm:$0xff]   ;;  %v13442_v44 = vld [vmem:[%s13800_s11 + $0x24ec] ss:$16 sps:$4 sm:$0xff]  }
 0x498   : > { %8934 = vmatpush1.bf16.msra.mxu0 %v13347_v37  ;;  %9794 = vmatpush1.bf16.msra.mxu1 %v13350_v38  ;;  %v13437_v37 = vld [vmem:[%s13800_s11 + $0x24e0] ss:$16 sps:$4 sm:$0xff]   ;;  %v13440_v38 = vld [vmem:[%s13800_s11 + $0x24e8] ss:$16 sps:$4 sm:$0xff]  }
 0x499   : > { %8935 = vmatprep.subr.bf16.mxu0 %v13355_v47  ;;  %9795 = vmatprep.subr.bf16.mxu1 %v13358_v48  ;;  %v13445_v47 = vld [vmem:[%s13800_s11 + $0x2504] ss:$16 sps:$4 sm:$0xff]   ;;  %v13448_v48 = vld [vmem:[%s13800_s11 + $0x250c] ss:$16 sps:$4 sm:$0xff]  }
 0x49c   : > { %8936 = vmatpush1.bf16.msra.mxu0 %v13353_v41  ;;  %9796 = vmatpush1.bf16.msra.mxu1 %v13356_v42  ;;  %v13443_v41 = vld [vmem:[%s13800_s11 + $0x2500] ss:$16 sps:$4 sm:$0xff]   ;;  %v13446_v42 = vld [vmem:[%s13800_s11 + $0x2508] ss:$16 sps:$4 sm:$0xff]  }
 0x49d   : > { %8937 = vmatprep.subr.bf16.mxu0 %v13361_v51  ;;  %9797 = vmatprep.subr.bf16.mxu1 %v13364_v52  ;;  %v13451_v51 = vld [vmem:[%s13800_s11 + $0x2524] ss:$16 sps:$4 sm:$0xff]   ;;  %v13454_v52 = vld [vmem:[%s13800_s11 + $0x252c] ss:$16 sps:$4 sm:$0xff]  }
 0x4a0   : > { %8938 = vmatpush1.bf16.msra.mxu0 %v13359_v53  ;;  %9798 = vmatpush1.bf16.msra.mxu1 %v13362_v46  ;;  %v13449_v53 = vld [vmem:[%s13800_s11 + $0x2520] ss:$16 sps:$4 sm:$0xff]   ;;  %v13452_v46 = vld [vmem:[%s13800_s11 + $0x2528] ss:$16 sps:$4 sm:$0xff]  }
 0x4a1   : > { %8939 = vmatprep.subr.bf16.mxu0 %v13367_v55  ;;  %9799 = vmatprep.subr.bf16.mxu1 %v13370_v49  ;;  %v13457_v55 = vld [vmem:[%s13800_s11 + $0x2544] ss:$16 sps:$4 sm:$0xff]   ;;  %v13460_v49 = vld [vmem:[%s13800_s11 + $0x254c] ss:$16 sps:$4 sm:$0xff]  }
 0x4a4   : > { %8940 = vmatpush1.bf16.msra.mxu0 %v13365_v50  ;;  %9800 = vmatpush1.bf16.msra.mxu1 %v13368_v58  ;;  %v13455_v50 = vld [vmem:[%s13800_s11 + $0x2540] ss:$16 sps:$4 sm:$0xff]   ;;  %v13458_v58 = vld [vmem:[%s13800_s11 + $0x2548] ss:$16 sps:$4 sm:$0xff]  }
 0x4a5   : > { %8941 = vmatprep.subr.bf16.mxu0 %v13373_v59  ;;  %9801 = vmatprep.subr.bf16.mxu1 %v13376_v54  ;;  %v13463_v59 = vld [vmem:[%s13800_s11 + $0x2564] ss:$16 sps:$4 sm:$0xff]   ;;  %v13466_v54 = vld [vmem:[%s13800_s11 + $0x256c] ss:$16 sps:$4 sm:$0xff]  }
 0x4a8   : > { %8942 = vmatpush1.bf16.msra.mxu0 %v13371_v45  ;;  %9802 = vmatpush1.bf16.msra.mxu1 %v13374_v62  ;;  %v13461_v45 = vld [vmem:[%s13800_s11 + $0x2560] ss:$16 sps:$4 sm:$0xff]   ;;  %v13464_v62 = vld [vmem:[%s13800_s11 + $0x2568] ss:$16 sps:$4 sm:$0xff]  }
 0x4a9   : > { %8943 = vmatprep.subr.bf16.mxu0 %v13379_v63  ;;  %9803 = vmatprep.subr.bf16.mxu1 %v13382_v56  ;;  %v13469_v63 = vld [vmem:[%s13800_s11 + $0x2584] ss:$16 sps:$4 sm:$0xff]   ;;  %v13472_v56 = vld [vmem:[%s13800_s11 + $0x258c] ss:$16 sps:$4 sm:$0xff]  }
 0x4ac   : > { %8944 = vmatpush1.bf16.msra.mxu0 %v13377_v57  ;;  %9804 = vmatpush1.bf16.msra.mxu1 %v13380_v2  ;;  %v13467_v57 = vld [vmem:[%s13800_s11 + $0x2580] ss:$16 sps:$4 sm:$0xff]   ;;  %v13470_v2 = vld [vmem:[%s13800_s11 + $0x2588] ss:$16 sps:$4 sm:$0xff]  }
 0x4ad   : > { %8945 = vmatprep.subr.bf16.mxu0 %v13385_v3  ;;  %9805 = vmatprep.subr.bf16.mxu1 %v13388_v60  ;;  %v13475_v3 = vld [vmem:[%s13800_s11 + $0x25a4] ss:$16 sps:$4 sm:$0xff]   ;;  %v13478_v60 = vld [vmem:[%s13800_s11 + $0x25ac] ss:$16 sps:$4 sm:$0xff]  }
 0x4b0   : > { %8946 = vmatpush1.bf16.msra.mxu0 %v13383_v61  ;;  %9806 = vmatpush1.bf16.msra.mxu1 %v13386_v6  ;;  %v13473_v61 = vld [vmem:[%s13800_s11 + $0x25a0] ss:$16 sps:$4 sm:$0xff]   ;;  %v13476_v6 = vld [vmem:[%s13800_s11 + $0x25a8] ss:$16 sps:$4 sm:$0xff]  }
 0x4b1   : > { %8947 = vmatprep.subr.bf16.mxu0 %v13391_v7  ;;  %9807 = vmatprep.subr.bf16.mxu1 %v13394_v0  ;;  %v13481_v7 = vld [vmem:[%s13800_s11 + $0x25c4] ss:$16 sps:$4 sm:$0xff]   ;;  %v13484_v0 = vld [vmem:[%s13800_s11 + $0x25cc] ss:$16 sps:$4 sm:$0xff]  }
 0x4b4   : > { %8948 = vmatpush1.bf16.msra.mxu0 %v13389_v1  ;;  %9808 = vmatpush1.bf16.msra.mxu1 %v13392_v10  ;;  %v13479_v1 = vld [vmem:[%s13800_s11 + $0x25c0] ss:$16 sps:$4 sm:$0xff]   ;;  %v13482_v10 = vld [vmem:[%s13800_s11 + $0x25c8] ss:$16 sps:$4 sm:$0xff]  }
 0x4b5   : > { %8960 = vmatprep.subr.bf16.mxu0 %v13397_v11  ;;  %9820 = vmatprep.subr.bf16.mxu1 %v13400_v4  ;;  %v13487_v11 = vld [vmem:[%s13800_s11 + $0x25e4] ss:$16 sps:$4 sm:$0xff]   ;;  %v13490_v4 = vld [vmem:[%s13800_s11 + $0x25ec] ss:$16 sps:$4 sm:$0xff]  }
 0x4b7   : > { %8950 = vmatmul.mubr.bf16.vlgmr.msra.gmra.mrb[0].mxu0 %v10161_v5  ;;  %9810 = vmatmul.mubr.bf16.vlgmr.msra.gmra.mrb[0].mxu1 %v10161_v5  ;;  %v13485_v5 = vld [vmem:[%s13800_s11 + $0x25e0] ss:$16 sps:$4 sm:$0xff]  }
 0x4b8   : > { %8961 = vmatpush1.bf16.msra.mxu0 %v13395_v16  ;;  %9821 = vmatpush1.bf16.msra.mxu1 %v13398_v17  ;;  %v13488_v16 = vld [vmem:[%s13800_s11 + $0x25e8] ss:$16 sps:$4 sm:$0xff]   ;;  %v13493_v17 = vld [vmem:[%s13800_s11 + $0x2604] ss:$16 sps:$4 sm:$0xff]  }
 0x4b9   : > { %8962 = vmatprep.subr.bf16.mxu0 %v13403_v8  ;;  %9822 = vmatprep.subr.bf16.mxu1 %v13406_v9  ;;  %v13496_v8 = vld [vmem:[%s13800_s11 + $0x260c] ss:$16 sps:$4 sm:$0xff]   ;;  %v10163_v9 = vcombine.low %v15207_v12, %v15212_v13  ;;  %v13499_v12 = vld [vmem:[%s13800_s11 + $0x2624] ss:$16 sps:$4 sm:$0xff]  }
 0x4ba   : > { %8992 = vmatprep.mubr.bf16.mxu0 %v10164_v20  ;;  %9852 = vmatprep.mubr.bf16.mxu1 %v10164_v20  ;;  %v15285_v20 = vld [vmem:[%s15387_s0 + $0x98] sm:$0xff] }
 0x4bb   : > { %v13502_v13 = vld [vmem:[%s13800_s11 + $0x262c] ss:$16 sps:$4 sm:$0xff]  }
 0x4bc   : > { %8963 = vmatpush1.bf16.msra.mxu0 %v13401_v15  ;;  %9823 = vmatpush1.bf16.msra.mxu1 %v13404_v22  ;;  %v15290_v15 = vld [vmem:[%s15387_s0 + $0x138] sm:$0xff]  ;;  %v13491_v22 = vld [vmem:[%s13800_s11 + $0x2600] ss:$16 sps:$4 sm:$0xff]  }
 0x4bd   : > { %8964 = vmatprep.subr.bf16.mxu0 %v13409_v23  ;;  %9824 = vmatprep.subr.bf16.mxu1 %v13412_v24  ;;  %v13494_v23 = vld [vmem:[%s13800_s11 + $0x2608] ss:$16 sps:$4 sm:$0xff]   ;;  %v10166_v24 = vcombine.high %v15285_v20, %v15290_v15 }
 0x4c0   : > { %8965 = vmatpush1.bf16.msra.mxu0 %v13407_v19  ;;  %9825 = vmatpush1.bf16.msra.mxu1 %v13410_v26  ;;  %v13497_v19 = vld [vmem:[%s13800_s11 + $0x2620] ss:$16 sps:$4 sm:$0xff]   ;;  %v13500_v26 = vld [vmem:[%s13800_s11 + $0x2628] ss:$16 sps:$4 sm:$0xff]  }
 0x4c1   : > { %8966 = vmatprep.subr.bf16.mxu0 %v13415_v27  ;;  %9826 = vmatprep.subr.bf16.mxu1 %v13418_v28  ;;  %v13505_v27 = vld [vmem:[%s13800_s11 + $0x2644] ss:$16 sps:$4 sm:$0xff]   ;;  %v13508_v28 = vld [vmem:[%s13800_s11 + $0x264c] ss:$16 sps:$4 sm:$0xff]  }
 0x4c4   : > { %8967 = vmatpush1.bf16.msra.mxu0 %v13413_v14  ;;  %9827 = vmatpush1.bf16.msra.mxu1 %v13416_v21  ;;  %v13503_v14 = vld [vmem:[%s13800_s11 + $0x2640] ss:$16 sps:$4 sm:$0xff]   ;;  %v13506_v21 = vld [vmem:[%s13800_s11 + $0x2648] ss:$16 sps:$4 sm:$0xff]  }
 0x4c5   : > { %8968 = vmatprep.subr.bf16.mxu0 %v13421_v31  ;;  %9828 = vmatprep.subr.bf16.mxu1 %v13424_v32  ;;  %v13511_v31 = vld [vmem:[%s13800_s11 + $0x2664] ss:$16 sps:$4 sm:$0xff]   ;;  %v13514_v32 = vld [vmem:[%s13800_s11 + $0x266c] ss:$16 sps:$4 sm:$0xff]  }
 0x4c8   : > { %8969 = vmatpush1.bf16.msra.mxu0 %v13419_v25  ;;  %9829 = vmatpush1.bf16.msra.mxu1 %v13422_v18  ;;  %v13509_v25 = vld [vmem:[%s13800_s11 + $0x2660] ss:$16 sps:$4 sm:$0xff]   ;;  %v13512_v18 = vld [vmem:[%s13800_s11 + $0x2668] ss:$16 sps:$4 sm:$0xff]  }
 0x4c9   : > { %8970 = vmatprep.subr.bf16.mxu0 %v13427_v35  ;;  %9830 = vmatprep.subr.bf16.mxu1 %v13430_v36  ;;  %v13517_v35 = vld [vmem:[%s13800_s11 + $0x2684] ss:$16 sps:$4 sm:$0xff]   ;;  %v13520_v36 = vld [vmem:[%s13800_s11 + $0x268c] ss:$16 sps:$4 sm:$0xff]  }
 0x4cc   : > { %8971 = vmatpush1.bf16.msra.mxu0 %v13425_v29  ;;  %9831 = vmatpush1.bf16.msra.mxu1 %v13428_v30  ;;  %v13515_v29 = vld [vmem:[%s13800_s11 + $0x2680] ss:$16 sps:$4 sm:$0xff]   ;;  %v13518_v30 = vld [vmem:[%s13800_s11 + $0x2688] ss:$16 sps:$4 sm:$0xff]  }
 0x4cd   : > { %8972 = vmatprep.subr.bf16.mxu0 %v13433_v39  ;;  %9832 = vmatprep.subr.bf16.mxu1 %v13436_v40  ;;  %v13523_v39 = vld [vmem:[%s13800_s11 + $0x26a4] ss:$16 sps:$4 sm:$0xff]   ;;  %v13526_v40 = vld [vmem:[%s13800_s11 + $0x26ac] ss:$16 sps:$4 sm:$0xff]  }
 0x4d0   : > { %8973 = vmatpush1.bf16.msra.mxu0 %v13431_v33  ;;  %9833 = vmatpush1.bf16.msra.mxu1 %v13434_v34  ;;  %v13521_v33 = vld [vmem:[%s13800_s11 + $0x26a0] ss:$16 sps:$4 sm:$0xff]   ;;  %v13524_v34 = vld [vmem:[%s13800_s11 + $0x26a8] ss:$16 sps:$4 sm:$0xff]  }
 0x4d1   : > { %8974 = vmatprep.subr.bf16.mxu0 %v13439_v43  ;;  %9834 = vmatprep.subr.bf16.mxu1 %v13442_v44  ;;  %v13529_v43 = vld [vmem:[%s13800_s11 + $0x26c4] ss:$16 sps:$4 sm:$0xff]   ;;  %v13532_v44 = vld [vmem:[%s13800_s11 + $0x26cc] ss:$16 sps:$4 sm:$0xff]  }
 0x4d4   : > { %8975 = vmatpush1.bf16.msra.mxu0 %v13437_v37  ;;  %9835 = vmatpush1.bf16.msra.mxu1 %v13440_v38  ;;  %v13527_v37 = vld [vmem:[%s13800_s11 + $0x26c0] ss:$16 sps:$4 sm:$0xff]   ;;  %v13530_v38 = vld [vmem:[%s13800_s11 + $0x26c8] ss:$16 sps:$4 sm:$0xff]  }
 0x4d5   : > { %8976 = vmatprep.subr.bf16.mxu0 %v13445_v47  ;;  %9836 = vmatprep.subr.bf16.mxu1 %v13448_v48  ;;  %v13535_v47 = vld [vmem:[%s13800_s11 + $0x26e4] ss:$16 sps:$4 sm:$0xff]   ;;  %v13538_v48 = vld [vmem:[%s13800_s11 + $0x26ec] ss:$16 sps:$4 sm:$0xff]  }
 0x4d8   : > { %8977 = vmatpush1.bf16.msra.mxu0 %v13443_v41  ;;  %9837 = vmatpush1.bf16.msra.mxu1 %v13446_v42  ;;  %v13533_v41 = vld [vmem:[%s13800_s11 + $0x26e0] ss:$16 sps:$4 sm:$0xff]   ;;  %v13536_v42 = vld [vmem:[%s13800_s11 + $0x26e8] ss:$16 sps:$4 sm:$0xff]  }
 0x4d9   : > { %8978 = vmatprep.subr.bf16.mxu0 %v13451_v51  ;;  %9838 = vmatprep.subr.bf16.mxu1 %v13454_v52  ;;  %v13541_v51 = vld [vmem:[%s13800_s11 + $0x2704] ss:$16 sps:$4 sm:$0xff]   ;;  %v13544_v52 = vld [vmem:[%s13800_s11 + $0x270c] ss:$16 sps:$4 sm:$0xff]  }
 0x4dc   : > { %8979 = vmatpush1.bf16.msra.mxu0 %v13449_v53  ;;  %9839 = vmatpush1.bf16.msra.mxu1 %v13452_v46  ;;  %v13539_v53 = vld [vmem:[%s13800_s11 + $0x2700] ss:$16 sps:$4 sm:$0xff]   ;;  %v13542_v46 = vld [vmem:[%s13800_s11 + $0x2708] ss:$16 sps:$4 sm:$0xff]  }
 0x4dd   : > { %8980 = vmatprep.subr.bf16.mxu0 %v13457_v55  ;;  %9840 = vmatprep.subr.bf16.mxu1 %v13460_v49  ;;  %v13547_v55 = vld [vmem:[%s13800_s11 + $0x2724] ss:$16 sps:$4 sm:$0xff]   ;;  %v13550_v49 = vld [vmem:[%s13800_s11 + $0x272c] ss:$16 sps:$4 sm:$0xff]  }
 0x4e0   : > { %8981 = vmatpush1.bf16.msra.mxu0 %v13455_v50  ;;  %9841 = vmatpush1.bf16.msra.mxu1 %v13458_v58  ;;  %v13545_v50 = vld [vmem:[%s13800_s11 + $0x2720] ss:$16 sps:$4 sm:$0xff]   ;;  %v13548_v58 = vld [vmem:[%s13800_s11 + $0x2728] ss:$16 sps:$4 sm:$0xff]  }
 0x4e1   : > { %8982 = vmatprep.subr.bf16.mxu0 %v13463_v59  ;;  %9842 = vmatprep.subr.bf16.mxu1 %v13466_v54  ;;  %v13553_v59 = vld [vmem:[%s13800_s11 + $0x2744] ss:$16 sps:$4 sm:$0xff]   ;;  %v13556_v54 = vld [vmem:[%s13800_s11 + $0x274c] ss:$16 sps:$4 sm:$0xff]  }
 0x4e4   : > { %8983 = vmatpush1.bf16.msra.mxu0 %v13461_v45  ;;  %9843 = vmatpush1.bf16.msra.mxu1 %v13464_v62  ;;  %v13551_v45 = vld [vmem:[%s13800_s11 + $0x2740] ss:$16 sps:$4 sm:$0xff]   ;;  %v13554_v62 = vld [vmem:[%s13800_s11 + $0x2748] ss:$16 sps:$4 sm:$0xff]  }
 0x4e5   : > { %8984 = vmatprep.subr.bf16.mxu0 %v13469_v63  ;;  %9844 = vmatprep.subr.bf16.mxu1 %v13472_v56  ;;  %v13559_v63 = vld [vmem:[%s13800_s11 + $0x2764] ss:$16 sps:$4 sm:$0xff]   ;;  %v13562_v56 = vld [vmem:[%s13800_s11 + $0x276c] ss:$16 sps:$4 sm:$0xff]  }
 0x4e8   : > { %8985 = vmatpush1.bf16.msra.mxu0 %v13467_v57  ;;  %9845 = vmatpush1.bf16.msra.mxu1 %v13470_v2  ;;  %v13557_v57 = vld [vmem:[%s13800_s11 + $0x2760] ss:$16 sps:$4 sm:$0xff]   ;;  %v13560_v2 = vld [vmem:[%s13800_s11 + $0x2768] ss:$16 sps:$4 sm:$0xff]  }
 0x4e9   : > { %8986 = vmatprep.subr.bf16.mxu0 %v13475_v3  ;;  %9846 = vmatprep.subr.bf16.mxu1 %v13478_v60  ;;  %v13565_v3 = vld [vmem:[%s13800_s11 + $0x2784] ss:$16 sps:$4 sm:$0xff]   ;;  %v13568_v60 = vld [vmem:[%s13800_s11 + $0x278c] ss:$16 sps:$4 sm:$0xff]  }
 0x4ec   : > { %8987 = vmatpush1.bf16.msra.mxu0 %v13473_v61  ;;  %9847 = vmatpush1.bf16.msra.mxu1 %v13476_v6  ;;  %v13563_v61 = vld [vmem:[%s13800_s11 + $0x2780] ss:$16 sps:$4 sm:$0xff]   ;;  %v13566_v6 = vld [vmem:[%s13800_s11 + $0x2788] ss:$16 sps:$4 sm:$0xff]  }
 0x4ed   : > { %8988 = vmatprep.subr.bf16.mxu0 %v13481_v7  ;;  %9848 = vmatprep.subr.bf16.mxu1 %v13484_v0  ;;  %v13571_v7 = vld [vmem:[%s13800_s11 + $0x27a4] ss:$16 sps:$4 sm:$0xff]   ;;  %v13574_v0 = vld [vmem:[%s13800_s11 + $0x27ac] ss:$16 sps:$4 sm:$0xff]  }
 0x4f0   : > { %8989 = vmatpush1.bf16.msra.mxu0 %v13479_v1  ;;  %9849 = vmatpush1.bf16.msra.mxu1 %v13482_v10  ;;  %v13569_v1 = vld [vmem:[%s13800_s11 + $0x27a0] ss:$16 sps:$4 sm:$0xff]   ;;  %v13572_v10 = vld [vmem:[%s13800_s11 + $0x27a8] ss:$16 sps:$4 sm:$0xff]  }
 0x4f1   : > { %8990 = vmatprep.subr.bf16.mxu0 %v13487_v11  ;;  %9850 = vmatprep.subr.bf16.mxu1 %v13490_v4  ;;  %v13577_v11 = vld [vmem:[%s13800_s11 + $0x27c4] ss:$16 sps:$4 sm:$0xff]   ;;  %v13580_v4 = vld [vmem:[%s13800_s11 + $0x27cc] ss:$16 sps:$4 sm:$0xff]  }
 0x4f4   : > { %8991 = vmatpush1.bf16.msra.mxu0 %v13485_v5  ;;  %9851 = vmatpush1.bf16.msra.mxu1 %v13488_v16  ;;  %v13575_v5 = vld [vmem:[%s13800_s11 + $0x27c0] ss:$16 sps:$4 sm:$0xff]   ;;  %v13578_v16 = vld [vmem:[%s13800_s11 + $0x27c8] ss:$16 sps:$4 sm:$0xff]  }
 0x4f5   : > { %9003 = vmatprep.subr.bf16.mxu0 %v13493_v17  ;;  %9863 = vmatprep.subr.bf16.mxu1 %v13496_v8  ;;  %v13583_v17 = vld [vmem:[%s13800_s11 + $0x27e4] ss:$16 sps:$4 sm:$0xff]   ;;  %v13586_v8 = vld [vmem:[%s13800_s11 + $0x27ec] ss:$16 sps:$4 sm:$0xff]  }
 0x4f7   : > { %8993 = vmatmul.mubr.bf16.vlgmr.msra.gmra.mrb[0].mxu0 %v10163_v9  ;;  %9853 = vmatmul.mubr.bf16.vlgmr.msra.gmra.mrb[0].mxu1 %v10163_v9  ;;  %v13581_v9 = vld [vmem:[%s13800_s11 + $0x27e0] ss:$16 sps:$4 sm:$0xff]  }
 0x4f8   : > { %9004 = vmatpush1.bf16.msra.mxu0 %v13491_v22  ;;  %9864 = vmatpush1.bf16.msra.mxu1 %v13494_v23  ;;  %v13584_v22 = vld [vmem:[%s13800_s11 + $0x27e8] ss:$16 sps:$4 sm:$0xff]   ;;  %v10165_v23 = vcombine.low %v15285_v20, %v15290_v15  ;;  %s10125_s11 = sshll.u32 %s13796_s6, 6  ;;  %s11453_s6 = sshll.u32 (%p15396_p9), %s13659_s15, 5 }
 0x4f9   : > { %9005 = vmatprep.subr.bf16.mxu0 %v13499_v12  ;;  %9865 = vmatprep.subr.bf16.mxu1 %v13502_v13  ;;  %v9935_v12 = vlaneseq  ;;  %s231_s10 = scalar_lea.vmem [#allocation4], %s10125_s11  ;;  %s9988_s5 = scalar_lea.vmem (%p15396_p9), %s15390_s3, %s11453_s6 }
 0x4fa   : > { %9035 = vmatprep.mubr.bf16.mxu0 %v10166_v24  ;;  %9895 = vmatprep.mubr.bf16.mxu1 %v10166_v24 }
 0x4fb   : > { %v9936_v13 = vshrl.u32 %v9935_v12, 7 }
 0x4fc   : > { %9006 = vmatpush1.bf16.msra.mxu0 %v13497_v19  ;;  %9866 = vmatpush1.bf16.msra.mxu1 %v13500_v26  ;;  %v9933_v26 = vld [vmem:[%s243_s9] sm:$0xf] }
 0x4fd   : > { %9007 = vmatprep.subr.bf16.mxu0 %v13505_v27  ;;  %9867 = vmatprep.subr.bf16.mxu1 %v13508_v28  ;;  %v9937_v24 = vsub.s32 0, %v9936_v13  ;;  %v9945_v19 = vsub.s32 2, %v9936_v13  ;;  %v9941_v27 = vsub.s32 1, %v9936_v13  ;;  %v9949_v28 = vsub.s32 3, %v9936_v13 }
 0x4ff   : > { %v9938_v20 = vrot.slane %v9933_v26, %v9937_v24  ;;  %v9946_v15 = vrot.slane %v9933_v26, %v9945_v19 }
 0x500   : > { %9008 = vmatpush1.bf16.msra.mxu0 %v13503_v14  ;;  %9868 = vmatpush1.bf16.msra.mxu1 %v13506_v21 }
 0x501   : > { %9009 = vmatprep.subr.bf16.mxu0 %v13511_v31  ;;  %9869 = vmatprep.subr.bf16.mxu1 %v13514_v32  ;;  %v9942_v31 = vrot.slane %v9933_v26, %v9941_v27  ;;  %v9950_v32 = vrot.slane %v9933_v26, %v9949_v28 }
 0x504   : > { %9010 = vmatpush1.bf16.msra.mxu0 %v13509_v25  ;;  %9870 = vmatpush1.bf16.msra.mxu1 %v13512_v18 }
 0x505   : > { %9011 = vmatprep.subr.bf16.mxu0 %v13517_v35  ;;  %9871 = vmatprep.subr.bf16.mxu1 %v13520_v36 }
 0x508   : > { %9012 = vmatpush1.bf16.msra.mxu0 %v13515_v29  ;;  %9872 = vmatpush1.bf16.msra.mxu1 %v13518_v30 }
 0x509   : > { %9013 = vmatprep.subr.bf16.mxu0 %v13523_v39  ;;  %9873 = vmatprep.subr.bf16.mxu1 %v13526_v40 }
 0x50c   : > { %9014 = vmatpush1.bf16.msra.mxu0 %v13521_v33  ;;  %9874 = vmatpush1.bf16.msra.mxu1 %v13524_v34 }
 0x50d   : > { %9015 = vmatprep.subr.bf16.mxu0 %v13529_v43  ;;  %9875 = vmatprep.subr.bf16.mxu1 %v13532_v44 }
 0x510   : > { %9016 = vmatpush1.bf16.msra.mxu0 %v13527_v37  ;;  %9876 = vmatpush1.bf16.msra.mxu1 %v13530_v38 }
 0x511   : > { %9017 = vmatprep.subr.bf16.mxu0 %v13535_v47  ;;  %9877 = vmatprep.subr.bf16.mxu1 %v13538_v48 }
 0x514   : > { %9018 = vmatpush1.bf16.msra.mxu0 %v13533_v41  ;;  %9878 = vmatpush1.bf16.msra.mxu1 %v13536_v42 }
 0x515   : > { %9019 = vmatprep.subr.bf16.mxu0 %v13541_v51  ;;  %9879 = vmatprep.subr.bf16.mxu1 %v13544_v52 }
 0x518   : > { %9020 = vmatpush1.bf16.msra.mxu0 %v13539_v53  ;;  %9880 = vmatpush1.bf16.msra.mxu1 %v13542_v46 }
 0x519   : > { %9021 = vmatprep.subr.bf16.mxu0 %v13547_v55  ;;  %9881 = vmatprep.subr.bf16.mxu1 %v13550_v49 }
 0x51c   : > { %9022 = vmatpush1.bf16.msra.mxu0 %v13545_v50  ;;  %9882 = vmatpush1.bf16.msra.mxu1 %v13548_v58 }
 0x51d   : > { %9023 = vmatprep.subr.bf16.mxu0 %v13553_v59  ;;  %9883 = vmatprep.subr.bf16.mxu1 %v13556_v54 }
 0x520   : > { %9024 = vmatpush1.bf16.msra.mxu0 %v13551_v45  ;;  %9884 = vmatpush1.bf16.msra.mxu1 %v13554_v62 }
 0x521   : > { %9025 = vmatprep.subr.bf16.mxu0 %v13559_v63  ;;  %9885 = vmatprep.subr.bf16.mxu1 %v13562_v56 }
 0x524   : > { %9026 = vmatpush1.bf16.msra.mxu0 %v13557_v57  ;;  %9886 = vmatpush1.bf16.msra.mxu1 %v13560_v2 }
 0x525   : > { %9027 = vmatprep.subr.bf16.mxu0 %v13565_v3  ;;  %9887 = vmatprep.subr.bf16.mxu1 %v13568_v60 }
 0x528   : > { %9028 = vmatpush1.bf16.msra.mxu0 %v13563_v61  ;;  %9888 = vmatpush1.bf16.msra.mxu1 %v13566_v6 }
 0x529   : > { %9029 = vmatprep.subr.bf16.mxu0 %v13571_v7  ;;  %9889 = vmatprep.subr.bf16.mxu1 %v13574_v0 }
 0x52c   : > { %9030 = vmatpush1.bf16.msra.mxu0 %v13569_v1  ;;  %9890 = vmatpush1.bf16.msra.mxu1 %v13572_v10 }
 0x52d   : > { %9031 = vmatprep.subr.bf16.mxu0 %v13577_v11  ;;  %9891 = vmatprep.subr.bf16.mxu1 %v13580_v4 }
 0x530   : > { %9032 = vmatpush1.bf16.msra.mxu0 %v13575_v5  ;;  %9892 = vmatpush1.bf16.msra.mxu1 %v13578_v16 }
 0x531   : > { %9033 = vmatprep.subr.bf16.mxu0 %v13583_v17  ;;  %9893 = vmatprep.subr.bf16.mxu1 %v13586_v8 }
 0x534   : > { %9034 = vmatpush1.bf16.msra.mxu0 %v13581_v9  ;;  %9894 = vmatpush1.bf16.msra.mxu1 %v13584_v22 }
 0x537   : > { %9036 = vmatmul.mubr.bf16.vlgmr.msra.gmra.mrb[0].mxu0 %v10165_v23  ;;  %9896 = vmatmul.mubr.bf16.vlgmr.msra.gmra.mrb[0].mxu1 %v10165_v23 }
 0x60a   : > { %v9037_v14 = vpop.f32.mrb[0].mxu0  ;;  %v9897_v21 = vpop.f32.mrb[0].mxu1 }
 0x60b   : > { %v9039_v25 = vpop.f32.mrb[1].mxu0  ;;  %v9899_v18 = vpop.f32.mrb[1].mxu1  ;;  %v9955_v29 = vadd.f32 %v9938_v20, %v9037_v14  ;;  %v9957_v30 = vadd.f32 %v9946_v15, %v9897_v21 }
 0x60c   : > { %v9041_v35 = vpop.f32.mrb[2].mxu0  ;;  %v9901_v36 = vpop.f32.mrb[2].mxu1  ;;  %v9956_v33 = vadd.f32 %v9942_v31, %v9039_v25  ;;  %v9958_v34 = vadd.f32 %v9950_v32, %v9899_v18  ;;  %9985 = sbr.rel (!%p15396_p9) target bundleno = 1563 (0x61b), region = 48 }
 0x60d   : > { %v9043_v39 = vpop.f32.mrb[3].mxu0  ;;  %v9903_v40 = vpop.f32.mrb[3].mxu1  ;;  %v9963_v43 = vmax.f32 %v9955_v29, 0.0  ;;  %v9965_v44 = vmax.f32 %v9957_v30, 0.0  ;;  %v9959_v37 = vadd.f32 %v9938_v20, %v9041_v35  ;;  %v9961_v38 = vadd.f32 %v9946_v15, %v9901_v36 }
 0x60e   : > { %v9964_v47 = vmax.f32 %v9956_v33, 0.0  ;;  %v9966_v48 = vmax.f32 %v9958_v34, 0.0  ;;  %v9960_v41 = vadd.f32 %v9942_v31, %v9043_v39  ;;  %v9962_v42 = vadd.f32 %v9950_v32, %v9903_v40 }
 0x60f   : > { %9971 = vst [vmem:[%s231_s10] sm:$0xff] %v9963_v43  ;;  %9973 = vst [vmem:[%s231_s10 + $0x10] sm:$0xff] %v9965_v44  ;;  %v9967_v51 = vmax.f32 %v9959_v37, 0.0  ;;  %v9969_v52 = vmax.f32 %v9961_v38, 0.0 }
 0x610   : > { %9972 = vst [vmem:[%s231_s10 + $0x8] sm:$0xff] %v9964_v47  ;;  %9974 = vst [vmem:[%s231_s10 + $0x18] sm:$0xff] %v9966_v48  ;;  %v9968_v53 = vmax.f32 %v9960_v41, 0.0  ;;  %v9970_v46 = vmax.f32 %v9962_v42, 0.0 }
 0x611   : > { %9975 = vst [vmem:[%s231_s10 + $0x20] sm:$0xff] %v9967_v51  ;;  %9977 = vst [vmem:[%s231_s10 + $0x30] sm:$0xff] %v9969_v52 }
 0x612   : > { %9976 = vst [vmem:[%s231_s10 + $0x28] sm:$0xff] %v9968_v53  ;;  %9978 = vst [vmem:[%s231_s10 + $0x38] sm:$0xff] %v9970_v46 }
 0x616   : > { %v10001_v55 = vld [vmem:[%s231_s10] sm:$0xff]  ;;  %v10005_v50 = vld [vmem:[%s231_s10 + $0x10] sm:$0xff] }
 0x617   : > { %v10003_v49 = vld [vmem:[%s231_s10 + $0x8] sm:$0xff]  ;;  %v10007_v58 = vld [vmem:[%s231_s10 + $0x18] sm:$0xff]  ;;  %10002 = vst [vmem:[%s9988_s5] sm:$0xff] %v10001_v55  ;;  %10006 = vst [vmem:[%s9988_s5 + $0x10] sm:$0xff] %v10005_v50 }
 0x618   : > { %v10009_v59 = vld [vmem:[%s231_s10 + $0x20] sm:$0xff]  ;;  %10004 = vst [vmem:[%s9988_s5 + $0x8] sm:$0xff] %v10003_v49  ;;  %10008 = vst [vmem:[%s9988_s5 + $0x18] sm:$0xff] %v10007_v58  ;;  %v10013_v45 = vld [vmem:[%s231_s10 + $0x30] sm:$0xff] }
 0x619   : > { %v10011_v54 = vld [vmem:[%s231_s10 + $0x28] sm:$0xff]  ;;  %10010 = vst [vmem:[%s9988_s5 + $0xa0] sm:$0xff] %v10009_v59  ;;  %v10015_v62 = vld [vmem:[%s231_s10 + $0x38] sm:$0xff]  ;;  %10014 = vst [vmem:[%s9988_s5 + $0xb0] sm:$0xff] %v10013_v45 }
 0x61a   : > { %10012 = vst [vmem:[%s9988_s5 + $0xa8] sm:$0xff] %v10011_v54  ;;  %10016 = vst [vmem:[%s9988_s5 + $0xb8] sm:$0xff] %v10015_v62 }
 0x61b PF: > { %s16_s17 = sadd.s32 1, %s13667_s17   ;;  %s15397_s12 = smov %s13651_s13 }
 0x61c   : > { %p13_p11 = scmp.ge.s32.totalorder %s16_s17, 7   ;;  %s15398_s13 = smov %s13655_s14 }
 0x61d   : > { %s15399_s14 = smov %s13741_s24  ;;  %s15400_s15 = smov %s13663_s16 }
 0x61e   : > { %s15401_s16 = smov %s15403_s19  ;;  %15 = sbr.rel (!%p13_p11) target bundleno = 4 (0x4), region = 109 }
 0x625   :  { %10032 = vsyncpa [#allocation3], 1 }
 0x626   :  { %10034 = vsyncpa [#allocation3 + $0x1], 1 }

</bundles_post_ra>
